<compile_context>
chip_gen: v7x
topology: tpu7x:2x2x1
jax: 0.10.0
libtpu: 0.0.40
codegen_flags: <defaults>
</compile_context>

<pallas_src>
import functools
import math

import numpy as np

import jax
import jax.numpy as jnp
from jax.experimental import pallas as pl
from jax.experimental.pallas import tpu as pltpu


# Fixed tap enumeration shared by mask builder, weight packing and the kernel.
_TAPS = tuple((kd, kh, kw) for kd in range(3) for kh in range(3) for kw in range(3))


# ----------------------------------------------------------------------------
# Host-side constant prep
# ----------------------------------------------------------------------------
def _build_masks(D, H, W):
    """(27, D*H*W) {0,1} f32: validity of tap (kd,kh,kw) at each output voxel."""
    d = np.arange(D)[:, None, None]
    h = np.arange(H)[None, :, None]
    w = np.arange(W)[None, None, :]
    rows = []
    for kd, kh, kw in _TAPS:
        valid = ((d + kd - 1 >= 0) & (d + kd - 1 < D)
                 & (h + kh - 1 >= 0) & (h + kh - 1 < H)
                 & (w + kw - 1 >= 0) & (w + kw - 1 < W))
        rows.append(valid.reshape(-1))
    return np.stack(rows, axis=0).astype(np.float32)


def init_params(channels, key):
    """PyTorch-layout Conv3d params: w_i (Cout, 2C, 3, 3, 3), b_i (Cout,)."""
    cin = 2 * channels
    bound = 1.0 / math.sqrt(cin * 27)
    params = {}
    for i in range(1, 5):
        key, kw, kb = jax.random.split(key, 3)
        params[f"w{i}"] = jax.random.uniform(kw, (channels, cin, 3, 3, 3),
                                             jnp.float32, -bound, bound)
        params[f"b{i}"] = jax.random.uniform(kb, (channels,), jnp.float32,
                                             -bound, bound)
    return params


def pack_params(params, C):
    """Pack PyTorch-layout weights into the 2-D slabs the fused kernel consumes.

    Stage A input stack per tap: [mu2(0:C), mu3(C:2C), f(2C:3C)]  (f de-duped:
      conv1's fs-weights and conv2's fs-weights live in the shared f columns
      but in different output rows, so no conflict).
    Stage B input stack per tap: [c1(0:C), c2(C:2C)]   (== concat3 order)
    Stage C input stack per tap: [mu1(0:C), c3(C:2C)]  (== concat4 order)
    """
    def tapwise(w):  # (C, 2C, 3,3,3) -> (C, 27, 2C), tap order == _TAPS
        return jnp.stack([w[:, :, kd, kh, kw] for kd, kh, kw in _TAPS], axis=1)

    t1 = tapwise(params["w1"])
    t2 = tapwise(params["w2"])
    t3 = tapwise(params["w3"])
    t4 = tapwise(params["w4"])

    # Stage A: (2C, 27*3C) slab.  Rows 0:C = conv1 (c1), rows C:2C = conv2 (c2).
    wA = jnp.zeros((2 * C, 27, 3 * C), jnp.float32)
    wA = wA.at[0:C,       :, 0:C        ].set(t1[:, :, 0:C])       # c1 <- mu2
    wA = wA.at[0:C,       :, 2 * C:3 * C].set(t1[:, :, C:2 * C])   # c1 <- f
    wA = wA.at[C:2 * C,   :, C:2 * C    ].set(t2[:, :, 0:C])       # c2 <- mu3
    wA = wA.at[C:2 * C,   :, 2 * C:3 * C].set(t2[:, :, C:2 * C])   # c2 <- f
    wA = wA.reshape(2 * C, 27 * 3 * C)

    w3 = t3.reshape(C, 27 * 2 * C)               # c3 <- [c1, c2]
    w4 = t4.reshape(C, 27 * 2 * C)               # c4 <- [mu1, c3]

    bA = jnp.concatenate([params["b1"], params["b2"]]).reshape(2 * C, 1)
    b3 = params["b3"].reshape(C, 1)
    b4 = params["b4"].reshape(C, 1)
    return {"wA": wA, "w3": w3, "w4": w4, "bA": bA, "b3": b3, "b4": b4}


def _is_v7x():
    try:
        kind = jax.devices()[0].device_kind.lower().replace(" ", "")
        return ("v7" in kind) or ("tpu7" in kind)
    except Exception:
        return False


# ----------------------------------------------------------------------------
# Fused Pallas kernel: whole forward pass for one lane-slab per grid step.
# ----------------------------------------------------------------------------
def _fused_kernel(pt_ref, ct_ref, f_ref, mask_ref, wA_ref, w3_ref, w4_ref,
                  bA_ref, b3_ref, b4_ref, out_ref, col_ref, *, C, D, H, W):
    L = pt_ref.shape[-1]          # lane width (P or N*P)
    HW = H * W

    def im2col(x):
        """x: (Cs, L) -> tap-major (27*Cs, L) slabs written into col_ref.

        'Same' zero padding is realised by an XLU lane rotation plus the
        precomputed boundary masks: every wrapped / out-of-volume position is
        exactly a masked position, so the result equals a true 3-D zero pad.
        """
        cs = x.shape[0]
        for t, (kd, kh, kw) in enumerate(_TAPS):
            o = (kd - 1) * HW + (kh - 1) * W + (kw - 1)
            if (kd, kh, kw) == (1, 1, 1):
                slab = x                                    # centre tap: valid everywhere
            else:
                shifted = pltpu.roll(x, shift=(-o) % L, axis=1)   # shifted[p] = x[(p+o) % L]
                slab = shifted * mask_ref[t:t + 1, :]
            col_ref[t * cs:(t + 1) * cs, :] = slab
        return 27 * cs

    # Gating products, stacked to (2C, L) so VPU vregs are fully populated.
    mu23 = (jnp.concatenate([pt_ref[...], ct_ref[...]], axis=0)
            * jnp.concatenate([f_ref[...], f_ref[...]], axis=0))   # [mu2; mu3]

    # Stage A: conv1(cat(mu2, f)) and conv2(cat(mu3, f)) as ONE dot over the
    # de-duplicated stack [mu2, mu3, f]  (K = 27*3C).
    rows = im2col(jnp.concatenate([mu23, f_ref[...]], axis=0))     # (3C, L)
    yA = jnp.dot(wA_ref[...], col_ref[0:rows, :],
                 preferred_element_type=jnp.float32) + bA_ref[...]  # (2C, L) = [c1; c2]

    # Stage B: conv3(cat(c1, c2)) -- yA already is that stack.
    rows = im2col(yA)
    c3 = jnp.dot(w3_ref[...], col_ref[0:rows, :],
                 preferred_element_type=jnp.float32) + b3_ref[...]  # (C, L)

    # Stage C: conv4(cat(mu1, c3)); mu1 recomputed from refs (bounds live ranges).
    mu1 = pt_ref[...] * f_ref[...] * ct_ref[...]
    rows = im2col(jnp.concatenate([mu1, c3], axis=0))
    c4 = jnp.dot(w4_ref[...], col_ref[0:rows, :],
                 preferred_element_type=jnp.float32) + b4_ref[...]  # (C, L)

    out_ref[...] = c4.astype(out_ref.dtype)


# ----------------------------------------------------------------------------
# Public forward (PyTorch NCDHW in / NCDHW out)
# ----------------------------------------------------------------------------
def mcmthree_conv_forward(encpt, encct, fs, packed, *, fold_batch=None):
    N, C, D, H, W = encpt.shape
    P = D * H * W
    if fold_batch is None:
        # Single-TC chips (v5e/v6e): fold batch into lanes, one invocation.
        # v7x (2 TCs): keep a parallel batch grid so both cores get work.
        fold_batch = not _is_v7x()

    if fold_batch:
        B, L = 1, N * P
        def prep(x):
            return x.reshape(N, C, P).transpose(1, 0, 2).reshape(1, C, L)
    else:
        B, L = N, P
        def prep(x):
            return x.reshape(N, C, P)

    mask_np = _build_masks(D, H, W)                          # (27, P)
    masks = jnp.asarray(np.tile(mask_np, (1, L // P)))       # (27, L) constant
    # (The cross-batch seam created by the lane fold is safe: any tap whose
    #  flattened offset would cross the seam is out-of-volume, hence masked.)

    kernel = functools.partial(_fused_kernel, C=C, D=D, H=H, W=W)
    vol_spec = pl.BlockSpec((pl.Squeezed(), C, L), lambda n: (n, 0, 0))

    def fixed(shape):
        return pl.BlockSpec(shape, lambda n: (0,) * len(shape))

    out = pl.pallas_call(
        kernel,
        out_shape=jax.ShapeDtypeStruct((B, C, L), encpt.dtype),
        grid=(B,),
        in_specs=[
            vol_spec, vol_spec, vol_spec,                    # pt, ct, f
            fixed((27, L)),                                  # boundary masks
            fixed((2 * C, 27 * 3 * C)),                      # wA
            fixed((C, 27 * 2 * C)),                          # w3
            fixed((C, 27 * 2 * C)),                          # w4
            fixed((2 * C, 1)), fixed((C, 1)), fixed((C, 1)),  # biases
        ],
        out_specs=vol_spec,
        scratch_shapes=[pltpu.VMEM((27 * 3 * C, L), jnp.float32)],  # im2col buffer
        compiler_params=pltpu.CompilerParams(
            dimension_semantics=("parallel",),               # megacore over batch (v7x)
            vmem_limit_bytes=48 * 1024 * 1024),
    )(prep(encpt), prep(encct), prep(fs), masks,
      packed["wA"], packed["w3"], packed["w4"],
      packed["bA"], packed["b3"], packed["b4"])

    if fold_batch:
        out = out.reshape(C, N, P).transpose(1, 0, 2)
    return out.reshape(N, C, D, H, W)


# ----------------------------------------------------------------------------
# Pure-JAX reference (mirrors the PyTorch module exactly, NCDHW / OIDHW)
# ----------------------------------------------------------------------------
def _conv3d_ref(x, w, b):
    out = jax.lax.conv_general_dilated(
        x, w, window_strides=(1, 1, 1),
        padding=((1, 1), (1, 1), (1, 1)),
        dimension_numbers=("NCDHW", "OIDHW", "NCDHW"))
    return out + b.reshape(1, -1, 1, 1, 1)


def forward_ref(encpt, encct, fs, params):
    mu1 = encpt * fs * encct
    mu2 = encpt * fs
    mu3 = encct * fs
    c1 = _conv3d_ref(jnp.concatenate([mu2, fs], axis=1), params["w1"], params["b1"])
    c2 = _conv3d_ref(jnp.concatenate([mu3, fs], axis=1), params["w2"], params["b2"])
    c3 = _conv3d_ref(jnp.concatenate([c1, c2], axis=1), params["w3"], params["b3"])
    c4 = _conv3d_ref(jnp.concatenate([mu1, c3], axis=1), params["w4"], params["b4"])
    return c4
    # Note: nn.Sigmoid is declared in the PyTorch module but never used in
    # forward, so it is intentionally omitted here as well.


if __name__ == "__main__":
    channels = 4
    N, D, H, W = 2, 8, 8, 8

    key = jax.random.PRNGKey(0)
    k1, k2, k3, kp = jax.random.split(key, 4)
    encpt = jax.random.normal(k1, (N, channels, D, H, W), jnp.float32)
    encct = jax.random.normal(k2, (N, channels, D, H, W), jnp.float32)
    fs = jax.random.normal(k3, (N, channels, D, H, W), jnp.float32)

    params = init_params(channels, kp)
    packed = pack_params(params, channels)        # one-time host-side packing

    fwd = jax.jit(mcmthree_conv_forward)
    out = jax.block_until_ready(fwd(encpt, encct, fs, packed))
    assert out.shape == (N, channels, D, H, W), out.shape

    ref = forward_ref(encpt, encct, fs, params)
    max_err = float(jnp.max(jnp.abs(out - ref)))
    assert jnp.allclose(out, ref, rtol=1e-3, atol=1e-3), max_err

    print("KERNEL_OK")
</pallas_src>

<mosaic_0001>
module attributes {stable_mosaic.version = 11 : i64} {
  func.func @_fused_kernel(%arg0: i32, %arg1: memref<1x4x1024xf32, #tpu.memory_space<vmem>>, %arg2: memref<1x4x1024xf32, #tpu.memory_space<vmem>>, %arg3: memref<1x4x1024xf32, #tpu.memory_space<vmem>>, %arg4: memref<27x1024xf32, #tpu.memory_space<vmem>>, %arg5: memref<8x324xf32, #tpu.memory_space<vmem>>, %arg6: memref<4x216xf32, #tpu.memory_space<vmem>>, %arg7: memref<4x216xf32, #tpu.memory_space<vmem>>, %arg8: memref<8x1xf32, #tpu.memory_space<vmem>>, %arg9: memref<4x1xf32, #tpu.memory_space<vmem>>, %arg10: memref<4x1xf32, #tpu.memory_space<vmem>>, %arg11: memref<1x4x1024xf32, #tpu.memory_space<vmem>>, %arg12: memref<324x1024xf32, #tpu.memory_space<vmem>>) attributes {dimension_semantics = [#tpu.dimension_semantics<parallel>], iteration_bounds = array<i64: 1>, scalar_prefetch = 0 : i64, scratch_operands = 1 : i64, tpu.core_type = #tpu.core_type<tc>, window_params = [{transform_indices = @transform_0, window_bounds = array<i64: 1, 4, 1024>}, {transform_indices = @transform_1, window_bounds = array<i64: 1, 4, 1024>}, {transform_indices = @transform_2, window_bounds = array<i64: 1, 4, 1024>}, {pipeline_mode = #tpu.pipeline_mode<synchronous>, transform_indices = @transform_3, window_bounds = array<i64: 27, 1024>}, {pipeline_mode = #tpu.pipeline_mode<synchronous>, transform_indices = @transform_4, window_bounds = array<i64: 8, 324>}, {pipeline_mode = #tpu.pipeline_mode<synchronous>, transform_indices = @transform_5, window_bounds = array<i64: 4, 216>}, {pipeline_mode = #tpu.pipeline_mode<synchronous>, transform_indices = @transform_6, window_bounds = array<i64: 4, 216>}, {pipeline_mode = #tpu.pipeline_mode<synchronous>, transform_indices = @transform_7, window_bounds = array<i64: 8, 1>}, {pipeline_mode = #tpu.pipeline_mode<synchronous>, transform_indices = @transform_8, window_bounds = array<i64: 4, 1>}, {pipeline_mode = #tpu.pipeline_mode<synchronous>, transform_indices = @transform_9, window_bounds = array<i64: 4, 1>}, {transform_indices = @transform_10, window_bounds = array<i64: 1, 4, 1024>}]} {
    %c0 = arith.constant 0 : index
    %c0_0 = arith.constant 0 : index
    %c0_1 = arith.constant 0 : index
    %0 = vector.load %arg1[%c0, %c0_0, %c0_1] : memref<1x4x1024xf32, #tpu.memory_space<vmem>>, vector<1x4x1024xf32>
    %1 = vector.shape_cast %0 : vector<1x4x1024xf32> to vector<4x1024xf32>
    %c0_2 = arith.constant 0 : index
    %c0_3 = arith.constant 0 : index
    %c0_4 = arith.constant 0 : index
    %2 = vector.load %arg2[%c0_2, %c0_3, %c0_4] : memref<1x4x1024xf32, #tpu.memory_space<vmem>>, vector<1x4x1024xf32>
    %3 = vector.shape_cast %2 : vector<1x4x1024xf32> to vector<4x1024xf32>
    %4 = tpu.concatenate %1, %3 in 0 : vector<4x1024xf32>, vector<4x1024xf32> -> vector<8x1024xf32>
    %c0_5 = arith.constant 0 : index
    %c0_6 = arith.constant 0 : index
    %c0_7 = arith.constant 0 : index
    %5 = vector.load %arg3[%c0_5, %c0_6, %c0_7] : memref<1x4x1024xf32, #tpu.memory_space<vmem>>, vector<1x4x1024xf32>
    %6 = vector.shape_cast %5 : vector<1x4x1024xf32> to vector<4x1024xf32>
    %c0_8 = arith.constant 0 : index
    %c0_9 = arith.constant 0 : index
    %c0_10 = arith.constant 0 : index
    %7 = vector.load %arg3[%c0_8, %c0_9, %c0_10] : memref<1x4x1024xf32, #tpu.memory_space<vmem>>, vector<1x4x1024xf32>
    %8 = vector.shape_cast %7 : vector<1x4x1024xf32> to vector<4x1024xf32>
    %9 = tpu.concatenate %6, %8 in 0 : vector<4x1024xf32>, vector<4x1024xf32> -> vector<8x1024xf32>
    %10 = arith.mulf %4, %9 : vector<8x1024xf32>
    %c0_11 = arith.constant 0 : index
    %c0_12 = arith.constant 0 : index
    %c0_13 = arith.constant 0 : index
    %11 = vector.load %arg3[%c0_11, %c0_12, %c0_13] : memref<1x4x1024xf32, #tpu.memory_space<vmem>>, vector<1x4x1024xf32>
    %12 = vector.shape_cast %11 : vector<1x4x1024xf32> to vector<4x1024xf32>
    %13 = tpu.concatenate %10, %12 in 0 : vector<8x1024xf32>, vector<4x1024xf32> -> vector<12x1024xf32>
    %c73_i32 = arith.constant 73 : i32
    %14 = tpu.dynamic_rotate %13 by %c73_i32 dim 1 : vector<12x1024xf32>, i32 -> vector<12x1024xf32>
    %c0_14 = arith.constant 0 : index
    %c0_15 = arith.constant 0 : index
    %15 = vector.load %arg4[%c0_14, %c0_15] : memref<27x1024xf32, #tpu.memory_space<vmem>>, vector<1x1024xf32>
    %16 = vector.broadcast %15 : vector<1x1024xf32> to vector<12x1024xf32>
    %17 = arith.mulf %14, %16 : vector<12x1024xf32>
    %c0_16 = arith.constant 0 : index
    %c0_17 = arith.constant 0 : index
    %18 = vector.load %arg12[%c0_16, %c0_17] : memref<324x1024xf32, #tpu.memory_space<vmem>>, vector<12x1024xf32>
    tpu.vector_store %arg12[%c0_16, %c0_17], %17 {strides = array<i32>} : memref<324x1024xf32, #tpu.memory_space<vmem>>, vector<12x1024xf32>,
    %c72_i32 = arith.constant 72 : i32
    %19 = tpu.dynamic_rotate %13 by %c72_i32 dim 1 : vector<12x1024xf32>, i32 -> vector<12x1024xf32>
    %c1 = arith.constant 1 : index
    %c0_18 = arith.constant 0 : index
    %20 = vector.load %arg4[%c1, %c0_18] : memref<27x1024xf32, #tpu.memory_space<vmem>>, vector<1x1024xf32>
    %21 = vector.broadcast %20 : vector<1x1024xf32> to vector<12x1024xf32>
    %22 = arith.mulf %19, %21 : vector<12x1024xf32>
    %c12 = arith.constant 12 : index
    %c0_19 = arith.constant 0 : index
    %23 = vector.load %arg12[%c12, %c0_19] : memref<324x1024xf32, #tpu.memory_space<vmem>>, vector<12x1024xf32>
    tpu.vector_store %arg12[%c12, %c0_19], %22 {strides = array<i32>} : memref<324x1024xf32, #tpu.memory_space<vmem>>, vector<12x1024xf32>,
    %c71_i32 = arith.constant 71 : i32
    %24 = tpu.dynamic_rotate %13 by %c71_i32 dim 1 : vector<12x1024xf32>, i32 -> vector<12x1024xf32>
    %c2 = arith.constant 2 : index
    %c0_20 = arith.constant 0 : index
    %25 = vector.load %arg4[%c2, %c0_20] : memref<27x1024xf32, #tpu.memory_space<vmem>>, vector<1x1024xf32>
    %26 = vector.broadcast %25 : vector<1x1024xf32> to vector<12x1024xf32>
    %27 = arith.mulf %24, %26 : vector<12x1024xf32>
    %c24 = arith.constant 24 : index
    %c0_21 = arith.constant 0 : index
    %28 = vector.load %arg12[%c24, %c0_21] : memref<324x1024xf32, #tpu.memory_space<vmem>>, vector<12x1024xf32>
    tpu.vector_store %arg12[%c24, %c0_21], %27 {strides = array<i32>} : memref<324x1024xf32, #tpu.memory_space<vmem>>, vector<12x1024xf32>,
    %c65_i32 = arith.constant 65 : i32
    %29 = tpu.dynamic_rotate %13 by %c65_i32 dim 1 : vector<12x1024xf32>, i32 -> vector<12x1024xf32>
    %c3 = arith.constant 3 : index
    %c0_22 = arith.constant 0 : index
    %30 = vector.load %arg4[%c3, %c0_22] : memref<27x1024xf32, #tpu.memory_space<vmem>>, vector<1x1024xf32>
    %31 = vector.broadcast %30 : vector<1x1024xf32> to vector<12x1024xf32>
    %32 = arith.mulf %29, %31 : vector<12x1024xf32>
    %c36 = arith.constant 36 : index
    %c0_23 = arith.constant 0 : index
    %33 = vector.load %arg12[%c36, %c0_23] : memref<324x1024xf32, #tpu.memory_space<vmem>>, vector<12x1024xf32>
    tpu.vector_store %arg12[%c36, %c0_23], %32 {strides = array<i32>} : memref<324x1024xf32, #tpu.memory_space<vmem>>, vector<12x1024xf32>,
    %c64_i32 = arith.constant 64 : i32
    %34 = tpu.dynamic_rotate %13 by %c64_i32 dim 1 : vector<12x1024xf32>, i32 -> vector<12x1024xf32>
    %c4 = arith.constant 4 : index
    %c0_24 = arith.constant 0 : index
    %35 = vector.load %arg4[%c4, %c0_24] : memref<27x1024xf32, #tpu.memory_space<vmem>>, vector<1x1024xf32>
    %36 = vector.broadcast %35 : vector<1x1024xf32> to vector<12x1024xf32>
    %37 = arith.mulf %34, %36 : vector<12x1024xf32>
    %c48 = arith.constant 48 : index
    %c0_25 = arith.constant 0 : index
    %38 = vector.load %arg12[%c48, %c0_25] : memref<324x1024xf32, #tpu.memory_space<vmem>>, vector<12x1024xf32>
    tpu.vector_store %arg12[%c48, %c0_25], %37 {strides = array<i32>} : memref<324x1024xf32, #tpu.memory_space<vmem>>, vector<12x1024xf32>,
    %c63_i32 = arith.constant 63 : i32
    %39 = tpu.dynamic_rotate %13 by %c63_i32 dim 1 : vector<12x1024xf32>, i32 -> vector<12x1024xf32>
    %c5 = arith.constant 5 : index
    %c0_26 = arith.constant 0 : index
    %40 = vector.load %arg4[%c5, %c0_26] : memref<27x1024xf32, #tpu.memory_space<vmem>>, vector<1x1024xf32>
    %41 = vector.broadcast %40 : vector<1x1024xf32> to vector<12x1024xf32>
    %42 = arith.mulf %39, %41 : vector<12x1024xf32>
    %c60 = arith.constant 60 : index
    %c0_27 = arith.constant 0 : index
    %43 = vector.load %arg12[%c60, %c0_27] : memref<324x1024xf32, #tpu.memory_space<vmem>>, vector<12x1024xf32>
    tpu.vector_store %arg12[%c60, %c0_27], %42 {strides = array<i32>} : memref<324x1024xf32, #tpu.memory_space<vmem>>, vector<12x1024xf32>,
    %c57_i32 = arith.constant 57 : i32
    %44 = tpu.dynamic_rotate %13 by %c57_i32 dim 1 : vector<12x1024xf32>, i32 -> vector<12x1024xf32>
    %c6 = arith.constant 6 : index
    %c0_28 = arith.constant 0 : index
    %45 = vector.load %arg4[%c6, %c0_28] : memref<27x1024xf32, #tpu.memory_space<vmem>>, vector<1x1024xf32>
    %46 = vector.broadcast %45 : vector<1x1024xf32> to vector<12x1024xf32>
    %47 = arith.mulf %44, %46 : vector<12x1024xf32>
    %c72 = arith.constant 72 : index
    %c0_29 = arith.constant 0 : index
    %48 = vector.load %arg12[%c72, %c0_29] : memref<324x1024xf32, #tpu.memory_space<vmem>>, vector<12x1024xf32>
    tpu.vector_store %arg12[%c72, %c0_29], %47 {strides = array<i32>} : memref<324x1024xf32, #tpu.memory_space<vmem>>, vector<12x1024xf32>,
    %c56_i32 = arith.constant 56 : i32
    %49 = tpu.dynamic_rotate %13 by %c56_i32 dim 1 : vector<12x1024xf32>, i32 -> vector<12x1024xf32>
    %c7 = arith.constant 7 : index
    %c0_30 = arith.constant 0 : index
    %50 = vector.load %arg4[%c7, %c0_30] : memref<27x1024xf32, #tpu.memory_space<vmem>>, vector<1x1024xf32>
    %51 = vector.broadcast %50 : vector<1x1024xf32> to vector<12x1024xf32>
    %52 = arith.mulf %49, %51 : vector<12x1024xf32>
    %c84 = arith.constant 84 : index
    %c0_31 = arith.constant 0 : index
    %53 = vector.load %arg12[%c84, %c0_31] : memref<324x1024xf32, #tpu.memory_space<vmem>>, vector<12x1024xf32>
    tpu.vector_store %arg12[%c84, %c0_31], %52 {strides = array<i32>} : memref<324x1024xf32, #tpu.memory_space<vmem>>, vector<12x1024xf32>,
    %c55_i32 = arith.constant 55 : i32
    %54 = tpu.dynamic_rotate %13 by %c55_i32 dim 1 : vector<12x1024xf32>, i32 -> vector<12x1024xf32>
    %c8 = arith.constant 8 : index
    %c0_32 = arith.constant 0 : index
    %55 = vector.load %arg4[%c8, %c0_32] : memref<27x1024xf32, #tpu.memory_space<vmem>>, vector<1x1024xf32>
    %56 = vector.broadcast %55 : vector<1x1024xf32> to vector<12x1024xf32>
    %57 = arith.mulf %54, %56 : vector<12x1024xf32>
    %c96 = arith.constant 96 : index
    %c0_33 = arith.constant 0 : index
    %58 = vector.load %arg12[%c96, %c0_33] : memref<324x1024xf32, #tpu.memory_space<vmem>>, vector<12x1024xf32>
    tpu.vector_store %arg12[%c96, %c0_33], %57 {strides = array<i32>} : memref<324x1024xf32, #tpu.memory_space<vmem>>, vector<12x1024xf32>,
    %c9_i32 = arith.constant 9 : i32
    %59 = tpu.dynamic_rotate %13 by %c9_i32 dim 1 : vector<12x1024xf32>, i32 -> vector<12x1024xf32>
    %c9 = arith.constant 9 : index
    %c0_34 = arith.constant 0 : index
    %60 = vector.load %arg4[%c9, %c0_34] : memref<27x1024xf32, #tpu.memory_space<vmem>>, vector<1x1024xf32>
    %61 = vector.broadcast %60 : vector<1x1024xf32> to vector<12x1024xf32>
    %62 = arith.mulf %59, %61 : vector<12x1024xf32>
    %c108 = arith.constant 108 : index
    %c0_35 = arith.constant 0 : index
    %63 = vector.load %arg12[%c108, %c0_35] : memref<324x1024xf32, #tpu.memory_space<vmem>>, vector<12x1024xf32>
    tpu.vector_store %arg12[%c108, %c0_35], %62 {strides = array<i32>} : memref<324x1024xf32, #tpu.memory_space<vmem>>, vector<12x1024xf32>,
    %c8_i32 = arith.constant 8 : i32
    %64 = tpu.dynamic_rotate %13 by %c8_i32 dim 1 : vector<12x1024xf32>, i32 -> vector<12x1024xf32>
    %c10 = arith.constant 10 : index
    %c0_36 = arith.constant 0 : index
    %65 = vector.load %arg4[%c10, %c0_36] : memref<27x1024xf32, #tpu.memory_space<vmem>>, vector<1x1024xf32>
    %66 = vector.broadcast %65 : vector<1x1024xf32> to vector<12x1024xf32>
    %67 = arith.mulf %64, %66 : vector<12x1024xf32>
    %c120 = arith.constant 120 : index
    %c0_37 = arith.constant 0 : index
    %68 = vector.load %arg12[%c120, %c0_37] : memref<324x1024xf32, #tpu.memory_space<vmem>>, vector<12x1024xf32>
    tpu.vector_store %arg12[%c120, %c0_37], %67 {strides = array<i32>} : memref<324x1024xf32, #tpu.memory_space<vmem>>, vector<12x1024xf32>,
    %c7_i32 = arith.constant 7 : i32
    %69 = tpu.dynamic_rotate %13 by %c7_i32 dim 1 : vector<12x1024xf32>, i32 -> vector<12x1024xf32>
    %c11 = arith.constant 11 : index
    %c0_38 = arith.constant 0 : index
    %70 = vector.load %arg4[%c11, %c0_38] : memref<27x1024xf32, #tpu.memory_space<vmem>>, vector<1x1024xf32>
    %71 = vector.broadcast %70 : vector<1x1024xf32> to vector<12x1024xf32>
    %72 = arith.mulf %69, %71 : vector<12x1024xf32>
    %c132 = arith.constant 132 : index
    %c0_39 = arith.constant 0 : index
    %73 = vector.load %arg12[%c132, %c0_39] : memref<324x1024xf32, #tpu.memory_space<vmem>>, vector<12x1024xf32>
    tpu.vector_store %arg12[%c132, %c0_39], %72 {strides = array<i32>} : memref<324x1024xf32, #tpu.memory_space<vmem>>, vector<12x1024xf32>,
    %c1_i32 = arith.constant 1 : i32
    %74 = tpu.dynamic_rotate %13 by %c1_i32 dim 1 : vector<12x1024xf32>, i32 -> vector<12x1024xf32>
    %c12_40 = arith.constant 12 : index
    %c0_41 = arith.constant 0 : index
    %75 = vector.load %arg4[%c12_40, %c0_41] : memref<27x1024xf32, #tpu.memory_space<vmem>>, vector<1x1024xf32>
    %76 = vector.broadcast %75 : vector<1x1024xf32> to vector<12x1024xf32>
    %77 = arith.mulf %74, %76 : vector<12x1024xf32>
    %c144 = arith.constant 144 : index
    %c0_42 = arith.constant 0 : index
    %78 = vector.load %arg12[%c144, %c0_42] : memref<324x1024xf32, #tpu.memory_space<vmem>>, vector<12x1024xf32>
    tpu.vector_store %arg12[%c144, %c0_42], %77 {strides = array<i32>} : memref<324x1024xf32, #tpu.memory_space<vmem>>, vector<12x1024xf32>,
    %c156 = arith.constant 156 : index
    %c0_43 = arith.constant 0 : index
    %79 = vector.load %arg12[%c156, %c0_43] : memref<324x1024xf32, #tpu.memory_space<vmem>>, vector<12x1024xf32>
    tpu.vector_store %arg12[%c156, %c0_43], %13 {strides = array<i32>} : memref<324x1024xf32, #tpu.memory_space<vmem>>, vector<12x1024xf32>,
    %c1023_i32 = arith.constant 1023 : i32
    %80 = tpu.dynamic_rotate %13 by %c1023_i32 dim 1 : vector<12x1024xf32>, i32 -> vector<12x1024xf32>
    %c14 = arith.constant 14 : index
    %c0_44 = arith.constant 0 : index
    %81 = vector.load %arg4[%c14, %c0_44] : memref<27x1024xf32, #tpu.memory_space<vmem>>, vector<1x1024xf32>
    %82 = vector.broadcast %81 : vector<1x1024xf32> to vector<12x1024xf32>
    %83 = arith.mulf %80, %82 : vector<12x1024xf32>
    %c168 = arith.constant 168 : index
    %c0_45 = arith.constant 0 : index
    %84 = vector.load %arg12[%c168, %c0_45] : memref<324x1024xf32, #tpu.memory_space<vmem>>, vector<12x1024xf32>
    tpu.vector_store %arg12[%c168, %c0_45], %83 {strides = array<i32>} : memref<324x1024xf32, #tpu.memory_space<vmem>>, vector<12x1024xf32>,
    %c1017_i32 = arith.constant 1017 : i32
    %85 = tpu.dynamic_rotate %13 by %c1017_i32 dim 1 : vector<12x1024xf32>, i32 -> vector<12x1024xf32>
    %c15 = arith.constant 15 : index
    %c0_46 = arith.constant 0 : index
    %86 = vector.load %arg4[%c15, %c0_46] : memref<27x1024xf32, #tpu.memory_space<vmem>>, vector<1x1024xf32>
    %87 = vector.broadcast %86 : vector<1x1024xf32> to vector<12x1024xf32>
    %88 = arith.mulf %85, %87 : vector<12x1024xf32>
    %c180 = arith.constant 180 : index
    %c0_47 = arith.constant 0 : index
    %89 = vector.load %arg12[%c180, %c0_47] : memref<324x1024xf32, #tpu.memory_space<vmem>>, vector<12x1024xf32>
    tpu.vector_store %arg12[%c180, %c0_47], %88 {strides = array<i32>} : memref<324x1024xf32, #tpu.memory_space<vmem>>, vector<12x1024xf32>,
    %c1016_i32 = arith.constant 1016 : i32
    %90 = tpu.dynamic_rotate %13 by %c1016_i32 dim 1 : vector<12x1024xf32>, i32 -> vector<12x1024xf32>
    %c16 = arith.constant 16 : index
    %c0_48 = arith.constant 0 : index
    %91 = vector.load %arg4[%c16, %c0_48] : memref<27x1024xf32, #tpu.memory_space<vmem>>, vector<1x1024xf32>
    %92 = vector.broadcast %91 : vector<1x1024xf32> to vector<12x1024xf32>
    %93 = arith.mulf %90, %92 : vector<12x1024xf32>
    %c192 = arith.constant 192 : index
    %c0_49 = arith.constant 0 : index
    %94 = vector.load %arg12[%c192, %c0_49] : memref<324x1024xf32, #tpu.memory_space<vmem>>, vector<12x1024xf32>
    tpu.vector_store %arg12[%c192, %c0_49], %93 {strides = array<i32>} : memref<324x1024xf32, #tpu.memory_space<vmem>>, vector<12x1024xf32>,
    %c1015_i32 = arith.constant 1015 : i32
    %95 = tpu.dynamic_rotate %13 by %c1015_i32 dim 1 : vector<12x1024xf32>, i32 -> vector<12x1024xf32>
    %c17 = arith.constant 17 : index
    %c0_50 = arith.constant 0 : index
    %96 = vector.load %arg4[%c17, %c0_50] : memref<27x1024xf32, #tpu.memory_space<vmem>>, vector<1x1024xf32>
    %97 = vector.broadcast %96 : vector<1x1024xf32> to vector<12x1024xf32>
    %98 = arith.mulf %95, %97 : vector<12x1024xf32>
    %c204 = arith.constant 204 : index
    %c0_51 = arith.constant 0 : index
    %99 = vector.load %arg12[%c204, %c0_51] : memref<324x1024xf32, #tpu.memory_space<vmem>>, vector<12x1024xf32>
    tpu.vector_store %arg12[%c204, %c0_51], %98 {strides = array<i32>} : memref<324x1024xf32, #tpu.memory_space<vmem>>, vector<12x1024xf32>,
    %c969_i32 = arith.constant 969 : i32
    %100 = tpu.dynamic_rotate %13 by %c969_i32 dim 1 : vector<12x1024xf32>, i32 -> vector<12x1024xf32>
    %c18 = arith.constant 18 : index
    %c0_52 = arith.constant 0 : index
    %101 = vector.load %arg4[%c18, %c0_52] : memref<27x1024xf32, #tpu.memory_space<vmem>>, vector<1x1024xf32>
    %102 = vector.broadcast %101 : vector<1x1024xf32> to vector<12x1024xf32>
    %103 = arith.mulf %100, %102 : vector<12x1024xf32>
    %c216 = arith.constant 216 : index
    %c0_53 = arith.constant 0 : index
    %104 = vector.load %arg12[%c216, %c0_53] : memref<324x1024xf32, #tpu.memory_space<vmem>>, vector<12x1024xf32>
    tpu.vector_store %arg12[%c216, %c0_53], %103 {strides = array<i32>} : memref<324x1024xf32, #tpu.memory_space<vmem>>, vector<12x1024xf32>,
    %c968_i32 = arith.constant 968 : i32
    %105 = tpu.dynamic_rotate %13 by %c968_i32 dim 1 : vector<12x1024xf32>, i32 -> vector<12x1024xf32>
    %c19 = arith.constant 19 : index
    %c0_54 = arith.constant 0 : index
    %106 = vector.load %arg4[%c19, %c0_54] : memref<27x1024xf32, #tpu.memory_space<vmem>>, vector<1x1024xf32>
    %107 = vector.broadcast %106 : vector<1x1024xf32> to vector<12x1024xf32>
    %108 = arith.mulf %105, %107 : vector<12x1024xf32>
    %c228 = arith.constant 228 : index
    %c0_55 = arith.constant 0 : index
    %109 = vector.load %arg12[%c228, %c0_55] : memref<324x1024xf32, #tpu.memory_space<vmem>>, vector<12x1024xf32>
    tpu.vector_store %arg12[%c228, %c0_55], %108 {strides = array<i32>} : memref<324x1024xf32, #tpu.memory_space<vmem>>, vector<12x1024xf32>,
    %c967_i32 = arith.constant 967 : i32
    %110 = tpu.dynamic_rotate %13 by %c967_i32 dim 1 : vector<12x1024xf32>, i32 -> vector<12x1024xf32>
    %c20 = arith.constant 20 : index
    %c0_56 = arith.constant 0 : index
    %111 = vector.load %arg4[%c20, %c0_56] : memref<27x1024xf32, #tpu.memory_space<vmem>>, vector<1x1024xf32>
    %112 = vector.broadcast %111 : vector<1x1024xf32> to vector<12x1024xf32>
    %113 = arith.mulf %110, %112 : vector<12x1024xf32>
    %c240 = arith.constant 240 : index
    %c0_57 = arith.constant 0 : index
    %114 = vector.load %arg12[%c240, %c0_57] : memref<324x1024xf32, #tpu.memory_space<vmem>>, vector<12x1024xf32>
    tpu.vector_store %arg12[%c240, %c0_57], %113 {strides = array<i32>} : memref<324x1024xf32, #tpu.memory_space<vmem>>, vector<12x1024xf32>,
    %c961_i32 = arith.constant 961 : i32
    %115 = tpu.dynamic_rotate %13 by %c961_i32 dim 1 : vector<12x1024xf32>, i32 -> vector<12x1024xf32>
    %c21 = arith.constant 21 : index
    %c0_58 = arith.constant 0 : index
    %116 = vector.load %arg4[%c21, %c0_58] : memref<27x1024xf32, #tpu.memory_space<vmem>>, vector<1x1024xf32>
    %117 = vector.broadcast %116 : vector<1x1024xf32> to vector<12x1024xf32>
    %118 = arith.mulf %115, %117 : vector<12x1024xf32>
    %c252 = arith.constant 252 : index
    %c0_59 = arith.constant 0 : index
    %119 = vector.load %arg12[%c252, %c0_59] : memref<324x1024xf32, #tpu.memory_space<vmem>>, vector<12x1024xf32>
    tpu.vector_store %arg12[%c252, %c0_59], %118 {strides = array<i32>} : memref<324x1024xf32, #tpu.memory_space<vmem>>, vector<12x1024xf32>,
    %c960_i32 = arith.constant 960 : i32
    %120 = tpu.dynamic_rotate %13 by %c960_i32 dim 1 : vector<12x1024xf32>, i32 -> vector<12x1024xf32>
    %c22 = arith.constant 22 : index
    %c0_60 = arith.constant 0 : index
    %121 = vector.load %arg4[%c22, %c0_60] : memref<27x1024xf32, #tpu.memory_space<vmem>>, vector<1x1024xf32>
    %122 = vector.broadcast %121 : vector<1x1024xf32> to vector<12x1024xf32>
    %123 = arith.mulf %120, %122 : vector<12x1024xf32>
    %c264 = arith.constant 264 : index
    %c0_61 = arith.constant 0 : index
    %124 = vector.load %arg12[%c264, %c0_61] : memref<324x1024xf32, #tpu.memory_space<vmem>>, vector<12x1024xf32>
    tpu.vector_store %arg12[%c264, %c0_61], %123 {strides = array<i32>} : memref<324x1024xf32, #tpu.memory_space<vmem>>, vector<12x1024xf32>,
    %c959_i32 = arith.constant 959 : i32
    %125 = tpu.dynamic_rotate %13 by %c959_i32 dim 1 : vector<12x1024xf32>, i32 -> vector<12x1024xf32>
    %c23 = arith.constant 23 : index
    %c0_62 = arith.constant 0 : index
    %126 = vector.load %arg4[%c23, %c0_62] : memref<27x1024xf32, #tpu.memory_space<vmem>>, vector<1x1024xf32>
    %127 = vector.broadcast %126 : vector<1x1024xf32> to vector<12x1024xf32>
    %128 = arith.mulf %125, %127 : vector<12x1024xf32>
    %c276 = arith.constant 276 : index
    %c0_63 = arith.constant 0 : index
    %129 = vector.load %arg12[%c276, %c0_63] : memref<324x1024xf32, #tpu.memory_space<vmem>>, vector<12x1024xf32>
    tpu.vector_store %arg12[%c276, %c0_63], %128 {strides = array<i32>} : memref<324x1024xf32, #tpu.memory_space<vmem>>, vector<12x1024xf32>,
    %c953_i32 = arith.constant 953 : i32
    %130 = tpu.dynamic_rotate %13 by %c953_i32 dim 1 : vector<12x1024xf32>, i32 -> vector<12x1024xf32>
    %c24_64 = arith.constant 24 : index
    %c0_65 = arith.constant 0 : index
    %131 = vector.load %arg4[%c24_64, %c0_65] : memref<27x1024xf32, #tpu.memory_space<vmem>>, vector<1x1024xf32>
    %132 = vector.broadcast %131 : vector<1x1024xf32> to vector<12x1024xf32>
    %133 = arith.mulf %130, %132 : vector<12x1024xf32>
    %c288 = arith.constant 288 : index
    %c0_66 = arith.constant 0 : index
    %134 = vector.load %arg12[%c288, %c0_66] : memref<324x1024xf32, #tpu.memory_space<vmem>>, vector<12x1024xf32>
    tpu.vector_store %arg12[%c288, %c0_66], %133 {strides = array<i32>} : memref<324x1024xf32, #tpu.memory_space<vmem>>, vector<12x1024xf32>,
    %c952_i32 = arith.constant 952 : i32
    %135 = tpu.dynamic_rotate %13 by %c952_i32 dim 1 : vector<12x1024xf32>, i32 -> vector<12x1024xf32>
    %c25 = arith.constant 25 : index
    %c0_67 = arith.constant 0 : index
    %136 = vector.load %arg4[%c25, %c0_67] : memref<27x1024xf32, #tpu.memory_space<vmem>>, vector<1x1024xf32>
    %137 = vector.broadcast %136 : vector<1x1024xf32> to vector<12x1024xf32>
    %138 = arith.mulf %135, %137 : vector<12x1024xf32>
    %c300 = arith.constant 300 : index
    %c0_68 = arith.constant 0 : index
    %139 = vector.load %arg12[%c300, %c0_68] : memref<324x1024xf32, #tpu.memory_space<vmem>>, vector<12x1024xf32>
    tpu.vector_store %arg12[%c300, %c0_68], %138 {strides = array<i32>} : memref<324x1024xf32, #tpu.memory_space<vmem>>, vector<12x1024xf32>,
    %c951_i32 = arith.constant 951 : i32
    %140 = tpu.dynamic_rotate %13 by %c951_i32 dim 1 : vector<12x1024xf32>, i32 -> vector<12x1024xf32>
    %c26 = arith.constant 26 : index
    %c0_69 = arith.constant 0 : index
    %141 = vector.load %arg4[%c26, %c0_69] : memref<27x1024xf32, #tpu.memory_space<vmem>>, vector<1x1024xf32>
    %142 = vector.broadcast %141 : vector<1x1024xf32> to vector<12x1024xf32>
    %143 = arith.mulf %140, %142 : vector<12x1024xf32>
    %c312 = arith.constant 312 : index
    %c0_70 = arith.constant 0 : index
    %144 = vector.load %arg12[%c312, %c0_70] : memref<324x1024xf32, #tpu.memory_space<vmem>>, vector<12x1024xf32>
    tpu.vector_store %arg12[%c312, %c0_70], %143 {strides = array<i32>} : memref<324x1024xf32, #tpu.memory_space<vmem>>, vector<12x1024xf32>,
    %c0_71 = arith.constant 0 : index
    %c0_72 = arith.constant 0 : index
    %145 = vector.load %arg5[%c0_71, %c0_72] : memref<8x324xf32, #tpu.memory_space<vmem>>, vector<8x324xf32>
    %c0_73 = arith.constant 0 : index
    %c0_74 = arith.constant 0 : index
    %146 = vector.load %arg12[%c0_73, %c0_74] : memref<324x1024xf32, #tpu.memory_space<vmem>>, vector<324x1024xf32>
    %cst = arith.constant dense<0.000000e+00> : vector<8x1024xf32>
    %147 = tpu.matmul %145, %146, %cst {dimension_numbers = #tpu.dot_dimension_numbers<[1], [0], [0], [1], [0, 0, 1, 1], [], []>} : vector<8x324xf32>, vector<324x1024xf32>, vector<8x1024xf32> -> vector<8x1024xf32>
    %c0_75 = arith.constant 0 : index
    %c0_76 = arith.constant 0 : index
    %148 = vector.load %arg8[%c0_75, %c0_76] : memref<8x1xf32, #tpu.memory_space<vmem>>, vector<8x1xf32>
    %149 = vector.broadcast %148 : vector<8x1xf32> to vector<8x1024xf32>
    %150 = arith.addf %147, %149 : vector<8x1024xf32>
    %c73_i32_77 = arith.constant 73 : i32
    %151 = tpu.dynamic_rotate %150 by %c73_i32_77 dim 1 : vector<8x1024xf32>, i32 -> vector<8x1024xf32>
    %c0_78 = arith.constant 0 : index
    %c0_79 = arith.constant 0 : index
    %152 = vector.load %arg4[%c0_78, %c0_79] : memref<27x1024xf32, #tpu.memory_space<vmem>>, vector<1x1024xf32>
    %153 = vector.broadcast %152 : vector<1x1024xf32> to vector<8x1024xf32>
    %154 = arith.mulf %151, %153 : vector<8x1024xf32>
    %c0_80 = arith.constant 0 : index
    %c0_81 = arith.constant 0 : index
    %155 = vector.load %arg12[%c0_80, %c0_81] : memref<324x1024xf32, #tpu.memory_space<vmem>>, vector<8x1024xf32>
    tpu.vector_store %arg12[%c0_80, %c0_81], %154 {strides = array<i32>} : memref<324x1024xf32, #tpu.memory_space<vmem>>, vector<8x1024xf32>,
    %c72_i32_82 = arith.constant 72 : i32
    %156 = tpu.dynamic_rotate %150 by %c72_i32_82 dim 1 : vector<8x1024xf32>, i32 -> vector<8x1024xf32>
    %c1_83 = arith.constant 1 : index
    %c0_84 = arith.constant 0 : index
    %157 = vector.load %arg4[%c1_83, %c0_84] : memref<27x1024xf32, #tpu.memory_space<vmem>>, vector<1x1024xf32>
    %158 = vector.broadcast %157 : vector<1x1024xf32> to vector<8x1024xf32>
    %159 = arith.mulf %156, %158 : vector<8x1024xf32>
    %c8_85 = arith.constant 8 : index
    %c0_86 = arith.constant 0 : index
    %160 = vector.load %arg12[%c8_85, %c0_86] : memref<324x1024xf32, #tpu.memory_space<vmem>>, vector<8x1024xf32>
    tpu.vector_store %arg12[%c8_85, %c0_86], %159 {strides = array<i32>} : memref<324x1024xf32, #tpu.memory_space<vmem>>, vector<8x1024xf32>,
    %c71_i32_87 = arith.constant 71 : i32
    %161 = tpu.dynamic_rotate %150 by %c71_i32_87 dim 1 : vector<8x1024xf32>, i32 -> vector<8x1024xf32>
    %c2_88 = arith.constant 2 : index
    %c0_89 = arith.constant 0 : index
    %162 = vector.load %arg4[%c2_88, %c0_89] : memref<27x1024xf32, #tpu.memory_space<vmem>>, vector<1x1024xf32>
    %163 = vector.broadcast %162 : vector<1x1024xf32> to vector<8x1024xf32>
    %164 = arith.mulf %161, %163 : vector<8x1024xf32>
    %c16_90 = arith.constant 16 : index
    %c0_91 = arith.constant 0 : index
    %165 = vector.load %arg12[%c16_90, %c0_91] : memref<324x1024xf32, #tpu.memory_space<vmem>>, vector<8x1024xf32>
    tpu.vector_store %arg12[%c16_90, %c0_91], %164 {strides = array<i32>} : memref<324x1024xf32, #tpu.memory_space<vmem>>, vector<8x1024xf32>,
    %c65_i32_92 = arith.constant 65 : i32
    %166 = tpu.dynamic_rotate %150 by %c65_i32_92 dim 1 : vector<8x1024xf32>, i32 -> vector<8x1024xf32>
    %c3_93 = arith.constant 3 : index
    %c0_94 = arith.constant 0 : index
    %167 = vector.load %arg4[%c3_93, %c0_94] : memref<27x1024xf32, #tpu.memory_space<vmem>>, vector<1x1024xf32>
    %168 = vector.broadcast %167 : vector<1x1024xf32> to vector<8x1024xf32>
    %169 = arith.mulf %166, %168 : vector<8x1024xf32>
    %c24_95 = arith.constant 24 : index
    %c0_96 = arith.constant 0 : index
    %170 = vector.load %arg12[%c24_95, %c0_96] : memref<324x1024xf32, #tpu.memory_space<vmem>>, vector<8x1024xf32>
    tpu.vector_store %arg12[%c24_95, %c0_96], %169 {strides = array<i32>} : memref<324x1024xf32, #tpu.memory_space<vmem>>, vector<8x1024xf32>,
    %c64_i32_97 = arith.constant 64 : i32
    %171 = tpu.dynamic_rotate %150 by %c64_i32_97 dim 1 : vector<8x1024xf32>, i32 -> vector<8x1024xf32>
    %c4_98 = arith.constant 4 : index
    %c0_99 = arith.constant 0 : index
    %172 = vector.load %arg4[%c4_98, %c0_99] : memref<27x1024xf32, #tpu.memory_space<vmem>>, vector<1x1024xf32>
    %173 = vector.broadcast %172 : vector<1x1024xf32> to vector<8x1024xf32>
    %174 = arith.mulf %171, %173 : vector<8x1024xf32>
    %c32 = arith.constant 32 : index
    %c0_100 = arith.constant 0 : index
    %175 = vector.load %arg12[%c32, %c0_100] : memref<324x1024xf32, #tpu.memory_space<vmem>>, vector<8x1024xf32>
    tpu.vector_store %arg12[%c32, %c0_100], %174 {strides = array<i32>} : memref<324x1024xf32, #tpu.memory_space<vmem>>, vector<8x1024xf32>,
    %c63_i32_101 = arith.constant 63 : i32
    %176 = tpu.dynamic_rotate %150 by %c63_i32_101 dim 1 : vector<8x1024xf32>, i32 -> vector<8x1024xf32>
    %c5_102 = arith.constant 5 : index
    %c0_103 = arith.constant 0 : index
    %177 = vector.load %arg4[%c5_102, %c0_103] : memref<27x1024xf32, #tpu.memory_space<vmem>>, vector<1x1024xf32>
    %178 = vector.broadcast %177 : vector<1x1024xf32> to vector<8x1024xf32>
    %179 = arith.mulf %176, %178 : vector<8x1024xf32>
    %c40 = arith.constant 40 : index
    %c0_104 = arith.constant 0 : index
    %180 = vector.load %arg12[%c40, %c0_104] : memref<324x1024xf32, #tpu.memory_space<vmem>>, vector<8x1024xf32>
    tpu.vector_store %arg12[%c40, %c0_104], %179 {strides = array<i32>} : memref<324x1024xf32, #tpu.memory_space<vmem>>, vector<8x1024xf32>,
    %c57_i32_105 = arith.constant 57 : i32
    %181 = tpu.dynamic_rotate %150 by %c57_i32_105 dim 1 : vector<8x1024xf32>, i32 -> vector<8x1024xf32>
    %c6_106 = arith.constant 6 : index
    %c0_107 = arith.constant 0 : index
    %182 = vector.load %arg4[%c6_106, %c0_107] : memref<27x1024xf32, #tpu.memory_space<vmem>>, vector<1x1024xf32>
    %183 = vector.broadcast %182 : vector<1x1024xf32> to vector<8x1024xf32>
    %184 = arith.mulf %181, %183 : vector<8x1024xf32>
    %c48_108 = arith.constant 48 : index
    %c0_109 = arith.constant 0 : index
    %185 = vector.load %arg12[%c48_108, %c0_109] : memref<324x1024xf32, #tpu.memory_space<vmem>>, vector<8x1024xf32>
    tpu.vector_store %arg12[%c48_108, %c0_109], %184 {strides = array<i32>} : memref<324x1024xf32, #tpu.memory_space<vmem>>, vector<8x1024xf32>,
    %c56_i32_110 = arith.constant 56 : i32
    %186 = tpu.dynamic_rotate %150 by %c56_i32_110 dim 1 : vector<8x1024xf32>, i32 -> vector<8x1024xf32>
    %c7_111 = arith.constant 7 : index
    %c0_112 = arith.constant 0 : index
    %187 = vector.load %arg4[%c7_111, %c0_112] : memref<27x1024xf32, #tpu.memory_space<vmem>>, vector<1x1024xf32>
    %188 = vector.broadcast %187 : vector<1x1024xf32> to vector<8x1024xf32>
    %189 = arith.mulf %186, %188 : vector<8x1024xf32>
    %c56 = arith.constant 56 : index
    %c0_113 = arith.constant 0 : index
    %190 = vector.load %arg12[%c56, %c0_113] : memref<324x1024xf32, #tpu.memory_space<vmem>>, vector<8x1024xf32>
    tpu.vector_store %arg12[%c56, %c0_113], %189 {strides = array<i32>} : memref<324x1024xf32, #tpu.memory_space<vmem>>, vector<8x1024xf32>,
    %c55_i32_114 = arith.constant 55 : i32
    %191 = tpu.dynamic_rotate %150 by %c55_i32_114 dim 1 : vector<8x1024xf32>, i32 -> vector<8x1024xf32>
    %c8_115 = arith.constant 8 : index
    %c0_116 = arith.constant 0 : index
    %192 = vector.load %arg4[%c8_115, %c0_116] : memref<27x1024xf32, #tpu.memory_space<vmem>>, vector<1x1024xf32>
    %193 = vector.broadcast %192 : vector<1x1024xf32> to vector<8x1024xf32>
    %194 = arith.mulf %191, %193 : vector<8x1024xf32>
    %c64 = arith.constant 64 : index
    %c0_117 = arith.constant 0 : index
    %195 = vector.load %arg12[%c64, %c0_117] : memref<324x1024xf32, #tpu.memory_space<vmem>>, vector<8x1024xf32>
    tpu.vector_store %arg12[%c64, %c0_117], %194 {strides = array<i32>} : memref<324x1024xf32, #tpu.memory_space<vmem>>, vector<8x1024xf32>,
    %c9_i32_118 = arith.constant 9 : i32
    %196 = tpu.dynamic_rotate %150 by %c9_i32_118 dim 1 : vector<8x1024xf32>, i32 -> vector<8x1024xf32>
    %c9_119 = arith.constant 9 : index
    %c0_120 = arith.constant 0 : index
    %197 = vector.load %arg4[%c9_119, %c0_120] : memref<27x1024xf32, #tpu.memory_space<vmem>>, vector<1x1024xf32>
    %198 = vector.broadcast %197 : vector<1x1024xf32> to vector<8x1024xf32>
    %199 = arith.mulf %196, %198 : vector<8x1024xf32>
    %c72_121 = arith.constant 72 : index
    %c0_122 = arith.constant 0 : index
    %200 = vector.load %arg12[%c72_121, %c0_122] : memref<324x1024xf32, #tpu.memory_space<vmem>>, vector<8x1024xf32>
    tpu.vector_store %arg12[%c72_121, %c0_122], %199 {strides = array<i32>} : memref<324x1024xf32, #tpu.memory_space<vmem>>, vector<8x1024xf32>,
    %c8_i32_123 = arith.constant 8 : i32
    %201 = tpu.dynamic_rotate %150 by %c8_i32_123 dim 1 : vector<8x1024xf32>, i32 -> vector<8x1024xf32>
    %c10_124 = arith.constant 10 : index
    %c0_125 = arith.constant 0 : index
    %202 = vector.load %arg4[%c10_124, %c0_125] : memref<27x1024xf32, #tpu.memory_space<vmem>>, vector<1x1024xf32>
    %203 = vector.broadcast %202 : vector<1x1024xf32> to vector<8x1024xf32>
    %204 = arith.mulf %201, %203 : vector<8x1024xf32>
    %c80 = arith.constant 80 : index
    %c0_126 = arith.constant 0 : index
    %205 = vector.load %arg12[%c80, %c0_126] : memref<324x1024xf32, #tpu.memory_space<vmem>>, vector<8x1024xf32>
    tpu.vector_store %arg12[%c80, %c0_126], %204 {strides = array<i32>} : memref<324x1024xf32, #tpu.memory_space<vmem>>, vector<8x1024xf32>,
    %c7_i32_127 = arith.constant 7 : i32
    %206 = tpu.dynamic_rotate %150 by %c7_i32_127 dim 1 : vector<8x1024xf32>, i32 -> vector<8x1024xf32>
    %c11_128 = arith.constant 11 : index
    %c0_129 = arith.constant 0 : index
    %207 = vector.load %arg4[%c11_128, %c0_129] : memref<27x1024xf32, #tpu.memory_space<vmem>>, vector<1x1024xf32>
    %208 = vector.broadcast %207 : vector<1x1024xf32> to vector<8x1024xf32>
    %209 = arith.mulf %206, %208 : vector<8x1024xf32>
    %c88 = arith.constant 88 : index
    %c0_130 = arith.constant 0 : index
    %210 = vector.load %arg12[%c88, %c0_130] : memref<324x1024xf32, #tpu.memory_space<vmem>>, vector<8x1024xf32>
    tpu.vector_store %arg12[%c88, %c0_130], %209 {strides = array<i32>} : memref<324x1024xf32, #tpu.memory_space<vmem>>, vector<8x1024xf32>,
    %c1_i32_131 = arith.constant 1 : i32
    %211 = tpu.dynamic_rotate %150 by %c1_i32_131 dim 1 : vector<8x1024xf32>, i32 -> vector<8x1024xf32>
    %c12_132 = arith.constant 12 : index
    %c0_133 = arith.constant 0 : index
    %212 = vector.load %arg4[%c12_132, %c0_133] : memref<27x1024xf32, #tpu.memory_space<vmem>>, vector<1x1024xf32>
    %213 = vector.broadcast %212 : vector<1x1024xf32> to vector<8x1024xf32>
    %214 = arith.mulf %211, %213 : vector<8x1024xf32>
    %c96_134 = arith.constant 96 : index
    %c0_135 = arith.constant 0 : index
    %215 = vector.load %arg12[%c96_134, %c0_135] : memref<324x1024xf32, #tpu.memory_space<vmem>>, vector<8x1024xf32>
    tpu.vector_store %arg12[%c96_134, %c0_135], %214 {strides = array<i32>} : memref<324x1024xf32, #tpu.memory_space<vmem>>, vector<8x1024xf32>,
    %c104 = arith.constant 104 : index
    %c0_136 = arith.constant 0 : index
    %216 = vector.load %arg12[%c104, %c0_136] : memref<324x1024xf32, #tpu.memory_space<vmem>>, vector<8x1024xf32>
    tpu.vector_store %arg12[%c104, %c0_136], %150 {strides = array<i32>} : memref<324x1024xf32, #tpu.memory_space<vmem>>, vector<8x1024xf32>,
    %c1023_i32_137 = arith.constant 1023 : i32
    %217 = tpu.dynamic_rotate %150 by %c1023_i32_137 dim 1 : vector<8x1024xf32>, i32 -> vector<8x1024xf32>
    %c14_138 = arith.constant 14 : index
    %c0_139 = arith.constant 0 : index
    %218 = vector.load %arg4[%c14_138, %c0_139] : memref<27x1024xf32, #tpu.memory_space<vmem>>, vector<1x1024xf32>
    %219 = vector.broadcast %218 : vector<1x1024xf32> to vector<8x1024xf32>
    %220 = arith.mulf %217, %219 : vector<8x1024xf32>
    %c112 = arith.constant 112 : index
    %c0_140 = arith.constant 0 : index
    %221 = vector.load %arg12[%c112, %c0_140] : memref<324x1024xf32, #tpu.memory_space<vmem>>, vector<8x1024xf32>
    tpu.vector_store %arg12[%c112, %c0_140], %220 {strides = array<i32>} : memref<324x1024xf32, #tpu.memory_space<vmem>>, vector<8x1024xf32>,
    %c1017_i32_141 = arith.constant 1017 : i32
    %222 = tpu.dynamic_rotate %150 by %c1017_i32_141 dim 1 : vector<8x1024xf32>, i32 -> vector<8x1024xf32>
    %c15_142 = arith.constant 15 : index
    %c0_143 = arith.constant 0 : index
    %223 = vector.load %arg4[%c15_142, %c0_143] : memref<27x1024xf32, #tpu.memory_space<vmem>>, vector<1x1024xf32>
    %224 = vector.broadcast %223 : vector<1x1024xf32> to vector<8x1024xf32>
    %225 = arith.mulf %222, %224 : vector<8x1024xf32>
    %c120_144 = arith.constant 120 : index
    %c0_145 = arith.constant 0 : index
    %226 = vector.load %arg12[%c120_144, %c0_145] : memref<324x1024xf32, #tpu.memory_space<vmem>>, vector<8x1024xf32>
    tpu.vector_store %arg12[%c120_144, %c0_145], %225 {strides = array<i32>} : memref<324x1024xf32, #tpu.memory_space<vmem>>, vector<8x1024xf32>,
    %c1016_i32_146 = arith.constant 1016 : i32
    %227 = tpu.dynamic_rotate %150 by %c1016_i32_146 dim 1 : vector<8x1024xf32>, i32 -> vector<8x1024xf32>
    %c16_147 = arith.constant 16 : index
    %c0_148 = arith.constant 0 : index
    %228 = vector.load %arg4[%c16_147, %c0_148] : memref<27x1024xf32, #tpu.memory_space<vmem>>, vector<1x1024xf32>
    %229 = vector.broadcast %228 : vector<1x1024xf32> to vector<8x1024xf32>
    %230 = arith.mulf %227, %229 : vector<8x1024xf32>
    %c128 = arith.constant 128 : index
    %c0_149 = arith.constant 0 : index
    %231 = vector.load %arg12[%c128, %c0_149] : memref<324x1024xf32, #tpu.memory_space<vmem>>, vector<8x1024xf32>
    tpu.vector_store %arg12[%c128, %c0_149], %230 {strides = array<i32>} : memref<324x1024xf32, #tpu.memory_space<vmem>>, vector<8x1024xf32>,
    %c1015_i32_150 = arith.constant 1015 : i32
    %232 = tpu.dynamic_rotate %150 by %c1015_i32_150 dim 1 : vector<8x1024xf32>, i32 -> vector<8x1024xf32>
    %c17_151 = arith.constant 17 : index
    %c0_152 = arith.constant 0 : index
    %233 = vector.load %arg4[%c17_151, %c0_152] : memref<27x1024xf32, #tpu.memory_space<vmem>>, vector<1x1024xf32>
    %234 = vector.broadcast %233 : vector<1x1024xf32> to vector<8x1024xf32>
    %235 = arith.mulf %232, %234 : vector<8x1024xf32>
    %c136 = arith.constant 136 : index
    %c0_153 = arith.constant 0 : index
    %236 = vector.load %arg12[%c136, %c0_153] : memref<324x1024xf32, #tpu.memory_space<vmem>>, vector<8x1024xf32>
    tpu.vector_store %arg12[%c136, %c0_153], %235 {strides = array<i32>} : memref<324x1024xf32, #tpu.memory_space<vmem>>, vector<8x1024xf32>,
    %c969_i32_154 = arith.constant 969 : i32
    %237 = tpu.dynamic_rotate %150 by %c969_i32_154 dim 1 : vector<8x1024xf32>, i32 -> vector<8x1024xf32>
    %c18_155 = arith.constant 18 : index
    %c0_156 = arith.constant 0 : index
    %238 = vector.load %arg4[%c18_155, %c0_156] : memref<27x1024xf32, #tpu.memory_space<vmem>>, vector<1x1024xf32>
    %239 = vector.broadcast %238 : vector<1x1024xf32> to vector<8x1024xf32>
    %240 = arith.mulf %237, %239 : vector<8x1024xf32>
    %c144_157 = arith.constant 144 : index
    %c0_158 = arith.constant 0 : index
    %241 = vector.load %arg12[%c144_157, %c0_158] : memref<324x1024xf32, #tpu.memory_space<vmem>>, vector<8x1024xf32>
    tpu.vector_store %arg12[%c144_157, %c0_158], %240 {strides = array<i32>} : memref<324x1024xf32, #tpu.memory_space<vmem>>, vector<8x1024xf32>,
    %c968_i32_159 = arith.constant 968 : i32
    %242 = tpu.dynamic_rotate %150 by %c968_i32_159 dim 1 : vector<8x1024xf32>, i32 -> vector<8x1024xf32>
    %c19_160 = arith.constant 19 : index
    %c0_161 = arith.constant 0 : index
    %243 = vector.load %arg4[%c19_160, %c0_161] : memref<27x1024xf32, #tpu.memory_space<vmem>>, vector<1x1024xf32>
    %244 = vector.broadcast %243 : vector<1x1024xf32> to vector<8x1024xf32>
    %245 = arith.mulf %242, %244 : vector<8x1024xf32>
    %c152 = arith.constant 152 : index
    %c0_162 = arith.constant 0 : index
    %246 = vector.load %arg12[%c152, %c0_162] : memref<324x1024xf32, #tpu.memory_space<vmem>>, vector<8x1024xf32>
    tpu.vector_store %arg12[%c152, %c0_162], %245 {strides = array<i32>} : memref<324x1024xf32, #tpu.memory_space<vmem>>, vector<8x1024xf32>,
    %c967_i32_163 = arith.constant 967 : i32
    %247 = tpu.dynamic_rotate %150 by %c967_i32_163 dim 1 : vector<8x1024xf32>, i32 -> vector<8x1024xf32>
    %c20_164 = arith.constant 20 : index
    %c0_165 = arith.constant 0 : index
    %248 = vector.load %arg4[%c20_164, %c0_165] : memref<27x1024xf32, #tpu.memory_space<vmem>>, vector<1x1024xf32>
    %249 = vector.broadcast %248 : vector<1x1024xf32> to vector<8x1024xf32>
    %250 = arith.mulf %247, %249 : vector<8x1024xf32>
    %c160 = arith.constant 160 : index
    %c0_166 = arith.constant 0 : index
    %251 = vector.load %arg12[%c160, %c0_166] : memref<324x1024xf32, #tpu.memory_space<vmem>>, vector<8x1024xf32>
    tpu.vector_store %arg12[%c160, %c0_166], %250 {strides = array<i32>} : memref<324x1024xf32, #tpu.memory_space<vmem>>, vector<8x1024xf32>,
    %c961_i32_167 = arith.constant 961 : i32
    %252 = tpu.dynamic_rotate %150 by %c961_i32_167 dim 1 : vector<8x1024xf32>, i32 -> vector<8x1024xf32>
    %c21_168 = arith.constant 21 : index
    %c0_169 = arith.constant 0 : index
    %253 = vector.load %arg4[%c21_168, %c0_169] : memref<27x1024xf32, #tpu.memory_space<vmem>>, vector<1x1024xf32>
    %254 = vector.broadcast %253 : vector<1x1024xf32> to vector<8x1024xf32>
    %255 = arith.mulf %252, %254 : vector<8x1024xf32>
    %c168_170 = arith.constant 168 : index
    %c0_171 = arith.constant 0 : index
    %256 = vector.load %arg12[%c168_170, %c0_171] : memref<324x1024xf32, #tpu.memory_space<vmem>>, vector<8x1024xf32>
    tpu.vector_store %arg12[%c168_170, %c0_171], %255 {strides = array<i32>} : memref<324x1024xf32, #tpu.memory_space<vmem>>, vector<8x1024xf32>,
    %c960_i32_172 = arith.constant 960 : i32
    %257 = tpu.dynamic_rotate %150 by %c960_i32_172 dim 1 : vector<8x1024xf32>, i32 -> vector<8x1024xf32>
    %c22_173 = arith.constant 22 : index
    %c0_174 = arith.constant 0 : index
    %258 = vector.load %arg4[%c22_173, %c0_174] : memref<27x1024xf32, #tpu.memory_space<vmem>>, vector<1x1024xf32>
    %259 = vector.broadcast %258 : vector<1x1024xf32> to vector<8x1024xf32>
    %260 = arith.mulf %257, %259 : vector<8x1024xf32>
    %c176 = arith.constant 176 : index
    %c0_175 = arith.constant 0 : index
    %261 = vector.load %arg12[%c176, %c0_175] : memref<324x1024xf32, #tpu.memory_space<vmem>>, vector<8x1024xf32>
    tpu.vector_store %arg12[%c176, %c0_175], %260 {strides = array<i32>} : memref<324x1024xf32, #tpu.memory_space<vmem>>, vector<8x1024xf32>,
    %c959_i32_176 = arith.constant 959 : i32
    %262 = tpu.dynamic_rotate %150 by %c959_i32_176 dim 1 : vector<8x1024xf32>, i32 -> vector<8x1024xf32>
    %c23_177 = arith.constant 23 : index
    %c0_178 = arith.constant 0 : index
    %263 = vector.load %arg4[%c23_177, %c0_178] : memref<27x1024xf32, #tpu.memory_space<vmem>>, vector<1x1024xf32>
    %264 = vector.broadcast %263 : vector<1x1024xf32> to vector<8x1024xf32>
    %265 = arith.mulf %262, %264 : vector<8x1024xf32>
    %c184 = arith.constant 184 : index
    %c0_179 = arith.constant 0 : index
    %266 = vector.load %arg12[%c184, %c0_179] : memref<324x1024xf32, #tpu.memory_space<vmem>>, vector<8x1024xf32>
    tpu.vector_store %arg12[%c184, %c0_179], %265 {strides = array<i32>} : memref<324x1024xf32, #tpu.memory_space<vmem>>, vector<8x1024xf32>,
    %c953_i32_180 = arith.constant 953 : i32
    %267 = tpu.dynamic_rotate %150 by %c953_i32_180 dim 1 : vector<8x1024xf32>, i32 -> vector<8x1024xf32>
    %c24_181 = arith.constant 24 : index
    %c0_182 = arith.constant 0 : index
    %268 = vector.load %arg4[%c24_181, %c0_182] : memref<27x1024xf32, #tpu.memory_space<vmem>>, vector<1x1024xf32>
    %269 = vector.broadcast %268 : vector<1x1024xf32> to vector<8x1024xf32>
    %270 = arith.mulf %267, %269 : vector<8x1024xf32>
    %c192_183 = arith.constant 192 : index
    %c0_184 = arith.constant 0 : index
    %271 = vector.load %arg12[%c192_183, %c0_184] : memref<324x1024xf32, #tpu.memory_space<vmem>>, vector<8x1024xf32>
    tpu.vector_store %arg12[%c192_183, %c0_184], %270 {strides = array<i32>} : memref<324x1024xf32, #tpu.memory_space<vmem>>, vector<8x1024xf32>,
    %c952_i32_185 = arith.constant 952 : i32
    %272 = tpu.dynamic_rotate %150 by %c952_i32_185 dim 1 : vector<8x1024xf32>, i32 -> vector<8x1024xf32>
    %c25_186 = arith.constant 25 : index
    %c0_187 = arith.constant 0 : index
    %273 = vector.load %arg4[%c25_186, %c0_187] : memref<27x1024xf32, #tpu.memory_space<vmem>>, vector<1x1024xf32>
    %274 = vector.broadcast %273 : vector<1x1024xf32> to vector<8x1024xf32>
    %275 = arith.mulf %272, %274 : vector<8x1024xf32>
    %c200 = arith.constant 200 : index
    %c0_188 = arith.constant 0 : index
    %276 = vector.load %arg12[%c200, %c0_188] : memref<324x1024xf32, #tpu.memory_space<vmem>>, vector<8x1024xf32>
    tpu.vector_store %arg12[%c200, %c0_188], %275 {strides = array<i32>} : memref<324x1024xf32, #tpu.memory_space<vmem>>, vector<8x1024xf32>,
    %c951_i32_189 = arith.constant 951 : i32
    %277 = tpu.dynamic_rotate %150 by %c951_i32_189 dim 1 : vector<8x1024xf32>, i32 -> vector<8x1024xf32>
    %c26_190 = arith.constant 26 : index
    %c0_191 = arith.constant 0 : index
    %278 = vector.load %arg4[%c26_190, %c0_191] : memref<27x1024xf32, #tpu.memory_space<vmem>>, vector<1x1024xf32>
    %279 = vector.broadcast %278 : vector<1x1024xf32> to vector<8x1024xf32>
    %280 = arith.mulf %277, %279 : vector<8x1024xf32>
    %c208 = arith.constant 208 : index
    %c0_192 = arith.constant 0 : index
    %281 = vector.load %arg12[%c208, %c0_192] : memref<324x1024xf32, #tpu.memory_space<vmem>>, vector<8x1024xf32>
    tpu.vector_store %arg12[%c208, %c0_192], %280 {strides = array<i32>} : memref<324x1024xf32, #tpu.memory_space<vmem>>, vector<8x1024xf32>,
    %c0_193 = arith.constant 0 : index
    %c0_194 = arith.constant 0 : index
    %282 = vector.load %arg6[%c0_193, %c0_194] : memref<4x216xf32, #tpu.memory_space<vmem>>, vector<4x216xf32>
    %c0_195 = arith.constant 0 : index
    %c0_196 = arith.constant 0 : index
    %283 = vector.load %arg12[%c0_195, %c0_196] : memref<324x1024xf32, #tpu.memory_space<vmem>>, vector<216x1024xf32>
    %cst_197 = arith.constant dense<0.000000e+00> : vector<4x1024xf32>
    %284 = tpu.matmul %282, %283, %cst_197 {dimension_numbers = #tpu.dot_dimension_numbers<[1], [0], [0], [1], [0, 0, 1, 1], [], []>} : vector<4x216xf32>, vector<216x1024xf32>, vector<4x1024xf32> -> vector<4x1024xf32>
    %c0_198 = arith.constant 0 : index
    %c0_199 = arith.constant 0 : index
    %285 = vector.load %arg9[%c0_198, %c0_199] : memref<4x1xf32, #tpu.memory_space<vmem>>, vector<4x1xf32>
    %286 = vector.broadcast %285 : vector<4x1xf32> to vector<4x1024xf32>
    %287 = arith.addf %284, %286 : vector<4x1024xf32>
    %c0_200 = arith.constant 0 : index
    %c0_201 = arith.constant 0 : index
    %c0_202 = arith.constant 0 : index
    %288 = vector.load %arg1[%c0_200, %c0_201, %c0_202] : memref<1x4x1024xf32, #tpu.memory_space<vmem>>, vector<1x4x1024xf32>
    %289 = vector.shape_cast %288 : vector<1x4x1024xf32> to vector<4x1024xf32>
    %c0_203 = arith.constant 0 : index
    %c0_204 = arith.constant 0 : index
    %c0_205 = arith.constant 0 : index
    %290 = vector.load %arg3[%c0_203, %c0_204, %c0_205] : memref<1x4x1024xf32, #tpu.memory_space<vmem>>, vector<1x4x1024xf32>
    %291 = vector.shape_cast %290 : vector<1x4x1024xf32> to vector<4x1024xf32>
    %292 = arith.mulf %289, %291 : vector<4x1024xf32>
    %c0_206 = arith.constant 0 : index
    %c0_207 = arith.constant 0 : index
    %c0_208 = arith.constant 0 : index
    %293 = vector.load %arg2[%c0_206, %c0_207, %c0_208] : memref<1x4x1024xf32, #tpu.memory_space<vmem>>, vector<1x4x1024xf32>
    %294 = vector.shape_cast %293 : vector<1x4x1024xf32> to vector<4x1024xf32>
    %295 = arith.mulf %292, %294 : vector<4x1024xf32>
    %296 = tpu.concatenate %295, %287 in 0 : vector<4x1024xf32>, vector<4x1024xf32> -> vector<8x1024xf32>
    %c73_i32_209 = arith.constant 73 : i32
    %297 = tpu.dynamic_rotate %296 by %c73_i32_209 dim 1 : vector<8x1024xf32>, i32 -> vector<8x1024xf32>
    %c0_210 = arith.constant 0 : index
    %c0_211 = arith.constant 0 : index
    %298 = vector.load %arg4[%c0_210, %c0_211] : memref<27x1024xf32, #tpu.memory_space<vmem>>, vector<1x1024xf32>
    %299 = vector.broadcast %298 : vector<1x1024xf32> to vector<8x1024xf32>
    %300 = arith.mulf %297, %299 : vector<8x1024xf32>
    %c0_212 = arith.constant 0 : index
    %c0_213 = arith.constant 0 : index
    %301 = vector.load %arg12[%c0_212, %c0_213] : memref<324x1024xf32, #tpu.memory_space<vmem>>, vector<8x1024xf32>
    tpu.vector_store %arg12[%c0_212, %c0_213], %300 {strides = array<i32>} : memref<324x1024xf32, #tpu.memory_space<vmem>>, vector<8x1024xf32>,
    %c72_i32_214 = arith.constant 72 : i32
    %302 = tpu.dynamic_rotate %296 by %c72_i32_214 dim 1 : vector<8x1024xf32>, i32 -> vector<8x1024xf32>
    %c1_215 = arith.constant 1 : index
    %c0_216 = arith.constant 0 : index
    %303 = vector.load %arg4[%c1_215, %c0_216] : memref<27x1024xf32, #tpu.memory_space<vmem>>, vector<1x1024xf32>
    %304 = vector.broadcast %303 : vector<1x1024xf32> to vector<8x1024xf32>
    %305 = arith.mulf %302, %304 : vector<8x1024xf32>
    %c8_217 = arith.constant 8 : index
    %c0_218 = arith.constant 0 : index
    %306 = vector.load %arg12[%c8_217, %c0_218] : memref<324x1024xf32, #tpu.memory_space<vmem>>, vector<8x1024xf32>
    tpu.vector_store %arg12[%c8_217, %c0_218], %305 {strides = array<i32>} : memref<324x1024xf32, #tpu.memory_space<vmem>>, vector<8x1024xf32>,
    %c71_i32_219 = arith.constant 71 : i32
    %307 = tpu.dynamic_rotate %296 by %c71_i32_219 dim 1 : vector<8x1024xf32>, i32 -> vector<8x1024xf32>
    %c2_220 = arith.constant 2 : index
    %c0_221 = arith.constant 0 : index
    %308 = vector.load %arg4[%c2_220, %c0_221] : memref<27x1024xf32, #tpu.memory_space<vmem>>, vector<1x1024xf32>
    %309 = vector.broadcast %308 : vector<1x1024xf32> to vector<8x1024xf32>
    %310 = arith.mulf %307, %309 : vector<8x1024xf32>
    %c16_222 = arith.constant 16 : index
    %c0_223 = arith.constant 0 : index
    %311 = vector.load %arg12[%c16_222, %c0_223] : memref<324x1024xf32, #tpu.memory_space<vmem>>, vector<8x1024xf32>
    tpu.vector_store %arg12[%c16_222, %c0_223], %310 {strides = array<i32>} : memref<324x1024xf32, #tpu.memory_space<vmem>>, vector<8x1024xf32>,
    %c65_i32_224 = arith.constant 65 : i32
    %312 = tpu.dynamic_rotate %296 by %c65_i32_224 dim 1 : vector<8x1024xf32>, i32 -> vector<8x1024xf32>
    %c3_225 = arith.constant 3 : index
    %c0_226 = arith.constant 0 : index
    %313 = vector.load %arg4[%c3_225, %c0_226] : memref<27x1024xf32, #tpu.memory_space<vmem>>, vector<1x1024xf32>
    %314 = vector.broadcast %313 : vector<1x1024xf32> to vector<8x1024xf32>
    %315 = arith.mulf %312, %314 : vector<8x1024xf32>
    %c24_227 = arith.constant 24 : index
    %c0_228 = arith.constant 0 : index
    %316 = vector.load %arg12[%c24_227, %c0_228] : memref<324x1024xf32, #tpu.memory_space<vmem>>, vector<8x1024xf32>
    tpu.vector_store %arg12[%c24_227, %c0_228], %315 {strides = array<i32>} : memref<324x1024xf32, #tpu.memory_space<vmem>>, vector<8x1024xf32>,
    %c64_i32_229 = arith.constant 64 : i32
    %317 = tpu.dynamic_rotate %296 by %c64_i32_229 dim 1 : vector<8x1024xf32>, i32 -> vector<8x1024xf32>
    %c4_230 = arith.constant 4 : index
    %c0_231 = arith.constant 0 : index
    %318 = vector.load %arg4[%c4_230, %c0_231] : memref<27x1024xf32, #tpu.memory_space<vmem>>, vector<1x1024xf32>
    %319 = vector.broadcast %318 : vector<1x1024xf32> to vector<8x1024xf32>
    %320 = arith.mulf %317, %319 : vector<8x1024xf32>
    %c32_232 = arith.constant 32 : index
    %c0_233 = arith.constant 0 : index
    %321 = vector.load %arg12[%c32_232, %c0_233] : memref<324x1024xf32, #tpu.memory_space<vmem>>, vector<8x1024xf32>
    tpu.vector_store %arg12[%c32_232, %c0_233], %320 {strides = array<i32>} : memref<324x1024xf32, #tpu.memory_space<vmem>>, vector<8x1024xf32>,
    %c63_i32_234 = arith.constant 63 : i32
    %322 = tpu.dynamic_rotate %296 by %c63_i32_234 dim 1 : vector<8x1024xf32>, i32 -> vector<8x1024xf32>
    %c5_235 = arith.constant 5 : index
    %c0_236 = arith.constant 0 : index
    %323 = vector.load %arg4[%c5_235, %c0_236] : memref<27x1024xf32, #tpu.memory_space<vmem>>, vector<1x1024xf32>
    %324 = vector.broadcast %323 : vector<1x1024xf32> to vector<8x1024xf32>
    %325 = arith.mulf %322, %324 : vector<8x1024xf32>
    %c40_237 = arith.constant 40 : index
    %c0_238 = arith.constant 0 : index
    %326 = vector.load %arg12[%c40_237, %c0_238] : memref<324x1024xf32, #tpu.memory_space<vmem>>, vector<8x1024xf32>
    tpu.vector_store %arg12[%c40_237, %c0_238], %325 {strides = array<i32>} : memref<324x1024xf32, #tpu.memory_space<vmem>>, vector<8x1024xf32>,
    %c57_i32_239 = arith.constant 57 : i32
    %327 = tpu.dynamic_rotate %296 by %c57_i32_239 dim 1 : vector<8x1024xf32>, i32 -> vector<8x1024xf32>
    %c6_240 = arith.constant 6 : index
    %c0_241 = arith.constant 0 : index
    %328 = vector.load %arg4[%c6_240, %c0_241] : memref<27x1024xf32, #tpu.memory_space<vmem>>, vector<1x1024xf32>
    %329 = vector.broadcast %328 : vector<1x1024xf32> to vector<8x1024xf32>
    %330 = arith.mulf %327, %329 : vector<8x1024xf32>
    %c48_242 = arith.constant 48 : index
    %c0_243 = arith.constant 0 : index
    %331 = vector.load %arg12[%c48_242, %c0_243] : memref<324x1024xf32, #tpu.memory_space<vmem>>, vector<8x1024xf32>
    tpu.vector_store %arg12[%c48_242, %c0_243], %330 {strides = array<i32>} : memref<324x1024xf32, #tpu.memory_space<vmem>>, vector<8x1024xf32>,
    %c56_i32_244 = arith.constant 56 : i32
    %332 = tpu.dynamic_rotate %296 by %c56_i32_244 dim 1 : vector<8x1024xf32>, i32 -> vector<8x1024xf32>
    %c7_245 = arith.constant 7 : index
    %c0_246 = arith.constant 0 : index
    %333 = vector.load %arg4[%c7_245, %c0_246] : memref<27x1024xf32, #tpu.memory_space<vmem>>, vector<1x1024xf32>
    %334 = vector.broadcast %333 : vector<1x1024xf32> to vector<8x1024xf32>
    %335 = arith.mulf %332, %334 : vector<8x1024xf32>
    %c56_247 = arith.constant 56 : index
    %c0_248 = arith.constant 0 : index
    %336 = vector.load %arg12[%c56_247, %c0_248] : memref<324x1024xf32, #tpu.memory_space<vmem>>, vector<8x1024xf32>
    tpu.vector_store %arg12[%c56_247, %c0_248], %335 {strides = array<i32>} : memref<324x1024xf32, #tpu.memory_space<vmem>>, vector<8x1024xf32>,
    %c55_i32_249 = arith.constant 55 : i32
    %337 = tpu.dynamic_rotate %296 by %c55_i32_249 dim 1 : vector<8x1024xf32>, i32 -> vector<8x1024xf32>
    %c8_250 = arith.constant 8 : index
    %c0_251 = arith.constant 0 : index
    %338 = vector.load %arg4[%c8_250, %c0_251] : memref<27x1024xf32, #tpu.memory_space<vmem>>, vector<1x1024xf32>
    %339 = vector.broadcast %338 : vector<1x1024xf32> to vector<8x1024xf32>
    %340 = arith.mulf %337, %339 : vector<8x1024xf32>
    %c64_252 = arith.constant 64 : index
    %c0_253 = arith.constant 0 : index
    %341 = vector.load %arg12[%c64_252, %c0_253] : memref<324x1024xf32, #tpu.memory_space<vmem>>, vector<8x1024xf32>
    tpu.vector_store %arg12[%c64_252, %c0_253], %340 {strides = array<i32>} : memref<324x1024xf32, #tpu.memory_space<vmem>>, vector<8x1024xf32>,
    %c9_i32_254 = arith.constant 9 : i32
    %342 = tpu.dynamic_rotate %296 by %c9_i32_254 dim 1 : vector<8x1024xf32>, i32 -> vector<8x1024xf32>
    %c9_255 = arith.constant 9 : index
    %c0_256 = arith.constant 0 : index
    %343 = vector.load %arg4[%c9_255, %c0_256] : memref<27x1024xf32, #tpu.memory_space<vmem>>, vector<1x1024xf32>
    %344 = vector.broadcast %343 : vector<1x1024xf32> to vector<8x1024xf32>
    %345 = arith.mulf %342, %344 : vector<8x1024xf32>
    %c72_257 = arith.constant 72 : index
    %c0_258 = arith.constant 0 : index
    %346 = vector.load %arg12[%c72_257, %c0_258] : memref<324x1024xf32, #tpu.memory_space<vmem>>, vector<8x1024xf32>
    tpu.vector_store %arg12[%c72_257, %c0_258], %345 {strides = array<i32>} : memref<324x1024xf32, #tpu.memory_space<vmem>>, vector<8x1024xf32>,
    %c8_i32_259 = arith.constant 8 : i32
    %347 = tpu.dynamic_rotate %296 by %c8_i32_259 dim 1 : vector<8x1024xf32>, i32 -> vector<8x1024xf32>
    %c10_260 = arith.constant 10 : index
    %c0_261 = arith.constant 0 : index
    %348 = vector.load %arg4[%c10_260, %c0_261] : memref<27x1024xf32, #tpu.memory_space<vmem>>, vector<1x1024xf32>
    %349 = vector.broadcast %348 : vector<1x1024xf32> to vector<8x1024xf32>
    %350 = arith.mulf %347, %349 : vector<8x1024xf32>
    %c80_262 = arith.constant 80 : index
    %c0_263 = arith.constant 0 : index
    %351 = vector.load %arg12[%c80_262, %c0_263] : memref<324x1024xf32, #tpu.memory_space<vmem>>, vector<8x1024xf32>
    tpu.vector_store %arg12[%c80_262, %c0_263], %350 {strides = array<i32>} : memref<324x1024xf32, #tpu.memory_space<vmem>>, vector<8x1024xf32>,
    %c7_i32_264 = arith.constant 7 : i32
    %352 = tpu.dynamic_rotate %296 by %c7_i32_264 dim 1 : vector<8x1024xf32>, i32 -> vector<8x1024xf32>
    %c11_265 = arith.constant 11 : index
    %c0_266 = arith.constant 0 : index
    %353 = vector.load %arg4[%c11_265, %c0_266] : memref<27x1024xf32, #tpu.memory_space<vmem>>, vector<1x1024xf32>
    %354 = vector.broadcast %353 : vector<1x1024xf32> to vector<8x1024xf32>
    %355 = arith.mulf %352, %354 : vector<8x1024xf32>
    %c88_267 = arith.constant 88 : index
    %c0_268 = arith.constant 0 : index
    %356 = vector.load %arg12[%c88_267, %c0_268] : memref<324x1024xf32, #tpu.memory_space<vmem>>, vector<8x1024xf32>
    tpu.vector_store %arg12[%c88_267, %c0_268], %355 {strides = array<i32>} : memref<324x1024xf32, #tpu.memory_space<vmem>>, vector<8x1024xf32>,
    %c1_i32_269 = arith.constant 1 : i32
    %357 = tpu.dynamic_rotate %296 by %c1_i32_269 dim 1 : vector<8x1024xf32>, i32 -> vector<8x1024xf32>
    %c12_270 = arith.constant 12 : index
    %c0_271 = arith.constant 0 : index
    %358 = vector.load %arg4[%c12_270, %c0_271] : memref<27x1024xf32, #tpu.memory_space<vmem>>, vector<1x1024xf32>
    %359 = vector.broadcast %358 : vector<1x1024xf32> to vector<8x1024xf32>
    %360 = arith.mulf %357, %359 : vector<8x1024xf32>
    %c96_272 = arith.constant 96 : index
    %c0_273 = arith.constant 0 : index
    %361 = vector.load %arg12[%c96_272, %c0_273] : memref<324x1024xf32, #tpu.memory_space<vmem>>, vector<8x1024xf32>
    tpu.vector_store %arg12[%c96_272, %c0_273], %360 {strides = array<i32>} : memref<324x1024xf32, #tpu.memory_space<vmem>>, vector<8x1024xf32>,
    %c104_274 = arith.constant 104 : index
    %c0_275 = arith.constant 0 : index
    %362 = vector.load %arg12[%c104_274, %c0_275] : memref<324x1024xf32, #tpu.memory_space<vmem>>, vector<8x1024xf32>
    tpu.vector_store %arg12[%c104_274, %c0_275], %296 {strides = array<i32>} : memref<324x1024xf32, #tpu.memory_space<vmem>>, vector<8x1024xf32>,
    %c1023_i32_276 = arith.constant 1023 : i32
    %363 = tpu.dynamic_rotate %296 by %c1023_i32_276 dim 1 : vector<8x1024xf32>, i32 -> vector<8x1024xf32>
    %c14_277 = arith.constant 14 : index
    %c0_278 = arith.constant 0 : index
    %364 = vector.load %arg4[%c14_277, %c0_278] : memref<27x1024xf32, #tpu.memory_space<vmem>>, vector<1x1024xf32>
    %365 = vector.broadcast %364 : vector<1x1024xf32> to vector<8x1024xf32>
    %366 = arith.mulf %363, %365 : vector<8x1024xf32>
    %c112_279 = arith.constant 112 : index
    %c0_280 = arith.constant 0 : index
    %367 = vector.load %arg12[%c112_279, %c0_280] : memref<324x1024xf32, #tpu.memory_space<vmem>>, vector<8x1024xf32>
    tpu.vector_store %arg12[%c112_279, %c0_280], %366 {strides = array<i32>} : memref<324x1024xf32, #tpu.memory_space<vmem>>, vector<8x1024xf32>,
    %c1017_i32_281 = arith.constant 1017 : i32
    %368 = tpu.dynamic_rotate %296 by %c1017_i32_281 dim 1 : vector<8x1024xf32>, i32 -> vector<8x1024xf32>
    %c15_282 = arith.constant 15 : index
    %c0_283 = arith.constant 0 : index
    %369 = vector.load %arg4[%c15_282, %c0_283] : memref<27x1024xf32, #tpu.memory_space<vmem>>, vector<1x1024xf32>
    %370 = vector.broadcast %369 : vector<1x1024xf32> to vector<8x1024xf32>
    %371 = arith.mulf %368, %370 : vector<8x1024xf32>
    %c120_284 = arith.constant 120 : index
    %c0_285 = arith.constant 0 : index
    %372 = vector.load %arg12[%c120_284, %c0_285] : memref<324x1024xf32, #tpu.memory_space<vmem>>, vector<8x1024xf32>
    tpu.vector_store %arg12[%c120_284, %c0_285], %371 {strides = array<i32>} : memref<324x1024xf32, #tpu.memory_space<vmem>>, vector<8x1024xf32>,
    %c1016_i32_286 = arith.constant 1016 : i32
    %373 = tpu.dynamic_rotate %296 by %c1016_i32_286 dim 1 : vector<8x1024xf32>, i32 -> vector<8x1024xf32>
    %c16_287 = arith.constant 16 : index
    %c0_288 = arith.constant 0 : index
    %374 = vector.load %arg4[%c16_287, %c0_288] : memref<27x1024xf32, #tpu.memory_space<vmem>>, vector<1x1024xf32>
    %375 = vector.broadcast %374 : vector<1x1024xf32> to vector<8x1024xf32>
    %376 = arith.mulf %373, %375 : vector<8x1024xf32>
    %c128_289 = arith.constant 128 : index
    %c0_290 = arith.constant 0 : index
    %377 = vector.load %arg12[%c128_289, %c0_290] : memref<324x1024xf32, #tpu.memory_space<vmem>>, vector<8x1024xf32>
    tpu.vector_store %arg12[%c128_289, %c0_290], %376 {strides = array<i32>} : memref<324x1024xf32, #tpu.memory_space<vmem>>, vector<8x1024xf32>,
    %c1015_i32_291 = arith.constant 1015 : i32
    %378 = tpu.dynamic_rotate %296 by %c1015_i32_291 dim 1 : vector<8x1024xf32>, i32 -> vector<8x1024xf32>
    %c17_292 = arith.constant 17 : index
    %c0_293 = arith.constant 0 : index
    %379 = vector.load %arg4[%c17_292, %c0_293] : memref<27x1024xf32, #tpu.memory_space<vmem>>, vector<1x1024xf32>
    %380 = vector.broadcast %379 : vector<1x1024xf32> to vector<8x1024xf32>
    %381 = arith.mulf %378, %380 : vector<8x1024xf32>
    %c136_294 = arith.constant 136 : index
    %c0_295 = arith.constant 0 : index
    %382 = vector.load %arg12[%c136_294, %c0_295] : memref<324x1024xf32, #tpu.memory_space<vmem>>, vector<8x1024xf32>
    tpu.vector_store %arg12[%c136_294, %c0_295], %381 {strides = array<i32>} : memref<324x1024xf32, #tpu.memory_space<vmem>>, vector<8x1024xf32>,
    %c969_i32_296 = arith.constant 969 : i32
    %383 = tpu.dynamic_rotate %296 by %c969_i32_296 dim 1 : vector<8x1024xf32>, i32 -> vector<8x1024xf32>
    %c18_297 = arith.constant 18 : index
    %c0_298 = arith.constant 0 : index
    %384 = vector.load %arg4[%c18_297, %c0_298] : memref<27x1024xf32, #tpu.memory_space<vmem>>, vector<1x1024xf32>
    %385 = vector.broadcast %384 : vector<1x1024xf32> to vector<8x1024xf32>
    %386 = arith.mulf %383, %385 : vector<8x1024xf32>
    %c144_299 = arith.constant 144 : index
    %c0_300 = arith.constant 0 : index
    %387 = vector.load %arg12[%c144_299, %c0_300] : memref<324x1024xf32, #tpu.memory_space<vmem>>, vector<8x1024xf32>
    tpu.vector_store %arg12[%c144_299, %c0_300], %386 {strides = array<i32>} : memref<324x1024xf32, #tpu.memory_space<vmem>>, vector<8x1024xf32>,
    %c968_i32_301 = arith.constant 968 : i32
    %388 = tpu.dynamic_rotate %296 by %c968_i32_301 dim 1 : vector<8x1024xf32>, i32 -> vector<8x1024xf32>
    %c19_302 = arith.constant 19 : index
    %c0_303 = arith.constant 0 : index
    %389 = vector.load %arg4[%c19_302, %c0_303] : memref<27x1024xf32, #tpu.memory_space<vmem>>, vector<1x1024xf32>
    %390 = vector.broadcast %389 : vector<1x1024xf32> to vector<8x1024xf32>
    %391 = arith.mulf %388, %390 : vector<8x1024xf32>
    %c152_304 = arith.constant 152 : index
    %c0_305 = arith.constant 0 : index
    %392 = vector.load %arg12[%c152_304, %c0_305] : memref<324x1024xf32, #tpu.memory_space<vmem>>, vector<8x1024xf32>
    tpu.vector_store %arg12[%c152_304, %c0_305], %391 {strides = array<i32>} : memref<324x1024xf32, #tpu.memory_space<vmem>>, vector<8x1024xf32>,
    %c967_i32_306 = arith.constant 967 : i32
    %393 = tpu.dynamic_rotate %296 by %c967_i32_306 dim 1 : vector<8x1024xf32>, i32 -> vector<8x1024xf32>
    %c20_307 = arith.constant 20 : index
    %c0_308 = arith.constant 0 : index
    %394 = vector.load %arg4[%c20_307, %c0_308] : memref<27x1024xf32, #tpu.memory_space<vmem>>, vector<1x1024xf32>
    %395 = vector.broadcast %394 : vector<1x1024xf32> to vector<8x1024xf32>
    %396 = arith.mulf %393, %395 : vector<8x1024xf32>
    %c160_309 = arith.constant 160 : index
    %c0_310 = arith.constant 0 : index
    %397 = vector.load %arg12[%c160_309, %c0_310] : memref<324x1024xf32, #tpu.memory_space<vmem>>, vector<8x1024xf32>
    tpu.vector_store %arg12[%c160_309, %c0_310], %396 {strides = array<i32>} : memref<324x1024xf32, #tpu.memory_space<vmem>>, vector<8x1024xf32>,
    %c961_i32_311 = arith.constant 961 : i32
    %398 = tpu.dynamic_rotate %296 by %c961_i32_311 dim 1 : vector<8x1024xf32>, i32 -> vector<8x1024xf32>
    %c21_312 = arith.constant 21 : index
    %c0_313 = arith.constant 0 : index
    %399 = vector.load %arg4[%c21_312, %c0_313] : memref<27x1024xf32, #tpu.memory_space<vmem>>, vector<1x1024xf32>
    %400 = vector.broadcast %399 : vector<1x1024xf32> to vector<8x1024xf32>
    %401 = arith.mulf %398, %400 : vector<8x1024xf32>
    %c168_314 = arith.constant 168 : index
    %c0_315 = arith.constant 0 : index
    %402 = vector.load %arg12[%c168_314, %c0_315] : memref<324x1024xf32, #tpu.memory_space<vmem>>, vector<8x1024xf32>
    tpu.vector_store %arg12[%c168_314, %c0_315], %401 {strides = array<i32>} : memref<324x1024xf32, #tpu.memory_space<vmem>>, vector<8x1024xf32>,
    %c960_i32_316 = arith.constant 960 : i32
    %403 = tpu.dynamic_rotate %296 by %c960_i32_316 dim 1 : vector<8x1024xf32>, i32 -> vector<8x1024xf32>
    %c22_317 = arith.constant 22 : index
    %c0_318 = arith.constant 0 : index
    %404 = vector.load %arg4[%c22_317, %c0_318] : memref<27x1024xf32, #tpu.memory_space<vmem>>, vector<1x1024xf32>
    %405 = vector.broadcast %404 : vector<1x1024xf32> to vector<8x1024xf32>
    %406 = arith.mulf %403, %405 : vector<8x1024xf32>
    %c176_319 = arith.constant 176 : index
    %c0_320 = arith.constant 0 : index
    %407 = vector.load %arg12[%c176_319, %c0_320] : memref<324x1024xf32, #tpu.memory_space<vmem>>, vector<8x1024xf32>
    tpu.vector_store %arg12[%c176_319, %c0_320], %406 {strides = array<i32>} : memref<324x1024xf32, #tpu.memory_space<vmem>>, vector<8x1024xf32>,
    %c959_i32_321 = arith.constant 959 : i32
    %408 = tpu.dynamic_rotate %296 by %c959_i32_321 dim 1 : vector<8x1024xf32>, i32 -> vector<8x1024xf32>
    %c23_322 = arith.constant 23 : index
    %c0_323 = arith.constant 0 : index
    %409 = vector.load %arg4[%c23_322, %c0_323] : memref<27x1024xf32, #tpu.memory_space<vmem>>, vector<1x1024xf32>
    %410 = vector.broadcast %409 : vector<1x1024xf32> to vector<8x1024xf32>
    %411 = arith.mulf %408, %410 : vector<8x1024xf32>
    %c184_324 = arith.constant 184 : index
    %c0_325 = arith.constant 0 : index
    %412 = vector.load %arg12[%c184_324, %c0_325] : memref<324x1024xf32, #tpu.memory_space<vmem>>, vector<8x1024xf32>
    tpu.vector_store %arg12[%c184_324, %c0_325], %411 {strides = array<i32>} : memref<324x1024xf32, #tpu.memory_space<vmem>>, vector<8x1024xf32>,
    %c953_i32_326 = arith.constant 953 : i32
    %413 = tpu.dynamic_rotate %296 by %c953_i32_326 dim 1 : vector<8x1024xf32>, i32 -> vector<8x1024xf32>
    %c24_327 = arith.constant 24 : index
    %c0_328 = arith.constant 0 : index
    %414 = vector.load %arg4[%c24_327, %c0_328] : memref<27x1024xf32, #tpu.memory_space<vmem>>, vector<1x1024xf32>
    %415 = vector.broadcast %414 : vector<1x1024xf32> to vector<8x1024xf32>
    %416 = arith.mulf %413, %415 : vector<8x1024xf32>
    %c192_329 = arith.constant 192 : index
    %c0_330 = arith.constant 0 : index
    %417 = vector.load %arg12[%c192_329, %c0_330] : memref<324x1024xf32, #tpu.memory_space<vmem>>, vector<8x1024xf32>
    tpu.vector_store %arg12[%c192_329, %c0_330], %416 {strides = array<i32>} : memref<324x1024xf32, #tpu.memory_space<vmem>>, vector<8x1024xf32>,
    %c952_i32_331 = arith.constant 952 : i32
    %418 = tpu.dynamic_rotate %296 by %c952_i32_331 dim 1 : vector<8x1024xf32>, i32 -> vector<8x1024xf32>
    %c25_332 = arith.constant 25 : index
    %c0_333 = arith.constant 0 : index
    %419 = vector.load %arg4[%c25_332, %c0_333] : memref<27x1024xf32, #tpu.memory_space<vmem>>, vector<1x1024xf32>
    %420 = vector.broadcast %419 : vector<1x1024xf32> to vector<8x1024xf32>
    %421 = arith.mulf %418, %420 : vector<8x1024xf32>
    %c200_334 = arith.constant 200 : index
    %c0_335 = arith.constant 0 : index
    %422 = vector.load %arg12[%c200_334, %c0_335] : memref<324x1024xf32, #tpu.memory_space<vmem>>, vector<8x1024xf32>
    tpu.vector_store %arg12[%c200_334, %c0_335], %421 {strides = array<i32>} : memref<324x1024xf32, #tpu.memory_space<vmem>>, vector<8x1024xf32>,
    %c951_i32_336 = arith.constant 951 : i32
    %423 = tpu.dynamic_rotate %296 by %c951_i32_336 dim 1 : vector<8x1024xf32>, i32 -> vector<8x1024xf32>
    %c26_337 = arith.constant 26 : index
    %c0_338 = arith.constant 0 : index
    %424 = vector.load %arg4[%c26_337, %c0_338] : memref<27x1024xf32, #tpu.memory_space<vmem>>, vector<1x1024xf32>
    %425 = vector.broadcast %424 : vector<1x1024xf32> to vector<8x1024xf32>
    %426 = arith.mulf %423, %425 : vector<8x1024xf32>
    %c208_339 = arith.constant 208 : index
    %c0_340 = arith.constant 0 : index
    %427 = vector.load %arg12[%c208_339, %c0_340] : memref<324x1024xf32, #tpu.memory_space<vmem>>, vector<8x1024xf32>
    tpu.vector_store %arg12[%c208_339, %c0_340], %426 {strides = array<i32>} : memref<324x1024xf32, #tpu.memory_space<vmem>>, vector<8x1024xf32>,
    %c0_341 = arith.constant 0 : index
    %c0_342 = arith.constant 0 : index
    %428 = vector.load %arg7[%c0_341, %c0_342] : memref<4x216xf32, #tpu.memory_space<vmem>>, vector<4x216xf32>
    %c0_343 = arith.constant 0 : index
    %c0_344 = arith.constant 0 : index
    %429 = vector.load %arg12[%c0_343, %c0_344] : memref<324x1024xf32, #tpu.memory_space<vmem>>, vector<216x1024xf32>
    %cst_345 = arith.constant dense<0.000000e+00> : vector<4x1024xf32>
    %430 = tpu.matmul %428, %429, %cst_345 {dimension_numbers = #tpu.dot_dimension_numbers<[1], [0], [0], [1], [0, 0, 1, 1], [], []>} : vector<4x216xf32>, vector<216x1024xf32>, vector<4x1024xf32> -> vector<4x1024xf32>
    %c0_346 = arith.constant 0 : index
    %c0_347 = arith.constant 0 : index
    %431 = vector.load %arg10[%c0_346, %c0_347] : memref<4x1xf32, #tpu.memory_space<vmem>>, vector<4x1xf32>
    %432 = vector.broadcast %431 : vector<4x1xf32> to vector<4x1024xf32>
    %433 = arith.addf %430, %432 : vector<4x1024xf32>
    %c0_348 = arith.constant 0 : index
    %c0_349 = arith.constant 0 : index
    %c0_350 = arith.constant 0 : index
    %434 = vector.load %arg11[%c0_348, %c0_349, %c0_350] : memref<1x4x1024xf32, #tpu.memory_space<vmem>>, vector<1x4x1024xf32>
    %435 = vector.shape_cast %434 : vector<1x4x1024xf32> to vector<4x1024xf32>
    %436 = vector.shape_cast %433 : vector<4x1024xf32> to vector<1x4x1024xf32>
    tpu.vector_store %arg11[%c0_348, %c0_349, %c0_350], %436 {strides = array<i32>} : memref<1x4x1024xf32, #tpu.memory_space<vmem>>, vector<1x4x1024xf32>,
    return
  }
  func.func @transform_0(%arg0: i32) -> (i32, i32, i32) {
    %c0_i32 = arith.constant 0 : i32
    %c0_i32_0 = arith.constant 0 : i32
    %c0_i32_1 = arith.constant 0 : i32
    return %arg0, %c0_i32, %c0_i32_0 : i32, i32, i32
  }
  func.func @transform_1(%arg0: i32) -> (i32, i32, i32) {
    %c0_i32 = arith.constant 0 : i32
    %c0_i32_0 = arith.constant 0 : i32
    %c0_i32_1 = arith.constant 0 : i32
    return %arg0, %c0_i32, %c0_i32_0 : i32, i32, i32
  }
  func.func @transform_2(%arg0: i32) -> (i32, i32, i32) {
    %c0_i32 = arith.constant 0 : i32
    %c0_i32_0 = arith.constant 0 : i32
    %c0_i32_1 = arith.constant 0 : i32
    return %arg0, %c0_i32, %c0_i32_0 : i32, i32, i32
  }
  func.func @transform_3(%arg0: i32) -> (i32, i32) {
    %c0_i32 = arith.constant 0 : i32
    %c0_i32_0 = arith.constant 0 : i32
    %c0_i32_1 = arith.constant 0 : i32
    return %c0_i32, %c0_i32_0 : i32, i32
  }
  func.func @transform_4(%arg0: i32) -> (i32, i32) {
    %c0_i32 = arith.constant 0 : i32
    %c0_i32_0 = arith.constant 0 : i32
    %c0_i32_1 = arith.constant 0 : i32
    return %c0_i32, %c0_i32_0 : i32, i32
  }
  func.func @transform_5(%arg0: i32) -> (i32, i32) {
    %c0_i32 = arith.constant 0 : i32
    %c0_i32_0 = arith.constant 0 : i32
    %c0_i32_1 = arith.constant 0 : i32
    return %c0_i32, %c0_i32_0 : i32, i32
  }
  func.func @transform_6(%arg0: i32) -> (i32, i32) {
    %c0_i32 = arith.constant 0 : i32
    %c0_i32_0 = arith.constant 0 : i32
    %c0_i32_1 = arith.constant 0 : i32
    return %c0_i32, %c0_i32_0 : i32, i32
  }
  func.func @transform_7(%arg0: i32) -> (i32, i32) {
    %c0_i32 = arith.constant 0 : i32
    %c0_i32_0 = arith.constant 0 : i32
    %c0_i32_1 = arith.constant 0 : i32
    return %c0_i32, %c0_i32_0 : i32, i32
  }
  func.func @transform_8(%arg0: i32) -> (i32, i32) {
    %c0_i32 = arith.constant 0 : i32
    %c0_i32_0 = arith.constant 0 : i32
    %c0_i32_1 = arith.constant 0 : i32
    return %c0_i32, %c0_i32_0 : i32, i32
  }
  func.func @transform_9(%arg0: i32) -> (i32, i32) {
    %c0_i32 = arith.constant 0 : i32
    %c0_i32_0 = arith.constant 0 : i32
    %c0_i32_1 = arith.constant 0 : i32
    return %c0_i32, %c0_i32_0 : i32, i32
  }
  func.func @transform_10(%arg0: i32) -> (i32, i32, i32) {
    %c0_i32 = arith.constant 0 : i32
    %c0_i32_0 = arith.constant 0 : i32
    %c0_i32_1 = arith.constant 0 : i32
    return %arg0, %c0_i32, %c0_i32_0 : i32, i32, i32
  }
}

</mosaic_0001>

<bundles_post_ra>
// kernel: mcmthree_conv_forward.1
= control target key start
LH: loop header
LB: loop body
LE: loop exit
PB: predicated region body
PF: predicated region fallthrough
CT: control target
= control target key end

     0   :  { %vm67_vm0 = vcmask 1043456   ;;  %s18463_s11 = smov 72   ;;  %s18465_s12 = smov 73   ;;  %v148_v34 = vlaneseq  ;;  %s18168_s0 = inlined_call_operand.vmem [shape: f32[1,4,1024], index: 0, kind: input, shape index: {}]   ;;  %s18169_s1 = inlined_call_operand.vmem [shape: f32[1,4,1024], index: 1, kind: input, shape index: {}]   ;;  %s18170_s2 = inlined_call_operand.vmem [shape: f32[1,4,1024], index: 2, kind: input, shape index: {}]   ;;  %s18171_s3 = inlined_call_operand.vmem [shape: f32[27,1024], index: 3, kind: input, shape index: {}]   ;;  %s18172_s4 = inlined_call_operand.vmem [shape: f32[8,324], index: 4, kind: input, shape index: {}]   ;;  %s18173_s7 = inlined_call_operand.vmem [shape: f32[8,1], index: 7, kind: input, shape index: {}]   ;;  %s18174_s5 = inlined_call_operand.vmem [shape: f32[4,216], index: 5, kind: input, shape index: {}]   ;;  %s18175_s8 = inlined_call_operand.vmem [shape: f32[4,1], index: 8, kind: input, shape index: {}]   ;;  %s18176_s6 = inlined_call_operand.vmem [shape: f32[4,216], index: 6, kind: input, shape index: {}]   ;;  %s18177_s9 = inlined_call_operand.vmem [shape: f32[4,1], index: 9, kind: input, shape index: {}]   ;;  %s18178_s10 = inlined_call_operand.vmem [shape: f32[1,4,1024], index: 10, kind: output, shape index: {}]  }
   0x1   :  { %v36_v0 = vld [vmem:[%s18168_s0 + $0x8] sm:$0xff]  ;;  %v35_v6 = vld [vmem:[%s18168_s0] sm:$0xff]  ;;  %v38_v14 = vld [vmem:[%s18168_s0 + $0x18] sm:$0xff]  ;;  %s18513_s13 = smov 71   ;;  %s18511_s14 = smov 65  }
   0x2   :  { %v40_v1 = vld [vmem:[%s18169_s1 + $0x8] sm:$0xff]  ;;  %v48_v5 = vcombine.high %v36_v0, %v36_v0  ;;  %v39_v7 = vld [vmem:[%s18169_s1] sm:$0xff]  ;;  %v47_v12 = vcombine.high %v35_v6, %v35_v6  ;;  %v79_v19 = vld [vmem:[%s18170_s2 + $0x18] sm:$0xff]  ;;  %v50_v27 = vcombine.high %v38_v14, %v38_v14  ;;  %s10669_s15 = smov 63   ;;  %s10670_s16 = smov 64   ;;  %v10924_v36 = vshrl.u32 %v148_v34, 7 }
   0x3   :  { %v10748_v2 = vld [vmem:[%s18170_s2 + $0x8] sm:$0xff]  ;;  %v60_v3 = vcombine.low %v40_v1, %v40_v1  ;;  %v10761_v8 = vld [vmem:[%s18170_s2] sm:$0xff]  ;;  %v59_v10 = vcombine.low %v39_v7, %v39_v7  ;;  %v42_v26 = vld [vmem:[%s18169_s1 + $0x18] sm:$0xff]  ;;  %v10804_v29 = vcombine.high %v79_v19, %v79_v19  ;;  %v10937_v40 = vand.u32 127, %v148_v34  ;;  %s18509_s29 = smov 57   ;;  %s10672_s20 = smov 56  }
   0x4   :  { %v93_v4 = vcombine.low %v10748_v2, %v10748_v2  ;;  %v10765_v9 = vcombine.high %v10748_v2, %v10748_v2  ;;  %v92_v11 = vcombine.low %v10761_v8, %v10761_v8  ;;  %v10771_v13 = vcombine.high %v10761_v8, %v10761_v8  ;;  %v9684_v35 = vld [vmem:[%s18171_s3 + $0x1] ss:$8 sm:$0xf]  ;;  %v9718_v38 = vld [vmem:[%s18171_s3 + $0x83] ss:$8 sm:$0xf] }
   0x5   :  { %v70_v15 = vsel %vm67_vm0, %v36_v0, %v60_v3  ;;  %v71_v17 = vsel %vm67_vm0, %v48_v5, %v40_v1  ;;  %v68_v21 = vsel %vm67_vm0, %v35_v6, %v59_v10  ;;  %v69_v24 = vsel %vm67_vm0, %v47_v12, %v39_v7  ;;  %18590 = vst [vmem:[#allocation3_spill] sm:$0xff] %v10804_v29  ;;  %v9685_v37 = vld [vmem:[%s18171_s3 + $0x1] ss:$8 sm:$0xf0]  ;;  %s18438_s25 = smov 9   ;;  %s18440_s26 = smov 55  }
   0x6   :  { %v102_v16 = vsel %vm67_vm0, %v10748_v2, %v93_v4  ;;  %v103_v18 = vsel %vm67_vm0, %v10765_v9, %v10748_v2  ;;  %v100_v22 = vsel %vm67_vm0, %v10761_v8, %v92_v11  ;;  %v101_v25 = vsel %vm67_vm0, %v10771_v13, %v10761_v8  ;;  %v9719_v39 = vld [vmem:[%s18171_s3 + $0x83] ss:$8 sm:$0xf0]  ;;  %v9716_v50 = vld [vmem:[%s18171_s3 + $0x82] ss:$8 sm:$0xf] }
   0x7   :  { %v10786_v20 = vmul.f32 %v102_v16, %v70_v15  ;;  %v10791_v23 = vmul.f32 %v100_v22, %v68_v21  ;;  %v10802_v28 = vmul.f32 %v103_v18, %v71_v17  ;;  %v10808_v30 = vmul.f32 %v101_v25, %v69_v24  ;;  %v9717_v53 = vld [vmem:[%s18171_s3 + $0x82] ss:$8 sm:$0xf0]  ;;  %v167_v15 = vld [vmem:[%s18171_s3] ss:$8 sm:$0xf] }
   0x8   :  { %v75_v31 = vsel %vm67_vm0, %v50_v27, %v42_v26  ;;  %v107_v32 = vsel %vm67_vm0, %v10804_v29, %v79_v19  ;;  %v10942_v41 = vsub.s32 2, %v10924_v36  ;;  %v10945_v42 = vsub.s32 3, %v10924_v36  ;;  %v168_v24 = vld [vmem:[%s18171_s3] ss:$8 sm:$0xf0]  ;;  %s18436_s30 = smov 8  }
   0x9   :  { %251 = vrot.lane.b32.xlu1 %v10786_v20, %s18463_s11  ;;  %243 = vrot.lane.b32.xlu0 %v10791_v23, %s18463_s11  ;;  %v10817_v33 = vmul.f32 %v107_v32, %v75_v31  ;;  %v10947_v43 = vor.u32 %v9685_v37, %v9684_v35  ;;  %v10949_v44 = vor.u32 %v9719_v39, %v9718_v38  ;;  %v10954_v45 = vsub.s32 0, %v10924_v36  ;;  %s18434_s22 = smov 7   ;;  %s18432_s17 = smov 1  }
   0xa   :  { %18592 = vst [vmem:[#allocation5_spill] sm:$0xff] %v10942_v41  ;;  %18593 = vst [vmem:[#allocation6_spill] sm:$0xff] %v10945_v42  ;;  %v10957_v46 = vsub.s32 1, %v10924_v36  ;;  %v10960_v49 = vsub.s32 7, %v10924_v36  ;;  %vm275_vm1 = vcmp.lt.s32.totalorder %v10937_v40, 72  ;;  %v11010_v63 = vor.u32 %v9717_v53, %v9716_v50  ;;  %s18467_s28 = smov 127  }
   0xb   :  { %18591 = vst [vmem:[#allocation4_spill] sm:$0xff] %v10817_v33  ;;  %18594 = vst [vmem:[#allocation7_spill] sm:$0xff] %v10954_v45  ;;  %v10970_v51 = vrot.slane %v10947_v43, %v10945_v42  ;;  %v10974_v52 = vrot.slane %v10949_v44, %v10942_v41  ;;  %v10987_v55 = vrot.slane %v10947_v43, %v10942_v41  ;;  %vm150_vm2 = vcmp.lt.s32.totalorder %v10937_v40, 73  ;;  %s18261_s24 = smov 121   ;;  %s18279_s21 = smov 119  }
   0xc   :  { %18595 = vst [vmem:[#allocation8_spill] sm:$0xff] %v10957_v46  ;;  %18596 = vst [vmem:[#allocation9_spill] sm:$0xff] %v10960_v49  ;;  %v10983_v54 = vrot.slane %v10947_v43, %v10957_v46  ;;  %v10991_v56 = vrot.slane %v10949_v44, %v10954_v45  ;;  %v10995_v57 = vrot.slane %v10949_v44, %v10957_v46  ;;  %vm457_vm3 = vcmp.lt.s32.totalorder %v10937_v40, 71  ;;  %s18886_s18 = smov 121   ;;  %s18918_s19 = smov 119  }
   0xd   :  { %255 = vrot.lane.b32.xlu1 %v10802_v28, %s18463_s11  ;;  %247 = vrot.lane.b32.xlu0 %v10808_v30, %s18463_s11  ;;  %v11004_v61 = vrot.slane %v10947_v43, %v10954_v45  ;;  %v11008_v62 = vrot.slane %v10949_v44, %v10960_v49  ;;  %v2779_v25 = vrot.slane %v11010_v63, %v10954_v45  ;;  %vm583_vm4 = vcmp.lt.s32.totalorder %v10937_v40, 65  ;;  %s18922_s23 = smov 120   ;;  %s19201_s27 = smov 57  }
   0xe   :  { %v11084_v35 = vor.u32 %v168_v24, %v167_v15  ;;  %vm891_vm5 = vcmp.lt.s32.totalorder %v10937_v40, 63  ;;  %vm765_vm6 = vcmp.lt.s32.totalorder %v10937_v40, 64  ;;  %vm1073_vm7 = vcmp.lt.s32.totalorder %v10937_v40, 57 }
   0xf   :  { %vm1199_vm8 = vcmp.lt.s32.totalorder %v10937_v40, 56  ;;  %vm18430_vm9 = vcmp.lt.s32.totalorder %v10937_v40, 9  ;;  %vm1381_vm10 = vcmp.lt.s32.totalorder %v10937_v40, 55  ;;  %vm18429_vm11 = vcmp.lt.s32.totalorder %v10937_v40, 8 }
  0x10   :  { %v178_v50 = vrot.slane %v11084_v35, %v10957_v46  ;;  %vm18428_vm12 = vcmp.lt.s32.totalorder %v10937_v40, 7  ;;  %vm18295_vm13 = vcmp.lt.s32.totalorder %v10937_v40, 1  ;;  %vm18431_vm14 = vcmp.lt.s32.totalorder %v10937_v40, 127 }
  0x11   :  { %116 = vrot.lane.b32.xlu1 %v10791_v23, %s18465_s12  ;;  %271 = vrot.lane.b32.xlu0 %v10817_v33, %s18463_s11  ;;  %vm18298_vm15 = vcmp.lt.s32.totalorder %v10937_v40, 121 }
  0x15   :  { %120 = vrot.lane.b32.xlu1 %v10808_v30, %s18465_s12  ;;  %118 = vrot.lane.b32.xlu0 %v10761_v8, %s18465_s12 }
  0x19   :  { %124 = vrot.lane.b32.xlu1 %v10786_v20, %s18465_s12  ;;  %122 = vrot.lane.b32.xlu0 %v10771_v13, %s18465_s12 }
  0x1d   :  { %128 = vrot.lane.b32.xlu1 %v10802_v28, %s18465_s12  ;;  %126 = vrot.lane.b32.xlu0 %v10748_v2, %s18465_s12 }
  0x21   :  { %144 = vrot.lane.b32.xlu1 %v10817_v33, %s18465_s12  ;;  %130 = vrot.lane.b32.xlu0 %v10765_v9, %s18465_s12 }
  0x25   :  { %245 = vrot.lane.b32.xlu1 %v10761_v8, %s18463_s11  ;;  %146 = vrot.lane.b32.xlu0 %v10804_v29, %s18465_s12 }
  0x29   :  { %253 = vrot.lane.b32.xlu1 %v10748_v2, %s18463_s11  ;;  %249 = vrot.lane.b32.xlu0 %v10771_v13, %s18463_s11 }
  0x2d   :  { %273 = vrot.lane.b32.xlu1 %v10804_v29, %s18463_s11  ;;  %257 = vrot.lane.b32.xlu0 %v10765_v9, %s18463_s11 }
  0x31   :  { %429 = vrot.lane.b32.xlu1 %v10808_v30, %s18513_s13  ;;  %425 = vrot.lane.b32.xlu0 %v10791_v23, %s18513_s13 }
  0x35   :  { %437 = vrot.lane.b32.xlu1 %v10802_v28, %s18513_s13  ;;  %433 = vrot.lane.b32.xlu0 %v10786_v20, %s18513_s13 }
  0x39   :  { %551 = vrot.lane.b32.xlu1 %v10791_v23, %s18511_s14  ;;  %453 = vrot.lane.b32.xlu0 %v10817_v33, %s18513_s13 }
  0x3d   :  { %555 = vrot.lane.b32.xlu1 %v10808_v30, %s18511_s14  ;;  %553 = vrot.lane.b32.xlu0 %v10761_v8, %s18511_s14 }
  0x41   :  { %559 = vrot.lane.b32.xlu1 %v10786_v20, %s18511_s14  ;;  %557 = vrot.lane.b32.xlu0 %v10771_v13, %s18511_s14 }
  0x45   :  { %563 = vrot.lane.b32.xlu1 %v10802_v28, %s18511_s14  ;;  %561 = vrot.lane.b32.xlu0 %v10748_v2, %s18511_s14 }
  0x49   :  { %579 = vrot.lane.b32.xlu1 %v10817_v33, %s18511_s14  ;;  %565 = vrot.lane.b32.xlu0 %v10765_v9, %s18511_s14 }
  0x4d   :  { %427 = vrot.lane.b32.xlu1 %v10761_v8, %s18513_s13  ;;  %581 = vrot.lane.b32.xlu0 %v10804_v29, %s18511_s14 }
  0x51   :  { %435 = vrot.lane.b32.xlu1 %v10748_v2, %s18513_s13  ;;  %431 = vrot.lane.b32.xlu0 %v10771_v13, %s18513_s13 }
  0x55   :  { %455 = vrot.lane.b32.xlu1 %v10804_v29, %s18513_s13  ;;  %439 = vrot.lane.b32.xlu0 %v10765_v9, %s18513_s13 }
  0x59   :  { %863 = vrot.lane.b32.xlu1 %v10808_v30, %s10669_s15  ;;  %859 = vrot.lane.b32.xlu0 %v10791_v23, %s10669_s15 }
  0x5d   :  { %871 = vrot.lane.b32.xlu1 %v10802_v28, %s10669_s15  ;;  %867 = vrot.lane.b32.xlu0 %v10786_v20, %s10669_s15 }
  0x61   :  { %733 = vrot.lane.b32.xlu1 %v10791_v23, %s10670_s16  ;;  %887 = vrot.lane.b32.xlu0 %v10817_v33, %s10669_s15 }
  0x65   :  { %737 = vrot.lane.b32.xlu1 %v10808_v30, %s10670_s16  ;;  %735 = vrot.lane.b32.xlu0 %v10761_v8, %s10670_s16 }
  0x69   :  { %741 = vrot.lane.b32.xlu1 %v10786_v20, %s10670_s16  ;;  %739 = vrot.lane.b32.xlu0 %v10771_v13, %s10670_s16 }
  0x6d   :  { %745 = vrot.lane.b32.xlu1 %v10802_v28, %s10670_s16  ;;  %743 = vrot.lane.b32.xlu0 %v10748_v2, %s10670_s16 }
  0x71   :  { %761 = vrot.lane.b32.xlu1 %v10817_v33, %s10670_s16  ;;  %747 = vrot.lane.b32.xlu0 %v10765_v9, %s10670_s16 }
  0x75   :  { %861 = vrot.lane.b32.xlu1 %v10761_v8, %s10669_s15  ;;  %763 = vrot.lane.b32.xlu0 %v10804_v29, %s10670_s16 }
  0x79   :  { %869 = vrot.lane.b32.xlu1 %v10748_v2, %s10669_s15  ;;  %865 = vrot.lane.b32.xlu0 %v10771_v13, %s10669_s15 }
  0x7b   :  { %v252_v47 = vpop.permute.xlu1 %251  ;;  %v244_v48 = vpop.permute.xlu0 %243 }
  0x7d   :  { %889 = vrot.lane.b32.xlu1 %v10804_v29, %s10669_s15  ;;  %873 = vrot.lane.b32.xlu0 %v10765_v9, %s10669_s15 }
  0x7f   :  { %v10997_v58 = vpop.permute.xlu1 %255  ;;  %v248_v60 = vpop.permute.xlu0 %247 }
  0x80   :  { %v284_v59 = vsel %vm275_vm1, %v252_v47, %v10997_v58  ;;  %v286_v3 = vsel %vm275_vm1, %v248_v60, %v252_v47  ;;  %v288_v4 = vsel %vm275_vm1, %v244_v48, %v248_v60  ;;  %v2783_v47 = vrot.slane %v11010_v63, %v10957_v46 }
  0x81   :  { %v11013_v0 = vmul.f32 %v10970_v51, %v284_v59  ;;  %v11016_v1 = vmul.f32 %v10974_v52, %v284_v59  ;;  %1045 = vrot.lane.b32.xlu1 %v10808_v30, %s18509_s29  ;;  %v11025_v5 = vmul.f32 %v10983_v54, %v288_v4  ;;  %v11028_v6 = vmul.f32 %v10987_v55, %v286_v3 }
  0x82   :  { %v11031_v7 = vmul.f32 %v10991_v56, %v288_v4  ;;  %v11034_v10 = vmul.f32 %v10995_v57, %v286_v3  ;;  %1041 = vrot.lane.b32.xlu0 %v10791_v23, %s18509_s29  ;;  %v2787_v4 = vrot.slane %v11010_v63, %v10942_v41 }
  0x83   :  { %v18180_v11 = vrot.slane %v11013_v0, 4  ;;  %v18183_v12 = vrot.slane %v11016_v1, 4  ;;  %v11040_v14 = vpop.permute.xlu1 %116  ;;  %v18182_v16 = vrot.slane %v11025_v5, 4  ;;  %v18181_v17 = vrot.slane %v11028_v6, 4  ;;  %v11049_v21 = vpop.permute.xlu0 %271 }
  0x84   :  { %v18186_v18 = vrot.slane %v11031_v7, 4  ;;  %v18185_v19 = vrot.slane %v11034_v10, 4  ;;  %18597 = vst [vmem:[#allocation10_spill] sm:$0xff] %v11049_v21  ;;  %v290_v22 = vsel %vm275_vm1, %v11049_v21, %v244_v48 }
  0x85   :  { %412 = vst [vmem:[#allocation2 + $0x58] sm:$0xf0] %v18180_v11  ;;  %2967 = vst [vmem:[#allocation2 + $0x710] sm:$0xf0] %v18183_v12  ;;  %1053 = vrot.lane.b32.xlu1 %v10802_v28, %s18509_s29  ;;  %v11075_v26 = vmul.f32 %v11004_v61, %v290_v22  ;;  %v11078_v27 = vmul.f32 %v11008_v62, %v290_v22 }
  0x86   :  { %410 = vst [vmem:[#allocation2 + $0x48] sm:$0xf0] %v18182_v16  ;;  %411 = vst [vmem:[#allocation2 + $0x50] sm:$0xf0] %v18181_v17  ;;  %1049 = vrot.lane.b32.xlu0 %v10786_v20, %s18509_s29 }
  0x87   :  { %2965 = vst [vmem:[#allocation2 + $0x700] sm:$0xf0] %v18186_v18  ;;  %2966 = vst [vmem:[#allocation2 + $0x708] sm:$0xf0] %v18185_v19  ;;  %v121_v31 = vpop.permute.xlu1 %120  ;;  %v18179_v32 = vrot.slane %v11075_v26, 4  ;;  %v18184_v34 = vrot.slane %v11078_v27, 4  ;;  %v119_v38 = vpop.permute.xlu0 %118 }
  0x88   :  { %v163_v37 = vsel %vm150_vm2, %v11040_v14, %v121_v31 }
  0x89   :  { %v2816_v39 = vmul.f32 %v2779_v25, %v163_v37  ;;  %1167 = vrot.lane.b32.xlu1 %v10791_v23, %s10672_s20  ;;  %409 = vst [vmem:[#allocation2 + $0x40] sm:$0xf0] %v18179_v32  ;;  %2972 = vst [vmem:[#allocation2 + $0x738] sm:$0xf0] %v18184_v34 }
  0x8a   :  { %1069 = vrot.lane.b32.xlu0 %v10817_v33, %s18509_s29 }
  0x8b   :  { %2832 = vst [vmem:[#allocation2 + $0x6c0] sm:$0xff] %v2816_v39  ;;  %v125_v48 = vpop.permute.xlu1 %124  ;;  %v123_v59 = vpop.permute.xlu0 %122 }
  0x8c   :  { %v11103_v53 = vsel %vm150_vm2, %v121_v31, %v125_v48  ;;  %v164_v3 = vsel %vm150_vm2, %v119_v38, %v123_v59  ;;  %v182_v31 = vrot.slane %v11084_v35, %v10942_v41 }
  0x8d   :  { %v2817_v60 = vmul.f32 %v2783_v47, %v11103_v53  ;;  %1171 = vrot.lane.b32.xlu1 %v10808_v30, %s10672_s20  ;;  %v220_v15 = vmul.f32 %v178_v50, %v164_v3  ;;  %v2824_v22 = vmul.f32 %v2779_v25, %v164_v3 }
  0x8e   :  { %1169 = vrot.lane.b32.xlu0 %v10761_v8, %s10672_s20 }
  0x8f   :  { %2833 = vst [vmem:[#allocation2 + $0x6c8] sm:$0xff] %v2817_v60  ;;  %v11114_v24 = vpop.permute.xlu1 %128  ;;  %236 = vst [vmem:[#allocation2 + $0x48] sm:$0xf] %v220_v15  ;;  %v127_v32 = vpop.permute.xlu0 %126  ;;  %v2807_v60 = vrot.slane %v11010_v63, %v10960_v49 }
  0x90   :  { %18598 = vst [vmem:[#allocation11_spill] sm:$0xff] %v11114_v24  ;;  %2840 = vst [vmem:[#allocation2 + $0x700] sm:$0xf] %v2824_v22  ;;  %v159_v39 = vsel %vm150_vm2, %v125_v48, %v11114_v24  ;;  %v162_v25 = vsel %vm150_vm2, %v123_v59, %v127_v32  ;;  %v186_v48 = vrot.slane %v11084_v35, %v10945_v42 }
  0x91   :  { %v2818_v11 = vmul.f32 %v2787_v4, %v159_v39  ;;  %1175 = vrot.lane.b32.xlu1 %v10786_v20, %s10672_s20  ;;  %v221_v3 = vmul.f32 %v182_v31, %v162_v25  ;;  %v2825_v17 = vmul.f32 %v2783_v47, %v162_v25 }
  0x92   :  { %1173 = vrot.lane.b32.xlu0 %v10771_v13, %s10672_s20 }
  0x93   :  { %2834 = vst [vmem:[#allocation2 + $0x6d0] sm:$0xff] %v2818_v11  ;;  %v11129_v15 = vpop.permute.xlu1 %144  ;;  %237 = vst [vmem:[#allocation2 + $0x50] sm:$0xf] %v221_v3  ;;  %v11137_v22 = vpop.permute.xlu0 %130  ;;  %v212_v11 = vmul.f32 %v178_v50, %v163_v37 }
  0x94   :  { %18599 = vst [vmem:[#allocation12_spill] sm:$0xff] %v11129_v15  ;;  %2841 = vst [vmem:[#allocation2 + $0x708] sm:$0xf] %v2825_v17  ;;  %v165_v59 = vsel %vm150_vm2, %v11129_v15, %v11040_v14  ;;  %v160_v47 = vsel %vm150_vm2, %v127_v32, %v11137_v22  ;;  %v174_v14 = vrot.slane %v11084_v35, %v10954_v45 }
  0x95   :  { %18600 = vst [vmem:[#allocation13_spill] sm:$0xff] %v11137_v22  ;;  %v2823_v16 = vmul.f32 %v2807_v60, %v165_v59  ;;  %1179 = vrot.lane.b32.xlu1 %v10802_v28, %s10672_s20  ;;  %v222_v25 = vmul.f32 %v186_v48, %v160_v47  ;;  %v2826_v12 = vmul.f32 %v2787_v4, %v160_v47  ;;  %v9687_v47 = vld [vmem:[%s18171_s3 + $0x2] ss:$8 sm:$0xf0] }
  0x96   :  { %1177 = vrot.lane.b32.xlu0 %v10748_v2, %s10672_s20  ;;  %v3700_v3 = vld [vmem:[#allocation2 + $0x48] sm:$0xff]  ;;  %v213_v15 = vmul.f32 %v182_v31, %v11103_v53  ;;  %v211_v21 = vmul.f32 %v174_v14, %v165_v59  ;;  %v18605_v31 = vrot.slane %v11031_v7, 4 }
  0x97   :  { %2839 = vst [vmem:[#allocation2 + $0x6f8] sm:$0xff] %v2823_v16  ;;  %v246_v17 = vpop.permute.xlu1 %245  ;;  %238 = vst [vmem:[#allocation2 + $0x58] sm:$0xf] %v222_v25  ;;  %v11148_v34 = vpop.permute.xlu0 %146  ;;  %v9854_v32 = vpack.c.bf16 %v3700_v3, %v212_v11  ;;  %v9721_v11 = vld [vmem:[%s18171_s3 + $0x84] ss:$8 sm:$0xf0] }
  0x98   :  { %2842 = vst [vmem:[#allocation2 + $0x710] sm:$0xf] %v2826_v12  ;;  %18601 = vst [vmem:[#allocation14_spill] sm:$0xff] %v11148_v34  ;;  %v166_v37 = vsel %vm150_vm2, %v11148_v34, %v119_v38  ;;  %v9686_v12 = vld [vmem:[%s18171_s3 + $0x2] ss:$8 sm:$0xf] }
  0x99   :  { %1195 = vrot.lane.b32.xlu1 %v10817_v33, %s10672_s20  ;;  %v219_v50 = vmul.f32 %v174_v14, %v166_v37  ;;  %v2831_v4 = vmul.f32 %v2807_v60, %v166_v37  ;;  %9855 = vmatprep.subr.bf16.mxu0 %v9854_v32  ;;  %v9720_v60 = vld [vmem:[%s18171_s3 + $0x84] ss:$8 sm:$0xf]  ;;  %v11182_v34 = vor.u32 %v9687_v47, %v9686_v12 }
  0x9a   :  { %1181 = vrot.lane.b32.xlu0 %v10765_v9, %s10672_s20  ;;  %v3701_v18 = vld [vmem:[#allocation2 + $0x50] sm:$0xff] }
  0x9b   :  { %v254_v16 = vpop.permute.xlu1 %253  ;;  %235 = vst [vmem:[#allocation2 + $0x40] sm:$0xf] %v219_v50  ;;  %2847 = vst [vmem:[#allocation2 + $0x738] sm:$0xf] %v2831_v4  ;;  %v250_v38 = vpop.permute.xlu0 %249  ;;  %v214_v50 = vmul.f32 %v186_v48, %v159_v39  ;;  %v11212_v47 = vrot.slane %v11182_v34, %v10957_v46 }
  0x9c   :  { %v287_v25 = vsel %vm275_vm1, %v250_v38, %v254_v16  ;;  %v289_v3 = vsel %vm275_vm1, %v246_v17, %v250_v38  ;;  %v11184_v38 = vor.u32 %v9721_v11, %v9720_v60  ;;  %v9689_v60 = vld [vmem:[%s18171_s3 + $0x3] ss:$8 sm:$0xf0] }
  0x9d   :  { %1043 = vrot.lane.b32.xlu1 %v10761_v8, %s18509_s29  ;;  %v2901_v32 = vmul.f32 %v10991_v56, %v289_v3  ;;  %v2902_v37 = vmul.f32 %v10995_v57, %v287_v25  ;;  %v346_v24 = vmul.f32 %v10983_v54, %v289_v3  ;;  %v347_v53 = vmul.f32 %v10987_v55, %v287_v25 }
  0x9e   :  { %1197 = vrot.lane.b32.xlu0 %v10804_v29, %s10672_s20  ;;  %v3702_v19 = vld [vmem:[#allocation2 + $0x58] sm:$0xff]  ;;  %18603 = vst [vmem:[#allocation16_spill] sm:$0xff] %v11184_v38  ;;  %v18606_v54 = vrot.slane %v11034_v10, 4 }
  0x9f   :  { %v11179_v4 = vpop.permute.xlu1 %273  ;;  %v2933_v56 = vrot.slane %v2901_v32, 4  ;;  %v2935_v22 = vrot.slane %v2902_v37, 4  ;;  %v11187_v57 = vpop.permute.xlu0 %257  ;;  %v9934_v12 = vpack.c.bf16 %v3702_v19, %v214_v50  ;;  %v379_v11 = vrot.slane %v346_v24, 4  ;;  %v9722_v32 = vld [vmem:[%s18171_s3 + $0x85] ss:$8 sm:$0xf] }
  0xa0   :  { %18602 = vst [vmem:[#allocation15_spill] sm:$0xff] %v11179_v4  ;;  %18604 = vst [vmem:[#allocation17_spill] sm:$0xff] %v11187_v57  ;;  %v291_v39 = vsel %vm275_vm1, %v11179_v4, %v246_v17  ;;  %v285_v48 = vsel %vm275_vm1, %v254_v16, %v11187_v57  ;;  %v9936_v17 = vpack.c.bf16 %v3701_v18, %v213_v15  ;;  %v381_v37 = vrot.slane %v347_v53, 4 }
  0xa1   :  { %1051 = vrot.lane.b32.xlu1 %v10748_v2, %s18509_s29  ;;  %v2934_v59 = vsel %vm67_vm0, %v18605_v31, %v2933_v56  ;;  %v2936_v14 = vsel %vm67_vm0, %v18606_v54, %v2935_v22  ;;  %v2908_v16 = vmul.f32 %v11008_v62, %v291_v39  ;;  %v348_v19 = vmul.f32 %v10970_v51, %v285_v48 }
  0xa2   :  { %1047 = vrot.lane.b32.xlu0 %v10771_v13, %s18509_s29  ;;  %2973 = vst [vmem:[#allocation2 + $0x740] sm:$0xff] %v2934_v59  ;;  %2974 = vst [vmem:[#allocation2 + $0x748] sm:$0xff] %v2936_v14  ;;  %v2903_v55 = vmul.f32 %v10974_v52, %v285_v48  ;;  %9935 = vmatprep.subr.bf16.mxu1 %v9934_v12  ;;  %v3699_v10 = vld [vmem:[#allocation2 + $0x40] sm:$0xff]  ;;  %v11216_v22 = vrot.slane %v11184_v38, %v10954_v45  ;;  %v18607_v53 = vrot.slane %v11078_v27, 4 }
  0xa3   :  { %v430_v7 = vpop.permute.xlu1 %429  ;;  %9937 = vmatpush1.bf16.msra.mxu1 %v9936_v17  ;;  %v426_v18 = vpop.permute.xlu0 %425  ;;  %v9856_v15 = vpack.c.bf16 %v3699_v10, %v211_v21  ;;  %v11220_v62 = vrot.slane %v11182_v34, %v10942_v41  ;;  %v11224_v51 = vrot.slane %v11182_v34, %v10945_v42  ;;  %v9688_v52 = vld [vmem:[%s18171_s3 + $0x3] ss:$8 sm:$0xf]  ;;  %v2947_v25 = vrot.slane %v2908_v16, 4 }
  0xa4   :  { %v2937_v3 = vrot.slane %v2903_v55, 4  ;;  %v11236_v21 = vrot.slane %v11184_v38, %v10957_v46  ;;  %v470_v50 = vsel %vm457_vm3, %v426_v18, %v430_v7  ;;  %v11247_v24 = vrot.slane %v11184_v38, %v10942_v41  ;;  %v9723_v48 = vld [vmem:[%s18171_s3 + $0x85] ss:$8 sm:$0xf0] }
  0xa5   :  { %1071 = vrot.lane.b32.xlu1 %v10804_v29, %s18509_s29  ;;  %9857 = vmatpush1.bf16.msra.mxu0 %v9856_v15  ;;  %v11251_v56 = vrot.slane %v11182_v34, %v10954_v45  ;;  %v345_v12 = vmul.f32 %v11004_v61, %v291_v39  ;;  %v2948_v31 = vsel %vm67_vm0, %v18607_v53, %v2947_v25  ;;  %v383_v59 = vrot.slane %v348_v19, 4 }
  0xa6   :  { %1055 = vrot.lane.b32.xlu0 %v10765_v9, %s18509_s29  ;;  %v18608_v54 = vrot.slane %v11016_v1, 4  ;;  %2980 = vst [vmem:[#allocation2 + $0x778] sm:$0xff] %v2948_v31  ;;  %v520_v16 = vmul.f32 %v11212_v47, %v470_v50  ;;  %v3026_v55 = vmul.f32 %v11216_v22, %v470_v50  ;;  %v11269_v61 = vrot.slane %v11184_v38, %v10960_v49 }
  0xa7   :  { %v11263_v17 = vpop.permute.xlu1 %437  ;;  %v434_v10 = vpop.permute.xlu0 %433  ;;  %v11271_v27 = vor.u32 %v9689_v60, %v9688_v52  ;;  %v18611_v39 = vrot.slane %v11025_v5, 4  ;;  %v11283_v25 = vor.u32 %v9723_v48, %v9722_v32  ;;  %v377_v50 = vrot.slane %v345_v12, 4 }
  0xa8   :  { %v2938_v14 = vsel %vm67_vm0, %v18608_v54, %v2937_v3  ;;  %18609 = vst [vmem:[#allocation18_spill] sm:$0xff] %v11263_v17  ;;  %v466_v19 = vsel %vm457_vm3, %v434_v10, %v11263_v17  ;;  %v468_v15 = vsel %vm457_vm3, %v430_v7, %v434_v10  ;;  %3042 = vst [vmem:[#allocation2 + $0x780] sm:$0xff] %v3026_v55  ;;  %v18613_v7 = vrot.slane %v11028_v6, 4 }
  0xa9   :  { %2975 = vst [vmem:[#allocation2 + $0x750] sm:$0xff] %v2938_v14  ;;  %18610 = vst [vmem:[#allocation19_spill] sm:$0xff] %v11271_v27  ;;  %v380_v1 = vsel %vm67_vm0, %v18611_v39, %v379_v11  ;;  %1479 = vrot.lane.b32.xlu1 %v10808_v30, %s18438_s25  ;;  %v521_v52 = vmul.f32 %v11220_v62, %v468_v15  ;;  %v522_v5 = vmul.f32 %v11224_v51, %v466_v19 }
  0xaa   :  { %18612 = vst [vmem:[#allocation20_spill] sm:$0xff] %v11283_v25  ;;  %v3027_v60 = vmul.f32 %v11236_v21, %v468_v15  ;;  %v3028_v11 = vmul.f32 %v11247_v24, %v466_v19  ;;  %1475 = vrot.lane.b32.xlu0 %v10791_v23, %s18438_s25  ;;  %v382_v3 = vsel %vm67_vm0, %v18613_v7, %v381_v37  ;;  %v18614_v32 = vrot.slane %v11013_v0, 4 }
  0xab   :  { %v11297_v53 = vpop.permute.xlu1 %551  ;;  %v9858_v31 = vpack.c.bf16 %v520_v16, %v380_v1  ;;  %v11299_v54 = vpop.permute.xlu0 %453  ;;  %v9940_v55 = vpack.c.bf16 %v521_v52, %v382_v3  ;;  %v11309_v0 = vrot.slane %v11271_v27, %v10957_v46  ;;  %v3066_v37 = vrot.slane %v11283_v25, %v10954_v45 }
  0xac   :  { %v384_v48 = vsel %vm67_vm0, %v18614_v32, %v383_v59  ;;  %3043 = vst [vmem:[#allocation2 + $0x788] sm:$0xff] %v3027_v60  ;;  %3044 = vst [vmem:[#allocation2 + $0x790] sm:$0xff] %v3028_v11  ;;  %v472_v6 = vsel %vm457_vm3, %v11299_v54, %v426_v18  ;;  %v18616_v18 = vrot.slane %v11075_v26, 4  ;;  %v11332_v26 = vrot.slane %v11271_v27, %v10942_v41 }
  0xad   :  { %18615 = vst [vmem:[#allocation21_spill] sm:$0xff] %v11299_v54  ;;  %v9938_v14 = vpack.c.bf16 %v522_v5, %v384_v48  ;;  %1487 = vrot.lane.b32.xlu1 %v10802_v28, %s18438_s25  ;;  %9859 = vmatprep.subr.bf16.mxu0 %v9858_v31  ;;  %v519_v12 = vmul.f32 %v11251_v56, %v472_v6 }
  0xae   :  { %v3033_v59 = vmul.f32 %v11269_v61, %v472_v6  ;;  %1483 = vrot.lane.b32.xlu0 %v10786_v20, %s18438_s25  ;;  %v378_v16 = vsel %vm67_vm0, %v18616_v18, %v377_v50  ;;  %v3070_v5 = vrot.slane %v11283_v25, %v10957_v46  ;;  %v11343_v32 = vrot.slane %v11271_v27, %v10945_v42 }
  0xaf   :  { %9939 = vmatprep.subr.bf16.mxu1 %v9938_v14  ;;  %v556_v10 = vpop.permute.xlu1 %555  ;;  %v11323_v1 = vpop.permute.xlu0 %553  ;;  %v9860_v19 = vpack.c.bf16 %v519_v12, %v378_v16 }
  0xb0   :  { %9941 = vmatpush1.bf16.msra.mxu1 %v9940_v55  ;;  %3049 = vst [vmem:[#allocation2 + $0x7b8] sm:$0xff] %v3033_v59  ;;  %v596_v39 = vsel %vm583_vm4, %v11297_v53, %v556_v10  ;;  %v3074_v55 = vrot.slane %v11283_v25, %v10942_v41 }
  0xb1   :  { %v11326_v15 = vmul.f32 %v11309_v0, %v596_v39  ;;  %v3103_v52 = vmul.f32 %v3066_v37, %v596_v39  ;;  %1349 = vrot.lane.b32.xlu1 %v10791_v23, %s18440_s26  ;;  %9861 = vmatpush1.bf16.msra.mxu0 %v9860_v19  ;;  %v11370_v19 = vrot.slane %v11271_v27, %v10954_v45 }
  0xb2   :  { %1503 = vrot.lane.b32.xlu0 %v10817_v33, %s18438_s25 }
  0xb3   :  { %v18193_v60 = vrot.slane %v11326_v15, 4  ;;  %v3135_v11 = vrot.slane %v3103_v52, 4  ;;  %v560_v7 = vpop.permute.xlu1 %559  ;;  %v558_v50 = vpop.permute.xlu0 %557 }
  0xb4   :  { %v594_v3 = vsel %vm583_vm4, %v556_v10, %v560_v7  ;;  %v11353_v14 = vsel %vm583_vm4, %v11323_v1, %v558_v50 }
  0xb5   :  { %718 = vst [vmem:[#allocation2 + $0x108] sm:$0xf0] %v18193_v60  ;;  %3175 = vst [vmem:[#allocation2 + $0x7c0] sm:$0xf0] %v3135_v11  ;;  %v11348_v48 = vmul.f32 %v11332_v26, %v594_v3  ;;  %v3104_v31 = vmul.f32 %v3070_v5, %v594_v3  ;;  %1353 = vrot.lane.b32.xlu1 %v10808_v30, %s18440_s26  ;;  %v3111_v6 = vmul.f32 %v3066_v37, %v11353_v14 }
  0xb6   :  { %1351 = vrot.lane.b32.xlu0 %v10761_v8, %s18440_s26  ;;  %v654_v17 = vmul.f32 %v11309_v0, %v11353_v14 }
  0xb7   :  { %v18192_v12 = vrot.slane %v11348_v48, 4  ;;  %v3136_v59 = vrot.slane %v3104_v31, 4  ;;  %v11363_v18 = vpop.permute.xlu1 %563  ;;  %v3143_v16 = vrot.slane %v3111_v6, 4  ;;  %v562_v39 = vpop.permute.xlu0 %561 }
  0xb8   :  { %18617 = vst [vmem:[#allocation22_spill] sm:$0xff] %v11363_v18  ;;  %v592_v10 = vsel %vm583_vm4, %v560_v7, %v11363_v18  ;;  %v11379_v3 = vsel %vm583_vm4, %v558_v50, %v562_v39  ;;  %v3094_v7 = vrot.slane %v11283_v25, %v10960_v49 }
  0xb9   :  { %719 = vst [vmem:[#allocation2 + $0x110] sm:$0xf0] %v18192_v12  ;;  %3176 = vst [vmem:[#allocation2 + $0x7c8] sm:$0xf0] %v3136_v59  ;;  %v11375_v37 = vmul.f32 %v11343_v32, %v592_v10  ;;  %v3105_v52 = vmul.f32 %v3074_v55, %v592_v10  ;;  %1357 = vrot.lane.b32.xlu1 %v10786_v20, %s18440_s26  ;;  %v3144_v31 = vsel %vm67_vm0, %v3135_v11, %v3143_v16 }
  0xba   :  { %v3112_v6 = vmul.f32 %v3070_v5, %v11379_v3  ;;  %1355 = vrot.lane.b32.xlu0 %v10771_v13, %s18440_s26  ;;  %3183 = vst [vmem:[#allocation2 + $0x800] sm:$0xff] %v3144_v31 }
  0xbb   :  { %v18196_v10 = vrot.slane %v11375_v37, 4  ;;  %v3137_v12 = vrot.slane %v3105_v52, 4  ;;  %v11390_v60 = vpop.permute.xlu1 %579  ;;  %v11396_v4 = vpop.permute.xlu0 %565 }
  0xbc   :  { %18618 = vst [vmem:[#allocation23_spill] sm:$0xff] %v11390_v60  ;;  %v3145_v50 = vrot.slane %v3112_v6, 4  ;;  %v598_v54 = vsel %vm583_vm4, %v11390_v60, %v11297_v53  ;;  %18619 = vst [vmem:[#allocation24_spill] sm:$0xff] %v11396_v4  ;;  %v593_v16 = vsel %vm583_vm4, %v562_v39, %v11396_v4 }
  0xbd   :  { %720 = vst [vmem:[#allocation2 + $0x118] sm:$0xf0] %v18196_v10  ;;  %3177 = vst [vmem:[#allocation2 + $0x7d0] sm:$0xf0] %v3137_v12  ;;  %v11401_v5 = vmul.f32 %v11370_v19, %v598_v54  ;;  %v3110_v11 = vmul.f32 %v3094_v7, %v598_v54  ;;  %1361 = vrot.lane.b32.xlu1 %v10802_v28, %s18440_s26  ;;  %v3113_v53 = vmul.f32 %v3074_v55, %v593_v16 }
  0xbe   :  { %v3146_v52 = vsel %vm67_vm0, %v3136_v59, %v3145_v50  ;;  %1359 = vrot.lane.b32.xlu0 %v10748_v2, %s18440_s26  ;;  %v9692_v50 = vld [vmem:[%s18171_s3 + $0x5] ss:$8 sm:$0xf] }
  0xbf   :  { %3184 = vst [vmem:[#allocation2 + $0x808] sm:$0xff] %v3146_v52  ;;  %v18198_v31 = vrot.slane %v11401_v5, 4  ;;  %v3142_v6 = vrot.slane %v3110_v11, 4  ;;  %v428_v10 = vpop.permute.xlu1 %427  ;;  %v3147_v60 = vrot.slane %v3113_v53, 4  ;;  %v11412_v54 = vpop.permute.xlu0 %581 }
  0xc0   :  { %18620 = vst [vmem:[#allocation25_spill] sm:$0xff] %v11412_v54  ;;  %v599_v55 = vsel %vm583_vm4, %v11412_v54, %v11323_v1  ;;  %v9693_v11 = vld [vmem:[%s18171_s3 + $0x5] ss:$8 sm:$0xf0] }
  0xc1   :  { %717 = vst [vmem:[#allocation2 + $0x100] sm:$0xf0] %v18198_v31  ;;  %3182 = vst [vmem:[#allocation2 + $0x7f8] sm:$0xf0] %v3142_v6  ;;  %1377 = vrot.lane.b32.xlu1 %v10817_v33, %s18440_s26  ;;  %v3148_v59 = vsel %vm67_vm0, %v3137_v12, %v3147_v60  ;;  %v3118_v39 = vmul.f32 %v3094_v7, %v599_v55 }
  0xc2   :  { %1363 = vrot.lane.b32.xlu0 %v10765_v9, %s18440_s26  ;;  %3185 = vst [vmem:[#allocation2 + $0x810] sm:$0xff] %v3148_v59  ;;  %v9726_v1 = vld [vmem:[%s18171_s3 + $0x87] ss:$8 sm:$0xf]  ;;  %v11443_v59 = vor.u32 %v9693_v11, %v9692_v50 }
  0xc3   :  { %v436_v52 = vpop.permute.xlu1 %435  ;;  %v9727_v60 = vld [vmem:[%s18171_s3 + $0x87] ss:$8 sm:$0xf0]  ;;  %v3157_v12 = vrot.slane %v3118_v39, 4  ;;  %v432_v7 = vpop.permute.xlu0 %431 }
  0xc4   :  { %v469_v53 = vsel %vm457_vm3, %v432_v7, %v436_v52  ;;  %v471_v31 = vsel %vm457_vm3, %v428_v10, %v432_v7  ;;  %18621 = vst [vmem:[#allocation26_spill] sm:$0xff] %v11443_v59  ;;  %v11450_v39 = vor.u32 %v9727_v60, %v9726_v1 }
  0xc5   :  { %1477 = vrot.lane.b32.xlu1 %v10761_v8, %s18438_s25  ;;  %v3158_v54 = vsel %vm67_vm0, %v3142_v6, %v3157_v12  ;;  %v528_v4 = vmul.f32 %v11212_v47, %v471_v31  ;;  %v529_v18 = vmul.f32 %v11220_v62, %v469_v53  ;;  %v3034_v7 = vmul.f32 %v11216_v22, %v471_v31 }
  0xc6   :  { %1379 = vrot.lane.b32.xlu0 %v10804_v29, %s18440_s26  ;;  %18622 = vst [vmem:[#allocation27_spill] sm:$0xff] %v11450_v39  ;;  %3190 = vst [vmem:[#allocation2 + $0x838] sm:$0xff] %v3158_v54  ;;  %v3035_v8 = vmul.f32 %v11236_v21, %v469_v53  ;;  %v653_v6 = vmul.f32 %v11370_v19, %v599_v55  ;;  %v656_v19 = vmul.f32 %v11343_v32, %v593_v16 }
  0xc7   :  { %v11456_v50 = vpop.permute.xlu1 %455  ;;  %544 = vst [vmem:[#allocation2 + $0x108] sm:$0xf] %v528_v4  ;;  %545 = vst [vmem:[#allocation2 + $0x110] sm:$0xf] %v529_v18  ;;  %v11461_v62 = vpop.permute.xlu0 %439  ;;  %v11478_v18 = vrot.slane %v11443_v59, %v10957_v46  ;;  %v655_v32 = vmul.f32 %v11332_v26, %v11379_v3  ;;  %v11503_v54 = vrot.slane %v11443_v59, %v10945_v42 }
  0xc8   :  { %18623 = vst [vmem:[#allocation28_spill] sm:$0xff] %v11456_v50  ;;  %v473_v47 = vsel %vm457_vm3, %v11456_v50, %v428_v10  ;;  %18624 = vst [vmem:[#allocation29_spill] sm:$0xff] %v11461_v62  ;;  %v467_v4 = vsel %vm457_vm3, %v436_v52, %v11461_v62  ;;  %v9724_v10 = vld [vmem:[%s18171_s3 + $0x86] ss:$8 sm:$0xf]  ;;  %v685_v16 = vrot.slane %v653_v6, 4  ;;  %v11515_v26 = vrot.slane %v11450_v39, %v10957_v46 }
  0xc9   :  { %3050 = vst [vmem:[#allocation2 + $0x7c0] sm:$0xf] %v3034_v7  ;;  %3051 = vst [vmem:[#allocation2 + $0x7c8] sm:$0xf] %v3035_v8  ;;  %v527_v22 = vmul.f32 %v11251_v56, %v473_v47  ;;  %v3041_v21 = vmul.f32 %v11269_v61, %v473_v47  ;;  %1485 = vrot.lane.b32.xlu1 %v10748_v2, %s18438_s25  ;;  %v530_v0 = vmul.f32 %v11224_v51, %v467_v4 }
  0xca   :  { %v3036_v14 = vmul.f32 %v11247_v24, %v467_v4  ;;  %1481 = vrot.lane.b32.xlu0 %v10771_v13, %s18438_s25  ;;  %v11482_v56 = vrot.slane %v11450_v39, %v10954_v45  ;;  %v687_v61 = vrot.slane %v654_v17, 4  ;;  %v11487_v24 = vrot.slane %v11443_v59, %v10942_v41  ;;  %v9725_v17 = vld [vmem:[%s18171_s3 + $0x86] ss:$8 sm:$0xf0] }
  0xcb   :  { %543 = vst [vmem:[#allocation2 + $0x100] sm:$0xf] %v527_v22  ;;  %3057 = vst [vmem:[#allocation2 + $0x7f8] sm:$0xf] %v3041_v21  ;;  %v864_v2 = vpop.permute.xlu1 %863  ;;  %v860_v51 = vpop.permute.xlu0 %859  ;;  %v11519_v3 = vrot.slane %v11450_v39, %v10942_v41  ;;  %v18625_v52 = vrot.slane %v11326_v15, 4  ;;  %v691_v60 = vrot.slane %v656_v19, 4  ;;  %v11528_v7 = vrot.slane %v11443_v59, %v10954_v45 }
  0xcc   :  { %546 = vst [vmem:[#allocation2 + $0x118] sm:$0xf] %v530_v0  ;;  %3052 = vst [vmem:[#allocation2 + $0x7d0] sm:$0xf] %v3036_v14  ;;  %v904_v31 = vsel %vm891_vm5, %v860_v51, %v864_v2  ;;  %v11530_v8 = vor.u32 %v9725_v17, %v9724_v10  ;;  %v11536_v15 = vrot.slane %v11450_v39, %v10960_v49  ;;  %v689_v4 = vrot.slane %v655_v32, 4 }
  0xcd   :  { %1505 = vrot.lane.b32.xlu1 %v10804_v29, %s18438_s25  ;;  %v11506_v55 = vmul.f32 %v11478_v18, %v904_v31  ;;  %v11509_v11 = vmul.f32 %v11482_v56, %v904_v31  ;;  %v688_v1 = vsel %vm67_vm0, %v18625_v52, %v687_v61  ;;  %v18628_v0 = vrot.slane %v11401_v5, 4 }
  0xce   :  { %1489 = vrot.lane.b32.xlu0 %v10765_v9, %s18438_s25  ;;  %v3724_v53 = vld [vmem:[#allocation2 + $0x108] sm:$0xff]  ;;  %18627 = vst [vmem:[#allocation31_spill] sm:$0xff] %v11530_v8 }
  0xcf   :  { %v11524_v12 = vpop.permute.xlu1 %871  ;;  %v18203_v47 = vrot.slane %v11506_v55, 4  ;;  %v18204_v6 = vrot.slane %v11509_v11, 4  ;;  %v868_v22 = vpop.permute.xlu0 %867  ;;  %v9862_v21 = vpack.c.bf16 %v688_v1, %v3724_v53  ;;  %v686_v14 = vsel %vm67_vm0, %v18628_v0, %v685_v16  ;;  %v9690_v0 = vld [vmem:[%s18171_s3 + $0x4] ss:$8 sm:$0xf] }
  0xd0   :  { %18626 = vst [vmem:[#allocation30_spill] sm:$0xff] %v11524_v12  ;;  %v900_v61 = vsel %vm891_vm5, %v868_v22, %v11524_v12  ;;  %v902_v19 = vsel %vm891_vm5, %v864_v2, %v868_v22  ;;  %v18629_v16 = vrot.slane %v11375_v37, 4  ;;  %v3725_v22 = vld [vmem:[#allocation2 + $0x110] sm:$0xff] }
  0xd1   :  { %1661 = vrot.lane.b32.xlu1 %v10808_v30, %s18436_s30  ;;  %1026 = vst [vmem:[#allocation2 + $0x1c8] sm:$0xf0] %v18203_v47  ;;  %3385 = vst [vmem:[#allocation2 + $0x880] sm:$0xf0] %v18204_v6  ;;  %v11553_v5 = vmul.f32 %v11487_v24, %v902_v19  ;;  %v11556_v10 = vmul.f32 %v11503_v54, %v900_v61  ;;  %v11559_v17 = vmul.f32 %v11515_v26, %v902_v19 }
  0xd2   :  { %v11562_v2 = vmul.f32 %v11519_v3, %v900_v61  ;;  %1657 = vrot.lane.b32.xlu0 %v10791_v23, %s18436_s30  ;;  %v3723_v32 = vld [vmem:[#allocation2 + $0x100] sm:$0xff]  ;;  %v692_v31 = vsel %vm67_vm0, %v18629_v16, %v691_v60  ;;  %9863 = vmatprep.subr.bf16.mxu0 %v9862_v21  ;;  %v3199_v61 = vrot.slane %v11530_v8, %v10954_v45 }
  0xd3   :  { %v11569_v52 = vpop.permute.xlu1 %733  ;;  %v9864_v1 = vpack.c.bf16 %v686_v14, %v3723_v32  ;;  %v3726_v53 = vld [vmem:[#allocation2 + $0x118] sm:$0xff]  ;;  %v18206_v19 = vrot.slane %v11553_v5, 4  ;;  %v18205_v47 = vrot.slane %v11556_v10, 4  ;;  %v18209_v37 = vrot.slane %v11559_v17, 4  ;;  %v11580_v21 = vpop.permute.xlu0 %887 }
  0xd4   :  { %18630 = vst [vmem:[#allocation32_spill] sm:$0xff] %v11580_v21  ;;  %v18631_v14 = vrot.slane %v11348_v48, 4  ;;  %v906_v16 = vsel %vm891_vm5, %v11580_v21, %v860_v51  ;;  %v9942_v6 = vpack.c.bf16 %v692_v31, %v3726_v53  ;;  %v9691_v60 = vld [vmem:[%s18171_s3 + $0x4] ss:$8 sm:$0xf0]  ;;  %v18632_v48 = vrot.slane %v11562_v2, 4 }
  0xd5   :  { %1669 = vrot.lane.b32.xlu1 %v10802_v28, %s18436_s30  ;;  %9865 = vmatpush1.bf16.msra.mxu0 %v9864_v1  ;;  %1027 = vst [vmem:[#allocation2 + $0x1d0] sm:$0xf0] %v18206_v19  ;;  %1028 = vst [vmem:[#allocation2 + $0x1d8] sm:$0xf0] %v18205_v47  ;;  %v11603_v51 = vmul.f32 %v11528_v7, %v906_v16  ;;  %v11612_v47 = vor.u32 %v9691_v60, %v9690_v0 }
  0xd6   :  { %v690_v32 = vsel %vm67_vm0, %v18631_v14, %v689_v4  ;;  %3386 = vst [vmem:[#allocation2 + $0x888] sm:$0xf0] %v18209_v37  ;;  %3387 = vst [vmem:[#allocation2 + $0x890] sm:$0xf0] %v18632_v48  ;;  %v11606_v4 = vmul.f32 %v11536_v15, %v906_v16  ;;  %1665 = vrot.lane.b32.xlu0 %v10786_v20, %s18436_s30  ;;  %9943 = vmatprep.subr.bf16.mxu1 %v9942_v6 }
  0xd7   :  { %v9944_v31 = vpack.c.bf16 %v690_v32, %v3725_v22  ;;  %v738_v1 = vpop.permute.xlu1 %737  ;;  %v18207_v53 = vrot.slane %v11603_v51, 4  ;;  %18633 = vst [vmem:[#allocation33_spill] sm:$0xff] %v11612_v47  ;;  %v11617_v19 = vpop.permute.xlu0 %735  ;;  %v3203_v6 = vrot.slane %v11530_v8, %v10957_v46  ;;  %v794_v0 = vrot.slane %v11612_v47, %v10957_v46 }
  0xd8   :  { %v18208_v14 = vrot.slane %v11606_v4, 4  ;;  %v778_v48 = vsel %vm765_vm6, %v11569_v52, %v738_v1  ;;  %v11654_v50 = vrot.slane %v11612_v47, %v10942_v41 }
  0xd9   :  { %9945 = vmatpush1.bf16.msra.mxu1 %v9944_v31  ;;  %v3236_v16 = vmul.f32 %v3199_v61, %v778_v48  ;;  %1783 = vrot.lane.b32.xlu1 %v10791_v23, %s18434_s22  ;;  %1025 = vst [vmem:[#allocation2 + $0x1c0] sm:$0xf0] %v18207_v53 }
  0xda   :  { %3392 = vst [vmem:[#allocation2 + $0x8b8] sm:$0xf0] %v18208_v14  ;;  %1685 = vrot.lane.b32.xlu0 %v10817_v33, %s18436_s30 }
  0xdb   :  { %3252 = vst [vmem:[#allocation2 + $0x840] sm:$0xff] %v3236_v16  ;;  %v742_v22 = vpop.permute.xlu1 %741  ;;  %v740_v32 = vpop.permute.xlu0 %739  ;;  %v3207_v16 = vrot.slane %v11530_v8, %v10942_v41 }
  0xdc   :  { %v11633_v60 = vsel %vm765_vm6, %v738_v1, %v742_v22  ;;  %v779_v53 = vsel %vm765_vm6, %v11617_v19, %v740_v32  ;;  %v11646_v1 = vld [vmem:[%s18170_s2] sm:$0xff] }
  0xdd   :  { %v3237_v31 = vmul.f32 %v3203_v6, %v11633_v60  ;;  %1787 = vrot.lane.b32.xlu1 %v10808_v30, %s18434_s22  ;;  %v836_v14 = vmul.f32 %v794_v0, %v779_v53  ;;  %v3244_v37 = vmul.f32 %v3199_v61, %v779_v53 }
  0xde   :  { %1785 = vrot.lane.b32.xlu0 %v11646_v1, %s18434_s22 }
  0xdf   :  { %3253 = vst [vmem:[#allocation2 + $0x848] sm:$0xff] %v3237_v31  ;;  %v11650_v21 = vpop.permute.xlu1 %745  ;;  %852 = vst [vmem:[#allocation2 + $0x1c8] sm:$0xf] %v836_v14  ;;  %v744_v53 = vpop.permute.xlu0 %743  ;;  %v3227_v31 = vrot.slane %v11530_v8, %v10960_v49  ;;  %v802_v14 = vrot.slane %v11612_v47, %v10945_v42 }
  0xe0   :  { %18634 = vst [vmem:[#allocation34_spill] sm:$0xff] %v11650_v21  ;;  %3260 = vst [vmem:[#allocation2 + $0x880] sm:$0xf] %v3244_v37  ;;  %v774_v61 = vsel %vm765_vm6, %v742_v22, %v11650_v21  ;;  %v777_v62 = vsel %vm765_vm6, %v740_v32, %v744_v53 }
  0xe1   :  { %v3238_v12 = vmul.f32 %v3207_v16, %v774_v61  ;;  %1791 = vrot.lane.b32.xlu1 %v10786_v20, %s18434_s22  ;;  %v837_v39 = vmul.f32 %v11654_v50, %v777_v62  ;;  %v3245_v59 = vmul.f32 %v3203_v6, %v777_v62 }
  0xe2   :  { %1789 = vrot.lane.b32.xlu0 %v10771_v13, %s18434_s22 }
  0xe3   :  { %3254 = vst [vmem:[#allocation2 + $0x850] sm:$0xff] %v3238_v12  ;;  %v11668_v37 = vpop.permute.xlu1 %761  ;;  %853 = vst [vmem:[#allocation2 + $0x1d0] sm:$0xf] %v837_v39  ;;  %v11676_v32 = vpop.permute.xlu0 %747  ;;  %v828_v12 = vmul.f32 %v794_v0, %v778_v48  ;;  %v9694_v39 = vld [vmem:[%s18171_s3 + $0x6] ss:$8 sm:$0xf]  ;;  %v790_v0 = vrot.slane %v11612_v47, %v10954_v45 }
  0xe4   :  { %18635 = vst [vmem:[#allocation35_spill] sm:$0xff] %v11668_v37  ;;  %3261 = vst [vmem:[#allocation2 + $0x888] sm:$0xf] %v3245_v59  ;;  %v780_v22 = vsel %vm765_vm6, %v11668_v37, %v11569_v52  ;;  %v775_v62 = vsel %vm765_vm6, %v744_v53, %v11676_v32  ;;  %v11686_v59 = vld [vmem:[%s18170_s2 + $0x8] sm:$0xff] }
  0xe5   :  { %18636 = vst [vmem:[#allocation36_spill] sm:$0xff] %v11676_v32  ;;  %v3243_v21 = vmul.f32 %v3227_v31, %v780_v22  ;;  %1795 = vrot.lane.b32.xlu1 %v10802_v28, %s18434_s22  ;;  %v838_v6 = vmul.f32 %v802_v14, %v775_v62  ;;  %v3246_v8 = vmul.f32 %v3207_v16, %v775_v62  ;;  %v9695_v48 = vld [vmem:[%s18171_s3 + $0x6] ss:$8 sm:$0xf0] }
  0xe6   :  { %1793 = vrot.lane.b32.xlu0 %v11686_v59, %s18434_s22  ;;  %v3748_v53 = vld [vmem:[#allocation2 + $0x1c8] sm:$0xff] }
  0xe7   :  { %3259 = vst [vmem:[#allocation2 + $0x878] sm:$0xff] %v3243_v21  ;;  %v862_v52 = vpop.permute.xlu1 %861  ;;  %854 = vst [vmem:[#allocation2 + $0x1d8] sm:$0xf] %v838_v6  ;;  %v11698_v16 = vpop.permute.xlu0 %763  ;;  %v9866_v62 = vpack.c.bf16 %v3748_v53, %v828_v12  ;;  %v9728_v37 = vld [vmem:[%s18171_s3 + $0xc0] ss:$8 sm:$0xf]  ;;  %v11714_v53 = vor.u32 %v9695_v48, %v9694_v39 }
  0xe8   :  { %3262 = vst [vmem:[#allocation2 + $0x890] sm:$0xf] %v3246_v8  ;;  %18637 = vst [vmem:[#allocation37_spill] sm:$0xff] %v11698_v16  ;;  %v9729_v21 = vld [vmem:[%s18171_s3 + $0xc0] ss:$8 sm:$0xf0]  ;;  %v781_v32 = vsel %vm765_vm6, %v11698_v16, %v11617_v19 }
  0xe9   :  { %1811 = vrot.lane.b32.xlu1 %v10817_v33, %s18434_s22  ;;  %v835_v8 = vmul.f32 %v790_v0, %v781_v32  ;;  %v3251_v6 = vmul.f32 %v3227_v31, %v781_v32  ;;  %9867 = vmatprep.subr.bf16.mxu0 %v9866_v62  ;;  %18638 = vst [vmem:[#allocation38_spill] sm:$0xff] %v11714_v53 }
  0xea   :  { %1797 = vrot.lane.b32.xlu0 %v10765_v9, %s18434_s22  ;;  %v11716_v47 = vor.u32 %v9729_v21, %v9728_v37  ;;  %v830_v37 = vmul.f32 %v802_v14, %v774_v61  ;;  %v3749_v62 = vld [vmem:[#allocation2 + $0x1d0] sm:$0xff] }
  0xeb   :  { %v870_v12 = vpop.permute.xlu1 %869  ;;  %851 = vst [vmem:[#allocation2 + $0x1c0] sm:$0xf] %v835_v8  ;;  %3267 = vst [vmem:[#allocation2 + $0x8b8] sm:$0xf] %v3251_v6  ;;  %v866_v57 = vpop.permute.xlu0 %865 }
  0xec   :  { %18639 = vst [vmem:[#allocation39_spill] sm:$0xff] %v11716_v47  ;;  %v903_v19 = vsel %vm891_vm5, %v866_v57, %v870_v12  ;;  %v905_v16 = vsel %vm891_vm5, %v862_v52, %v866_v57  ;;  %v11733_v57 = vrot.slane %v11714_v53, %v10957_v46  ;;  %v11737_v21 = vrot.slane %v11716_v47, %v10954_v45 }
  0xed   :  { %1659 = vrot.lane.b32.xlu1 %v11646_v1, %s18436_s30  ;;  %v3321_v31 = vmul.f32 %v11482_v56, %v905_v16  ;;  %v3322_v32 = vmul.f32 %v11515_v26, %v903_v19  ;;  %v829_v56 = vmul.f32 %v11654_v50, %v11633_v60  ;;  %v827_v26 = vmul.f32 %v790_v0, %v780_v22 }
  0xee   :  { %1813 = vrot.lane.b32.xlu0 %v10804_v29, %s18434_s22  ;;  %v3750_v48 = vld [vmem:[#allocation2 + $0x1d8] sm:$0xff]  ;;  %v962_v6 = vmul.f32 %v11478_v18, %v905_v16  ;;  %v963_v50 = vmul.f32 %v11487_v24, %v903_v19  ;;  %v18642_v60 = vrot.slane %v11509_v11, 4  ;;  %v18643_v18 = vrot.slane %v11559_v17, 4 }
  0xef   :  { %v11728_v39 = vpop.permute.xlu1 %889  ;;  %v3353_v8 = vrot.slane %v3321_v31, 4  ;;  %v3355_v61 = vrot.slane %v3322_v32, 4  ;;  %v11741_v14 = vpop.permute.xlu0 %873  ;;  %v9946_v38 = vpack.c.bf16 %v3750_v48, %v830_v37  ;;  %v11766_v17 = vrot.slane %v11714_v53, %v10942_v41  ;;  %v9696_v31 = vld [vmem:[%s18171_s3 + $0x7] ss:$8 sm:$0xf] }
  0xf0   :  { %18640 = vst [vmem:[#allocation40_spill] sm:$0xff] %v11728_v39  ;;  %18641 = vst [vmem:[#allocation41_spill] sm:$0xff] %v11741_v14  ;;  %v907_v25 = vsel %vm891_vm5, %v11728_v39, %v862_v52  ;;  %v901_v27 = vsel %vm891_vm5, %v870_v12, %v11741_v14  ;;  %v9948_v52 = vpack.c.bf16 %v3749_v62, %v829_v56  ;;  %v995_v48 = vrot.slane %v962_v6, 4 }
  0xf1   :  { %1667 = vrot.lane.b32.xlu1 %v11686_v59, %s18436_s30  ;;  %v3354_v22 = vsel %vm67_vm0, %v18642_v60, %v3353_v8  ;;  %v3356_v0 = vsel %vm67_vm0, %v18643_v18, %v3355_v61  ;;  %v3328_v16 = vmul.f32 %v11536_v15, %v907_v25  ;;  %v964_v12 = vmul.f32 %v11503_v54, %v901_v27  ;;  %v9697_v54 = vld [vmem:[%s18171_s3 + $0x7] ss:$8 sm:$0xf0]  ;;  %v9731_v8 = vld [vmem:[%s18171_s3 + $0xc1] ss:$8 sm:$0xf0] }
  0xf2   :  { %1663 = vrot.lane.b32.xlu0 %v10771_v13, %s18436_s30  ;;  %3393 = vst [vmem:[#allocation2 + $0x8c0] sm:$0xff] %v3354_v22  ;;  %3394 = vst [vmem:[#allocation2 + $0x8c8] sm:$0xff] %v3356_v0  ;;  %v3323_v24 = vmul.f32 %v11519_v3, %v901_v27  ;;  %9947 = vmatprep.subr.bf16.mxu1 %v9946_v38  ;;  %v3747_v19 = vld [vmem:[#allocation2 + $0x1c0] sm:$0xff]  ;;  %v11773_v15 = vrot.slane %v11714_v53, %v10945_v42  ;;  %v997_v61 = vrot.slane %v963_v50, 4 }
  0xf3   :  { %v1046_v11 = vpop.permute.xlu1 %1045  ;;  %9949 = vmatpush1.bf16.msra.mxu1 %v9948_v52  ;;  %v9868_v37 = vpack.c.bf16 %v3747_v19, %v827_v26  ;;  %v11777_v38 = vrot.slane %v11716_v47, %v10957_v46  ;;  %v11781_v27 = vrot.slane %v11716_v47, %v10942_v41  ;;  %v9730_v3 = vld [vmem:[%s18171_s3 + $0xc1] ss:$8 sm:$0xf]  ;;  %v3367_v62 = vrot.slane %v3328_v16, 4 }
  0xf4   :  { %v1042_v32 = vpop.permute.xlu0 %1041  ;;  %v3357_v56 = vrot.slane %v3323_v24, 4  ;;  %v11793_v26 = vrot.slane %v11714_v53, %v10954_v45  ;;  %v11804_v6 = vrot.slane %v11716_v47, %v10960_v49  ;;  %v961_v18 = vmul.f32 %v11528_v7, %v907_v25 }
  0xf5   :  { %1687 = vrot.lane.b32.xlu1 %v10804_v29, %s18436_s30  ;;  %v1086_v60 = vsel %vm1073_vm7, %v1042_v32, %v1046_v11  ;;  %9869 = vmatpush1.bf16.msra.mxu0 %v9868_v37  ;;  %v18644_v0 = vrot.slane %v11606_v4, 4  ;;  %v999_v50 = vrot.slane %v964_v12, 4  ;;  %v18645_v16 = vrot.slane %v11562_v2, 4 }
  0xf6   :  { %1671 = vrot.lane.b32.xlu0 %v10765_v9, %s18436_s30  ;;  %v1136_v37 = vmul.f32 %v11733_v57, %v1086_v60  ;;  %v3446_v39 = vmul.f32 %v11737_v21, %v1086_v60  ;;  %v11818_v14 = vor.u32 %v9697_v54, %v9696_v31  ;;  %v11820_v25 = vor.u32 %v9731_v8, %v9730_v3 }
  0xf7   :  { %v3368_v52 = vsel %vm67_vm0, %v18644_v0, %v3367_v62  ;;  %v3358_v24 = vsel %vm67_vm0, %v18645_v16, %v3357_v56  ;;  %v11814_v19 = vpop.permute.xlu1 %1053  ;;  %v18649_v7 = vrot.slane %v10808_v30, 4  ;;  %v18650_v2 = vrot.slane %v11506_v55, 4 }
  0xf8   :  { %18646 = vst [vmem:[#allocation42_spill] sm:$0xff] %v11814_v19  ;;  %3400 = vst [vmem:[#allocation2 + $0x8f8] sm:$0xff] %v3368_v52  ;;  %v1050_v22 = vpop.permute.xlu0 %1049  ;;  %v18236_v31 = vrot.slane %v10786_v20, 4  ;;  %v993_v8 = vrot.slane %v961_v18, 4  ;;  %v18652_v60 = vrot.slane %v11556_v10, 4  ;;  %v3486_v18 = vrot.slane %v11820_v25, %v10954_v45 }
  0xf9   :  { %3395 = vst [vmem:[#allocation2 + $0x8d0] sm:$0xff] %v3358_v24  ;;  %18647 = vst [vmem:[#allocation43_spill] sm:$0xff] %v11818_v14  ;;  %v996_v4 = vsel %vm67_vm0, %v18650_v2, %v995_v48  ;;  %v1082_v12 = vsel %vm1073_vm7, %v1050_v22, %v11814_v19  ;;  %v1084_v62 = vsel %vm1073_vm7, %v1046_v11, %v1050_v22  ;;  %1967 = vrot.lane.b32.xlu1 %v11646_v1, %s18432_s17 }
  0xfa   :  { %18648 = vst [vmem:[#allocation44_spill] sm:$0xff] %v11820_v25  ;;  %2140 = vst [vmem:[#allocation2 + $0x4c8] sm:$0xf0] %v18649_v7  ;;  %v1137_v54 = vmul.f32 %v11766_v17, %v1084_v62  ;;  %v1138_v55 = vmul.f32 %v11773_v15, %v1082_v12  ;;  %v3447_v3 = vmul.f32 %v11777_v38, %v1084_v62  ;;  %1965 = vrot.lane.b32.xlu0 %v10791_v23, %s18432_s17 }
  0xfb   :  { %3462 = vst [vmem:[#allocation2 + $0x900] sm:$0xff] %v3446_v39  ;;  %v3448_v48 = vmul.f32 %v11781_v27, %v1082_v12  ;;  %v18651_v11 = vrot.slane %v11553_v5, 4  ;;  %v1000_v39 = vsel %vm67_vm0, %v18652_v60, %v999_v50  ;;  %v11847_v22 = vpop.permute.xlu1 %1167  ;;  %v9870_v0 = vpack.c.bf16 %v1136_v37, %v996_v4  ;;  %2141 = vst [vmem:[#allocation2 + $0x4d0] sm:$0xf0] %v18236_v31  ;;  %v11898_v60 = vld [vmem:[%s18169_s1 + $0x10] sm:$0xff] }
  0xfc   :  { %3463 = vst [vmem:[#allocation2 + $0x908] sm:$0xff] %v3447_v3  ;;  %v11851_v52 = vpop.permute.xlu0 %1069  ;;  %v9950_v5 = vpack.c.bf16 %v1138_v55, %v1000_v39  ;;  %v18237_v50 = vrot.slane %v10802_v28, 4  ;;  %v11882_v62 = vrot.slane %v11818_v14, %v10942_v41  ;;  %v3490_v3 = vrot.slane %v11820_v25, %v10957_v46  ;;  %v11903_v39 = vld [vmem:[%s18170_s2 + $0x10] sm:$0xff] }
  0xfd   :  { %v998_v56 = vsel %vm67_vm0, %v18651_v11, %v997_v61  ;;  %3464 = vst [vmem:[#allocation2 + $0x910] sm:$0xff] %v3448_v48  ;;  %18653 = vst [vmem:[#allocation45_spill] sm:$0xff] %v11851_v52  ;;  %v1088_v10 = vsel %vm1073_vm7, %v11851_v52, %v1042_v32  ;;  %1971 = vrot.lane.b32.xlu1 %v10771_v13, %s18432_s17  ;;  %v11861_v61 = vrot.slane %v11818_v14, %v10957_v46 }
  0xfe   :  { %v9952_v16 = vpack.c.bf16 %v1137_v54, %v998_v56  ;;  %9871 = vmatprep.subr.bf16.mxu0 %v9870_v0  ;;  %v1135_v24 = vmul.f32 %v11793_v26, %v1088_v10  ;;  %v3453_v37 = vmul.f32 %v11804_v6, %v1088_v10  ;;  %1969 = vrot.lane.b32.xlu0 %v10808_v30, %s18432_s17  ;;  %v18654_v32 = vrot.slane %v11603_v51, 4 }
  0xff   :  { %9951 = vmatprep.subr.bf16.mxu1 %v9950_v5  ;;  %v1172_v2 = vpop.permute.xlu1 %1171  ;;  %2142 = vst [vmem:[#allocation2 + $0x4d8] sm:$0xf0] %v18237_v50  ;;  %v18235_v48 = vrot.slane %v10791_v23, 4 }
 0x100   :  { %v994_v7 = vsel %vm67_vm0, %v18654_v32, %v993_v8  ;;  %9953 = vmatpush1.bf16.msra.mxu1 %v9952_v16  ;;  %3469 = vst [vmem:[#allocation2 + $0x938] sm:$0xff] %v3453_v37  ;;  %v1212_v4 = vsel %vm1199_vm8, %v11847_v22, %v1172_v2  ;;  %v11878_v12 = vpop.permute.xlu0 %1169  ;;  %v11911_v16 = vrot.slane %v11818_v14, %v10945_v42 }
 0x101   :  { %v9872_v54 = vpack.c.bf16 %v1135_v24, %v994_v7  ;;  %v11885_v51 = vmul.f32 %v11861_v61, %v1212_v4  ;;  %v3523_v55 = vmul.f32 %v3486_v18, %v1212_v4  ;;  %1975 = vrot.lane.b32.xlu1 %v11686_v59, %s18432_s17  ;;  %2139 = vst [vmem:[#allocation2 + $0x4c0] sm:$0xf0] %v18235_v48  ;;  %v11940_v48 = vld [vmem:[%s18168_s0 + $0x10] sm:$0xff] }
 0x102   :  { %1973 = vrot.lane.b32.xlu0 %v10786_v20, %s18432_s17  ;;  %v3494_v32 = vrot.slane %v11820_v25, %v10942_v41  ;;  %v94_v4 = vcombine.low %v11903_v39, %v11903_v39 }
 0x103   :  { %9873 = vmatpush1.bf16.msra.mxu0 %v9872_v54  ;;  %v18238_v11 = vrot.slane %v11885_v51, 4  ;;  %v3555_v56 = vrot.slane %v3523_v55, 4  ;;  %v1176_v8 = vpop.permute.xlu1 %1175 }
 0x104   :  { %v1210_v0 = vsel %vm1199_vm8, %v1172_v2, %v1176_v8  ;;  %v1174_v5 = vpop.permute.xlu0 %1173  ;;  %v61_v2 = vcombine.low %v11898_v60, %v11898_v60 }
 0x105   :  { %1334 = vst [vmem:[#allocation2 + $0x288] sm:$0xf0] %v18238_v11  ;;  %3595 = vst [vmem:[#allocation2 + $0x940] sm:$0xf0] %v3555_v56  ;;  %v11916_v10 = vmul.f32 %v11882_v62, %v1210_v0  ;;  %v3524_v24 = vmul.f32 %v3490_v3, %v1210_v0  ;;  %v11921_v37 = vsel %vm1199_vm8, %v11878_v12, %v1174_v5  ;;  %1979 = vrot.lane.b32.xlu1 %v10765_v9, %s18432_s17 }
 0x106   :  { %v3531_v7 = vmul.f32 %v3486_v18, %v11921_v37  ;;  %1977 = vrot.lane.b32.xlu0 %v10802_v28, %s18432_s17  ;;  %v11947_v11 = vrot.slane %v11818_v14, %v10954_v45 }
 0x107   :  { %v18242_v54 = vrot.slane %v11916_v10, 4  ;;  %v3556_v55 = vrot.slane %v3524_v24, 4  ;;  %v11935_v0 = vpop.permute.xlu1 %1179 }
 0x108   :  { %18655 = vst [vmem:[#allocation46_spill] sm:$0xff] %v11935_v0  ;;  %v3563_v18 = vrot.slane %v3531_v7, 4  ;;  %v1208_v31 = vsel %vm1199_vm8, %v1176_v8, %v11935_v0  ;;  %v1178_v50 = vpop.permute.xlu0 %1177  ;;  %v3514_v8 = vrot.slane %v11820_v25, %v10960_v49 }
 0x109   :  { %1335 = vst [vmem:[#allocation2 + $0x290] sm:$0xf0] %v18242_v54  ;;  %3596 = vst [vmem:[#allocation2 + $0x948] sm:$0xf0] %v3556_v55  ;;  %v11952_v24 = vmul.f32 %v11911_v16, %v1208_v31  ;;  %v3525_v52 = vmul.f32 %v3494_v32, %v1208_v31  ;;  %v11956_v7 = vsel %vm1199_vm8, %v1174_v5, %v1178_v50  ;;  %1995 = vrot.lane.b32.xlu1 %v10804_v29, %s18432_s17 }
 0x10a   :  { %v3564_v0 = vsel %vm67_vm0, %v3555_v56, %v3563_v18  ;;  %v3532_v19 = vmul.f32 %v3490_v3, %v11956_v7  ;;  %1993 = vrot.lane.b32.xlu0 %v10817_v33, %s18432_s17  ;;  %v72_v31 = vsel %vm67_vm0, %v11940_v48, %v61_v2  ;;  %v104_v5 = vsel %vm67_vm0, %v11903_v39, %v94_v4 }
 0x10b   :  { %3603 = vst [vmem:[#allocation2 + $0x980] sm:$0xff] %v3564_v0  ;;  %v18249_v54 = vrot.slane %v11952_v24, 4  ;;  %v3557_v29 = vrot.slane %v3525_v52, 4  ;;  %v11971_v14 = vpop.permute.xlu1 %1195 }
 0x10c   :  { %18656 = vst [vmem:[#allocation47_spill] sm:$0xff] %v11971_v14  ;;  %v3565_v25 = vrot.slane %v3532_v19, 4  ;;  %v1214_v3 = vsel %vm1199_vm8, %v11971_v14, %v11847_v22  ;;  %v11977_v56 = vpop.permute.xlu0 %1181  ;;  %v11989_v19 = vmul.f32 %v104_v5, %v72_v31  ;;  %v9700_v31 = vld [vmem:[%s18171_s3 + $0x41] ss:$8 sm:$0xf] }
 0x10d   :  { %18657 = vst [vmem:[#allocation48_spill] sm:$0xff] %v11977_v56  ;;  %1336 = vst [vmem:[#allocation2 + $0x298] sm:$0xf0] %v18249_v54  ;;  %v11982_v2 = vmul.f32 %v11947_v11, %v1214_v3  ;;  %v3530_v4 = vmul.f32 %v3514_v8, %v1214_v3  ;;  %v1209_v52 = vsel %vm1199_vm8, %v1178_v50, %v11977_v56  ;;  %2163 = vrot.lane.b32.xlu1 %v10786_v20, %s18467_s28  ;;  %v9701_v5 = vld [vmem:[%s18171_s3 + $0x41] ss:$8 sm:$0xf0] }
 0x10e   :  { %3597 = vst [vmem:[#allocation2 + $0x950] sm:$0xf0] %v3557_v29  ;;  %18658 = vst [vmem:[#allocation49_spill] sm:$0xff] %v11989_v19  ;;  %v3566_v22 = vsel %vm67_vm0, %v3556_v55, %v3565_v25  ;;  %v3533_v0 = vmul.f32 %v3494_v32, %v1209_v52  ;;  %2159 = vrot.lane.b32.xlu0 %v10808_v30, %s18467_s28  ;;  %v12933_v56 = vld [vmem:[#allocation2 + $0x888] sm:$0xff] }
 0x10f   :  { %3604 = vst [vmem:[#allocation2 + $0x988] sm:$0xff] %v3566_v22  ;;  %v18253_v18 = vrot.slane %v11982_v2, 4  ;;  %v3562_v3 = vrot.slane %v3530_v4, 4  ;;  %v1044_v54 = vpop.permute.xlu1 %1043 }
 0x110   :  { %v3567_v14 = vrot.slane %v3533_v0, 4  ;;  %v11995_v33 = vpop.permute.xlu0 %1197 }
 0x111   :  { %18659 = vst [vmem:[#allocation50_spill] sm:$0xff] %v11995_v33  ;;  %1333 = vst [vmem:[#allocation2 + $0x280] sm:$0xf0] %v18253_v18  ;;  %v1215_v25 = vsel %vm1199_vm8, %v11995_v33, %v11878_v12  ;;  %2171 = vrot.lane.b32.xlu1 %v11989_v19, %s18467_s28 }
 0x112   :  { %3602 = vst [vmem:[#allocation2 + $0x978] sm:$0xf0] %v3562_v3  ;;  %v3568_v50 = vsel %vm67_vm0, %v3557_v29, %v3567_v14  ;;  %v3538_v32 = vmul.f32 %v3514_v8, %v1215_v25  ;;  %2167 = vrot.lane.b32.xlu0 %v10802_v28, %s18467_s28 }
 0x113   :  { %3605 = vst [vmem:[#allocation2 + $0x990] sm:$0xff] %v3568_v50  ;;  %v1052_v55 = vpop.permute.xlu1 %1051  ;;  %v12025_v50 = vor.u32 %v9701_v5, %v9700_v31  ;;  %v9733_v31 = vld [vmem:[%s18171_s3 + $0xc2] ss:$8 sm:$0xf0]  ;;  %v18663_v5 = vrot.slane %v11885_v51, 4 }
 0x114   :  { %v3577_v12 = vrot.slane %v3538_v32, 4  ;;  %v1048_v4 = vpop.permute.xlu0 %1047  ;;  %v1270_v32 = vmul.f32 %v11861_v61, %v11921_v37 }
 0x115   :  { %v1085_v22 = vsel %vm1073_vm7, %v1048_v4, %v1052_v55  ;;  %v1087_v29 = vsel %vm1073_vm7, %v1044_v54, %v1048_v4  ;;  %2285 = vrot.lane.b32.xlu1 %v10808_v30, %s18261_s24  ;;  %18660 = vst [vmem:[#allocation51_spill] sm:$0xff] %v12025_v50  ;;  %v12096_v51 = vrot.slane %v12025_v50, %v10954_v45 }
 0x116   :  { %v3578_v14 = vsel %vm67_vm0, %v3562_v3, %v3577_v12  ;;  %v1144_v8 = vmul.f32 %v11733_v57, %v1087_v29  ;;  %v1145_v0 = vmul.f32 %v11766_v17, %v1085_v22  ;;  %2155 = vrot.lane.b32.xlu0 %v10791_v23, %s18467_s28  ;;  %v3454_v4 = vmul.f32 %v11737_v21, %v1087_v29 }
 0x117   :  { %3610 = vst [vmem:[#allocation2 + $0x9b8] sm:$0xff] %v3578_v14  ;;  %v3455_v18 = vmul.f32 %v11777_v38, %v1085_v22  ;;  %v12031_v33 = vpop.permute.xlu1 %1071  ;;  %v1269_v38 = vmul.f32 %v11947_v11, %v1215_v25  ;;  %v1271_v11 = vmul.f32 %v11882_v62, %v11956_v7  ;;  %v9732_v25 = vld [vmem:[%s18171_s3 + $0xc2] ss:$8 sm:$0xf]  ;;  %v12072_v62 = vrot.slane %v12025_v50, %v10942_v41 }
 0x118   :  { %18661 = vst [vmem:[#allocation52_spill] sm:$0xff] %v12031_v33  ;;  %1160 = vst [vmem:[#allocation2 + $0x288] sm:$0xf] %v1144_v8  ;;  %v1089_v57 = vsel %vm1073_vm7, %v12031_v33, %v1044_v54  ;;  %v12036_v17 = vpop.permute.xlu0 %1055  ;;  %v12076_v7 = vrot.slane %v12025_v50, %v10945_v42 }
 0x119   :  { %1161 = vst [vmem:[#allocation2 + $0x290] sm:$0xf] %v1145_v0  ;;  %18662 = vst [vmem:[#allocation53_spill] sm:$0xff] %v12036_v17  ;;  %v1143_v3 = vmul.f32 %v11793_v26, %v1089_v57  ;;  %v3461_v61 = vmul.f32 %v11804_v6, %v1089_v57  ;;  %v1083_v21 = vsel %vm1073_vm7, %v1052_v55, %v12036_v17  ;;  %2289 = vrot.lane.b32.xlu1 %v10786_v20, %s18261_s24 }
 0x11a   :  { %3470 = vst [vmem:[#allocation2 + $0x940] sm:$0xf] %v3454_v4  ;;  %3471 = vst [vmem:[#allocation2 + $0x948] sm:$0xf] %v3455_v18  ;;  %v1146_v37 = vmul.f32 %v11773_v15, %v1083_v21  ;;  %v3456_v54 = vmul.f32 %v11781_v27, %v1083_v21  ;;  %2287 = vrot.lane.b32.xlu0 %v10771_v13, %s18261_s24  ;;  %v12053_v26 = vrot.slane %v12025_v50, %v10957_v46 }
 0x11b   :  { %v1303_v6 = vrot.slane %v1270_v32, 4  ;;  %v1272_v18 = vmul.f32 %v11911_v16, %v1209_v52  ;;  %1159 = vst [vmem:[#allocation2 + $0x280] sm:$0xf] %v1143_v3  ;;  %3477 = vst [vmem:[#allocation2 + $0x978] sm:$0xf] %v3461_v61  ;;  %v1480_v55 = vpop.permute.xlu1 %1479  ;;  %v1301_v16 = vrot.slane %v1269_v38, 4  ;;  %v12098_v61 = vor.u32 %v9733_v31, %v9732_v25 }
 0x11c   :  { %1162 = vst [vmem:[#allocation2 + $0x298] sm:$0xf] %v1146_v37  ;;  %3472 = vst [vmem:[#allocation2 + $0x950] sm:$0xf] %v3456_v54  ;;  %v1476_v15 = vpop.permute.xlu0 %1475  ;;  %v1305_v8 = vrot.slane %v1271_v11, 4  ;;  %v18666_v21 = vrot.slane %v11982_v2, 4 }
 0x11d   :  { %v1520_v27 = vsel %vm18430_vm9, %v1476_v15, %v1480_v55  ;;  %2293 = vrot.lane.b32.xlu1 %v10802_v28, %s18261_s24  ;;  %v1304_v12 = vsel %vm67_vm0, %v18663_v5, %v1303_v6  ;;  %v1307_v22 = vrot.slane %v1272_v18, 4  ;;  %18665 = vst [vmem:[#allocation55_spill] sm:$0xff] %v12098_v61 }
 0x11e   :  { %v12066_v52 = vmul.f32 %v12053_v26, %v1520_v27  ;;  %2291 = vrot.lane.b32.xlu0 %v11686_v59, %s18261_s24  ;;  %v1302_v38 = vsel %vm67_vm0, %v18666_v21, %v1301_v16  ;;  %v18668_v16 = vrot.slane %v11916_v10, 4 }
 0x11f   :  { %v12084_v29 = vpop.permute.xlu1 %1487  ;;  %v3772_v14 = vld [vmem:[#allocation2 + $0x288] sm:$0xff] }
 0x120   :  { %18664 = vst [vmem:[#allocation54_spill] sm:$0xff] %v12084_v29  ;;  %v18258_v0 = vrot.slane %v12066_v52, 4  ;;  %v1484_v32 = vpop.permute.xlu0 %1483  ;;  %v9874_v4 = vpack.c.bf16 %v1304_v12, %v3772_v14  ;;  %v3773_v18 = vld [vmem:[#allocation2 + $0x290] sm:$0xff]  ;;  %v1306_v31 = vsel %vm67_vm0, %v18668_v16, %v1305_v8 }
 0x121   :  { %v1516_v57 = vsel %vm18430_vm9, %v1484_v32, %v12084_v29  ;;  %v1518_v3 = vsel %vm18430_vm9, %v1480_v55, %v1484_v32  ;;  %2297 = vrot.lane.b32.xlu1 %v11989_v19, %s18261_s24  ;;  %v18667_v55 = vrot.slane %v11952_v24, 4  ;;  %v9698_v24 = vld [vmem:[%s18171_s3 + $0x40] ss:$8 sm:$0xf]  ;;  %v9956_v10 = vpack.c.bf16 %v1306_v31, %v3773_v18 }
 0x122   :  { %1642 = vst [vmem:[#allocation2 + $0x348] sm:$0xf0] %v18258_v0  ;;  %v12106_v37 = vmul.f32 %v12072_v62, %v1518_v3  ;;  %v12109_v54 = vmul.f32 %v12076_v7, %v1516_v57  ;;  %2295 = vrot.lane.b32.xlu0 %v10765_v9, %s18261_s24  ;;  %9875 = vmatprep.subr.bf16.mxu0 %v9874_v4  ;;  %v3771_v6 = vld [vmem:[#allocation2 + $0x280] sm:$0xff]  ;;  %v12954_v17 = vld [vmem:[#allocation2 + $0x948] sm:$0xff] }
 0x123   :  { %v1308_v2 = vsel %vm67_vm0, %v18667_v55, %v1307_v22  ;;  %v12116_v11 = vpop.permute.xlu1 %1349  ;;  %v9876_v27 = vpack.c.bf16 %v1302_v38, %v3771_v6  ;;  %v3774_v25 = vld [vmem:[#allocation2 + $0x298] sm:$0xff]  ;;  %v3619_v4 = vrot.slane %v12098_v61, %v10954_v45  ;;  %v3623_v55 = vrot.slane %v12098_v61, %v10957_v46 }
 0x124   :  { %v18257_v5 = vrot.slane %v12106_v37, 4  ;;  %v18256_v12 = vrot.slane %v12109_v54, 4  ;;  %v12123_v14 = vpop.permute.xlu0 %1503  ;;  %v9954_v32 = vpack.c.bf16 %v1308_v2, %v3774_v25  ;;  %v9699_v8 = vld [vmem:[%s18171_s3 + $0x40] ss:$8 sm:$0xf0] }
 0x125   :  { %18669 = vst [vmem:[#allocation56_spill] sm:$0xff] %v12123_v14  ;;  %v1522_v22 = vsel %vm18430_vm9, %v12123_v14, %v1476_v15  ;;  %2281 = vrot.lane.b32.xlu1 %v10791_v23, %s18261_s24  ;;  %9877 = vmatpush1.bf16.msra.mxu0 %v9876_v27  ;;  %v12149_v21 = vor.u32 %v9699_v8, %v9698_v24 }
 0x126   :  { %1643 = vst [vmem:[#allocation2 + $0x350] sm:$0xf0] %v18257_v5  ;;  %1644 = vst [vmem:[#allocation2 + $0x358] sm:$0xf0] %v18256_v12  ;;  %v12144_v15 = vmul.f32 %v12096_v51, %v1522_v22  ;;  %2299 = vrot.lane.b32.xlu0 %v11903_v39, %s18261_s24  ;;  %9955 = vmatprep.subr.bf16.mxu1 %v9954_v32  ;;  %v3627_v24 = vrot.slane %v12098_v61, %v10942_v41 }
 0x127   :  { %9957 = vmatpush1.bf16.msra.mxu1 %v9956_v10  ;;  %v1354_v57 = vpop.permute.xlu1 %1353  ;;  %18670 = vst [vmem:[#allocation57_spill] sm:$0xff] %v12149_v21  ;;  %v1410_v27 = vrot.slane %v12149_v21, %v10957_v46 }
 0x128   :  { %v18255_v3 = vrot.slane %v12144_v15, 4  ;;  %v1394_v38 = vsel %vm1381_vm10, %v12116_v11, %v1354_v57  ;;  %v1352_v6 = vpop.permute.xlu0 %1351 }
 0x129   :  { %v3656_v18 = vmul.f32 %v3619_v4, %v1394_v38  ;;  %2161 = vrot.lane.b32.xlu1 %v10771_v13, %s18467_s28 }
 0x12a   :  { %1641 = vst [vmem:[#allocation2 + $0x340] sm:$0xf0] %v18255_v3  ;;  %2283 = vrot.lane.b32.xlu0 %v11646_v1, %s18261_s24  ;;  %s18277_s24 = smov 120  }
 0x12b   :  { %3672 = vst [vmem:[#allocation2 + $0x9c0] sm:$0xff] %v3656_v18  ;;  %v1358_v2 = vpop.permute.xlu1 %1357 }
 0x12c   :  { %v12166_v25 = vsel %vm1381_vm10, %v1354_v57, %v1358_v2  ;;  %v1356_v16 = vpop.permute.xlu0 %1355  ;;  %v1414_v57 = vrot.slane %v12149_v21, %v10942_v41 }
 0x12d   :  { %v3657_v31 = vmul.f32 %v3623_v55, %v12166_v25  ;;  %v1395_v32 = vsel %vm1381_vm10, %v1352_v6, %v1356_v16  ;;  %2169 = vrot.lane.b32.xlu1 %v10765_v9, %s18467_s28 }
 0x12e   :  { %v1452_v22 = vmul.f32 %v1410_v27, %v1395_v32  ;;  %v3664_v10 = vmul.f32 %v3619_v4, %v1395_v32  ;;  %2165 = vrot.lane.b32.xlu0 %v11686_v59, %s18467_s28 }
 0x12f   :  { %3673 = vst [vmem:[#allocation2 + $0x9c8] sm:$0xff] %v3657_v31  ;;  %v12177_v8 = vpop.permute.xlu1 %1361  ;;  %v3647_v31 = vrot.slane %v12098_v61, %v10960_v49  ;;  %v12935_v49 = vld [vmem:[#allocation2 + $0x8c8] sm:$0xff]  ;;  %v12937_v61 = vld [vmem:[#allocation2 + $0x880] sm:$0xff] }
 0x130   :  { %18671 = vst [vmem:[#allocation58_spill] sm:$0xff] %v12177_v8  ;;  %1468 = vst [vmem:[#allocation2 + $0x348] sm:$0xf] %v1452_v22  ;;  %v1390_v18 = vsel %vm1381_vm10, %v1358_v2, %v12177_v8  ;;  %v1360_v3 = vpop.permute.xlu0 %1359  ;;  %v1418_v2 = vrot.slane %v12149_v21, %v10945_v42 }
 0x131   :  { %3680 = vst [vmem:[#allocation2 + $0xa00] sm:$0xf] %v3664_v10  ;;  %v3658_v12 = vmul.f32 %v3627_v24, %v1390_v18  ;;  %v1393_v4 = vsel %vm1381_vm10, %v1356_v16, %v1360_v3  ;;  %2157 = vrot.lane.b32.xlu1 %v11646_v1, %s18467_s28  ;;  %18734 = vst [vmem:[#allocation107_spill] sm:$0xff] %v12937_v61  ;;  %v13002_v61 = vld [vmem:[#allocation2 + $0x980] sm:$0xff] }
 0x132   :  { %v1453_v32 = vmul.f32 %v1414_v57, %v1393_v4  ;;  %v3665_v5 = vmul.f32 %v3623_v55, %v1393_v4  ;;  %2173 = vrot.lane.b32.xlu0 %v11903_v39, %s18467_s28 }
 0x133   :  { %3674 = vst [vmem:[#allocation2 + $0x9d0] sm:$0xff] %v3658_v12  ;;  %v12192_v22 = vpop.permute.xlu1 %1377  ;;  %v1444_v12 = vmul.f32 %v1410_v27, %v1394_v38 }
 0x134   :  { %18672 = vst [vmem:[#allocation59_spill] sm:$0xff] %v12192_v22  ;;  %1469 = vst [vmem:[#allocation2 + $0x350] sm:$0xf] %v1453_v32  ;;  %v1396_v16 = vsel %vm1381_vm10, %v12192_v22, %v12116_v11  ;;  %v12200_v10 = vpop.permute.xlu0 %1363  ;;  %v1406_v22 = vrot.slane %v12149_v21, %v10954_v45  ;;  %v12939_v21 = vld [vmem:[#allocation2 + $0x8c0] sm:$0xff] }
 0x135   :  { %3681 = vst [vmem:[#allocation2 + $0xa08] sm:$0xf] %v3665_v5  ;;  %18673 = vst [vmem:[#allocation60_spill] sm:$0xff] %v12200_v10  ;;  %v3663_v0 = vmul.f32 %v3647_v31, %v1396_v16  ;;  %v1391_v55 = vsel %vm1381_vm10, %v1360_v3, %v12200_v10  ;;  %2597 = vrot.lane.b32.xlu1 %v10786_v20, %s18279_s21 }
 0x136   :  { %v1454_v4 = vmul.f32 %v1418_v2, %v1391_v55  ;;  %v3666_v32 = vmul.f32 %v3627_v24, %v1391_v55  ;;  %2593 = vrot.lane.b32.xlu0 %v10808_v30, %s18279_s21  ;;  %v9702_v55 = vld [vmem:[%s18171_s3 + $0x42] ss:$8 sm:$0xf] }
 0x137   :  { %3679 = vst [vmem:[#allocation2 + $0x9f8] sm:$0xff] %v3663_v0  ;;  %v1478_v5 = vpop.permute.xlu1 %1477  ;;  %v3796_v11 = vld [vmem:[#allocation2 + $0x348] sm:$0xff] }
 0x138   :  { %1470 = vst [vmem:[#allocation2 + $0x358] sm:$0xf] %v1454_v4  ;;  %3682 = vst [vmem:[#allocation2 + $0xa10] sm:$0xf] %v3666_v32  ;;  %v12211_v14 = vpop.permute.xlu0 %1379  ;;  %v9878_v3 = vpack.c.bf16 %v3796_v11, %v1444_v12 }
 0x139   :  { %18674 = vst [vmem:[#allocation61_spill] sm:$0xff] %v12211_v14  ;;  %v1397_v38 = vsel %vm1381_vm10, %v12211_v14, %v1352_v6  ;;  %2605 = vrot.lane.b32.xlu1 %v11989_v19, %s18279_s21  ;;  %v9703_v12 = vld [vmem:[%s18171_s3 + $0x42] ss:$8 sm:$0xf0] }
 0x13a   :  { %v1451_v27 = vmul.f32 %v1406_v22, %v1397_v38  ;;  %v3671_v24 = vmul.f32 %v3647_v31, %v1397_v38  ;;  %2601 = vrot.lane.b32.xlu0 %v10802_v28, %s18279_s21  ;;  %9879 = vmatprep.subr.bf16.mxu0 %v9878_v3  ;;  %v1446_v31 = vmul.f32 %v1418_v2, %v1390_v18 }
 0x13b   :  { %v1486_v0 = vpop.permute.xlu1 %1485  ;;  %v3797_v32 = vld [vmem:[#allocation2 + $0x350] sm:$0xff]  ;;  %v12232_v11 = vor.u32 %v9703_v12, %v9702_v55  ;;  %v1445_v3 = vmul.f32 %v1414_v57, %v12166_v25  ;;  %v1443_v25 = vmul.f32 %v1406_v22, %v1396_v16 }
 0x13c   :  { %1467 = vst [vmem:[#allocation2 + $0x340] sm:$0xf] %v1451_v27  ;;  %3687 = vst [vmem:[#allocation2 + $0xa38] sm:$0xf] %v3671_v24  ;;  %v1482_v6 = vpop.permute.xlu0 %1481 }
 0x13d   :  { %v1521_v4 = vsel %vm18430_vm9, %v1478_v5, %v1482_v6  ;;  %2467 = vrot.lane.b32.xlu1 %v10808_v30, %s18277_s24  ;;  %18675 = vst [vmem:[#allocation62_spill] sm:$0xff] %v12232_v11  ;;  %v1519_v14 = vsel %vm18430_vm9, %v1482_v6, %v1486_v0  ;;  %v9960_v2 = vpack.c.bf16 %v3797_v32, %v1445_v3  ;;  %v18678_v32 = vrot.slane %v12066_v52, 4 }
 0x13e   :  { %2589 = vrot.lane.b32.xlu0 %v10791_v23, %s18279_s21  ;;  %v1578_v38 = vmul.f32 %v12053_v26, %v1521_v4  ;;  %v12252_v26 = vrot.slane %v12232_v11, %v10957_v46  ;;  %v1579_v57 = vmul.f32 %v12072_v62, %v1519_v14  ;;  %v12272_v14 = vrot.slane %v12232_v11, %v10945_v42 }
 0x13f   :  { %v12236_v27 = vpop.permute.xlu1 %1505  ;;  %v3798_v24 = vld [vmem:[#allocation2 + $0x358] sm:$0xff] }
 0x140   :  { %18676 = vst [vmem:[#allocation63_spill] sm:$0xff] %v12236_v27  ;;  %v12240_v29 = vpop.permute.xlu0 %1489  ;;  %v9958_v33 = vpack.c.bf16 %v3798_v24, %v1446_v31  ;;  %v1611_v55 = vrot.slane %v1578_v38, 4  ;;  %v1523_v22 = vsel %vm18430_vm9, %v12236_v27, %v1478_v5  ;;  %v9704_v5 = vld [vmem:[%s18171_s3 + $0x43] ss:$8 sm:$0xf]  ;;  %v1613_v38 = vrot.slane %v1579_v57, 4 }
 0x141   :  { %18677 = vst [vmem:[#allocation64_spill] sm:$0xff] %v12240_v29  ;;  %v1517_v18 = vsel %vm18430_vm9, %v1486_v0, %v12240_v29  ;;  %2471 = vrot.lane.b32.xlu1 %v10786_v20, %s18277_s24  ;;  %v9705_v31 = vld [vmem:[%s18171_s3 + $0x43] ss:$8 sm:$0xf0]  ;;  %v1577_v24 = vmul.f32 %v12096_v51, %v1523_v22 }
 0x142   :  { %2469 = vrot.lane.b32.xlu0 %v10771_v13, %s18277_s24  ;;  %9959 = vmatprep.subr.bf16.mxu1 %v9958_v33  ;;  %v1580_v0 = vmul.f32 %v12076_v7, %v1517_v18  ;;  %v12268_v7 = vrot.slane %v12232_v11, %v10942_v41  ;;  %v1612_v3 = vsel %vm67_vm0, %v18678_v32, %v1611_v55  ;;  %v12919_v27 = vld [vmem:[#allocation2 + $0x800] sm:$0xff]  ;;  %v12921_v29 = vld [vmem:[#allocation2 + $0x850] sm:$0xff] }
 0x143   :  { %9961 = vmatpush1.bf16.msra.mxu1 %v9960_v2  ;;  %v1662_v12 = vpop.permute.xlu1 %1661  ;;  %v3795_v6 = vld [vmem:[#allocation2 + $0x340] sm:$0xff]  ;;  %v12293_v52 = vor.u32 %v9705_v31, %v9704_v5  ;;  %v12301_v55 = vrot.slane %v12232_v11, %v10954_v45  ;;  %v1609_v22 = vrot.slane %v1577_v24, 4  ;;  %v12917_v11 = vld [vmem:[#allocation2 + $0x848] sm:$0xff]  ;;  %18731 = vst [vmem:[#allocation104_spill] sm:$0xff] %v12919_v27  ;;  %18732 = vst [vmem:[#allocation105_spill] sm:$0xff] %v12921_v29 }
 0x144   :  { %v1658_v16 = vpop.permute.xlu0 %1657  ;;  %v9880_v33 = vpack.c.bf16 %v3795_v6, %v1443_v25  ;;  %v1615_v18 = vrot.slane %v1580_v0, 4  ;;  %v18681_v0 = vrot.slane %v12106_v37, 4  ;;  %18730 = vst [vmem:[#allocation103_spill] sm:$0xff] %v12917_v11  ;;  %v12990_v27 = vld [vmem:[#allocation2 + $0x9c8] sm:$0xff] }
 0x145   :  { %v1702_v4 = vsel %vm18429_vm11, %v1658_v16, %v1662_v12  ;;  %2475 = vrot.lane.b32.xlu1 %v10802_v28, %s18277_s24  ;;  %18680 = vst [vmem:[#allocation66_spill] sm:$0xff] %v12293_v52  ;;  %v1844_v37 = vrot.slane %v12293_v52, %v10957_v46 }
 0x146   :  { %v1752_v62 = vmul.f32 %v12252_v26, %v1702_v4  ;;  %2473 = vrot.lane.b32.xlu0 %v11686_v59, %s18277_s24  ;;  %9881 = vmatpush1.bf16.msra.mxu0 %v9880_v33 }
 0x147   :  { %v12284_v2 = vpop.permute.xlu1 %1669 }
 0x148   :  { %18679 = vst [vmem:[#allocation65_spill] sm:$0xff] %v12284_v2  ;;  %v1666_v25 = vpop.permute.xlu0 %1665  ;;  %v9882_v6 = vpack.c.bf16 %v1752_v62, %v1612_v3  ;;  %v18682_v62 = vrot.slane %v12109_v54, 4 }
 0x149   :  { %v1698_v33 = vsel %vm18429_vm11, %v1666_v25, %v12284_v2  ;;  %v1700_v4 = vsel %vm18429_vm11, %v1662_v12, %v1666_v25  ;;  %2479 = vrot.lane.b32.xlu1 %v11989_v19, %s18277_s24  ;;  %v1614_v12 = vsel %vm67_vm0, %v18681_v0, %v1613_v38  ;;  %v18684_v38 = vrot.slane %v12144_v15, 4 }
 0x14a   :  { %v1753_v57 = vmul.f32 %v12268_v7, %v1700_v4  ;;  %v1754_v51 = vmul.f32 %v12272_v14, %v1698_v33  ;;  %2477 = vrot.lane.b32.xlu0 %v10765_v9, %s18277_s24  ;;  %9883 = vmatprep.subr.bf16.mxu0 %v9882_v6  ;;  %v1616_v5 = vsel %vm67_vm0, %v18682_v62, %v1615_v18 }
 0x14b   :  { %v1784_v31 = vpop.permute.xlu1 %1783  ;;  %v1610_v24 = vsel %vm67_vm0, %v18684_v38, %v1609_v22 }
 0x14c   :  { %v12309_v32 = vpop.permute.xlu0 %1685  ;;  %v9962_v3 = vpack.c.bf16 %v1754_v51, %v1616_v5  ;;  %v9964_v25 = vpack.c.bf16 %v1753_v57, %v1614_v12  ;;  %v12333_v51 = vrot.slane %v12293_v52, %v10942_v41  ;;  %v1852_v5 = vrot.slane %v12293_v52, %v10945_v42 }
 0x14d   :  { %18683 = vst [vmem:[#allocation67_spill] sm:$0xff] %v12309_v32  ;;  %v1704_v33 = vsel %vm18429_vm11, %v12309_v32, %v1658_v16  ;;  %2463 = vrot.lane.b32.xlu1 %v10791_v23, %s18277_s24 }
 0x14e   :  { %v1751_v54 = vmul.f32 %v12301_v55, %v1704_v33  ;;  %2481 = vrot.lane.b32.xlu0 %v11903_v39, %s18277_s24  ;;  %9963 = vmatprep.subr.bf16.mxu1 %v9962_v3 }
 0x14f   :  { %v1788_v18 = vpop.permute.xlu1 %1787  ;;  %9965 = vmatpush1.bf16.msra.mxu1 %v9964_v25 }
 0x150   :  { %v1828_v16 = vsel %vm18428_vm12, %v1784_v31, %v1788_v18  ;;  %v1786_v6 = vpop.permute.xlu0 %1785  ;;  %v9884_v4 = vpack.c.bf16 %v1751_v54, %v1610_v24 }
 0x151   :  { %v12327_v57 = vmul.f32 %v1844_v37, %v1828_v16  ;;  %2595 = vrot.lane.b32.xlu1 %v10771_v13, %s18279_s21 }
 0x152   :  { %2465 = vrot.lane.b32.xlu0 %v11646_v1, %s18277_s24  ;;  %9885 = vmatpush1.bf16.msra.mxu0 %v9884_v4 }
 0x153   :  { %v18268_v15 = vrot.slane %v12327_v57, 4  ;;  %v1792_v0 = vpop.permute.xlu1 %1791 }
 0x154   :  { %v1826_v12 = vsel %vm18428_vm12, %v1788_v18, %v1792_v0  ;;  %v1790_v22 = vpop.permute.xlu0 %1789 }
 0x155   :  { %1950 = vst [vmem:[#allocation2 + $0x408] sm:$0xf0] %v18268_v15  ;;  %v12343_v62 = vmul.f32 %v12333_v51, %v1826_v12  ;;  %2603 = vrot.lane.b32.xlu1 %v10765_v9, %s18279_s21 }
 0x156   :  { %2599 = vrot.lane.b32.xlu0 %v11686_v59, %s18279_s21  ;;  %v1840_v59 = vrot.slane %v12293_v52, %v10954_v45 }
 0x157   :  { %v18266_v3 = vrot.slane %v12343_v62, 4  ;;  %v12352_v25 = vpop.permute.xlu1 %1795 }
 0x158   :  { %18685 = vst [vmem:[#allocation68_spill] sm:$0xff] %v12352_v25  ;;  %v1824_v33 = vsel %vm18428_vm12, %v1792_v0, %v12352_v25  ;;  %v1794_v54 = vpop.permute.xlu0 %1793  ;;  %v9707_v25 = vld [vmem:[%s18171_s3 + $0x44] ss:$8 sm:$0xf0] }
 0x159   :  { %1951 = vst [vmem:[#allocation2 + $0x410] sm:$0xf0] %v18266_v3  ;;  %v12359_v38 = vmul.f32 %v1852_v5, %v1824_v33  ;;  %2591 = vrot.lane.b32.xlu1 %v11646_v1, %s18279_s21  ;;  %v1829_v3 = vsel %vm18428_vm12, %v1786_v6, %v1790_v22 }
 0x15a   :  { %2607 = vrot.lane.b32.xlu0 %v11903_v39, %s18279_s21  ;;  %v1886_v2 = vmul.f32 %v1844_v37, %v1829_v3  ;;  %v1827_v37 = vsel %vm18428_vm12, %v1790_v22, %v1794_v54  ;;  %s19058_s21 = smov 1  }
 0x15b   :  { %v18267_v24 = vrot.slane %v12359_v38, 4  ;;  %v12368_v18 = vpop.permute.xlu1 %1811 }
 0x15c   :  { %18686 = vst [vmem:[#allocation69_spill] sm:$0xff] %v12368_v18  ;;  %v1830_v16 = vsel %vm18428_vm12, %v12368_v18, %v1784_v31  ;;  %v12373_v4 = vpop.permute.xlu0 %1797 }
 0x15d   :  { %18687 = vst [vmem:[#allocation70_spill] sm:$0xff] %v12373_v4  ;;  %1952 = vst [vmem:[#allocation2 + $0x418] sm:$0xf0] %v18267_v24  ;;  %v12377_v1 = vmul.f32 %v1840_v59, %v1830_v16  ;;  %259 = vrot.lane.b32.xlu1 %v11989_v19, %s18463_s11  ;;  %v3689_v16 = vld [vmem:[%s18172_s4 + $0x8] sm:$0xff] }
 0x15e   :  { %132 = vrot.lane.b32.xlu0 %v11989_v19, %s18465_s12  ;;  %4117 = vmatprep.mubr.f32.mxu0 %v3689_v16 }
 0x15f   :  { %v1909_v0 = vrot.slane %v12377_v1, 4  ;;  %v1660_v12 = vpop.permute.xlu1 %1659  ;;  %4259 = vmatprep.mubr.f32.mxu1 %v3689_v16  ;;  %v9706_v16 = vld [vmem:[%s18171_s3 + $0x44] ss:$8 sm:$0xf] }
 0x160   :  { %v12384_v33 = vpop.permute.xlu0 %1813 }
 0x161   :  { %18688 = vst [vmem:[#allocation71_spill] sm:$0xff] %v12384_v33  ;;  %1949 = vst [vmem:[#allocation2 + $0x400] sm:$0xf0] %v1909_v0  ;;  %134 = vrot.lane.b32.xlu1 %v11903_v39, %s18465_s12 }
 0x162   :  { %261 = vrot.lane.b32.xlu0 %v11903_v39, %s18463_s11 }
 0x163   :  { %v1668_v31 = vpop.permute.xlu1 %1667 }
 0x164   :  { %v1664_v24 = vpop.permute.xlu0 %1663 }
 0x165   :  { %v1701_v1 = vsel %vm18429_vm11, %v1664_v24, %v1668_v31  ;;  %v1703_v15 = vsel %vm18429_vm11, %v1660_v12, %v1664_v24  ;;  %441 = vrot.lane.b32.xlu1 %v11989_v19, %s18513_s13  ;;  %v1831_v24 = vsel %vm18428_vm12, %v12384_v33, %v1786_v6 }
 0x166   :  { %v1760_v18 = vmul.f32 %v12252_v26, %v1703_v15  ;;  %v1761_v32 = vmul.f32 %v12268_v7, %v1701_v1  ;;  %567 = vrot.lane.b32.xlu0 %v11989_v19, %s18511_s14  ;;  %v1825_v26 = vsel %vm18428_vm12, %v1794_v54, %v12373_v4 }
 0x167   :  { %v12414_v52 = vpop.permute.xlu1 %1687 }
 0x168   :  { %18689 = vst [vmem:[#allocation72_spill] sm:$0xff] %v12414_v52  ;;  %1776 = vst [vmem:[#allocation2 + $0x408] sm:$0xf] %v1760_v18  ;;  %v1705_v7 = vsel %vm18429_vm11, %v12414_v52, %v1660_v12  ;;  %v12422_v15 = vpop.permute.xlu0 %1671  ;;  %v12432_v18 = vor.u32 %v9707_v25, %v9706_v16  ;;  %v1919_v12 = vrot.slane %v1886_v2, 4  ;;  %v1888_v52 = vmul.f32 %v1852_v5, %v1825_v26 }
 0x169   :  { %1777 = vst [vmem:[#allocation2 + $0x410] sm:$0xf] %v1761_v32  ;;  %18690 = vst [vmem:[#allocation73_spill] sm:$0xff] %v12422_v15  ;;  %v1759_v3 = vmul.f32 %v12301_v55, %v1705_v7  ;;  %v1699_v6 = vsel %vm18429_vm11, %v1668_v31, %v12422_v15  ;;  %569 = vrot.lane.b32.xlu1 %v11903_v39, %s18511_s14  ;;  %v1885_v32 = vmul.f32 %v1840_v59, %v1831_v24 }
 0x16a   :  { %18691 = vst [vmem:[#allocation74_spill] sm:$0xff] %v12432_v18  ;;  %v1762_v1 = vmul.f32 %v12272_v14, %v1699_v6  ;;  %443 = vrot.lane.b32.xlu0 %v11903_v39, %s18513_s13  ;;  %v1887_v55 = vmul.f32 %v12333_v51, %v1827_v37  ;;  %v2026_v14 = vrot.slane %v12432_v18, %v10957_v46  ;;  %v18692_v2 = vrot.slane %v12327_v57, 4 }
 0x16b   :  { %1775 = vst [vmem:[#allocation2 + $0x400] sm:$0xf] %v1759_v3  ;;  %v12437_v22 = vpop.permute.xlu1 %1967  ;;  %v1917_v25 = vrot.slane %v1885_v32, 4  ;;  %v1923_v51 = vrot.slane %v1888_v52, 4  ;;  %v12461_v57 = vrot.slane %v12432_v18, %v10942_v41  ;;  %v49_v52 = vcombine.high %v11940_v48, %v11940_v48 }
 0x16c   :  { %1778 = vst [vmem:[#allocation2 + $0x418] sm:$0xf] %v1762_v1  ;;  %v12440_v54 = vpop.permute.xlu0 %1965  ;;  %v1920_v5 = vsel %vm67_vm0, %v18692_v2, %v1919_v12  ;;  %v1921_v16 = vrot.slane %v1887_v55, 4  ;;  %v12470_v1 = vcombine.high %v11903_v39, %v11903_v39  ;;  %v18693_v12 = vrot.slane %v12359_v38, 4 }
 0x16d   :  { %875 = vrot.lane.b32.xlu1 %v11989_v19, %s10669_s15  ;;  %v1918_v3 = vsel %vm67_vm0, %v1909_v0, %v1917_v25  ;;  %v18694_v0 = vrot.slane %v12343_v62, 4  ;;  %v18704_v15 = vrot.slane %v10786_v20, 4 }
 0x16e   :  { %749 = vrot.lane.b32.xlu0 %v11989_v19, %s10670_s16  ;;  %v1924_v55 = vsel %vm67_vm0, %v18693_v12, %v1923_v51  ;;  %v2034_v51 = vrot.slane %v12432_v18, %v10945_v42 }
 0x16f   :  { %v1972_v59 = vpop.permute.xlu1 %1971  ;;  %v3820_v31 = vld [vmem:[#allocation2 + $0x408] sm:$0xff]  ;;  %v1922_v25 = vsel %vm67_vm0, %v18694_v0, %v1921_v16  ;;  %v105_v16 = vsel %vm67_vm0, %v12470_v1, %v11903_v39 }
 0x170   :  { %v2011_v24 = vsel %vm18295_vm13, %v12437_v22, %v1972_v59  ;;  %v12455_v26 = vpop.permute.xlu0 %1969  ;;  %v9886_v7 = vpack.c.bf16 %v1920_v5, %v3820_v31  ;;  %v3821_v32 = vld [vmem:[#allocation2 + $0x410] sm:$0xff] }
 0x171   :  { %v2068_v37 = vmul.f32 %v2026_v14, %v2011_v24  ;;  %751 = vrot.lane.b32.xlu1 %v11903_v39, %s10670_s16  ;;  %v9968_v38 = vpack.c.bf16 %v1922_v25, %v3821_v32  ;;  %v2010_v62 = vsel %vm18295_vm13, %v12440_v54, %v12455_v26  ;;  %v12504_v32 = vld [vmem:[%s18170_s2 + $0x18] sm:$0xff] }
 0x172   :  { %877 = vrot.lane.b32.xlu0 %v11903_v39, %s10669_s15  ;;  %9887 = vmatprep.subr.bf16.mxu0 %v9886_v7  ;;  %v3819_v6 = vld [vmem:[#allocation2 + $0x400] sm:$0xff] }
 0x173   :  { %2084 = vst [vmem:[#allocation2 + $0x4c8] sm:$0xf] %v2068_v37  ;;  %v1976_v2 = vpop.permute.xlu1 %1975  ;;  %v9888_v5 = vpack.c.bf16 %v1918_v3, %v3819_v6  ;;  %v3822_v48 = vld [vmem:[#allocation2 + $0x418] sm:$0xff] }
 0x174   :  { %v2009_v31 = vsel %vm18295_vm13, %v1972_v59, %v1976_v2  ;;  %v1974_v24 = vpop.permute.xlu0 %1973  ;;  %v9966_v7 = vpack.c.bf16 %v1924_v55, %v3822_v48  ;;  %v73_v59 = vsel %vm67_vm0, %v49_v52, %v11898_v60  ;;  %v10647_v37 = vld [vmem:[%s18169_s1 + $0x18] sm:$0xff]  ;;  %v95_v60 = vcombine.low %v12504_v32, %v12504_v32 }
 0x175   :  { %v2069_v4 = vmul.f32 %v12461_v57, %v2009_v31  ;;  %1057 = vrot.lane.b32.xlu1 %v11989_v19, %s18509_s29  ;;  %9889 = vmatpush1.bf16.msra.mxu0 %v9888_v5  ;;  %v62_v3 = vcombine.low %v10647_v37, %v10647_v37  ;;  %v2060_v55 = vmul.f32 %v2026_v14, %v2010_v62  ;;  %v9708_v0 = vld [vmem:[%s18171_s3 + $0x46] ss:$8 sm:$0xf] }
 0x176   :  { %1183 = vrot.lane.b32.xlu0 %v11989_v19, %s10672_s20  ;;  %9967 = vmatprep.subr.bf16.mxu1 %v9966_v7  ;;  %v12517_v48 = vmul.f32 %v105_v16, %v73_v59  ;;  %v10649_v7 = vld [vmem:[%s18168_s0 + $0x18] sm:$0xff]  ;;  %v106_v62 = vsel %vm67_vm0, %v12504_v32, %v95_v60 }
 0x177   :  { %2085 = vst [vmem:[#allocation2 + $0x4d0] sm:$0xf] %v2069_v4  ;;  %9969 = vmatpush1.bf16.msra.mxu1 %v9968_v38  ;;  %v12499_v6 = vpop.permute.xlu1 %1979  ;;  %v2022_v4 = vrot.slane %v12432_v18, %v10954_v45  ;;  %v74_v38 = vsel %vm67_vm0, %v10649_v7, %v62_v3  ;;  %v18703_v18 = vrot.slane %v10802_v28, 4 }
 0x178   :  { %18695 = vst [vmem:[#allocation75_spill] sm:$0xff] %v12499_v6  ;;  %v2007_v52 = vsel %vm18295_vm13, %v1976_v2, %v12499_v6  ;;  %v12511_v12 = vpop.permute.xlu0 %1977  ;;  %v9709_v2 = vld [vmem:[%s18171_s3 + $0x46] ss:$8 sm:$0xf0]  ;;  %v12551_v60 = vmul.f32 %v106_v62, %v74_v38 }
 0x179   :  { %18696 = vst [vmem:[#allocation76_spill] sm:$0xff] %v12511_v12  ;;  %v2070_v5 = vmul.f32 %v2034_v51, %v2007_v52  ;;  %1185 = vrot.lane.b32.xlu1 %v11903_v39, %s10672_s20  ;;  %v12541_v37 = vor.u32 %v9709_v2, %v9708_v0  ;;  %v2006_v3 = vsel %vm18295_vm13, %v1974_v24, %v12511_v12 }
 0x17a   :  { %1059 = vrot.lane.b32.xlu0 %v11903_v39, %s18509_s29  ;;  %v3844_v14 = vld [vmem:[#allocation2 + $0x4c8] sm:$0xff]  ;;  %v2114_v33 = vsel %vm67_vm0, %v18703_v18, %v10765_v9  ;;  %v10651_v9 = vld [vmem:[%s18170_s2] sm:$0xff] }
 0x17b   :  { %2086 = vst [vmem:[#allocation2 + $0x4d8] sm:$0xf] %v2070_v5  ;;  %v12527_v25 = vpop.permute.xlu1 %1995  ;;  %v9890_v31 = vpack.c.bf16 %v3844_v14, %v2060_v55  ;;  %18699 = vst [vmem:[#allocation79_spill] sm:$0xff] %v12541_v37  ;;  %v10650_v5 = vld [vmem:[%s18170_s2 + $0x8] sm:$0xff]  ;;  %v12561_v2 = vrot.slane %v12541_v37, %v10957_v46  ;;  %v2107_v28 = vrot.slane %v10651_v9, 4  ;;  %v12620_v18 = vrot.slane %v12541_v37, %v10954_v45 }
 0x17c   :  { %18697 = vst [vmem:[#allocation77_spill] sm:$0xff] %v12527_v25  ;;  %v2013_v59 = vsel %vm18295_vm13, %v12527_v25, %v12437_v22  ;;  %v12539_v16 = vpop.permute.xlu0 %1993  ;;  %v2008_v22 = vsel %vm18295_vm13, %v12455_v26, %v1974_v24  ;;  %v2111_v0 = vrot.slane %v10650_v5, 4  ;;  %v9711_v26 = vld [vmem:[%s18171_s3 + $0x47] ss:$8 sm:$0xf0]  ;;  %v2062_v24 = vmul.f32 %v2034_v51, %v2006_v3 }
 0x17d   :  { %18698 = vst [vmem:[#allocation78_spill] sm:$0xff] %v12539_v16  ;;  %v2067_v52 = vmul.f32 %v2022_v4, %v2013_v59  ;;  %263 = vrot.lane.b32.xlu1 %v12517_v48, %s18463_s11  ;;  %9891 = vmatprep.subr.bf16.mxu0 %v9890_v31  ;;  %v9710_v31 = vld [vmem:[%s18171_s3 + $0x47] ss:$8 sm:$0xf]  ;;  %v2061_v62 = vmul.f32 %v12461_v57, %v2008_v22 }
 0x17e   :  { %1365 = vrot.lane.b32.xlu0 %v11989_v19, %s18440_s26  ;;  %v3845_v38 = vld [vmem:[#allocation2 + $0x4d0] sm:$0xff]  ;;  %v2012_v59 = vsel %vm18295_vm13, %v12539_v16, %v12440_v54  ;;  %v12582_v51 = vrot.slane %v12541_v37, %v10942_v41  ;;  %v12590_v22 = vor.u32 %v9711_v26, %v9710_v31  ;;  %v18702_v54 = vrot.slane %v10808_v30, 4 }
 0x17f   :  { %2083 = vst [vmem:[#allocation2 + $0x4c0] sm:$0xf] %v2067_v52  ;;  %v2164_v55 = vpop.permute.xlu1 %2163  ;;  %v12586_v52 = vrot.slane %v12541_v37, %v10945_v42  ;;  %v9972_v6 = vpack.c.bf16 %v3845_v38, %v2061_v62  ;;  %v2059_v31 = vmul.f32 %v2022_v4, %v2012_v59  ;;  %v18706_v59 = vrot.slane %v10791_v23, 4 }
 0x180   :  { %v2160_v14 = vpop.permute.xlu0 %2159  ;;  %18701 = vst [vmem:[#allocation81_spill] sm:$0xff] %v12590_v22  ;;  %v2110_v16 = vsel %vm67_vm0, %v18702_v54, %v10771_v13  ;;  %v12646_v23 = vrot.slane %v12590_v22, %v10942_v41  ;;  %v2350_v9 = vrot.slane %v12590_v22, %v10945_v42  ;;  %vm2621_vm13 = vcmp.lt.s32.totalorder %v10937_v40, 119 }
 0x181   :  { %v2198_v7 = vsel %vm18431_vm14, %v2160_v14, %v2164_v55  ;;  %136 = vrot.lane.b32.xlu1 %v12517_v48, %s18465_s12 }
 0x182   :  { %267 = vrot.lane.b32.xlu0 %v12551_v60, %s18463_s11  ;;  %v3846_v3 = vld [vmem:[#allocation2 + $0x4d8] sm:$0xff]  ;;  %v2250_v12 = vmul.f32 %v12561_v2, %v2198_v7 }
 0x183   :  { %v12588_v5 = vpop.permute.xlu1 %2171  ;;  %v9970_v57 = vpack.c.bf16 %v3846_v3, %v2062_v24  ;;  %v2112_v24 = vsel %vm67_vm0, %v18704_v15, %v2111_v0  ;;  %v2108_v3 = vsel %vm67_vm0, %v18706_v59, %v2107_v28 }
 0x184   :  { %18700 = vst [vmem:[#allocation80_spill] sm:$0xff] %v12588_v5  ;;  %v2168_v25 = vpop.permute.xlu0 %2167  ;;  %v9894_v26 = vpack.c.bf16 %v2250_v12, %v2110_v16 }
 0x185   :  { %v2194_v30 = vsel %vm18431_vm14, %v2168_v25, %v12588_v5  ;;  %v2196_v13 = vsel %vm18431_vm14, %v2164_v55, %v2168_v25  ;;  %140 = vrot.lane.b32.xlu1 %v12551_v60, %s18465_s12  ;;  %9971 = vmatprep.subr.bf16.mxu1 %v9970_v57  ;;  %v12907_v5 = vld [vmem:[#allocation2 + $0x790] sm:$0xff] }
 0x186   :  { %v2251_v20 = vmul.f32 %v12582_v51, %v2196_v13  ;;  %v2252_v15 = vmul.f32 %v12586_v52, %v2194_v30  ;;  %138 = vrot.lane.b32.xlu0 %v12470_v1, %s18465_s12  ;;  %9973 = vmatpush1.bf16.msra.mxu1 %v9972_v6  ;;  %v3843_v4 = vld [vmem:[#allocation2 + $0x4c0] sm:$0xff]  ;;  %v2342_v6 = vrot.slane %v12590_v22, %v10957_v46 }
 0x187   :  { %v2286_v25 = vpop.permute.xlu1 %2285  ;;  %v9892_v55 = vpack.c.bf16 %v3843_v4, %v2059_v31  ;;  %18727 = vst [vmem:[#allocation100_spill] sm:$0xff] %v12907_v5  ;;  %v12974_v5 = vld [vmem:[#allocation2 + $0x9c0] sm:$0xff] }
 0x188   :  { %v12622_v0 = vpop.permute.xlu0 %2155  ;;  %v9974_v7 = vpack.c.bf16 %v2252_v15, %v2114_v33  ;;  %v9976_v38 = vpack.c.bf16 %v2251_v20, %v2112_v24 }
 0x189   :  { %18705 = vst [vmem:[#allocation82_spill] sm:$0xff] %v12622_v0  ;;  %v2200_v62 = vsel %vm18431_vm14, %v12622_v0, %v2160_v14  ;;  %1367 = vrot.lane.b32.xlu1 %v11903_v39, %s18440_s26  ;;  %9893 = vmatpush1.bf16.msra.mxu0 %v9892_v55 }
 0x18a   :  { %v2249_v33 = vmul.f32 %v12620_v18, %v2200_v62  ;;  %142 = vrot.lane.b32.xlu0 %v12504_v32, %s18465_s12  ;;  %9895 = vmatprep.subr.bf16.mxu0 %v9894_v26  ;;  %v2338_v26 = vrot.slane %v12590_v22, %v10954_v45  ;;  %v12909_v22 = vld [vmem:[#allocation2 + $0x7d0] sm:$0xff] }
 0x18b   :  { %v2290_v12 = vpop.permute.xlu1 %2289  ;;  %9975 = vmatprep.subr.bf16.mxu1 %v9974_v7  ;;  %18728 = vst [vmem:[#allocation101_spill] sm:$0xff] %v12909_v22  ;;  %v12976_v22 = vld [vmem:[#allocation2 + $0x950] sm:$0xff] }
 0x18c   :  { %v2324_v39 = vsel %vm18298_vm15, %v2286_v25, %v2290_v12  ;;  %v2288_v16 = vpop.permute.xlu0 %2287  ;;  %9977 = vmatpush1.bf16.msra.mxu1 %v9976_v38  ;;  %v9896_v14 = vpack.c.bf16 %v2249_v33, %v2108_v3  ;;  %18740 = vst [vmem:[#allocation113_spill] sm:$0xff] %v12976_v22 }
 0x18d   :  { %v12640_v57 = vmul.f32 %v2342_v6, %v2324_v39  ;;  %269 = vrot.lane.b32.xlu1 %v12504_v32, %s18463_s11 }
 0x18e   :  { %265 = vrot.lane.b32.xlu0 %v12470_v1, %s18463_s11  ;;  %9897 = vmatpush1.bf16.msra.mxu0 %v9896_v14  ;;  %v9714_v14 = vld [vmem:[%s18171_s3 + $0x81] ss:$8 sm:$0xf] }
 0x18f   :  { %v18291_v54 = vrot.slane %v12640_v57, 4  ;;  %v2294_v24 = vpop.permute.xlu1 %2293 }
 0x190   :  { %v2322_v31 = vsel %vm18298_vm15, %v2290_v12, %v2294_v24  ;;  %v2292_v30 = vpop.permute.xlu0 %2291 }
 0x191   :  { %2448 = vst [vmem:[#allocation2 + $0x588] sm:$0xf0] %v18291_v54  ;;  %v12656_v13 = vmul.f32 %v12646_v23, %v2322_v31  ;;  %449 = vrot.lane.b32.xlu1 %v12551_v60, %s18513_s13  ;;  %v2325_v31 = vsel %vm18298_vm15, %v2288_v16, %v2292_v30 }
 0x192   :  { %445 = vrot.lane.b32.xlu0 %v12517_v48, %s18513_s13 }
 0x193   :  { %v18289_v28 = vrot.slane %v12656_v13, 4  ;;  %v12665_v20 = vpop.permute.xlu1 %2297 }
 0x194   :  { %18707 = vst [vmem:[#allocation83_spill] sm:$0xff] %v12665_v20  ;;  %v2320_v15 = vsel %vm18298_vm15, %v2294_v24, %v12665_v20  ;;  %v2296_v4 = vpop.permute.xlu0 %2295  ;;  %v9715_v24 = vld [vmem:[%s18171_s3 + $0x81] ss:$8 sm:$0xf0] }
 0x195   :  { %2449 = vst [vmem:[#allocation2 + $0x590] sm:$0xf0] %v18289_v28  ;;  %v12672_v55 = vmul.f32 %v2350_v9, %v2320_v15  ;;  %573 = vrot.lane.b32.xlu1 %v12470_v1, %s18511_s14  ;;  %v12721_v54 = vor.u32 %v9715_v24, %v9714_v14 }
 0x196   :  { %571 = vrot.lane.b32.xlu0 %v12517_v48, %s18511_s14 }
 0x197   :  { %v18290_v7 = vrot.slane %v12672_v55, 4  ;;  %v12681_v38 = vpop.permute.xlu1 %2281  ;;  %18711 = vst [vmem:[#allocation87_spill] sm:$0xff] %v12721_v54 }
 0x198   :  { %18708 = vst [vmem:[#allocation84_spill] sm:$0xff] %v12681_v38  ;;  %v2326_v62 = vsel %vm18298_vm15, %v12681_v38, %v2286_v25  ;;  %v12686_v59 = vpop.permute.xlu0 %2299  ;;  %v2384_v38 = vmul.f32 %v2342_v6, %v2325_v31  ;;  %v2323_v6 = vsel %vm18298_vm15, %v2292_v30, %v2296_v4  ;;  %v12750_v30 = vrot.slane %v12721_v54, %v10957_v46 }
 0x199   :  { %18709 = vst [vmem:[#allocation85_spill] sm:$0xff] %v12686_v59  ;;  %2450 = vst [vmem:[#allocation2 + $0x598] sm:$0xf0] %v18290_v7  ;;  %v12690_v3 = vmul.f32 %v2338_v26, %v2326_v62  ;;  %577 = vrot.lane.b32.xlu1 %v12504_v32, %s18511_s14 }
 0x19a   :  { %575 = vrot.lane.b32.xlu0 %v12551_v60, %s18511_s14 }
 0x19b   :  { %v2407_v33 = vrot.slane %v12690_v3, 4  ;;  %v2162_v12 = vpop.permute.xlu1 %2161 }
 0x19c   :  { %v12697_v39 = vpop.permute.xlu0 %2283 }
 0x19d   :  { %18710 = vst [vmem:[#allocation86_spill] sm:$0xff] %v12697_v39  ;;  %2447 = vst [vmem:[#allocation2 + $0x580] sm:$0xf0] %v2407_v33  ;;  %451 = vrot.lane.b32.xlu1 %v12504_v32, %s18513_s13  ;;  %v2327_v0 = vsel %vm18298_vm15, %v12697_v39, %v2288_v16  ;;  %v12903_v39 = vld [vmem:[#allocation2 + $0x7c0] sm:$0xff] }
 0x19e   :  { %447 = vrot.lane.b32.xlu0 %v12470_v1, %s18513_s13 }
 0x19f   :  { %v2170_v25 = vpop.permute.xlu1 %2169 }
 0x1a0   :  { %v2166_v15 = vpop.permute.xlu0 %2165 }
 0x1a1   :  { %v2197_v62 = vsel %vm18431_vm14, %v2166_v15, %v2170_v25  ;;  %v2199_v3 = vsel %vm18431_vm14, %v2162_v12, %v2166_v15  ;;  %883 = vrot.lane.b32.xlu1 %v12551_v60, %s10669_s15  ;;  %v2321_v15 = vsel %vm18298_vm15, %v2296_v4, %v12686_v59  ;;  %vm18396_vm15 = vcmp.lt.s32.totalorder %v10937_v40, 120  ;;  %v12894_v59 = vld [vmem:[#allocation2 + $0x750] sm:$0xff] }
 0x1a2   :  { %v2258_v28 = vmul.f32 %v12561_v2, %v2199_v3  ;;  %v2259_v7 = vmul.f32 %v12582_v51, %v2197_v62  ;;  %879 = vrot.lane.b32.xlu0 %v12517_v48, %s10669_s15  ;;  %v2386_v4 = vmul.f32 %v2350_v9, %v2321_v15  ;;  %v12764_v9 = vrot.slane %v12721_v54, %v10942_v41 }
 0x1a3   :  { %v12726_v20 = vpop.permute.xlu1 %2157  ;;  %18724 = vst [vmem:[#allocation97_spill] sm:$0xff] %v12894_v59  ;;  %v12960_v59 = vld [vmem:[#allocation2 + $0x8d0] sm:$0xff] }
 0x1a4   :  { %18712 = vst [vmem:[#allocation88_spill] sm:$0xff] %v12726_v20  ;;  %2274 = vst [vmem:[#allocation2 + $0x588] sm:$0xf] %v2258_v28  ;;  %v2201_v2 = vsel %vm18431_vm14, %v12726_v20, %v2162_v12  ;;  %v12734_v51 = vpop.permute.xlu0 %2173  ;;  %v2383_v28 = vmul.f32 %v2338_v26, %v2327_v0  ;;  %v2421_v62 = vrot.slane %v2386_v4, 4 }
 0x1a5   :  { %2275 = vst [vmem:[#allocation2 + $0x590] sm:$0xf] %v2259_v7  ;;  %18713 = vst [vmem:[#allocation89_spill] sm:$0xff] %v12734_v51  ;;  %v2257_v14 = vmul.f32 %v12620_v18, %v2201_v2  ;;  %v2195_v16 = vsel %vm18431_vm14, %v2170_v25, %v12734_v51  ;;  %755 = vrot.lane.b32.xlu1 %v12470_v1, %s10670_s16  ;;  %v2417_v18 = vrot.slane %v2384_v38, 4  ;;  %v18714_v38 = vrot.slane %v12640_v57, 4  ;;  %v12905_v51 = vld [vmem:[#allocation2 + $0x840] sm:$0xff] }
 0x1a6   :  { %v2260_v7 = vmul.f32 %v12586_v52, %v2195_v16  ;;  %753 = vrot.lane.b32.xlu0 %v12517_v48, %s10670_s16  ;;  %v2385_v25 = vmul.f32 %v12646_v23, %v2323_v6  ;;  %v2415_v0 = vrot.slane %v2383_v28, 4  ;;  %v12768_v23 = vrot.slane %v12721_v54, %v10945_v42  ;;  %18726 = vst [vmem:[#allocation99_spill] sm:$0xff] %v12905_v51  ;;  %v12992_v51 = vld [vmem:[#allocation2 + $0x9d0] sm:$0xff] }
 0x1a7   :  { %2273 = vst [vmem:[#allocation2 + $0x580] sm:$0xf] %v2257_v14  ;;  %v2598_v12 = vpop.permute.xlu1 %2597  ;;  %v2418_v31 = vsel %vm67_vm0, %v18714_v38, %v2417_v18  ;;  %v12785_v57 = vrot.slane %v12721_v54, %v10954_v45  ;;  %v18716_v38 = vrot.slane %v12672_v55, 4  ;;  %18737 = vst [vmem:[#allocation110_spill] sm:$0xff] %v12960_v59 }
 0x1a8   :  { %2276 = vst [vmem:[#allocation2 + $0x598] sm:$0xf] %v2260_v7  ;;  %v2594_v24 = vpop.permute.xlu0 %2593  ;;  %v2419_v2 = vrot.slane %v2385_v25, 4  ;;  %v2416_v18 = vsel %vm67_vm0, %v2407_v33, %v2415_v0  ;;  %18741 = vst [vmem:[#allocation114_spill] sm:$0xff] %v12992_v51 }
 0x1a9   :  { %v2632_v52 = vsel %vm2621_vm13, %v2594_v24, %v2598_v12  ;;  %759 = vrot.lane.b32.xlu1 %v12504_v32, %s10670_s16 }
 0x1aa   :  { %v12758_v26 = vmul.f32 %v12750_v30, %v2632_v52  ;;  %757 = vrot.lane.b32.xlu0 %v12551_v60, %s10670_s16 }
 0x1ab   :  { %v12773_v3 = vpop.permute.xlu1 %2605  ;;  %v3868_v15 = vld [vmem:[#allocation2 + $0x588] sm:$0xff] }
 0x1ac   :  { %18715 = vst [vmem:[#allocation90_spill] sm:$0xff] %v12773_v3  ;;  %v18296_v6 = vrot.slane %v12758_v26, 4  ;;  %v2602_v14 = vpop.permute.xlu0 %2601  ;;  %v9898_v16 = vpack.c.bf16 %v2418_v31, %v3868_v15  ;;  %v3869_v52 = vld [vmem:[#allocation2 + $0x590] sm:$0xff]  ;;  %v2422_v31 = vsel %vm67_vm0, %v18716_v38, %v2421_v62 }
 0x1ad   :  { %v2628_v28 = vsel %vm2621_vm13, %v2602_v14, %v12773_v3  ;;  %v2630_v7 = vsel %vm2621_vm13, %v2598_v12, %v2602_v14  ;;  %885 = vrot.lane.b32.xlu1 %v12504_v32, %s10669_s15  ;;  %v18717_v14 = vrot.slane %v12656_v13, 4  ;;  %v9712_v13 = vld [vmem:[%s18171_s3 + $0x80] ss:$8 sm:$0xf] }
 0x1ae   :  { %2756 = vst [vmem:[#allocation2 + $0x648] sm:$0xf0] %v18296_v6  ;;  %v12791_v4 = vmul.f32 %v12764_v9, %v2630_v7  ;;  %v12794_v25 = vmul.f32 %v12768_v23, %v2628_v28  ;;  %881 = vrot.lane.b32.xlu0 %v12470_v1, %s10669_s15  ;;  %9899 = vmatprep.subr.bf16.mxu0 %v9898_v16  ;;  %v3867_v12 = vld [vmem:[#allocation2 + $0x580] sm:$0xff] }
 0x1af   :  { %v12801_v33 = vpop.permute.xlu1 %2467  ;;  %v9900_v0 = vpack.c.bf16 %v2416_v18, %v3867_v12  ;;  %v3870_v15 = vld [vmem:[#allocation2 + $0x598] sm:$0xff]  ;;  %v2420_v7 = vsel %vm67_vm0, %v18717_v14, %v2419_v2 }
 0x1b0   :  { %v18299_v28 = vrot.slane %v12791_v4, 4  ;;  %v18300_v6 = vrot.slane %v12794_v25, 4  ;;  %v12808_v3 = vpop.permute.xlu0 %2589  ;;  %v9978_v16 = vpack.c.bf16 %v2422_v31, %v3870_v15  ;;  %v9980_v62 = vpack.c.bf16 %v2420_v7, %v3869_v52  ;;  %v9713_v2 = vld [vmem:[%s18171_s3 + $0x80] ss:$8 sm:$0xf0] }
 0x1b1   :  { %18718 = vst [vmem:[#allocation91_spill] sm:$0xff] %v12808_v3  ;;  %v2634_v55 = vsel %vm2621_vm13, %v12808_v3, %v2594_v24  ;;  %1065 = vrot.lane.b32.xlu1 %v12551_v60, %s18509_s29  ;;  %9901 = vmatpush1.bf16.msra.mxu0 %v9900_v0  ;;  %v12833_v52 = vor.u32 %v9713_v2, %v9712_v13  ;;  %v12890_v3 = vld [vmem:[#allocation2 + $0x7c8] sm:$0xff] }
 0x1b2   :  { %2757 = vst [vmem:[#allocation2 + $0x650] sm:$0xf0] %v18299_v28  ;;  %2758 = vst [vmem:[#allocation2 + $0x658] sm:$0xf0] %v18300_v6  ;;  %v12826_v24 = vmul.f32 %v12785_v57, %v2634_v55  ;;  %1061 = vrot.lane.b32.xlu0 %v12517_v48, %s18509_s29  ;;  %9979 = vmatprep.subr.bf16.mxu1 %v9978_v16  ;;  %v12877_v6 = vld [vmem:[#allocation2 + $0x708] sm:$0xff] }
 0x1b3   :  { %9981 = vmatpush1.bf16.msra.mxu1 %v9980_v62  ;;  %v12830_v18 = vpop.permute.xlu1 %2471  ;;  %18719 = vst [vmem:[#allocation92_spill] sm:$0xff] %v12833_v52  ;;  %v2524_v0 = vrot.slane %v12833_v52, %v10957_v46  ;;  %v12856_v55 = vrot.slane %v12833_v52, %v10942_v41  ;;  %v12886_v46 = vld [vmem:[#allocation2 + $0x700] sm:$0xff]  ;;  %v12925_v50 = vrot.slane %v12833_v52, %v10954_v45  ;;  %v12941_v45 = vld [vmem:[#allocation2 + $0x810] sm:$0xff] }
 0x1b4   :  { %v18301_v12 = vrot.slane %v12826_v24, 4  ;;  %v2470_v38 = vpop.permute.xlu0 %2469  ;;  %v12888_v41 = vld [vmem:[#allocation2 + $0x740] sm:$0xff]  ;;  %18735 = vst [vmem:[#allocation108_spill] sm:$0xff] %v12941_v45  ;;  %v13006_v45 = vld [vmem:[#allocation2 + $0x910] sm:$0xff] }
 0x1b5   :  { %1189 = vrot.lane.b32.xlu1 %v12470_v1, %s10672_s20  ;;  %18742 = vst [vmem:[#allocation115_spill] sm:$0xff] %v13006_v45  ;;  %v18762_v45 = vld [vmem:[#allocation19_spill] sm:$0xff] }
 0x1b6   :  { %2755 = vst [vmem:[#allocation2 + $0x640] sm:$0xf0] %v18301_v12  ;;  %1187 = vrot.lane.b32.xlu0 %v12517_v48, %s10672_s20 }
 0x1b7   :  { %v12841_v31 = vpop.permute.xlu1 %2475 }
 0x1b8   :  { %v2474_v15 = vpop.permute.xlu0 %2473 }
 0x1b9   :  { %v2507_v14 = vsel %vm18396_vm15, %v2470_v38, %v2474_v15  ;;  %1193 = vrot.lane.b32.xlu1 %v12504_v32, %s10672_s20 }
 0x1ba   :  { %v2566_v7 = vmul.f32 %v2524_v0, %v2507_v14  ;;  %1191 = vrot.lane.b32.xlu0 %v12551_v60, %s10672_s20  ;;  %v2506_v14 = vsel %vm18396_vm15, %v12801_v33, %v12830_v18 }
 0x1bb   :  { %v12852_v16 = vpop.permute.xlu1 %2479  ;;  %v2558_v54 = vmul.f32 %v2524_v0, %v2506_v14  ;;  %v12915_v14 = vld [vmem:[#allocation2 + $0x808] sm:$0xff] }
 0x1bc   :  { %18720 = vst [vmem:[#allocation93_spill] sm:$0xff] %v12852_v16  ;;  %2582 = vst [vmem:[#allocation2 + $0x648] sm:$0xf] %v2566_v7  ;;  %v2478_v62 = vpop.permute.xlu0 %2477  ;;  %v12873_v7 = vrot.slane %v12833_v52, %v10945_v42  ;;  %v12956_v52 = vld [vmem:[#allocation2 + $0x940] sm:$0xff] }
 0x1bd   :  { %v2505_v13 = vsel %vm18396_vm15, %v2474_v15, %v2478_v62  ;;  %1067 = vrot.lane.b32.xlu1 %v12504_v32, %s18509_s29  ;;  %18729 = vst [vmem:[#allocation102_spill] sm:$0xff] %v12915_v14  ;;  %v12986_v14 = vld [vmem:[#allocation2 + $0x908] sm:$0xff] }
 0x1be   :  { %v2567_v2 = vmul.f32 %v12856_v55, %v2505_v13  ;;  %1063 = vrot.lane.b32.xlu0 %v12470_v1, %s18509_s29  ;;  %v12879_v13 = vld [vmem:[#allocation2 + $0x748] sm:$0xff] }
 0x1bf   :  { %v12869_v28 = vpop.permute.xlu1 %2463 }
 0x1c0   :  { %18721 = vst [vmem:[#allocation94_spill] sm:$0xff] %v12869_v28  ;;  %2583 = vst [vmem:[#allocation2 + $0x650] sm:$0xf] %v2567_v2  ;;  %v12875_v15 = vpop.permute.xlu0 %2481  ;;  %v12892_v2 = vld [vmem:[#allocation2 + $0x710] sm:$0xff] }
 0x1c1   :  { %18722 = vst [vmem:[#allocation95_spill] sm:$0xff] %v12875_v15  ;;  %v2503_v12 = vsel %vm18396_vm15, %v2478_v62, %v12875_v15  ;;  %1495 = vrot.lane.b32.xlu1 %v12517_v48, %s18438_s25  ;;  %18723 = vst [vmem:[#allocation96_spill] sm:$0xff] %v12892_v2  ;;  %v12899_v62 = vld [vmem:[#allocation2 + $0x788] sm:$0xff]  ;;  %v12901_v15 = vld [vmem:[#allocation2 + $0x780] sm:$0xff] }
 0x1c2   :  { %v2568_v20 = vmul.f32 %v12873_v7, %v2503_v12  ;;  %1491 = vrot.lane.b32.xlu0 %v11989_v19, %s18438_s25  ;;  %18725 = vst [vmem:[#allocation98_spill] sm:$0xff] %v12901_v15  ;;  %v12958_v2 = vld [vmem:[#allocation2 + $0x890] sm:$0xff] }
 0x1c3   :  { %v12911_v37 = vpop.permute.xlu1 %2595  ;;  %v3892_v0 = vld [vmem:[#allocation2 + $0x648] sm:$0xff]  ;;  %18736 = vst [vmem:[#allocation109_spill] sm:$0xff] %v12958_v2  ;;  %v13021_v12 = vld [vmem:[#allocation2 + $0x990] sm:$0xff] }
 0x1c4   :  { %2584 = vst [vmem:[#allocation2 + $0x658] sm:$0xf] %v2568_v20  ;;  %v12927_v10 = vpop.permute.xlu0 %2465  ;;  %v9902_v8 = vpack.c.bf16 %v3892_v0, %v2558_v54  ;;  %v12972_v20 = vld [vmem:[#allocation2 + $0x900] sm:$0xff]  ;;  %18743 = vst [vmem:[#allocation116_spill] sm:$0xff] %v13021_v12  ;;  %v2508_v0 = vsel %vm18396_vm15, %v12869_v28, %v12801_v33  ;;  %v2868_v33 = vrot.slane %v10949_v44, %v10945_v42 }
 0x1c5   :  { %18733 = vst [vmem:[#allocation106_spill] sm:$0xff] %v12927_v10  ;;  %v2509_v54 = vsel %vm18396_vm15, %v12927_v10, %v2470_v38  ;;  %1369 = vrot.lane.b32.xlu1 %v12517_v48, %s18440_s26  ;;  %v12963_v38 = vsub.s32 4, %v10924_v36  ;;  %18739 = vst [vmem:[#allocation112_spill] sm:$0xff] %v12972_v20  ;;  %v18753_v12 = vld [vmem:[#allocation11_spill] sm:$0xff] }
 0x1c6   :  { %v2565_v10 = vmul.f32 %v12925_v50, %v2509_v54  ;;  %1499 = vrot.lane.b32.xlu0 %v12551_v60, %s18438_s25  ;;  %9903 = vmatprep.subr.bf16.mxu0 %v9902_v8  ;;  %v2502_v54 = vsel %vm18396_vm15, %v12841_v31, %v12852_v16  ;;  %v2504_v16 = vsel %vm18396_vm15, %v12830_v18, %v12841_v31  ;;  %v13015_v18 = vld [vmem:[#allocation2 + $0x988] sm:$0xff]  ;;  %vm4025_vm15 = vcmask 556032  }
 0x1c7   :  { %18738 = vst [vmem:[#allocation111_spill] sm:$0xff] %v12963_v38  ;;  %v2604_v15 = vpop.permute.xlu1 %2603  ;;  %v2560_v8 = vmul.f32 %v12873_v7, %v2502_v54  ;;  %v2559_v31 = vmul.f32 %v12856_v55, %v2504_v16  ;;  %v624_v22 = vrot.slane %v18762_v45, %v12963_v38 }
 0x1c8   :  { %2581 = vst [vmem:[#allocation2 + $0x640] sm:$0xf] %v2565_v10  ;;  %v2600_v11 = vpop.permute.xlu0 %2599 }
 0x1c9   :  { %v2631_v29 = vsel %vm2621_vm13, %v2600_v11, %v2604_v15  ;;  %v2633_v10 = vsel %vm2621_vm13, %v12911_v37, %v2600_v11  ;;  %1373 = vrot.lane.b32.xlu1 %v12551_v60, %s18440_s26  ;;  %v3893_v11 = vld [vmem:[#allocation2 + $0x650] sm:$0xff] }
 0x1ca   :  { %v2692_v2 = vmul.f32 %v12750_v30, %v2633_v10  ;;  %1371 = vrot.lane.b32.xlu0 %v12470_v1, %s18440_s26  ;;  %v2693_v7 = vmul.f32 %v12764_v9, %v2631_v29  ;;  %v13041_v10 = vrot.slane %v10947_v43, %v12963_v38 }
 0x1cb   :  { %v13037_v30 = vpop.permute.xlu1 %2591  ;;  %v3894_v54 = vld [vmem:[#allocation2 + $0x658] sm:$0xff] }
 0x1cc   :  { %18744 = vst [vmem:[#allocation117_spill] sm:$0xff] %v13037_v30  ;;  %18745 = vst [vmem:[#allocation118_spill] sm:$0xff] %v13041_v10  ;;  %v2725_v59 = vrot.slane %v2692_v2, 4  ;;  %v2635_v16 = vsel %vm2621_vm13, %v13037_v30, %v12911_v37  ;;  %v13047_v55 = vpop.permute.xlu0 %2607  ;;  %v9982_v20 = vpack.c.bf16 %v3894_v54, %v2560_v8  ;;  %v13058_v2 = vld [vmem:[%s18170_s2 + $0x10] sm:$0xff]  ;;  %v9984_v37 = vpack.c.bf16 %v3893_v11, %v2559_v31 }
 0x1cd   :  { %18746 = vst [vmem:[#allocation119_spill] sm:$0xff] %v13047_v55  ;;  %v2691_v29 = vmul.f32 %v12785_v57, %v2635_v16  ;;  %v2629_v9 = vsel %vm2621_vm13, %v2604_v15, %v13047_v55  ;;  %1493 = vrot.lane.b32.xlu1 %v13058_v2, %s18438_s25  ;;  %v2791_v8 = vrot.slane %v11010_v63, %v10945_v42  ;;  %v18747_v57 = vrot.slane %v12758_v26, 4 }
 0x1ce   :  { %v2557_v54 = vmul.f32 %v12925_v50, %v2508_v0  ;;  %v2694_v15 = vmul.f32 %v12768_v23, %v2629_v9  ;;  %1375 = vrot.lane.b32.xlu0 %v12504_v32, %s18440_s26  ;;  %9983 = vmatprep.subr.bf16.mxu1 %v9982_v20  ;;  %v2727_v28 = vrot.slane %v2693_v7, 4  ;;  %v13075_v31 = vrot.slane %v11084_v35, %v12963_v38 }
 0x1cf   :  { %v2726_v16 = vsel %vm67_vm0, %v18747_v57, %v2725_v59  ;;  %v2723_v30 = vrot.slane %v2691_v29, 4  ;;  %9985 = vmatpush1.bf16.msra.mxu1 %v9984_v37  ;;  %v13071_v55 = vpop.permute.xlu1 %259  ;;  %v3891_v50 = vld [vmem:[#allocation2 + $0x640] sm:$0xff]  ;;  %v13079_v26 = vrot.slane %v11182_v34, %v12963_v38  ;;  %v3908_v59 = vld [vmem:[#allocation2 + $0x6c8] sm:$0xff]  ;;  %v18751_v29 = vrot.slane %v12826_v24, 4 }
 0x1d0   :  { %18748 = vst [vmem:[#allocation120_spill] sm:$0xff] %v13075_v31  ;;  %v2729_v23 = vrot.slane %v2694_v15, 4  ;;  %v282_v20 = vsel %vm275_vm1, %v10997_v58, %v13071_v55  ;;  %v13085_v0 = vpop.permute.xlu0 %132  ;;  %v9904_v11 = vpack.c.bf16 %v3891_v50, %v2557_v54  ;;  %v9906_v7 = vpack.c.bf16 %v3908_v59, %v2726_v16  ;;  %v18757_v16 = vld [vmem:[#allocation16_spill] sm:$0xff]  ;;  %v3907_v50 = vld [vmem:[#allocation2 + $0x6c0] sm:$0xff] }
 0x1d1   :  { %18749 = vst [vmem:[#allocation121_spill] sm:$0xff] %v13079_v26  ;;  %18750 = vst [vmem:[#allocation122_spill] sm:$0xff] %v13085_v0  ;;  %v2724_v9 = vsel %vm67_vm0, %v18751_v29, %v2723_v30  ;;  %v13091_v37 = vmul.f32 %v13041_v10, %v282_v20  ;;  %v2896_v57 = vmul.f32 %v2868_v33, %v282_v20  ;;  %1501 = vrot.lane.b32.xlu1 %v12504_v32, %s18438_s25  ;;  %v18766_v10 = vld [vmem:[#allocation26_spill] sm:$0xff] }
 0x1d2   :  { %v13097_v15 = vsel %vm150_vm2, %v18753_v12, %v13085_v0  ;;  %v13102_v58 = vsub.s32 5, %v10924_v36  ;;  %v18756_v24 = vrot.slane %v12794_v25, 4  ;;  %1497 = vrot.lane.b32.xlu0 %v12470_v1, %s18438_s25  ;;  %9905 = vmatpush1.bf16.msra.mxu0 %v9904_v11  ;;  %v13112_v12 = vrot.slane %v18757_v16, %v10945_v42 }
 0x1d3   :  { %18752 = vst [vmem:[#allocation123_spill] sm:$0xff] %v13091_v37  ;;  %18754 = vst [vmem:[#allocation11_spill] sm:$0xff] %v13097_v15  ;;  %v2819_v54 = vmul.f32 %v2791_v8, %v13097_v15  ;;  %v18758_v59 = vrot.slane %v12791_v4, 4  ;;  %v18365_v29 = vrot.slane %v13091_v37, 4  ;;  %v2928_v25 = vrot.slane %v2896_v57, 4  ;;  %v13118_v51 = vpop.permute.xlu1 %134  ;;  %9907 = vmatprep.subr.bf16.mxu0 %v9906_v7  ;;  %v18763_v4 = vld [vmem:[#allocation20_spill] sm:$0xff] }
 0x1d4   :  { %18755 = vst [vmem:[#allocation124_spill] sm:$0xff] %v13102_v58  ;;  %v2730_v30 = vsel %vm67_vm0, %v18756_v24, %v2729_v23  ;;  %18759 = vst [vmem:[#allocation16_spill] sm:$0xff] %v13118_v51  ;;  %v9908_v23 = vpack.c.bf16 %v3907_v50, %v2724_v9  ;;  %v18760_v24 = vld [vmem:[#allocation13_spill] sm:$0xff]  ;;  %v13124_v15 = vpop.permute.xlu0 %261 }
 0x1d5   :  { %v2728_v20 = vsel %vm67_vm0, %v18758_v59, %v2727_v28  ;;  %v158_v11 = vsel %vm150_vm2, %v18760_v24, %v13118_v51  ;;  %18761 = vst [vmem:[#allocation13_spill] sm:$0xff] %v13124_v15  ;;  %v3078_v28 = vrot.slane %v18763_v4, %v10945_v42  ;;  %v9986_v59 = vpack.c.bf16 %v2819_v54, %v2730_v30  ;;  %v18764_v57 = vld [vmem:[#allocation17_spill] sm:$0xff] }
 0x1d6   :  { %413 = vst [vmem:[#allocation2 + $0x60] sm:$0xf0] %v18365_v29  ;;  %2968 = vst [vmem:[#allocation2 + $0x718] sm:$0xf0] %v2928_v25  ;;  %v223_v7 = vmul.f32 %v13075_v31, %v158_v11  ;;  %v2827_v9 = vmul.f32 %v2791_v8, %v158_v11  ;;  %v13137_v50 = vsel %vm275_vm1, %v18764_v57, %v13124_v15  ;;  %1677 = vrot.lane.b32.xlu1 %v12517_v48, %s18436_s30  ;;  %v3909_v24 = vld [vmem:[#allocation2 + $0x6d0] sm:$0xff]  ;;  %v18767_v11 = vld [vmem:[#allocation27_spill] sm:$0xff] }
 0x1d7   :  { %18765 = vst [vmem:[#allocation19_spill] sm:$0xff] %v13137_v50  ;;  %v13143_v30 = vrot.slane %v18766_v10, %v12963_v38  ;;  %v2904_v54 = vmul.f32 %v2868_v33, %v13137_v50  ;;  %1673 = vrot.lane.b32.xlu0 %v11989_v19, %s18436_s30  ;;  %9909 = vmatpush1.bf16.msra.mxu0 %v9908_v23  ;;  %v13153_v57 = vsub.s32 6, %v10924_v36  ;;  %v13155_v37 = vpop.permute.xlu1 %441  ;;  %v18771_v33 = vld [vmem:[#allocation33_spill] sm:$0xff]  ;;  %v18777_v50 = vld [vmem:[#allocation22_spill] sm:$0xff] }
 0x1d8   :  { %v9988_v8 = vpack.c.bf16 %v3909_v24, %v2728_v20  ;;  %v13150_v29 = vrot.slane %v18767_v11, %v10945_v42  ;;  %239 = vst [vmem:[#allocation2 + $0x60] sm:$0xf] %v223_v7  ;;  %2843 = vst [vmem:[#allocation2 + $0x718] sm:$0xf] %v2827_v9  ;;  %v18770_v15 = vpack.c.bf16 %v12879_v13, %v12877_v6  ;;  %9987 = vmatprep.subr.bf16.mxu1 %v9986_v59  ;;  %v18772_v20 = vld [vmem:[#allocation31_spill] sm:$0xff]  ;;  %v18773_v9 = vld [vmem:[#allocation18_spill] sm:$0xff]  ;;  %v13178_v13 = vpop.permute.xlu0 %567 }
 0x1d9   :  { %18768 = vst [vmem:[#allocation20_spill] sm:$0xff] %v13153_v57  ;;  %18769 = vst [vmem:[#allocation17_spill] sm:$0xff] %v13155_v37  ;;  %v13162_v23 = vrot.slane %v18771_v33, %v12963_v38  ;;  %v13166_v24 = vrot.slane %v18772_v20, %v10945_v42  ;;  %v13170_v36 = vrot.slane %v11714_v53, %v12963_v38  ;;  %v2939_v7 = vrot.slane %v2904_v54, 4  ;;  %v18776_v59 = vld [vmem:[#allocation43_spill] sm:$0xff]  ;;  %v18782_v53 = vld [vmem:[#allocation57_spill] sm:$0xff] }
 0x1da   :  { %9911 = vmatprep.subr.bf16.mxu0 %v18770_v15  ;;  %v13176_v6 = vsel %vm457_vm3, %v18773_v9, %v13155_v37  ;;  %18775 = vst [vmem:[#allocation27_spill] sm:$0xff] %v13178_v13  ;;  %9989 = vmatpush1.bf16.msra.mxu1 %v9988_v8  ;;  %v13182_v15 = vrot.slane %v11716_v47, %v10945_v42  ;;  %v18778_v8 = vld [vmem:[#allocation44_spill] sm:$0xff] }
 0x1db   :  { %18774 = vst [vmem:[#allocation26_spill] sm:$0xff] %v13176_v6  ;;  %v13186_v31 = vrot.slane %v18776_v59, %v12963_v38  ;;  %v13190_v54 = vmul.f32 %v13112_v12, %v13176_v6  ;;  %v590_v9 = vsel %vm583_vm4, %v18777_v50, %v13178_v13  ;;  %1799 = vrot.lane.b32.xlu1 %v11989_v19, %s18434_s22  ;;  %v13213_v13 = vpop.permute.xlu1 %569 }
 0x1dc   :  { %v13200_v37 = vrot.slane %v18778_v8, %v10945_v42  ;;  %v13204_v59 = vrot.slane %v10947_v43, %v13102_v58  ;;  %v2940_v47 = vsel %vm67_vm0, %v2928_v25, %v2939_v7  ;;  %v649_v6 = vmul.f32 %v624_v22, %v590_v9  ;;  %1681 = vrot.lane.b32.xlu0 %v12551_v60, %s18436_s30  ;;  %v18783_v25 = vld [vmem:[#allocation55_spill] sm:$0xff] }
 0x1dd   :  { %v3106_v51 = vmul.f32 %v3078_v28, %v590_v9  ;;  %v13211_v50 = vrot.slane %v10949_v44, %v12963_v38  ;;  %18780 = vst [vmem:[#allocation22_spill] sm:$0xff] %v13213_v13  ;;  %v18781_v8 = vpack.c.bf16 %v12888_v41, %v12886_v46  ;;  %v13220_v20 = vrot.slane %v18782_v53, %v12963_v38  ;;  %v18785_v41 = vld [vmem:[#allocation24_spill] sm:$0xff] }
 0x1de   :  { %v13224_v7 = vrot.slane %v18783_v25, %v10945_v42  ;;  %v13228_v9 = vrot.slane %v11084_v35, %v13102_v58  ;;  %v13232_v33 = vrot.slane %v11010_v63, %v12963_v38  ;;  %v681_v0 = vrot.slane %v649_v6, 4  ;;  %v18788_v6 = vld [vmem:[#allocation29_spill] sm:$0xff] }
 0x1df   :  { %18779 = vst [vmem:[#allocation18_spill] sm:$0xff] %v13211_v50  ;;  %9913 = vmatpush1.bf16.msra.mxu0 %v18781_v8  ;;  %v3138_v50 = vrot.slane %v3106_v51, 4  ;;  %v591_v46 = vsel %vm583_vm4, %v18785_v41, %v13213_v13  ;;  %v13238_v8 = vpop.permute.xlu0 %443  ;;  %v18787_v42 = vpack.c.bf16 %v12890_v3, %v12899_v62  ;;  %v13245_v53 = vrot.slane %v10947_v43, %v13153_v57  ;;  %v18789_v41 = vld [vmem:[#allocation9_spill] sm:$0xff] }
 0x1e0   :  { %18784 = vst [vmem:[#allocation125_spill] sm:$0xff] %v13228_v9  ;;  %18786 = vst [vmem:[#allocation24_spill] sm:$0xff] %v13238_v8  ;;  %v657_v25 = vmul.f32 %v624_v22, %v591_v46  ;;  %v3114_v9 = vmul.f32 %v3078_v28, %v591_v46  ;;  %v465_v51 = vsel %vm457_vm3, %v18788_v6, %v13238_v8  ;;  %1803 = vrot.lane.b32.xlu1 %v12517_v48, %s18434_s22  ;;  %v3918_v22 = vld [vmem:[#allocation2 + $0x718] sm:$0xff]  ;;  %v13269_v6 = vpop.permute.xlu1 %875 }
 0x1e1   :  { %9915 = vmatprep.subr.bf16.mxu0 %v18787_v42  ;;  %v13255_v13 = vrot.slane %v10947_v43, %v18789_v41  ;;  %721 = vst [vmem:[#allocation2 + $0x120] sm:$0xf0] %v681_v0  ;;  %3178 = vst [vmem:[#allocation2 + $0x7d8] sm:$0xf0] %v3138_v50  ;;  %v531_v42 = vmul.f32 %v13079_v26, %v465_v51  ;;  %v3037_v3 = vmul.f32 %v13112_v12, %v465_v51  ;;  %v18794_v8 = vld [vmem:[#allocation98_spill] sm:$0xff] }
 0x1e2   :  { %1801 = vrot.lane.b32.xlu0 %v13058_v2, %s18434_s22  ;;  %v13263_v62 = vrot.slane %v10949_v44, %v13102_v58  ;;  %v13267_v28 = vrot.slane %v10949_v44, %v13153_v57  ;;  %v693_v43 = vrot.slane %v657_v25, 4  ;;  %v3149_v46 = vrot.slane %v3114_v9, 4  ;;  %18793 = vst [vmem:[#allocation128_spill] sm:$0xff] %v13269_v6  ;;  %v18798_v9 = vld [vmem:[#allocation103_spill] sm:$0xff] }
 0x1e3   :  { %18790 = vst [vmem:[#allocation29_spill] sm:$0xff] %v13255_v13  ;;  %v18795_v26 = vpack.c.bf16 %v12903_v39, %v18794_v8  ;;  %v9990_v12 = vpack.c.bf16 %v2940_v47, %v3918_v22  ;;  %v13276_v51 = vrot.slane %v11084_v35, %v13153_v57  ;;  %547 = vst [vmem:[#allocation2 + $0x120] sm:$0xf] %v531_v42  ;;  %v13282_v25 = vpop.permute.xlu0 %749  ;;  %v13290_v47 = vld [vmem:[%s18172_s4] sm:$0xff] }
 0x1e4   :  { %18791 = vst [vmem:[#allocation126_spill] sm:$0xff] %v13263_v62  ;;  %18792 = vst [vmem:[#allocation127_spill] sm:$0xff] %v13267_v28  ;;  %v18796_v62 = vld [vmem:[#allocation30_spill] sm:$0xff]  ;;  %v13294_v39 = vrot.slane %v11084_v35, %v18789_v41  ;;  %v694_v8 = vsel %vm67_vm0, %v681_v0, %v693_v43  ;;  %v13302_v42 = vsel %vm67_vm0, %v3138_v50, %v3149_v46  ;;  %1807 = vrot.lane.b32.xlu1 %v12551_v60, %s18434_s22 }
 0x1e5   :  { %9917 = vmatpush1.bf16.msra.mxu0 %v18795_v26  ;;  %3053 = vst [vmem:[#allocation2 + $0x7d8] sm:$0xf] %v3037_v3  ;;  %v898_v44 = vsel %vm891_vm5, %v18796_v62, %v13269_v6  ;;  %18797 = vst [vmem:[#allocation98_spill] sm:$0xff] %v13282_v25  ;;  %v18799_v28 = vld [vmem:[#allocation102_spill] sm:$0xff]  ;;  %v13298_v26 = vrot.slane %v11010_v63, %v13102_v58  ;;  %9991 = vmatprep.subr.bf16.mxu1 %v9990_v12 }
 0x1e6   :  { %v18800_v13 = vpack.c.bf16 %v18798_v9, %v18799_v28  ;;  %v3316_v3 = vmul.f32 %v13150_v29, %v898_v44  ;;  %729 = vst [vmem:[#allocation2 + $0x160] sm:$0xff] %v694_v8  ;;  %v18801_v35 = vld [vmem:[#allocation34_spill] sm:$0xff]  ;;  %1805 = vrot.lane.b32.xlu0 %v12470_v1, %s18434_s22  ;;  %v13316_v0 = vrot.slane %v11010_v63, %v13153_v57  ;;  %v18803_v9 = vld [vmem:[#allocation97_spill] sm:$0xff]  ;;  %v18804_v8 = vld [vmem:[#allocation96_spill] sm:$0xff] }
 0x1e7   :  { %v772_v22 = vsel %vm765_vm6, %v18801_v35, %v13282_v25  ;;  %v13320_v50 = vrot.slane %v11182_v34, %v18789_v41  ;;  %v18805_v12 = vpack.c.bf16 %v18803_v9, %v18804_v8  ;;  %v18806_v63 = vld [vmem:[#allocation36_spill] sm:$0xff]  ;;  %v13347_v9 = vrot.slane %v11182_v34, %v13102_v58 }
 0x1e8   :  { %9919 = vmatprep.subr.bf16.mxu0 %v18800_v13  ;;  %v957_v13 = vmul.f32 %v13143_v30, %v898_v44  ;;  %v3348_v28 = vrot.slane %v3316_v3, 4  ;;  %v831_v43 = vmul.f32 %v13162_v23, %v772_v22  ;;  %v13324_v46 = vmul.f32 %v13166_v24, %v772_v22  ;;  %v13326_v44 = vpop.permute.xlu1 %751  ;;  %4118 = vmatmul.mubr.f32.vlgmr.msra.gmra.mrb[0].mxu0 %v13290_v47  ;;  %v18808_v3 = vld [vmem:[#allocation99_spill] sm:$0xff]  ;;  %v18809_v25 = vld [vmem:[#allocation104_spill] sm:$0xff] }
 0x1e9   :  { %18802 = vst [vmem:[#allocation30_spill] sm:$0xff] %v13326_v44  ;;  %9993 = vmatpush1.bf16.msra.mxu1 %v18805_v12  ;;  %v773_v35 = vsel %vm765_vm6, %v18806_v63, %v13326_v44  ;;  %v18810_v6 = vpack.c.bf16 %v18808_v3, %v18809_v25  ;;  %v13343_v22 = vrot.slane %v18757_v16, %v13153_v57  ;;  %v18391_v8 = vmov 0.0  }
 0x1ea   :  { %v989_v62 = vrot.slane %v957_v13, 4  ;;  %v13336_v13 = vpop.permute.xlu0 %877  ;;  %4188 = vmatprep.mubr.f32.mxu0 %v18391_v8  ;;  %3388 = vst [vmem:[#allocation2 + $0x898] sm:$0xf0] %v3348_v28  ;;  %847 = vst [vmem:[#allocation2 + $0x1a0] sm:$0xff] %v831_v43  ;;  %v839_v12 = vmul.f32 %v13162_v23, %v773_v35  ;;  %v3247_v63 = vmul.f32 %v13166_v24, %v773_v35  ;;  %1675 = vrot.lane.b32.xlu1 %v13058_v2, %s18436_s30  ;;  %v10683_v24 = vmov 0  }
 0x1eb   :  { %18807 = vst [vmem:[#allocation103_spill] sm:$0xff] %v13336_v13  ;;  %9921 = vmatpush1.bf16.msra.mxu0 %v18810_v6  ;;  %v18811_v6 = vld [vmem:[#allocation41_spill] sm:$0xff]  ;;  %v18812_v3 = vpack.c.bf16 %v12935_v49, %v12933_v56  ;;  %1809 = vrot.lane.b32.xlu0 %v12504_v32, %s18434_s22  ;;  %v13367_v23 = vrot.slane %v11182_v34, %v13153_v57 }
 0x1ec   :  { %1029 = vst [vmem:[#allocation2 + $0x1e0] sm:$0xf0] %v989_v62  ;;  %v899_v25 = vsel %vm891_vm5, %v18811_v6, %v13336_v13  ;;  %10626 = vset.pattern.permute.xlu1 %v10683_v24  ;;  %855 = vst [vmem:[#allocation2 + $0x1e0] sm:$0xf] %v839_v12  ;;  %v13369_v35 = vpop.permute.xlu1 %1057  ;;  %v3942_v6 = vld [vmem:[#allocation2 + $0x7d8] sm:$0xff]  ;;  %v13373_v49 = vrot.slane %v18757_v16, %v12963_v38  ;;  %v13377_v56 = vrot.slane %v18757_v16, %v13102_v58 }
 0x1ed   :  { %9923 = vmatprep.subr.bf16.mxu0 %v18812_v3  ;;  %v965_v8 = vmul.f32 %v13143_v30, %v899_v25  ;;  %v3324_v43 = vmul.f32 %v13150_v29, %v899_v25  ;;  %18813 = vst [vmem:[#allocation102_spill] sm:$0xff] %v13367_v23  ;;  %3263 = vst [vmem:[#allocation2 + $0x898] sm:$0xf] %v3247_v63  ;;  %v13381_v32 = vrot.slane %v18762_v45, %v13102_v58  ;;  %v18815_v12 = vld [vmem:[#allocation42_spill] sm:$0xff]  ;;  %v18817_v3 = vld [vmem:[#allocation107_spill] sm:$0xff] }
 0x1ee   :  { %18814 = vst [vmem:[#allocation34_spill] sm:$0xff] %v13369_v35  ;;  %v13385_v34 = vrot.slane %v18763_v4, %v12963_v38  ;;  %10625 = vset.pattern.permute.xlu0 %v10683_v24  ;;  %v1080_v63 = vsel %vm1073_vm7, %v18815_v12, %v13369_v35  ;;  %v13391_v25 = vpop.permute.xlu0 %1183  ;;  %v9994_v16 = vpack.c.bf16 %v3942_v6, %v13190_v54  ;;  %v13408_v24 = vld [vmem:[%s18170_s2 + $0x18] sm:$0xff] }
 0x1ef   :  { %v1001_v29 = vrot.slane %v965_v8, 4  ;;  %v3359_v30 = vrot.slane %v3324_v43, 4  ;;  %18816 = vst [vmem:[#allocation97_spill] sm:$0xff] %v13391_v25  ;;  %v18818_v13 = vpack.c.bf16 %v12939_v21, %v18817_v3  ;;  %v1139_v44 = vmul.f32 %v13170_v36, %v1080_v63  ;;  %v18819_v8 = vld [vmem:[#allocation46_spill] sm:$0xff]  ;;  %1683 = vrot.lane.b32.xlu1 %v13408_v24, %s18436_s30  ;;  %1679 = vrot.lane.b32.xlu0 %v12470_v1, %s18436_s30 }
 0x1f0   :  { %v13399_v23 = vmul.f32 %v13182_v15, %v1080_v63  ;;  %v1206_v43 = vsel %vm1199_vm8, %v18819_v8, %v13391_v25  ;;  %v18820_v21 = vpack.c.bf16 %v12954_v17, %v12986_v14  ;;  %9995 = vmatprep.subr.bf16.mxu1 %v9994_v16  ;;  %v13421_v63 = vpop.permute.xlu1 %1185  ;;  %v9998_v17 = vpack.c.bf16 %v13324_v46, %v13302_v42  ;;  %v18825_v16 = vld [vmem:[#allocation100_spill] sm:$0xff] }
 0x1f1   :  { %9925 = vmatpush1.bf16.msra.mxu0 %v18818_v13  ;;  %v1002_v54 = vsel %vm67_vm0, %v989_v62, %v1001_v29  ;;  %v3360_v13 = vsel %vm67_vm0, %v3348_v28, %v3359_v30  ;;  %v1265_v6 = vmul.f32 %v13186_v31, %v1206_v43  ;;  %v3526_v12 = vmul.f32 %v13200_v37, %v1206_v43  ;;  %v18824_v30 = vld [vmem:[#allocation101_spill] sm:$0xff]  ;;  %v18827_v42 = vld [vmem:[#allocation48_spill] sm:$0xff] }
 0x1f2   :  { %9927 = vmatprep.subr.bf16.mxu0 %v18820_v21  ;;  %1037 = vst [vmem:[#allocation2 + $0x220] sm:$0xff] %v1002_v54  ;;  %1155 = vst [vmem:[#allocation2 + $0x260] sm:$0xff] %v1139_v44  ;;  %v13427_v14 = vrot.slane %v18762_v45, %v13153_v57  ;;  %v13431_v62 = vrot.slane %v18762_v45, %v18789_v41  ;;  %v13435_v28 = vrot.slane %v18763_v4, %v13102_v58  ;;  %v13444_v8 = vpop.permute.xlu0 %1059  ;;  %v18829_v45 = vld [vmem:[#allocation112_spill] sm:$0xff] }
 0x1f3   :  { %18821 = vst [vmem:[#allocation96_spill] sm:$0xff] %v13421_v63  ;;  %v1297_v29 = vrot.slane %v1265_v6, 4  ;;  %v3558_v44 = vrot.slane %v3526_v12, 4  ;;  %v18826_v3 = vpack.c.bf16 %v18824_v30, %v18825_v16  ;;  %v1207_v46 = vsel %vm1199_vm8, %v18827_v42, %v13421_v63  ;;  %18828 = vst [vmem:[#allocation104_spill] sm:$0xff] %v13444_v8  ;;  %v18831_v12 = vld [vmem:[#allocation53_spill] sm:$0xff]  ;;  %1983 = vrot.lane.b32.xlu1 %v13058_v2, %s18432_s17 }
 0x1f4   :  { %18822 = vst [vmem:[#allocation36_spill] sm:$0xff] %v13427_v14  ;;  %18823 = vst [vmem:[#allocation99_spill] sm:$0xff] %v13431_v62  ;;  %v18830_v43 = vpack.c.bf16 %v12956_v52, %v18829_v45  ;;  %v13451_v21 = vrot.slane %v18763_v4, %v13153_v57  ;;  %v1273_v54 = vmul.f32 %v13186_v31, %v1207_v46  ;;  %1981 = vrot.lane.b32.xlu0 %v11989_v19, %s18432_s17  ;;  %v18835_v42 = vld [vmem:[#allocation105_spill] sm:$0xff] }
 0x1f5   :  { %9997 = vmatpush1.bf16.msra.mxu1 %v18826_v3  ;;  %v3534_v6 = vmul.f32 %v13200_v37, %v1207_v46  ;;  %v1081_v30 = vsel %vm1073_vm7, %v18831_v12, %v13444_v8  ;;  %1337 = vst [vmem:[#allocation2 + $0x2a0] sm:$0xf0] %v1297_v29  ;;  %3598 = vst [vmem:[#allocation2 + $0x958] sm:$0xf0] %v3558_v44  ;;  %v18832_v31 = vpack.c.bf16 %v12990_v27, %v13015_v18  ;;  %v3966_v37 = vld [vmem:[#allocation2 + $0x898] sm:$0xff]  ;;  %v264_v3 = vpop.permute.xlu1 %263  ;;  %v18836_v27 = vld [vmem:[#allocation108_spill] sm:$0xff] }
 0x1f6   :  { %9929 = vmatpush1.bf16.msra.mxu0 %v18830_v43  ;;  %9999 = vmatprep.subr.bf16.mxu1 %v9998_v17  ;;  %v1147_v52 = vmul.f32 %v13170_v36, %v1081_v30  ;;  %v3457_v4 = vmul.f32 %v13182_v15, %v1081_v30  ;;  %v13470_v16 = vrot.slane %v18766_v10, %v18789_v41  ;;  %v1309_v2 = vrot.slane %v1273_v54, 4  ;;  %v13483_v45 = vpop.permute.xlu0 %1365  ;;  %v18881_v62 = vld [vmem:[#allocation113_spill] sm:$0xff] }
 0x1f7   :  { %9931 = vmatprep.subr.bf16.mxu0 %v18832_v31  ;;  %v3569_v17 = vrot.slane %v3534_v6, 4  ;;  %v10002_v36 = vpack.c.bf16 %v3360_v13, %v3966_v37  ;;  %v13475_v15 = vrot.slane %v18767_v11, %v13153_v57  ;;  %v18837_v18 = vpack.c.bf16 %v18835_v42, %v18836_v27  ;;  %18838 = vst [vmem:[#allocation107_spill] sm:$0xff] %v13483_v45 }
 0x1f8   :  { %18833 = vst [vmem:[#allocation41_spill] sm:$0xff] %v13470_v16  ;;  %4260 = vmatmul.mubr.f32.vlgmr.msra.gmra.mrb[0].mxu1 %v13290_v47  ;;  %1163 = vst [vmem:[#allocation2 + $0x2a0] sm:$0xf] %v1147_v52  ;;  %v280_v46 = vsel %vm275_vm1, %v13071_v55, %v264_v3  ;;  %v18839_v47 = vpack.c.bf16 %v12974_v5, %v13002_v61  ;;  %v13490_v13 = vrot.slane %v18766_v10, %v13102_v58  ;;  %v18842_v61 = vld [vmem:[#allocation18_spill] sm:$0xff]  ;;  %v18846_v42 = vmov 0.0  }
 0x1f9   :  { %18834 = vst [vmem:[#allocation42_spill] sm:$0xff] %v13475_v15  ;;  %3473 = vst [vmem:[#allocation2 + $0x958] sm:$0xf] %v3457_v4  ;;  %10001 = vmatpush1.bf16.msra.mxu1 %v18837_v18  ;;  %v13494_v43 = vrot.slane %v18766_v10, %v13153_v57  ;;  %v18397_v54 = vrot.slane %v11989_v19, 4  ;;  %v1310_v6 = vsel %vm67_vm0, %v1297_v29, %v1309_v2  ;;  %1987 = vrot.lane.b32.xlu1 %v12470_v1, %s18432_s17  ;;  %v18843_v10 = vld [vmem:[#allocation58_spill] sm:$0xff]  ;;  %v18880_v15 = vld [vmem:[#allocation4_spill] sm:$0xff] }
 0x1fa   :  { %9933 = vmatpush1.bf16.msra.mxu0 %v18839_v47  ;;  %18840 = vst [vmem:[#allocation46_spill] sm:$0xff] %v13490_v13  ;;  %v13499_v55 = vsel %vm67_vm0, %v3558_v44, %v3569_v17  ;;  %v13502_v12 = vmul.f32 %v13204_v59, %v280_v46  ;;  %v13505_v5 = vmul.f32 %v18842_v61, %v280_v46  ;;  %1345 = vst [vmem:[#allocation2 + $0x2e0] sm:$0xff] %v1310_v6  ;;  %v4012_v29 = vld [vmem:[#allocation2 + $0xa08] sm:$0xf]  ;;  %v137_v17 = vpop.permute.xlu1 %136  ;;  %v268_v18 = vpop.permute.xlu0 %267  ;;  %v18848_v46 = vld [vmem:[#allocation110_spill] sm:$0xff] }
 0x1fb   :  { %18841 = vst [vmem:[#allocation101_spill] sm:$0xff] %v13494_v43  ;;  %v1388_v30 = vsel %vm1381_vm10, %v18843_v10, %v13483_v45  ;;  %1985 = vrot.lane.b32.xlu0 %v12517_v48, %s18432_s17  ;;  %10003 = vmatprep.subr.bf16.mxu1 %v10002_v36  ;;  %v13517_v44 = vrot.slane %v18767_v11, %v12963_v38  ;;  %2143 = vst [vmem:[#allocation2 + $0x4e0] sm:$0xf0] %v18397_v54  ;;  %v4011_v36 = vld [vmem:[#allocation2 + $0xa00] sm:$0xf]  ;;  %v18849_v47 = vld [vmem:[#allocation109_spill] sm:$0xff] }
 0x1fc   :  { %v13521_v52 = vrot.slane %v18767_v11, %v13102_v58  ;;  %v18398_v4 = vrot.slane %v13502_v12, 4  ;;  %v1447_v37 = vmul.f32 %v13220_v20, %v1388_v30  ;;  %v13529_v2 = vmul.f32 %v13224_v7, %v1388_v30  ;;  %9734 = vmatprep.subr.msk.mxu0 %vm67_vm0, %v4012_v29  ;;  %4330 = vmatprep.mubr.f32.mxu1 %v18846_v42  ;;  %v18847_v11 = vld [vmem:[#allocation122_spill] sm:$0xff]  ;;  %v13545_v10 = vld [vmem:[%s18172_s4 + $0x10] sm:$0xff]  ;;  %v18853_v54 = vld [vmem:[#allocation31_spill] sm:$0xff] }
 0x1fd   :  { %18844 = vst [vmem:[#allocation100_spill] sm:$0xff] %v13517_v44  ;;  %v13536_v27 = vsel %vm150_vm2, %v18847_v11, %v137_v17  ;;  %v18850_v6 = vpack.c.bf16 %v18848_v46, %v18849_v47  ;;  %v18851_v30 = vld [vmem:[#allocation33_spill] sm:$0xff]  ;;  %v13553_v11 = vrot.slane %v18853_v54, %v12963_v38  ;;  %v18856_v47 = vld [vmem:[#allocation10_spill] sm:$0xff]  ;;  %v278_v42 = vsel %vm275_vm1, %v264_v3, %v268_v18 }
 0x1fe   :  { %18845 = vst [vmem:[#allocation48_spill] sm:$0xff] %v13521_v52  ;;  %9735 = vmatpush1.msk.msra.mxu0 %vm67_vm0, %v4011_v36  ;;  %v13549_v29 = vrot.slane %v18851_v30, %v13102_v58  ;;  %414 = vst [vmem:[#allocation2 + $0x68] sm:$0xf0] %v18398_v4  ;;  %v18855_v36 = vrot.slane %v13505_v5, 4  ;;  %v2820_v46 = vmul.f32 %v13232_v33, %v13536_v27  ;;  %1991 = vrot.lane.b32.xlu1 %v13408_v24, %s18432_s17  ;;  %v18859_v19 = vld [vmem:[#allocation126_spill] sm:$0xff]  ;;  %v18878_v52 = vld [vmem:[#allocation125_spill] sm:$0xff] }
 0x1ff   :  { %10005 = vmatpush1.bf16.msra.mxu1 %v18850_v6  ;;  %18854 = vst [vmem:[#allocation53_spill] sm:$0xff] %v13553_v11  ;;  %1463 = vst [vmem:[#allocation2 + $0x320] sm:$0xff] %v1447_v37  ;;  %v276_v6 = vsel %vm275_vm1, %v268_v18, %v18856_v47  ;;  %v13571_v4 = vrot.slane %v18851_v30, %v13153_v57  ;;  %v18858_v37 = vld [vmem:[#allocation29_spill] sm:$0xff]  ;;  %v13580_v45 = vmul.f32 %v18859_v19, %v278_v42  ;;  %v18860_v47 = vld [vmem:[#allocation127_spill] sm:$0xff]  ;;  %v141_v18 = vpop.permute.xlu1 %140 }
 0x200   :  { %18852 = vst [vmem:[#allocation112_spill] sm:$0xff] %v13549_v29  ;;  %2969 = vst [vmem:[#allocation2 + $0x720] sm:$0xf0] %v18855_v36  ;;  %v13574_v36 = vmul.f32 %v13245_v53, %v278_v42  ;;  %v13577_v31 = vmul.f32 %v18858_v37, %v276_v6  ;;  %v13583_v8 = vmul.f32 %v18860_v47, %v276_v6  ;;  %1989 = vrot.lane.b32.xlu0 %v12551_v60, %s18432_s17  ;;  %v3990_v25 = vld [vmem:[#allocation2 + $0x958] sm:$0xff]  ;;  %v18868_v11 = vld [vmem:[#allocation16_spill] sm:$0xff] }
 0x201   :  { %18857 = vst [vmem:[#allocation105_spill] sm:$0xff] %v13571_v4  ;;  %v18861_v3 = vrot.slane %v12517_v48, 4  ;;  %2836 = vst [vmem:[#allocation2 + $0x6e0] sm:$0xff] %v2820_v46  ;;  %9736 = vmatmul.mubr.msk.f32.vlgmr.msra.gmra.mrb[0].mxu0 %vm4025_vm15, %v13545_v10  ;;  %v13593_v63 = vrot.slane %v18851_v30, %v18789_v41  ;;  %v13597_v42 = vrot.slane %v18853_v54, %v13102_v58  ;;  %v18423_v16 = vrot.slane %v18880_v15, 4 }
 0x202   :  { %v13601_v6 = vrot.slane %v18853_v54, %v13153_v57  ;;  %v18867_v54 = vld [vmem:[#allocation12_spill] sm:$0xff]  ;;  %v13624_v4 = vsel %vm150_vm2, %v137_v17, %v141_v18  ;;  %2179 = vrot.lane.b32.xlu1 %v12551_v60, %s18467_s28  ;;  %v10006_v35 = vpack.c.bf16 %v3990_v25, %v13399_v23  ;;  %v18870_v29 = vrot.slane %v13577_v31, 4  ;;  %v18873_v23 = vld [vmem:[#allocation39_spill] sm:$0xff] }
 0x203   :  { %2144 = vst [vmem:[#allocation2 + $0x4e8] sm:$0xf0] %v18861_v3  ;;  %18862 = vst [vmem:[#allocation108_spill] sm:$0xff] %v13593_v63  ;;  %v18865_v3 = vld [vmem:[#allocation38_spill] sm:$0xff]  ;;  %v139_v63 = vpop.permute.xlu0 %138  ;;  %v18872_v17 = vrot.slane %v13583_v8, 4  ;;  %v13648_v25 = vrot.slane %v18873_v23, %v13153_v57  ;;  %v13658_v13 = vpop.permute.xlu1 %1367 }
 0x204   :  { %18863 = vst [vmem:[#allocation18_spill] sm:$0xff] %v13597_v42  ;;  %18864 = vst [vmem:[#allocation58_spill] sm:$0xff] %v13601_v6  ;;  %v13605_v46 = vrot.slane %v18865_v3, %v18789_v41  ;;  %v13614_v42 = vld [vmem:[%s18172_s4 + $0x8] sm:$0xff]  ;;  %v156_v30 = vsel %vm150_vm2, %v18868_v11, %v139_v63  ;;  %v18869_v6 = vrot.slane %v13574_v36, 4  ;;  %v2821_v11 = vmul.f32 %v13298_v26, %v13624_v4 }
 0x205   :  { %4401 = vmatprep.mubr.f32.mxu0 %v13614_v42  ;;  %416 = vst [vmem:[#allocation2 + $0x78] sm:$0xf0] %v18870_v29  ;;  %2971 = vst [vmem:[#allocation2 + $0x730] sm:$0xf0] %v18872_v17  ;;  %2175 = vrot.lane.b32.xlu0 %v12517_v48, %s18467_s28  ;;  %v13652_v29 = vrot.slane %v18865_v3, %v13102_v58  ;;  %v224_v44 = vmul.f32 %v18878_v52, %v156_v30 }
 0x206   :  { %18866 = vst [vmem:[#allocation122_spill] sm:$0xff] %v13605_v46  ;;  %v13620_v46 = vsel %vm150_vm2, %v141_v18, %v18867_v54  ;;  %415 = vst [vmem:[#allocation2 + $0x70] sm:$0xf0] %v18869_v6  ;;  %v18871_v54 = vrot.slane %v13580_v45, 4  ;;  %v18876_v6 = vld [vmem:[#allocation19_spill] sm:$0xff]  ;;  %v2828_v43 = vmul.f32 %v13232_v33, %v156_v30  ;;  %10007 = vmatprep.subr.bf16.mxu1 %v10006_v35  ;;  %v18422_v30 = vrot.slane %v12551_v60, 4 }
 0x207   :  { %v2822_v18 = vmul.f32 %v13316_v0, %v13620_v46  ;;  %18874 = vst [vmem:[#allocation110_spill] sm:$0xff] %v13648_v25  ;;  %18875 = vst [vmem:[#allocation109_spill] sm:$0xff] %v13652_v29  ;;  %v18882_v25 = vld [vmem:[#allocation115_spill] sm:$0xff]  ;;  %v18884_v29 = vld [vmem:[#allocation60_spill] sm:$0xff]  ;;  %v10010_v33 = vpack.c.bf16 %v13529_v2, %v13499_v55  ;;  %v13672_v35 = vrot.slane %v18865_v3, %v13153_v57  ;;  %2301 = vrot.lane.b32.xlu1 %v12517_v48, %s18886_s18 }
 0x208   :  { %2970 = vst [vmem:[#allocation2 + $0x728] sm:$0xf0] %v18871_v54  ;;  %v18877_v54 = vld [vmem:[#allocation118_spill] sm:$0xff]  ;;  %18879 = vst [vmem:[#allocation33_spill] sm:$0xff] %v13658_v13  ;;  %v18883_v14 = vpack.c.bf16 %v18881_v62, %v18882_v25  ;;  %v13696_v2 = vrot.slane %v18873_v23, %v12963_v38 }
 0x209   :  { %v349_v17 = vmul.f32 %v18877_v54, %v18876_v6  ;;  %2837 = vst [vmem:[#allocation2 + $0x6e8] sm:$0xff] %v2821_v11  ;;  %2838 = vst [vmem:[#allocation2 + $0x6f0] sm:$0xff] %v2822_v18  ;;  %v1389_v6 = vsel %vm1381_vm10, %v18884_v29, %v13658_v13  ;;  %v143_v54 = vpop.permute.xlu0 %142  ;;  %v18885_v11 = vld [vmem:[#allocation14_spill] sm:$0xff]  ;;  %2183 = vrot.lane.b32.xlu0 %v18880_v15, %s18467_s28 }
 0x20a   :  { %10009 = vmatpush1.bf16.msra.mxu1 %v18883_v14  ;;  %240 = vst [vmem:[#allocation2 + $0x68] sm:$0xf] %v224_v44  ;;  %2844 = vst [vmem:[#allocation2 + $0x720] sm:$0xf] %v2828_v43  ;;  %v1455_v62 = vmul.f32 %v13220_v20, %v1389_v6  ;;  %v3667_v14 = vmul.f32 %v13224_v7, %v1389_v6  ;;  %v152_v18 = vsel %vm150_vm2, %v143_v54, %v18885_v11  ;;  %v270_v44 = vpop.permute.xlu1 %269  ;;  %v18888_v29 = vld [vmem:[#allocation114_spill] sm:$0xff] }
 0x20b   :  { %v154_v25 = vsel %vm150_vm2, %v139_v63, %v143_v54  ;;  %2146 = vst [vmem:[#allocation2 + $0x4f8] sm:$0xf0] %v18423_v16  ;;  %v226_v43 = vmul.f32 %v13294_v39, %v152_v18  ;;  %v2830_v7 = vmul.f32 %v13316_v0, %v152_v18  ;;  %2145 = vst [vmem:[#allocation2 + $0x4f0] sm:$0xf0] %v18422_v30  ;;  %v385_v63 = vrot.slane %v349_v17, 4  ;;  %v18887_v0 = vld [vmem:[#allocation43_spill] sm:$0xff] }
 0x20c   :  { %v225_v55 = vmul.f32 %v13276_v51, %v154_v25  ;;  %v2829_v20 = vmul.f32 %v13298_v26, %v154_v25  ;;  %1471 = vst [vmem:[#allocation2 + $0x360] sm:$0xf] %v1455_v62  ;;  %3683 = vst [vmem:[#allocation2 + $0xa18] sm:$0xf] %v3667_v14  ;;  %10011 = vmatprep.subr.bf16.mxu1 %v10010_v33  ;;  %v13700_v26 = vrot.slane %v18873_v23, %v13102_v58  ;;  %v18889_v17 = vld [vmem:[#allocation116_spill] sm:$0xff]  ;;  %v18891_v54 = vld [vmem:[#allocation15_spill] sm:$0xff] }
 0x20d   :  { %v13704_v3 = vrot.slane %v18887_v0, %v13102_v58  ;;  %242 = vst [vmem:[#allocation2 + $0x78] sm:$0xf] %v226_v43  ;;  %2846 = vst [vmem:[#allocation2 + $0x730] sm:$0xf] %v2830_v7  ;;  %v18890_v6 = vpack.c.bf16 %v18888_v29, %v18889_v17  ;;  %v277_v33 = vsel %vm275_vm1, %v270_v44, %v18891_v54  ;;  %v266_v62 = vpop.permute.xlu0 %265  ;;  %v13712_v14 = vld [vmem:[#allocation2 + $0x60] sm:$0xff]  ;;  %v18892_v23 = vld [vmem:[#allocation44_spill] sm:$0xff]  ;;  %2305 = vrot.lane.b32.xlu1 %v12551_v60, %s18886_s18 }
 0x20e   :  { %241 = vst [vmem:[#allocation2 + $0x70] sm:$0xf] %v225_v55  ;;  %2845 = vst [vmem:[#allocation2 + $0x728] sm:$0xf] %v2829_v20  ;;  %v13716_v11 = vrot.slane %v18892_v23, %v12963_v38  ;;  %v13720_v18 = vrot.slane %v18887_v0, %v13153_v57  ;;  %v13724_v25 = vrot.slane %v18887_v0, %v18789_v41  ;;  %v18894_v55 = vld [vmem:[#allocation11_spill] sm:$0xff]  ;;  %v18895_v43 = vld [vmem:[#allocation120_spill] sm:$0xff]  ;;  %2303 = vrot.lane.b32.xlu0 %v12470_v1, %s18886_s18  ;;  %v450_v41 = vpop.permute.xlu1 %449 }
 0x20f   :  { %10013 = vmatpush1.bf16.msra.mxu1 %v18890_v6  ;;  %v13728_v20 = vmul.f32 %v18895_v43, %v18894_v55  ;;  %v2907_v7 = vmul.f32 %v18860_v47, %v277_v33  ;;  %v279_v29 = vsel %vm275_vm1, %v266_v62, %v270_v44  ;;  %v18896_v17 = vld [vmem:[#allocation13_spill] sm:$0xff]  ;;  %v18897_v54 = vld [vmem:[#allocation26_spill] sm:$0xff]  ;;  %v18899_v44 = vld [vmem:[#allocation123_spill] sm:$0xff] }
 0x210   :  { %18893 = vst [vmem:[#allocation31_spill] sm:$0xff] %v13724_v25  ;;  %v281_v6 = vsel %vm275_vm1, %v18896_v17, %v266_v62  ;;  %v18898_v30 = vld [vmem:[#allocation121_spill] sm:$0xff]  ;;  %v2906_v47 = vmul.f32 %v18859_v19, %v279_v29  ;;  %v18900_v43 = vrot.slane %v18899_v44, 4  ;;  %v352_v17 = vmul.f32 %v18858_v37, %v277_v33 }
 0x211   :  { %v13740_v0 = vmul.f32 %v18898_v30, %v18897_v54  ;;  %v350_v16 = vmul.f32 %v13204_v59, %v281_v6  ;;  %v2905_v55 = vmul.f32 %v18842_v61, %v281_v6  ;;  %v2945_v13 = vrot.slane %v2907_v7, 4  ;;  %v446_v54 = vpop.permute.xlu0 %445  ;;  %v18902_v37 = vld [vmem:[#allocation21_spill] sm:$0xff]  ;;  %2309 = vrot.lane.b32.xlu1 %v18880_v15, %s18886_s18 }
 0x212   :  { %v13750_v62 = vsel %vm67_vm0, %v18900_v43, %v385_v63  ;;  %v10016_v30 = vpack.c.bf16 %v13712_v14, %v13728_v20  ;;  %v216_v59 = vmul.f32 %v18878_v52, %v13536_v27  ;;  %v2943_v6 = vrot.slane %v2906_v47, 4  ;;  %2307 = vrot.lane.b32.xlu0 %v13408_v24, %s18886_s18 }
 0x213   :  { %v387_v61 = vrot.slane %v350_v16, 4  ;;  %v2941_v19 = vrot.slane %v2905_v55, 4  ;;  %v18901_v25 = vrot.slane %v13583_v8, 4  ;;  %v13761_v63 = vmul.f32 %v13245_v53, %v279_v29  ;;  %v3704_v16 = vld [vmem:[#allocation2 + $0x68] sm:$0xff] }
 0x214   :  { %v458_v33 = vsel %vm457_vm3, %v450_v41, %v18902_v37  ;;  %v460_v14 = vsel %vm457_vm3, %v446_v54, %v450_v41  ;;  %v217_v52 = vmul.f32 %v13276_v51, %v13624_v4  ;;  %v218_v8 = vmul.f32 %v13294_v39, %v13620_v46  ;;  %v4014_v41 = vld [vmem:[#allocation2 + $0xa18] sm:$0xf]  ;;  %v574_v4 = vpop.permute.xlu1 %573  ;;  %v4013_v46 = vld [vmem:[#allocation2 + $0xa10] sm:$0xf] }
 0x215   :  { %v2946_v44 = vsel %vm67_vm0, %v18901_v25, %v2945_v13  ;;  %v18903_v53 = vrot.slane %v13505_v5, 4  ;;  %v18904_v27 = vrot.slane %v13580_v45, 4  ;;  %v391_v20 = vrot.slane %v352_v17, 4  ;;  %v18906_v5 = vld [vmem:[#allocation17_spill] sm:$0xff]  ;;  %9737 = vmatprep.subr.msk.mxu1 %vm67_vm0, %v4014_v41  ;;  %v3706_v29 = vld [vmem:[#allocation2 + $0x78] sm:$0xff]  ;;  %v572_v17 = vpop.permute.xlu0 %571  ;;  %2177 = vrot.lane.b32.xlu1 %v12470_v1, %s18467_s28 }
 0x216   :  { %2979 = vst [vmem:[#allocation2 + $0x770] sm:$0xff] %v2946_v44  ;;  %v18905_v7 = vrot.slane %v13502_v12, 4  ;;  %v3032_v39 = vmul.f32 %v13343_v22, %v458_v33  ;;  %v462_v45 = vsel %vm457_vm3, %v18906_v5, %v446_v54  ;;  %v3031_v47 = vmul.f32 %v13377_v56, %v460_v14  ;;  %9738 = vmatpush1.msk.msra.mxu1 %vm67_vm0, %v4013_v46  ;;  %v18908_v44 = vld [vmem:[#allocation27_spill] sm:$0xff] }
 0x217   :  { %v2942_v13 = vsel %vm67_vm0, %v18903_v53, %v2941_v19  ;;  %v2944_v25 = vsel %vm67_vm0, %v18904_v27, %v2943_v6  ;;  %v524_v55 = vmul.f32 %v13347_v9, %v462_v45  ;;  %v3030_v12 = vmul.f32 %v13373_v49, %v462_v45  ;;  %v18907_v6 = vld [vmem:[#allocation22_spill] sm:$0xff]  ;;  %9739 = vmatmul.mubr.msk.f32.vlgmr.msra.gmra.mrb[0].mxu1 %vm4025_vm15, %v13545_v10  ;;  %v18910_v10 = vld [vmem:[#allocation3_spill] sm:$0xff] }
 0x218   :  { %v13785_v51 = vsel %vm67_vm0, %v18905_v7, %v387_v61  ;;  %2977 = vst [vmem:[#allocation2 + $0x760] sm:$0xff] %v2942_v13  ;;  %2978 = vst [vmem:[#allocation2 + $0x768] sm:$0xff] %v2944_v25  ;;  %v10014_v43 = vpack.c.bf16 %v3704_v16, %v216_v59  ;;  %v3705_v61 = vld [vmem:[#allocation2 + $0x70] sm:$0xff]  ;;  %v389_v19 = vrot.slane %v13761_v63, 4  ;;  %v589_v54 = vsel %vm583_vm4, %v18907_v6, %v574_v4 }
 0x219   :  { %3048 = vst [vmem:[#allocation2 + $0x7b0] sm:$0xff] %v3032_v39  ;;  %v588_v37 = vsel %vm583_vm4, %v18908_v44, %v572_v17  ;;  %v10094_v59 = vpack.c.bf16 %v3706_v29, %v218_v8  ;;  %v526_v16 = vmul.f32 %v13320_v50, %v458_v33  ;;  %3046 = vst [vmem:[#allocation2 + $0x7a0] sm:$0xff] %v3030_v12  ;;  %v18909_v27 = vrot.slane %v13577_v31, 4  ;;  %v578_v33 = vpop.permute.xlu1 %577  ;;  %v576_v45 = vpop.permute.xlu0 %575  ;;  %v18911_v31 = vld [vmem:[#allocation25_spill] sm:$0xff] }
 0x21a   :  { %3047 = vst [vmem:[#allocation2 + $0x7a8] sm:$0xff] %v3031_v47  ;;  %10015 = vmatprep.subr.bf16.mxu0 %v10014_v43  ;;  %v3115_v63 = vmul.f32 %v13385_v34, %v589_v54  ;;  %v13810_v53 = vmul.f32 %v13381_v32, %v588_v37  ;;  %v3107_v13 = vmul.f32 %v13385_v34, %v588_v37  ;;  %v18913_v46 = vrot.slane %v13574_v36, 4  ;;  %v18915_v36 = vld [vmem:[#allocation36_spill] sm:$0xff] }
 0x21b   :  { %v392_v25 = vsel %vm67_vm0, %v18909_v27, %v391_v20  ;;  %10017 = vmatpush1.bf16.msra.mxu0 %v10016_v30  ;;  %2311 = vrot.lane.b32.xlu0 %v18910_v10, %s18886_s18  ;;  %v10096_v8 = vpack.c.bf16 %v3705_v61, %v217_v52  ;;  %v10020_v41 = vpack.c.bf16 %v13740_v0, %v13750_v62  ;;  %v18912_v20 = vld [vmem:[#allocation23_spill] sm:$0xff] }
 0x21c   :  { %v3151_v7 = vrot.slane %v3115_v63, 4  ;;  %v682_v39 = vrot.slane %v13810_v53, 4  ;;  %v3139_v5 = vrot.slane %v3107_v13, 4  ;;  %10095 = vmatprep.subr.bf16.mxu1 %v10094_v59  ;;  %v10018_v34 = vpack.c.bf16 %v524_v55, %v13785_v51  ;;  %4543 = vmatprep.mubr.f32.mxu1 %v13614_v42  ;;  %v18914_v42 = vld [vmem:[#allocation102_spill] sm:$0xff] }
 0x21d   :  { %10097 = vmatpush1.bf16.msra.mxu1 %v10096_v8  ;;  %v585_v30 = vsel %vm583_vm4, %v578_v33, %v18911_v31  ;;  %v587_v52 = vsel %vm583_vm4, %v574_v4, %v578_v33  ;;  %v584_v0 = vsel %vm583_vm4, %v576_v45, %v18912_v20  ;;  %v586_v62 = vsel %vm583_vm4, %v572_v17, %v576_v45  ;;  %v18916_v17 = vld [vmem:[#allocation99_spill] sm:$0xff]  ;;  %v452_v61 = vpop.permute.xlu1 %451  ;;  %v448_v37 = vpop.permute.xlu0 %447  ;;  %v18917_v8 = vld [vmem:[#allocation28_spill] sm:$0xff] }
 0x21e   :  { %v390_v51 = vsel %vm67_vm0, %v18913_v46, %v389_v19  ;;  %v525_v29 = vmul.f32 %v18914_v42, %v460_v14  ;;  %722 = vst [vmem:[#allocation2 + $0x128] sm:$0xf0] %v682_v39  ;;  %v3152_v55 = vsel %vm67_vm0, %v3139_v5, %v3151_v7  ;;  %3179 = vst [vmem:[#allocation2 + $0x7e0] sm:$0xf0] %v3139_v5  ;;  %2185 = vrot.lane.b32.xlu1 %v18910_v10, %s18467_s28  ;;  %v18920_v46 = vld [vmem:[#allocation32_spill] sm:$0xff] }
 0x21f   :  { %v10098_v4 = vpack.c.bf16 %v526_v16, %v392_v25  ;;  %3187 = vst [vmem:[#allocation2 + $0x820] sm:$0xff] %v3152_v55  ;;  %v3116_v12 = vmul.f32 %v13435_v28, %v587_v52  ;;  %v3117_v47 = vmul.f32 %v13451_v21, %v585_v30  ;;  %v13845_v43 = vmul.f32 %v18915_v36, %v586_v62 }
 0x220   :  { %v13848_v14 = vmul.f32 %v18916_v17, %v584_v0  ;;  %2181 = vrot.lane.b32.xlu0 %v13408_v24, %s18467_s28  ;;  %v13853_v19 = vmul.f32 %v18915_v36, %v587_v52  ;;  %v3108_v6 = vmul.f32 %v13435_v28, %v586_v62  ;;  %v3109_v44 = vmul.f32 %v13451_v21, %v584_v0  ;;  %v18926_v36 = vld [vmem:[#allocation101_spill] sm:$0xff] }
 0x221   :  { %10019 = vmatprep.subr.bf16.mxu0 %v10018_v34  ;;  %10099 = vmatprep.subr.bf16.mxu1 %v10098_v4  ;;  %v3153_v59 = vrot.slane %v3116_v12, 4  ;;  %v3155_v16 = vrot.slane %v3117_v47, 4  ;;  %v683_v63 = vrot.slane %v13845_v43, 4  ;;  %v459_v33 = vsel %vm457_vm3, %v452_v61, %v18917_v8  ;;  %v884_v45 = vpop.permute.xlu1 %883  ;;  %v18919_v34 = vld [vmem:[#allocation24_spill] sm:$0xff]  ;;  %v880_v52 = vpop.permute.xlu0 %879 }
 0x222   :  { %v684_v13 = vrot.slane %v13848_v14, 4  ;;  %10021 = vmatpush1.bf16.msra.mxu0 %v10020_v41  ;;  %v3140_v27 = vrot.slane %v3108_v6, 4  ;;  %v3141_v25 = vrot.slane %v3109_v44, 4  ;;  %v461_v28 = vsel %vm457_vm3, %v448_v37, %v452_v61  ;;  %2613 = vrot.lane.b32.xlu1 %v12551_v60, %s18918_s19  ;;  %v18921_v4 = vld [vmem:[#allocation128_spill] sm:$0xff] }
 0x223   :  { %v13867_v21 = vmul.f32 %v13381_v32, %v589_v54  ;;  %v13870_v7 = vmul.f32 %v18916_v17, %v585_v30  ;;  %723 = vst [vmem:[#allocation2 + $0x130] sm:$0xf0] %v683_v63  ;;  %v534_v41 = vmul.f32 %v13320_v50, %v459_v33  ;;  %v3040_v5 = vmul.f32 %v13343_v22, %v459_v33  ;;  %v18927_v6 = vld [vmem:[#allocation100_spill] sm:$0xff] }
 0x224   :  { %724 = vst [vmem:[#allocation2 + $0x138] sm:$0xf0] %v684_v13  ;;  %2609 = vrot.lane.b32.xlu0 %v12517_v48, %s18918_s19  ;;  %v3154_v32 = vsel %vm67_vm0, %v3140_v27, %v3153_v59  ;;  %v3156_v54 = vsel %vm67_vm0, %v3141_v25, %v3155_v16  ;;  %3180 = vst [vmem:[#allocation2 + $0x7e8] sm:$0xf0] %v3140_v27  ;;  %v463_v31 = vsel %vm457_vm3, %v18919_v34, %v448_v37  ;;  %v18928_v37 = vld [vmem:[#allocation48_spill] sm:$0xff]  ;;  %v18929_v16 = vld [vmem:[#allocation30_spill] sm:$0xff] }
 0x225   :  { %3181 = vst [vmem:[#allocation2 + $0x7f0] sm:$0xf0] %v3141_v25  ;;  %v533_v30 = vmul.f32 %v18914_v42, %v461_v28  ;;  %3188 = vst [vmem:[#allocation2 + $0x828] sm:$0xff] %v3154_v32  ;;  %v532_v50 = vmul.f32 %v13347_v9, %v463_v31  ;;  %v3038_v22 = vmul.f32 %v13373_v49, %v463_v31  ;;  %v697_v62 = vrot.slane %v13853_v19, 4  ;;  %v18923_v9 = vld [vmem:[#allocation41_spill] sm:$0xff]  ;;  %v756_v61 = vpop.permute.xlu1 %755  ;;  %v754_v25 = vpop.permute.xlu0 %753 }
 0x226   :  { %3189 = vst [vmem:[#allocation2 + $0x830] sm:$0xff] %v3156_v54  ;;  %550 = vst [vmem:[#allocation2 + $0x138] sm:$0xf] %v534_v41  ;;  %v3039_v20 = vmul.f32 %v13377_v56, %v461_v28  ;;  %v10100_v0 = vpack.c.bf16 %v525_v29, %v390_v51  ;;  %v892_v55 = vsel %vm891_vm5, %v884_v45, %v18920_v46  ;;  %2483 = vrot.lane.b32.xlu1 %v12517_v48, %s18922_s23  ;;  %v18924_v56 = vld [vmem:[#allocation42_spill] sm:$0xff]  ;;  %v18931_v54 = vld [vmem:[#allocation53_spill] sm:$0xff] }
 0x227   :  { %3056 = vst [vmem:[#allocation2 + $0x7f0] sm:$0xf] %v3040_v5  ;;  %549 = vst [vmem:[#allocation2 + $0x130] sm:$0xf] %v533_v30  ;;  %v894_v42 = vsel %vm891_vm5, %v880_v52, %v884_v45  ;;  %v896_v12 = vsel %vm891_vm5, %v18921_v4, %v880_v52  ;;  %v13901_v49 = vmul.f32 %v18923_v9, %v892_v55  ;;  %v18925_v29 = vld [vmem:[#allocation46_spill] sm:$0xff]  ;;  %v699_v19 = vrot.slane %v13870_v7, 4 }
 0x228   :  { %548 = vst [vmem:[#allocation2 + $0x128] sm:$0xf] %v532_v50  ;;  %3054 = vst [vmem:[#allocation2 + $0x7e0] sm:$0xf] %v3038_v22  ;;  %10101 = vmatpush1.bf16.msra.mxu1 %v10100_v0  ;;  %v13904_v51 = vmul.f32 %v18924_v56, %v892_v55  ;;  %v13907_v47 = vmul.f32 %v18925_v29, %v896_v12  ;;  %v13910_v17 = vmul.f32 %v18926_v36, %v894_v42  ;;  %v18930_v45 = vld [vmem:[#allocation112_spill] sm:$0xff]  ;;  %v18932_v52 = vld [vmem:[#allocation98_spill] sm:$0xff] }
 0x229   :  { %3055 = vst [vmem:[#allocation2 + $0x7e8] sm:$0xf] %v3039_v20  ;;  %v13914_v44 = vmul.f32 %v18927_v6, %v896_v12  ;;  %v13917_v59 = vmul.f32 %v18928_v37, %v894_v42  ;;  %2617 = vrot.lane.b32.xlu0 %v18880_v15, %s18918_s19  ;;  %v771_v27 = vsel %vm765_vm6, %v18929_v16, %v756_v61  ;;  %v992_v8 = vrot.slane %v13901_v49, 4  ;;  %v760_v50 = vpop.permute.xlu1 %759  ;;  %v18933_v20 = vld [vmem:[#allocation37_spill] sm:$0xff]  ;;  %v18935_v42 = vld [vmem:[#allocation108_spill] sm:$0xff]  ;;  %v18936_v12 = vld [vmem:[#allocation18_spill] sm:$0xff] }
 0x22a   :  { %v3351_v33 = vrot.slane %v13904_v51, 4  ;;  %v990_v28 = vrot.slane %v13907_v47, 4  ;;  %v18427_v7 = vrot.slane %v13910_v17, 4  ;;  %v840_v32 = vmul.f32 %v18930_v45, %v771_v27  ;;  %2487 = vrot.lane.b32.xlu1 %v12551_v60, %s18922_s23  ;;  %v18934_v46 = vld [vmem:[#allocation105_spill] sm:$0xff]  ;;  %v18937_v16 = vld [vmem:[#allocation58_spill] sm:$0xff] }
 0x22b   :  { %v3349_v41 = vrot.slane %v13914_v44, 4  ;;  %v3350_v5 = vrot.slane %v13917_v59, 4  ;;  %v3248_v34 = vmul.f32 %v18931_v54, %v771_v27  ;;  %v695_v31 = vrot.slane %v13867_v21, 4  ;;  %1032 = vst [vmem:[#allocation2 + $0x1f8] sm:$0xf0] %v992_v8  ;;  %v18942_v49 = vld [vmem:[#allocation122_spill] sm:$0xff] }
 0x22c   :  { %v698_v30 = vsel %vm67_vm0, %v683_v63, %v697_v62  ;;  %3391 = vst [vmem:[#allocation2 + $0x8b0] sm:$0xf0] %v3351_v33  ;;  %1030 = vst [vmem:[#allocation2 + $0x1e8] sm:$0xf0] %v990_v28  ;;  %v770_v21 = vsel %vm765_vm6, %v18932_v52, %v754_v25  ;;  %v13951_v43 = vrot.slane %v18892_v23, %v13102_v58 }
 0x22d   :  { %1031 = vst [vmem:[#allocation2 + $0x1f0] sm:$0xf0] %v18427_v7  ;;  %v700_v63 = vsel %vm67_vm0, %v684_v13, %v699_v19  ;;  %3389 = vst [vmem:[#allocation2 + $0x8a0] sm:$0xf0] %v3349_v41  ;;  %v3240_v22 = vmul.f32 %v18931_v54, %v770_v21  ;;  %2485 = vrot.lane.b32.xlu0 %v12470_v1, %s18922_s23  ;;  %v767_v0 = vsel %vm765_vm6, %v760_v50, %v18933_v20  ;;  %v758_v13 = vpop.permute.xlu0 %757  ;;  %v3730_v62 = vld [vmem:[#allocation2 + $0x138] sm:$0xff] }
 0x22e   :  { %3390 = vst [vmem:[#allocation2 + $0x8a8] sm:$0xf0] %v3350_v5  ;;  %856 = vst [vmem:[#allocation2 + $0x1e8] sm:$0xf] %v840_v32  ;;  %v769_v14 = vsel %vm765_vm6, %v756_v61, %v760_v50  ;;  %v842_v4 = vmul.f32 %v18935_v42, %v767_v0  ;;  %v3250_v27 = vmul.f32 %v18937_v16, %v767_v0  ;;  %v3735_v32 = vld [vmem:[#allocation2 + $0x160] sm:$0xff]  ;;  %v3729_v54 = vld [vmem:[#allocation2 + $0x130] sm:$0xff]  ;;  %2491 = vrot.lane.b32.xlu1 %v18880_v15, %s18922_s23 }
 0x22f   :  { %3264 = vst [vmem:[#allocation2 + $0x8a0] sm:$0xf] %v3248_v34  ;;  %v841_v55 = vmul.f32 %v18934_v46, %v769_v14  ;;  %v3249_v19 = vmul.f32 %v18936_v12, %v769_v14  ;;  %3256 = vst [vmem:[#allocation2 + $0x860] sm:$0xff] %v3240_v22  ;;  %v18938_v34 = vld [vmem:[#allocation35_spill] sm:$0xff]  ;;  %v768_v61 = vsel %vm765_vm6, %v754_v25, %v758_v13  ;;  %v3728_v50 = vld [vmem:[#allocation2 + $0x128] sm:$0xff]  ;;  %v886_v25 = vpop.permute.xlu1 %885 }
 0x230   :  { %v766_v52 = vsel %vm765_vm6, %v758_v13, %v18938_v34  ;;  %v10102_v20 = vpack.c.bf16 %v700_v63, %v3730_v62  ;;  %v10104_v7 = vpack.c.bf16 %v698_v30, %v3729_v54  ;;  %v696_v0 = vsel %vm67_vm0, %v682_v39, %v695_v31  ;;  %858 = vst [vmem:[#allocation2 + $0x1f8] sm:$0xf] %v842_v4  ;;  %v3727_v34 = vld [vmem:[#allocation2 + $0x120] sm:$0xff]  ;;  %v18939_v31 = vld [vmem:[#allocation40_spill] sm:$0xff] }
 0x231   :  { %857 = vst [vmem:[#allocation2 + $0x1f0] sm:$0xf] %v841_v55  ;;  %3265 = vst [vmem:[#allocation2 + $0x8a8] sm:$0xf] %v3249_v19  ;;  %v3241_v22 = vmul.f32 %v18936_v12, %v768_v61  ;;  %v3242_v14 = vmul.f32 %v18937_v16, %v766_v52  ;;  %v13986_v13 = vrot.slane %v18892_v23, %v13153_v57  ;;  %2489 = vrot.lane.b32.xlu0 %v13408_v24, %s18922_s23  ;;  %v882_v63 = vpop.permute.xlu0 %881  ;;  %v13993_v62 = vld [vmem:[#allocation2 + $0x1e0] sm:$0xff] }
 0x232   :  { %3266 = vst [vmem:[#allocation2 + $0x8b0] sm:$0xf] %v3250_v27  ;;  %v10022_v53 = vpack.c.bf16 %v696_v0, %v3728_v50  ;;  %10103 = vmatprep.subr.bf16.mxu1 %v10102_v20  ;;  %v10024_v39 = vpack.c.bf16 %v3735_v32, %v3727_v34  ;;  %v893_v30 = vsel %vm891_vm5, %v886_v25, %v18939_v31  ;;  %v18940_v12 = vld [vmem:[#allocation103_spill] sm:$0xff]  ;;  %v18943_v31 = vld [vmem:[#allocation110_spill] sm:$0xff] }
 0x233   :  { %3257 = vst [vmem:[#allocation2 + $0x868] sm:$0xff] %v3241_v22  ;;  %3258 = vst [vmem:[#allocation2 + $0x870] sm:$0xff] %v3242_v14  ;;  %10105 = vmatpush1.bf16.msra.mxu1 %v10104_v7  ;;  %v968_v55 = vmul.f32 %v18923_v9, %v893_v30  ;;  %v3327_v23 = vmul.f32 %v18924_v56, %v893_v30  ;;  %v895_v4 = vsel %vm891_vm5, %v882_v63, %v886_v25  ;;  %v3743_v54 = vld [vmem:[#allocation2 + $0x1a0] sm:$0xff]  ;;  %v1066_v20 = vpop.permute.xlu1 %1065 }
 0x234   :  { %v897_v19 = vsel %vm891_vm5, %v18940_v12, %v882_v63  ;;  %10023 = vmatprep.subr.bf16.mxu0 %v10022_v53  ;;  %v967_v27 = vmul.f32 %v18926_v36, %v895_v4  ;;  %v3326_v7 = vmul.f32 %v18928_v37, %v895_v4  ;;  %v832_v9 = vmul.f32 %v18930_v45, %v770_v21  ;;  %v18941_v21 = vld [vmem:[#allocation45_spill] sm:$0xff]  ;;  %v18944_v63 = vld [vmem:[#allocation34_spill] sm:$0xff]  ;;  %v3767_v4 = vld [vmem:[#allocation2 + $0x260] sm:$0xff] }
 0x235   :  { %v966_v16 = vmul.f32 %v18925_v29, %v897_v19  ;;  %v3325_v32 = vmul.f32 %v18927_v6, %v897_v19  ;;  %10025 = vmatpush1.bf16.msra.mxu0 %v10024_v39  ;;  %v1007_v56 = vrot.slane %v968_v55, 4  ;;  %v3365_v50 = vrot.slane %v3327_v23, 4  ;;  %2611 = vrot.lane.b32.xlu1 %v12470_v1, %s18918_s19  ;;  %v1062_v6 = vpop.permute.xlu0 %1061  ;;  %v3759_v23 = vld [vmem:[#allocation2 + $0x220] sm:$0xff]  ;;  %v18946_v12 = vld [vmem:[#allocation96_spill] sm:$0xff] }
 0x236   :  { %v10028_v0 = vpack.c.bf16 %v13993_v62, %v3743_v54  ;;  %v833_v29 = vmul.f32 %v18934_v46, %v768_v61  ;;  %v3363_v14 = vrot.slane %v3326_v7, 4  ;;  %2493 = vrot.lane.b32.xlu0 %v18910_v10, %s18922_s23  ;;  %v834_v37 = vmul.f32 %v18935_v42, %v766_v52  ;;  %v3752_v61 = vld [vmem:[#allocation2 + $0x1e8] sm:$0xff]  ;;  %v4019_v54 = vld [vmem:[%s18173_s7] sm:$0xff]  ;;  %s19057_s7 = smov 7  }
 0x237   :  { %v1003_v22 = vrot.slane %v966_v16, 4  ;;  %v3361_v36 = vrot.slane %v3325_v32, 4  ;;  %v3366_v45 = vsel %vm67_vm0, %v3351_v33, %v3365_v50  ;;  %v1074_v34 = vsel %vm1073_vm7, %v1066_v20, %v18941_v21  ;;  %v3754_v42 = vld [vmem:[#allocation2 + $0x1f8] sm:$0xff]  ;;  %v1190_v59 = vpop.permute.xlu1 %1189  ;;  %v18947_v16 = vld [vmem:[#allocation97_spill] sm:$0xff] }
 0x238   :  { %v1076_v46 = vsel %vm1073_vm7, %v1062_v6, %v1066_v20  ;;  %v1008_v25 = vsel %vm67_vm0, %v992_v8, %v1007_v56  ;;  %3399 = vst [vmem:[#allocation2 + $0x8f0] sm:$0xff] %v3366_v45  ;;  %v1005_v53 = vrot.slane %v967_v27, 4  ;;  %v3364_v33 = vsel %vm67_vm0, %v3350_v5, %v3363_v14  ;;  %v3753_v52 = vld [vmem:[#allocation2 + $0x1f0] sm:$0xff] }
 0x239   :  { %v3362_v51 = vsel %vm67_vm0, %v3349_v41, %v3361_v36  ;;  %v1004_v39 = vsel %vm67_vm0, %v990_v28, %v1003_v22  ;;  %3398 = vst [vmem:[#allocation2 + $0x8e8] sm:$0xff] %v3364_v33  ;;  %v1142_v8 = vmul.f32 %v18942_v49, %v1074_v34  ;;  %v3452_v30 = vmul.f32 %v18943_v31, %v1074_v34  ;;  %v18945_v41 = vld [vmem:[#allocation109_spill] sm:$0xff]  ;;  %v1188_v55 = vpop.permute.xlu0 %1187  ;;  %v18951_v33 = vld [vmem:[#allocation51_spill] sm:$0xff] }
 0x23a   :  { %3397 = vst [vmem:[#allocation2 + $0x8e0] sm:$0xff] %v3362_v51  ;;  %v1078_v44 = vsel %vm1073_vm7, %v18944_v63, %v1062_v6  ;;  %2619 = vrot.lane.b32.xlu1 %v18910_v10, %s18918_s19  ;;  %v3451_v28 = vmul.f32 %v13700_v26, %v1076_v46  ;;  %2615 = vrot.lane.b32.xlu0 %v13408_v24, %s18918_s19  ;;  %v18948_v20 = vrot.slane %v13910_v17, 4  ;;  %v18952_v63 = vld [vmem:[#allocation31_spill] sm:$0xff] }
 0x23b   :  { %v1140_v5 = vmul.f32 %v18945_v41, %v1078_v44  ;;  %v3450_v47 = vmul.f32 %v13696_v2, %v1078_v44  ;;  %v10026_v62 = vpack.c.bf16 %v3752_v61, %v832_v9  ;;  %3468 = vst [vmem:[#allocation2 + $0x930] sm:$0xff] %v3452_v30  ;;  %v1205_v19 = vsel %vm1199_vm8, %v18946_v12, %v1190_v59  ;;  %v1194_v22 = vpop.permute.xlu1 %1193 }
 0x23c   :  { %v1204_v27 = vsel %vm1199_vm8, %v18947_v16, %v1188_v55  ;;  %v10106_v32 = vpack.c.bf16 %v3754_v42, %v834_v37  ;;  %v10108_v7 = vpack.c.bf16 %v3753_v52, %v833_v29  ;;  %v1141_v24 = vmul.f32 %v13672_v35, %v1076_v46  ;;  %3467 = vst [vmem:[#allocation2 + $0x928] sm:$0xff] %v3451_v28  ;;  %v18949_v46 = vld [vmem:[#allocation50_spill] sm:$0xff] }
 0x23d   :  { %3466 = vst [vmem:[#allocation2 + $0x920] sm:$0xff] %v3450_v47  ;;  %10027 = vmatprep.subr.bf16.mxu0 %v10026_v62  ;;  %v3535_v9 = vmul.f32 %v13716_v11, %v1205_v19  ;;  %v14058_v56 = vmul.f32 %v13704_v3, %v1204_v27  ;;  %v3527_v50 = vmul.f32 %v13716_v11, %v1204_v27  ;;  %v1192_v21 = vpop.permute.xlu0 %1191 }
 0x23e   :  { %v1006_v29 = vsel %vm67_vm0, %v18948_v20, %v1005_v53  ;;  %10029 = vmatpush1.bf16.msra.mxu0 %v10028_v0  ;;  %10107 = vmatprep.subr.bf16.mxu1 %v10106_v32  ;;  %v10030_v36 = vpack.c.bf16 %v1140_v5, %v1004_v39  ;;  %v10032_v14 = vpack.c.bf16 %v3767_v4, %v3759_v23  ;;  %v18950_v0 = vld [vmem:[#allocation47_spill] sm:$0xff] }
 0x23f   :  { %v3571_v6 = vrot.slane %v3535_v9, 4  ;;  %v1298_v37 = vrot.slane %v14058_v56, 4  ;;  %v3559_v45 = vrot.slane %v3527_v50, 4  ;;  %10109 = vmatpush1.bf16.msra.mxu1 %v10108_v7  ;;  %v10110_v34 = vpack.c.bf16 %v1142_v8, %v1008_v25  ;;  %4022 = vperm.xlu0 %10625, %v4019_v54  }
 0x240   :  { %v1201_v11 = vsel %vm1199_vm8, %v1194_v22, %v18949_v46  ;;  %v1203_v17 = vsel %vm1199_vm8, %v1190_v59, %v1194_v22  ;;  %v1200_v61 = vsel %vm1199_vm8, %v1192_v21, %v18950_v0  ;;  %v1202_v53 = vsel %vm1199_vm8, %v1188_v55, %v1192_v21  ;;  %10031 = vmatprep.subr.bf16.mxu0 %v10030_v36  ;;  %v1068_v59 = vpop.permute.xlu1 %1067  ;;  %v18953_v55 = vld [vmem:[#allocation55_spill] sm:$0xff]  ;;  %v18956_v21 = vld [vmem:[#allocation54_spill] sm:$0xff]  ;;  %v18957_v46 = vld [vmem:[#allocation9_spill] sm:$0xff] }
 0x241   :  { %1338 = vst [vmem:[#allocation2 + $0x2a8] sm:$0xf0] %v1298_v37  ;;  %v3572_v25 = vsel %vm67_vm0, %v3559_v45, %v3571_v6  ;;  %3599 = vst [vmem:[#allocation2 + $0x960] sm:$0xf0] %v3559_v45  ;;  %10111 = vmatprep.subr.bf16.mxu1 %v10110_v34  ;;  %v10112_v51 = vpack.c.bf16 %v1141_v24, %v1006_v29  ;;  %v14080_v42 = vrot.slane %v18951_v33, %v12963_v38  ;;  %v1064_v62 = vpop.permute.xlu0 %1063 }
 0x242   :  { %v14084_v52 = vrot.slane %v18951_v33, %v13102_v58  ;;  %3607 = vst [vmem:[#allocation2 + $0x9a0] sm:$0xff] %v3572_v25  ;;  %v3536_v39 = vmul.f32 %v13951_v43, %v1203_v17  ;;  %v3537_v8 = vmul.f32 %v13986_v13, %v1201_v11  ;;  %v14089_v30 = vmul.f32 %v13720_v18, %v1202_v53  ;;  %v18958_v25 = vld [vmem:[#allocation107_spill] sm:$0xff] }
 0x243   :  { %v14092_v44 = vmul.f32 %v18952_v63, %v1200_v61  ;;  %10033 = vmatpush1.bf16.msra.mxu0 %v10032_v14  ;;  %v14095_v5 = vmul.f32 %v13704_v3, %v1205_v19  ;;  %v3528_v47 = vmul.f32 %v13951_v43, %v1202_v53  ;;  %v3529_v28 = vmul.f32 %v13986_v13, %v1200_v61  ;;  %v18954_v3 = vld [vmem:[#allocation52_spill] sm:$0xff] }
 0x244   :  { %10113 = vmatpush1.bf16.msra.mxu1 %v10112_v51  ;;  %v14101_v23 = vrot.slane %v18953_v55, %v12963_v38  ;;  %v3573_v4 = vrot.slane %v3536_v39, 4  ;;  %v3575_v12 = vrot.slane %v3537_v8, 4  ;;  %v1299_v16 = vrot.slane %v14089_v30, 4  ;;  %v1496_v50 = vpop.permute.xlu1 %1495 }
 0x245   :  { %v1300_v27 = vrot.slane %v14092_v44, 4  ;;  %v3560_v32 = vrot.slane %v3528_v47, 4  ;;  %v3561_v7 = vrot.slane %v3529_v28, 4  ;;  %v1075_v43 = vsel %vm1073_vm7, %v1068_v59, %v18954_v3  ;;  %v1492_v14 = vpop.permute.xlu0 %1491 }
 0x246   :  { %v1077_v13 = vsel %vm1073_vm7, %v1064_v62, %v1068_v59  ;;  %v1275_v19 = vmul.f32 %v13720_v18, %v1203_v17  ;;  %v1276_v54 = vmul.f32 %v18952_v63, %v1201_v11  ;;  %1339 = vst [vmem:[#allocation2 + $0x2b0] sm:$0xf0] %v1299_v16  ;;  %v1150_v24 = vmul.f32 %v18942_v49, %v1075_v43  ;;  %v18955_v18 = vld [vmem:[#allocation104_spill] sm:$0xff] }
 0x247   :  { %1340 = vst [vmem:[#allocation2 + $0x2b8] sm:$0xf0] %v1300_v27  ;;  %v3460_v9 = vmul.f32 %v18943_v31, %v1075_v43  ;;  %v3574_v20 = vsel %vm67_vm0, %v3560_v32, %v3573_v4  ;;  %v3576_v29 = vsel %vm67_vm0, %v3561_v7, %v3575_v12  ;;  %3600 = vst [vmem:[#allocation2 + $0x968] sm:$0xf0] %v3560_v32  ;;  %v1311_v0 = vrot.slane %v14095_v5, 4  ;;  %v18959_v59 = vld [vmem:[#allocation56_spill] sm:$0xff] }
 0x248   :  { %3601 = vst [vmem:[#allocation2 + $0x970] sm:$0xf0] %v3561_v7  ;;  %v1079_v22 = vsel %vm1073_vm7, %v18955_v18, %v1064_v62  ;;  %v1149_v36 = vmul.f32 %v13672_v35, %v1077_v13  ;;  %3608 = vst [vmem:[#allocation2 + $0x9a8] sm:$0xff] %v3574_v20  ;;  %v3459_v6 = vmul.f32 %v13700_v26, %v1077_v13  ;;  %v1370_v26 = vpop.permute.xlu1 %1369  ;;  %v1313_v61 = vrot.slane %v1275_v19, 4  ;;  %v18960_v4 = vld [vmem:[#allocation57_spill] sm:$0xff]  ;;  %v18961_v13 = vld [vmem:[#allocation59_spill] sm:$0xff] }
 0x249   :  { %3609 = vst [vmem:[#allocation2 + $0x9b0] sm:$0xff] %v3576_v29  ;;  %1166 = vst [vmem:[#allocation2 + $0x2b8] sm:$0xf] %v1150_v24  ;;  %v1148_v49 = vmul.f32 %v18945_v41, %v1079_v22  ;;  %v3458_v31 = vmul.f32 %v13696_v2, %v1079_v22  ;;  %v1512_v45 = vsel %vm18430_vm9, %v1492_v14, %v1496_v50  ;;  %v1500_v39 = vpop.permute.xlu0 %1499  ;;  %v1315_v8 = vrot.slane %v1276_v54, 4  ;;  %v3783_v20 = vld [vmem:[#allocation2 + $0x2e0] sm:$0xff]  ;;  %v18962_v22 = vld [vmem:[#allocation33_spill] sm:$0xff] }
 0x24a   :  { %3476 = vst [vmem:[#allocation2 + $0x970] sm:$0xf] %v3460_v9  ;;  %1165 = vst [vmem:[#allocation2 + $0x2b0] sm:$0xf] %v1149_v36  ;;  %v1514_v34 = vsel %vm18430_vm9, %v18956_v21, %v1492_v14  ;;  %v14133_v35 = vmul.f32 %v14084_v52, %v1512_v45  ;;  %v14137_v11 = vrot.slane %v18951_v33, %v18957_v46 }
 0x24b   :  { %1164 = vst [vmem:[#allocation2 + $0x2a8] sm:$0xf] %v1148_v49  ;;  %3474 = vst [vmem:[#allocation2 + $0x960] sm:$0xf] %v3458_v31  ;;  %v14140_v2 = vmul.f32 %v14080_v42, %v1514_v34  ;;  %v14144_v41 = vrot.slane %v18951_v33, %v13153_v57  ;;  %v3639_v17 = vrot.slane %v18953_v55, %v13102_v58  ;;  %v3775_v31 = vld [vmem:[#allocation2 + $0x2a0] sm:$0xff] }
 0x24c   :  { %3475 = vst [vmem:[#allocation2 + $0x968] sm:$0xf] %v3459_v6  ;;  %v1606_v53 = vrot.slane %v14133_v35, 4  ;;  %v14153_v51 = vsel %vm1381_vm10, %v18958_v25, %v1370_v26  ;;  %v1508_v47 = vsel %vm18430_vm9, %v1500_v39, %v18959_v59  ;;  %v1510_v5 = vsel %vm18430_vm9, %v1496_v50, %v1500_v39  ;;  %v1374_v7 = vpop.permute.xlu1 %1373 }
 0x24d   :  { %v1605_v63 = vrot.slane %v14140_v2, 4  ;;  %v3660_v33 = vmul.f32 %v14101_v23, %v14153_v51  ;;  %v14166_v28 = vmul.f32 %v14137_v11, %v1508_v47  ;;  %v3643_v62 = vrot.slane %v18953_v55, %v13153_v57  ;;  %v1372_v54 = vpop.permute.xlu0 %1371 }
 0x24e   :  { %1646 = vst [vmem:[#allocation2 + $0x368] sm:$0xf0] %v1606_v53  ;;  %v1426_v12 = vrot.slane %v18960_v4, %v13102_v58  ;;  %v14175_v32 = vmul.f32 %v14144_v41, %v1510_v5  ;;  %v1312_v3 = vsel %vm67_vm0, %v1298_v37, %v1311_v0  ;;  %v14184_v55 = vsel %vm1381_vm10, %v1374_v7, %v18961_v13 }
 0x24f   :  { %1645 = vst [vmem:[#allocation2 + $0x360] sm:$0xf0] %v1605_v63  ;;  %3676 = vst [vmem:[#allocation2 + $0x9e0] sm:$0xff] %v3660_v33  ;;  %v1608_v43 = vrot.slane %v14166_v28, 4  ;;  %v1384_v19 = vsel %vm1381_vm10, %v1370_v26, %v1374_v7  ;;  %v1314_v9 = vsel %vm67_vm0, %v1299_v16, %v1313_v61  ;;  %v1316_v56 = vsel %vm67_vm0, %v1300_v27, %v1315_v8  ;;  %v18963_v26 = vld [vmem:[#allocation64_spill] sm:$0xff]  ;;  %v18965_v7 = vld [vmem:[#allocation63_spill] sm:$0xff] }
 0x250   :  { %v3778_v24 = vld [vmem:[#allocation2 + $0x2b8] sm:$0xff]  ;;  %v1607_v37 = vrot.slane %v14175_v32, 4  ;;  %v3661_v50 = vmul.f32 %v3639_v17, %v1384_v19  ;;  %v3662_v18 = vmul.f32 %v3643_v62, %v14184_v55  ;;  %v1387_v30 = vsel %vm1381_vm10, %v18962_v22, %v1372_v54  ;;  %v1494_v6 = vpop.permute.xlu1 %1493 }
 0x251   :  { %v3777_v29 = vld [vmem:[#allocation2 + $0x2b0] sm:$0xff]  ;;  %1648 = vst [vmem:[#allocation2 + $0x378] sm:$0xf0] %v1608_v43  ;;  %v10114_v16 = vpack.c.bf16 %v1316_v56, %v3778_v24  ;;  %v1456_v44 = vmul.f32 %v1426_v12, %v1387_v30  ;;  %v3668_v27 = vmul.f32 %v14101_v23, %v1387_v30  ;;  %v1430_v45 = vrot.slane %v18960_v4, %v13153_v57  ;;  %v1376_v61 = vpop.permute.xlu0 %1375  ;;  %v18967_v56 = vld [vmem:[#allocation66_spill] sm:$0xff] }
 0x252   :  { %v3776_v36 = vld [vmem:[#allocation2 + $0x2a8] sm:$0xff]  ;;  %v10116_v14 = vpack.c.bf16 %v1314_v9, %v3777_v29  ;;  %1647 = vst [vmem:[#allocation2 + $0x370] sm:$0xf0] %v1607_v37  ;;  %3677 = vst [vmem:[#allocation2 + $0x9e8] sm:$0xff] %v3661_v50  ;;  %v1434_v21 = vrot.slane %v18960_v4, %v18957_v46  ;;  %v10036_v34 = vpack.c.bf16 %v3783_v20, %v3775_v31  ;;  %v18964_v23 = vld [vmem:[#allocation61_spill] sm:$0xff] }
 0x253   :  { %v10034_v49 = vpack.c.bf16 %v1312_v3, %v3776_v36  ;;  %3678 = vst [vmem:[#allocation2 + $0x9f0] sm:$0xff] %v3662_v18  ;;  %10115 = vmatprep.subr.bf16.mxu1 %v10114_v16  ;;  %v1515_v0 = vsel %vm18430_vm9, %v18963_v26, %v1494_v6  ;;  %1472 = vst [vmem:[#allocation2 + $0x368] sm:$0xf] %v1456_v44  ;;  %v1383_v25 = vsel %vm1381_vm10, %v1376_v61, %v18964_v23  ;;  %v3791_v31 = vld [vmem:[#allocation2 + $0x320] sm:$0xff] }
 0x254   :  { %3684 = vst [vmem:[#allocation2 + $0xa20] sm:$0xf] %v3668_v27  ;;  %10117 = vmatpush1.bf16.msra.mxu1 %v10116_v14  ;;  %v1385_v39 = vsel %vm1381_vm10, %v1372_v54, %v1376_v61  ;;  %v1458_v33 = vmul.f32 %v1434_v21, %v1383_v25  ;;  %v3670_v47 = vmul.f32 %v3643_v62, %v1383_v25  ;;  %v1502_v4 = vpop.permute.xlu1 %1501 }
 0x255   :  { %10035 = vmatprep.subr.bf16.mxu0 %v10034_v49  ;;  %v1457_v8 = vmul.f32 %v1430_v45, %v1385_v39  ;;  %v3669_v59 = vmul.f32 %v3639_v17, %v1385_v39  ;;  %v1581_v5 = vmul.f32 %v14080_v42, %v1515_v0  ;;  %v1509_v3 = vsel %vm18430_vm9, %v1502_v4, %v18965_v7  ;;  %v1498_v13 = vpop.permute.xlu0 %1497  ;;  %v18966_v42 = vld [vmem:[#allocation62_spill] sm:$0xff] }
 0x256   :  { %10037 = vmatpush1.bf16.msra.mxu0 %v10036_v34  ;;  %1474 = vst [vmem:[#allocation2 + $0x378] sm:$0xf] %v1458_v33  ;;  %3686 = vst [vmem:[#allocation2 + $0xa30] sm:$0xf] %v3670_v47  ;;  %v1511_v54 = vsel %vm18430_vm9, %v1498_v13, %v1502_v4  ;;  %v1513_v24 = vsel %vm18430_vm9, %v1494_v6, %v1498_v13  ;;  %v14227_v62 = vrot.slane %v18966_v42, %v12963_v38  ;;  %v3799_v30 = vld [vmem:[#allocation2 + $0x360] sm:$0xff] }
 0x257   :  { %1473 = vst [vmem:[#allocation2 + $0x370] sm:$0xf] %v1457_v8  ;;  %3685 = vst [vmem:[#allocation2 + $0xa28] sm:$0xf] %v3669_v59  ;;  %v1582_v17 = vmul.f32 %v14084_v52, %v1513_v24  ;;  %v14231_v9 = vrot.slane %v18966_v42, %v13102_v58  ;;  %v14235_v50 = vrot.slane %v18967_v56, %v12963_v38  ;;  %v1617_v29 = vrot.slane %v1581_v5, 4  ;;  %v18970_v47 = vld [vmem:[#allocation67_spill] sm:$0xff] }
 0x258   :  { %v1448_v20 = vmul.f32 %v1426_v12, %v14153_v51  ;;  %v1584_v18 = vmul.f32 %v14137_v11, %v1509_v3  ;;  %v1583_v22 = vmul.f32 %v14144_v41, %v1511_v54  ;;  %v1678_v52 = vpop.permute.xlu1 %1677  ;;  %v1449_v36 = vmul.f32 %v1430_v45, %v1384_v19  ;;  %v18968_v41 = vld [vmem:[#allocation65_spill] sm:$0xff] }
 0x259   :  { %v1619_v16 = vrot.slane %v1582_v17, 4  ;;  %v1674_v14 = vpop.permute.xlu0 %1673  ;;  %v14242_v27 = vrot.slane %v18966_v42, %v13153_v57  ;;  %v14246_v49 = vrot.slane %v18966_v42, %v18957_v46  ;;  %v1450_v51 = vmul.f32 %v1434_v21, %v14184_v55 }
 0x25a   :  { %v3800_v44 = vld [vmem:[#allocation2 + $0x368] sm:$0xff]  ;;  %v1694_v11 = vsel %vm18429_vm11, %v1674_v14, %v1678_v52  ;;  %v1696_v12 = vsel %vm18429_vm11, %v18968_v41, %v1674_v14  ;;  %v10040_v26 = vpack.c.bf16 %v3799_v30, %v3791_v31  ;;  %v1618_v55 = vsel %vm67_vm0, %v1605_v63, %v1617_v29  ;;  %v18971_v30 = vld [vmem:[#allocation69_spill] sm:$0xff] }
 0x25b   :  { %v10038_v19 = vpack.c.bf16 %v3800_v44, %v1448_v20  ;;  %v1620_v6 = vsel %vm67_vm0, %v1606_v53, %v1619_v16  ;;  %v1755_v45 = vmul.f32 %v14227_v62, %v1696_v12  ;;  %v1756_v34 = vmul.f32 %v14231_v9, %v1694_v11  ;;  %v18969_v53 = vld [vmem:[#allocation68_spill] sm:$0xff] }
 0x25c   :  { %v1623_v21 = vrot.slane %v1584_v18, 4  ;;  %v1621_v0 = vrot.slane %v1583_v22, 4  ;;  %v1800_v61 = vpop.permute.xlu1 %1799  ;;  %v14264_v35 = vrot.slane %v18967_v56, %v13102_v58  ;;  %v1864_v32 = vrot.slane %v18967_v56, %v13153_v57 }
 0x25d   :  { %10039 = vmatprep.subr.bf16.mxu0 %v10038_v19  ;;  %v3802_v23 = vld [vmem:[#allocation2 + $0x378] sm:$0xff]  ;;  %v1822_v39 = vsel %vm18428_vm12, %v18969_v53, %v1800_v61  ;;  %v1682_v8 = vpop.permute.xlu0 %1681  ;;  %v10042_v59 = vpack.c.bf16 %v1756_v34, %v1620_v6  ;;  %v10044_v7 = vpack.c.bf16 %v1755_v45, %v1618_v55  ;;  %v18973_v45 = vld [vmem:[#allocation71_spill] sm:$0xff] }
 0x25e   :  { %v3801_v25 = vld [vmem:[#allocation2 + $0x370] sm:$0xff]  ;;  %10041 = vmatpush1.bf16.msra.mxu0 %v10040_v26  ;;  %v10118_v33 = vpack.c.bf16 %v3802_v23, %v1450_v51  ;;  %v14270_v63 = vmul.f32 %v14235_v50, %v1822_v39  ;;  %v1690_v5 = vsel %vm18429_vm11, %v1682_v8, %v18970_v47  ;;  %v1692_v4 = vsel %vm18429_vm11, %v1678_v52, %v1682_v8  ;;  %v18974_v55 = vld [vmem:[#allocation70_spill] sm:$0xff]  ;;  %v18975_v23 = vld [vmem:[#allocation72_spill] sm:$0xff] }
 0x25f   :  { %v10120_v2 = vpack.c.bf16 %v3801_v25, %v1449_v36  ;;  %v1757_v3 = vmul.f32 %v14242_v27, %v1692_v4  ;;  %v1758_v13 = vmul.f32 %v14246_v49, %v1690_v5  ;;  %10043 = vmatprep.subr.bf16.mxu0 %v10042_v59  ;;  %v1624_v54 = vsel %vm67_vm0, %v1608_v43, %v1623_v21 }
 0x260   :  { %10119 = vmatprep.subr.bf16.mxu1 %v10118_v33  ;;  %v1622_v24 = vsel %vm67_vm0, %v1607_v37, %v1621_v0  ;;  %v1913_v17 = vrot.slane %v14270_v63, 4  ;;  %v1804_v42 = vpop.permute.xlu1 %1803  ;;  %v1868_v43 = vrot.slane %v18967_v56, %v18957_v46  ;;  %v18972_v56 = vld [vmem:[#allocation73_spill] sm:$0xff]  ;;  %v18976_v33 = vld [vmem:[#allocation74_spill] sm:$0xff] }
 0x261   :  { %10121 = vmatpush1.bf16.msra.mxu1 %v10120_v2  ;;  %v1820_v20 = vsel %vm18428_vm12, %v1800_v61, %v1804_v42  ;;  %v1802_v29 = vpop.permute.xlu0 %1801  ;;  %v10122_v18 = vpack.c.bf16 %v1758_v13, %v1624_v54  ;;  %v10124_v22 = vpack.c.bf16 %v1757_v3, %v1622_v24  ;;  %v14327_v2 = vrot.slane %v18976_v33, %v12963_v38  ;;  %v18977_v13 = vld [vmem:[#allocation75_spill] sm:$0xff] }
 0x262   :  { %10045 = vmatpush1.bf16.msra.mxu0 %v10044_v7  ;;  %1953 = vst [vmem:[#allocation2 + $0x420] sm:$0xf0] %v1913_v17  ;;  %v14291_v28 = vmul.f32 %v14264_v35, %v1820_v20  ;;  %v1823_v21 = vsel %vm18428_vm12, %v18974_v55, %v1802_v29  ;;  %v18983_v55 = vld [vmem:[#allocation79_spill] sm:$0xff] }
 0x263   :  { %10123 = vmatprep.subr.bf16.mxu1 %v10122_v18  ;;  %v1889_v4 = vmul.f32 %v14235_v50, %v1823_v21  ;;  %v14360_v21 = vrot.slane %v18983_v55, %v13102_v58 }
 0x264   :  { %v1914_v37 = vrot.slane %v14291_v28, 4  ;;  %v1808_v52 = vpop.permute.xlu1 %1807 }
 0x265   :  { %10125 = vmatpush1.bf16.msra.mxu1 %v10124_v22  ;;  %v1816_v36 = vsel %vm18428_vm12, %v1808_v52, %v18971_v30  ;;  %v1818_v16 = vsel %vm18428_vm12, %v1804_v42, %v1808_v52  ;;  %v1806_v14 = vpop.permute.xlu0 %1805  ;;  %v1925_v20 = vrot.slane %v1889_v4, 4 }
 0x266   :  { %1954 = vst [vmem:[#allocation2 + $0x428] sm:$0xf0] %v1914_v37  ;;  %v1883_v44 = vmul.f32 %v1864_v32, %v1818_v16  ;;  %v1884_v51 = vmul.f32 %v1868_v43, %v1816_v36  ;;  %v1821_v0 = vsel %vm18428_vm12, %v1802_v29, %v1806_v14 }
 0x267   :  { %v1890_v7 = vmul.f32 %v14264_v35, %v1821_v0  ;;  %v1926_v16 = vsel %vm67_vm0, %v1913_v17, %v1925_v20  ;;  %v18984_v0 = vld [vmem:[#allocation76_spill] sm:$0xff] }
 0x268   :  { %v1915_v11 = vrot.slane %v1883_v44, 4  ;;  %v1916_v41 = vrot.slane %v1884_v51, 4  ;;  %v1676_v12 = vpop.permute.xlu1 %1675 }
 0x269   :  { %v1697_v19 = vsel %vm18429_vm11, %v18972_v56, %v1676_v12  ;;  %v1810_v31 = vpop.permute.xlu0 %1809  ;;  %v1927_v50 = vrot.slane %v1890_v7, 4  ;;  %v18987_v7 = vld [vmem:[#allocation78_spill] sm:$0xff] }
 0x26a   :  { %1955 = vst [vmem:[#allocation2 + $0x430] sm:$0xf0] %v1915_v11  ;;  %1956 = vst [vmem:[#allocation2 + $0x438] sm:$0xf0] %v1916_v41  ;;  %v1763_v6 = vmul.f32 %v14227_v62, %v1697_v19  ;;  %v1817_v34 = vsel %vm18428_vm12, %v1810_v31, %v18973_v45  ;;  %v1819_v61 = vsel %vm18428_vm12, %v1806_v14, %v1810_v31  ;;  %vm18978_vm12 = vcmp.lt.s32.totalorder %v10937_v40, 1  ;;  %v18980_v31 = vld [vmem:[#allocation77_spill] sm:$0xff] }
 0x26b   :  { %v1892_v59 = vmul.f32 %v1868_v43, %v1817_v34  ;;  %v2050_v43 = vrot.slane %v18976_v33, %v18957_v46  ;;  %v1928_v14 = vsel %vm67_vm0, %v1914_v37, %v1927_v50  ;;  %v18990_v50 = vrot.slane %v12517_v48, 4 }
 0x26c   :  { %1779 = vst [vmem:[#allocation2 + $0x420] sm:$0xf] %v1763_v6  ;;  %v1684_v26 = vpop.permute.xlu1 %1683 }
 0x26d   :  { %v1691_v62 = vsel %vm18429_vm11, %v1684_v26, %v18975_v23  ;;  %v1680_v25 = vpop.permute.xlu0 %1679 }
 0x26e   :  { %v1766_v53 = vmul.f32 %v14246_v49, %v1691_v62  ;;  %v1693_v39 = vsel %vm18429_vm11, %v1680_v25, %v1684_v26  ;;  %v1695_v8 = vsel %vm18429_vm11, %v1676_v12, %v1680_v25  ;;  %v1891_v49 = vmul.f32 %v1864_v32, %v1819_v61  ;;  %vm18979_vm11 = vmmov %vm18978_vm12  ;;  %v10655_v25 = vld [vmem:[%s18170_s2 + $0x10] sm:$0xff] }
 0x26f   :  { %v1764_v47 = vmul.f32 %v14231_v9, %v1695_v8  ;;  %v1765_v5 = vmul.f32 %v14242_v27, %v1693_v39  ;;  %v2042_v9 = vrot.slane %v18976_v33, %v13102_v58  ;;  %v1931_v27 = vrot.slane %v1892_v59, 4  ;;  %vm18982_vm9 = vmmov %vm18979_vm11 }
 0x270   :  { %1782 = vst [vmem:[#allocation2 + $0x438] sm:$0xf] %v1766_v53  ;;  %v1984_v3 = vpop.permute.xlu1 %1983  ;;  %v1929_v29 = vrot.slane %v1891_v49, 4  ;;  %v2046_v32 = vrot.slane %v18976_v33, %v13153_v57  ;;  %v14367_v62 = vrot.slane %v18983_v55, %v12963_v38  ;;  %v2115_v53 = vrot.slane %v10655_v25, 4  ;;  %v18986_v33 = vld [vmem:[#allocation81_spill] sm:$0xff] }
 0x271   :  { %1780 = vst [vmem:[#allocation2 + $0x428] sm:$0xf] %v1764_v47  ;;  %1781 = vst [vmem:[#allocation2 + $0x430] sm:$0xf] %v1765_v5  ;;  %v2005_v54 = vsel %vm18978_vm12, %v18977_v13, %v1984_v3  ;;  %v1982_v24 = vpop.permute.xlu0 %1981  ;;  %v1932_v52 = vsel %vm67_vm0, %v1916_v41, %v1931_v27  ;;  %v14376_v59 = vrot.slane %v18986_v33, %v12963_v38  ;;  %v18989_v13 = vld [vmem:[#allocation80_spill] sm:$0xff] }
 0x272   :  { %v2071_v42 = vmul.f32 %v14327_v2, %v2005_v54  ;;  %v1930_v44 = vsel %vm67_vm0, %v1915_v11, %v1929_v29  ;;  %vm18981_vm12 = vmmov %vm18979_vm11  ;;  %v14380_v47 = vrot.slane %v18983_v55, %v13153_v57  ;;  %v14384_v5 = vrot.slane %v18983_v55, %v18957_v46 }
 0x273   :  { %v3823_v36 = vld [vmem:[#allocation2 + $0x420] sm:$0xff]  ;;  %v2118_v29 = vsel %vm67_vm0, %v18990_v50, %v12470_v1 }
 0x274   :  { %2087 = vst [vmem:[#allocation2 + $0x4e0] sm:$0xf] %v2071_v42  ;;  %v1988_v35 = vpop.permute.xlu1 %1987  ;;  %v10048_v37 = vpack.c.bf16 %v1926_v16, %v3823_v36 }
 0x275   :  { %v2003_v18 = vsel %vm18979_vm11, %v1984_v3, %v1988_v35  ;;  %v1986_v22 = vpop.permute.xlu0 %1985 }
 0x276   :  { %v2072_v28 = vmul.f32 %v2042_v9, %v2003_v18  ;;  %v2002_v11 = vsel %vm18982_vm9, %v1982_v24, %v1986_v22 }
 0x277   :  { %v3826_v30 = vld [vmem:[#allocation2 + $0x438] sm:$0xff]  ;;  %v2064_v4 = vmul.f32 %v2042_v9, %v2002_v11  ;;  %v14398_v9 = vrot.slane %v18986_v33, %v13102_v58 }
 0x278   :  { %2088 = vst [vmem:[#allocation2 + $0x4e8] sm:$0xf] %v2072_v28  ;;  %v1992_v51 = vpop.permute.xlu1 %1991  ;;  %v3824_v12 = vld [vmem:[#allocation2 + $0x428] sm:$0xff]  ;;  %v10126_v56 = vpack.c.bf16 %v1932_v52, %v3826_v30  ;;  %v3825_v19 = vld [vmem:[#allocation2 + $0x430] sm:$0xff] }
 0x279   :  { %v1999_v6 = vsel %vm18979_vm11, %v1992_v51, %v18980_v31  ;;  %v2001_v41 = vsel %vm18981_vm12, %v1988_v35, %v1992_v51  ;;  %v1990_v45 = vpop.permute.xlu0 %1989  ;;  %v10046_v63 = vpack.c.bf16 %v1928_v14, %v3824_v12  ;;  %v10128_v34 = vpack.c.bf16 %v1930_v44, %v3825_v19  ;;  %vm18985_vm11 = vmmov %vm18982_vm9  ;;  %v18991_v28 = vld [vmem:[#allocation49_spill] sm:$0xff]  ;;  %v18993_v44 = vld [vmem:[#allocation83_spill] sm:$0xff] }
 0x27a   :  { %v2073_v17 = vmul.f32 %v2046_v32, %v2001_v41  ;;  %v2074_v26 = vmul.f32 %v2050_v43, %v1999_v6  ;;  %10127 = vmatprep.subr.bf16.mxu1 %v10126_v56  ;;  %v2004_v61 = vsel %vm18985_vm11, %v18984_v0, %v1982_v24  ;;  %v2000_v39 = vsel %vm18982_vm9, %v1986_v22, %v1990_v45  ;;  %vm18988_vm12 = vmmov %vm18982_vm9  ;;  %v18995_v56 = vld [vmem:[#allocation82_spill] sm:$0xff] }
 0x27b   :  { %10047 = vmatprep.subr.bf16.mxu0 %v10046_v63  ;;  %10129 = vmatpush1.bf16.msra.mxu1 %v10128_v34  ;;  %v1998_v49 = vsel %vm18988_vm12, %v1990_v45, %v18987_v7  ;;  %v3847_v24 = vld [vmem:[#allocation2 + $0x4e0] sm:$0xff]  ;;  %v2063_v42 = vmul.f32 %v14327_v2, %v2004_v61  ;;  %v2065_v35 = vmul.f32 %v2046_v32, %v2000_v39  ;;  %v18992_v52 = vrot.slane %v18991_v28, 4  ;;  %v10656_v2 = vld [vmem:[%s18170_s2 + $0x18] sm:$0xff] }
 0x27c   :  { %2089 = vst [vmem:[#allocation2 + $0x4f0] sm:$0xf] %v2073_v17  ;;  %2090 = vst [vmem:[#allocation2 + $0x4f8] sm:$0xf] %v2074_v26  ;;  %10049 = vmatpush1.bf16.msra.mxu0 %v10048_v37  ;;  %v2180_v23 = vpop.permute.xlu1 %2179  ;;  %v2119_v36 = vrot.slane %v10656_v2, 4  ;;  %v2066_v16 = vmul.f32 %v2050_v43, %v1998_v49  ;;  %vm18994_vm11 = vcmp.lt.s32.totalorder %v10937_v40, 121  ;;  %v2362_v61 = vrot.slane %v18986_v33, %v13153_v57 }
 0x27d   :  { %v2176_v8 = vpop.permute.xlu0 %2175  ;;  %v2116_v30 = vsel %vm67_vm0, %v18992_v52, %v2115_v53  ;;  %v10052_v32 = vpack.c.bf16 %v3847_v24, %v2063_v42  ;;  %v18996_v45 = vrot.slane %v18880_v15, 4  ;;  %vm18997_vm9 = vmmov %vm18994_vm11  ;;  %v18998_v53 = vrot.slane %v12551_v60, 4  ;;  %v19000_v49 = vld [vmem:[#allocation84_spill] sm:$0xff] }
 0x27e   :  { %v2190_v3 = vsel %vm18431_vm14, %v2176_v8, %v2180_v23  ;;  %v2192_v54 = vsel %vm18431_vm14, %v18989_v13, %v2176_v8  ;;  %vm18999_vm12 = vmmov %vm18997_vm9  ;;  %v19006_v2 = vld [vmem:[#allocation88_spill] sm:$0xff] }
 0x27f   :  { %v2254_v27 = vmul.f32 %v14360_v21, %v2190_v3  ;;  %v3848_v20 = vld [vmem:[#allocation2 + $0x4e8] sm:$0xff]  ;;  %v2253_v14 = vmul.f32 %v14367_v62, %v2192_v54  ;;  %v2122_v63 = vsel %vm67_vm0, %v18996_v45, %v18910_v10  ;;  %v2366_v10 = vrot.slane %v18986_v33, %v18957_v46 }
 0x280   :  { %v2302_v18 = vpop.permute.xlu1 %2301  ;;  %v10050_v22 = vpack.c.bf16 %v3848_v20, %v2064_v4  ;;  %v2120_v39 = vsel %vm67_vm0, %v18998_v53, %v2119_v36  ;;  %v19002_v20 = vld [vmem:[#allocation89_spill] sm:$0xff] }
 0x281   :  { %v2318_v48 = vsel %vm18994_vm11, %v18993_v44, %v2302_v18  ;;  %v2184_v1 = vpop.permute.xlu0 %2183  ;;  %v10054_v43 = vpack.c.bf16 %v2254_v27, %v2118_v29  ;;  %vm19001_vm11 = vmmov %vm18997_vm9 }
 0x282   :  { %v14415_v51 = vmul.f32 %v14376_v59, %v2318_v48  ;;  %v2188_v12 = vsel %vm18431_vm14, %v2180_v23, %v2184_v1  ;;  %v2202_v19 = vsel %vm18431_vm14, %v2184_v1, %v18995_v56  ;;  %10051 = vmatprep.subr.bf16.mxu0 %v10050_v22  ;;  %v10056_v23 = vpack.c.bf16 %v2253_v14, %v2116_v30  ;;  %v19003_v22 = vld [vmem:[#allocation86_spill] sm:$0xff]  ;;  %v19008_v48 = vld [vmem:[#allocation85_spill] sm:$0xff] }
 0x283   :  { %v2256_v31 = vmul.f32 %v14384_v5, %v2202_v19  ;;  %10053 = vmatpush1.bf16.msra.mxu0 %v10052_v32  ;;  %v3850_v6 = vld [vmem:[#allocation2 + $0x4f8] sm:$0xff]  ;;  %v3849_v41 = vld [vmem:[#allocation2 + $0x4f0] sm:$0xff]  ;;  %v2255_v11 = vmul.f32 %v14380_v47, %v2188_v12 }
 0x284   :  { %v2411_v34 = vrot.slane %v14415_v51, 4  ;;  %v2306_v17 = vpop.permute.xlu1 %2305  ;;  %v10130_v26 = vpack.c.bf16 %v3850_v6, %v2066_v16  ;;  %v10132_v37 = vpack.c.bf16 %v3849_v41, %v2065_v35  ;;  %10055 = vmatprep.subr.bf16.mxu0 %v10054_v43 }
 0x285   :  { %v2316_v55 = vsel %vm18997_vm9, %v2302_v18, %v2306_v17  ;;  %v2304_v0 = vpop.permute.xlu0 %2303  ;;  %v10134_v25 = vpack.c.bf16 %v2256_v31, %v2122_v63  ;;  %v10136_v33 = vpack.c.bf16 %v2255_v11, %v2120_v39 }
 0x286   :  { %2451 = vst [vmem:[#allocation2 + $0x5a0] sm:$0xf0] %v2411_v34  ;;  %v14436_v15 = vmul.f32 %v14398_v9, %v2316_v55  ;;  %10131 = vmatprep.subr.bf16.mxu1 %v10130_v26  ;;  %v2319_v1 = vsel %vm18997_vm9, %v19008_v48, %v2304_v0  ;;  %v19009_v26 = vld [vmem:[#allocation90_spill] sm:$0xff] }
 0x287   :  { %10133 = vmatpush1.bf16.msra.mxu1 %v10132_v37  ;;  %10057 = vmatpush1.bf16.msra.mxu0 %v10056_v23  ;;  %v2387_v63 = vmul.f32 %v14376_v59, %v2319_v1 }
 0x288   :  { %v2412_v8 = vrot.slane %v14436_v15, 4  ;;  %v2310_v4 = vpop.permute.xlu1 %2309  ;;  %10135 = vmatprep.subr.bf16.mxu1 %v10134_v25 }
 0x289   :  { %v2314_v7 = vsel %vm18999_vm12, %v2306_v17, %v2310_v4  ;;  %v2328_v3 = vsel %vm19001_vm11, %v2310_v4, %v19000_v49  ;;  %v2308_v13 = vpop.permute.xlu0 %2307  ;;  %vm19004_vm12 = vmmov %vm18997_vm9  ;;  %v2423_v23 = vrot.slane %v2387_v63, 4 }
 0x28a   :  { %2452 = vst [vmem:[#allocation2 + $0x5a8] sm:$0xf0] %v2412_v8  ;;  %v2381_v54 = vmul.f32 %v2362_v61, %v2314_v7  ;;  %v2382_v60 = vmul.f32 %v2366_v10, %v2328_v3  ;;  %v2317_v18 = vsel %vm18997_vm9, %v2304_v0, %v2308_v13  ;;  %vm19005_vm11 = vmmov %vm18997_vm9  ;;  %v19010_v7 = vld [vmem:[#allocation91_spill] sm:$0xff] }
 0x28b   :  { %10137 = vmatpush1.bf16.msra.mxu1 %v10136_v33  ;;  %v2388_v19 = vmul.f32 %v14398_v9, %v2317_v18  ;;  %v19011_v18 = vld [vmem:[#allocation92_spill] sm:$0xff] }
 0x28c   :  { %v2413_v24 = vrot.slane %v2381_v54, 4  ;;  %v2414_v42 = vrot.slane %v2382_v60, 4  ;;  %v2178_v27 = vpop.permute.xlu1 %2177 }
 0x28d   :  { %v2193_v50 = vsel %vm18431_vm14, %v19002_v20, %v2178_v27  ;;  %v2312_v35 = vpop.permute.xlu0 %2311  ;;  %v2425_v37 = vrot.slane %v2388_v19, 4  ;;  %v19015_v19 = vld [vmem:[#allocation119_spill] sm:$0xff] }
 0x28e   :  { %2453 = vst [vmem:[#allocation2 + $0x5b0] sm:$0xf0] %v2413_v24  ;;  %2454 = vst [vmem:[#allocation2 + $0x5b8] sm:$0xf0] %v2414_v42  ;;  %v2261_v29 = vmul.f32 %v14367_v62, %v2193_v50  ;;  %v2329_v28 = vsel %vm19004_vm12, %v2312_v35, %v19003_v22  ;;  %v2315_v30 = vsel %vm19005_vm11, %v2308_v13, %v2312_v35  ;;  %v19007_v62 = vld [vmem:[#allocation87_spill] sm:$0xff]  ;;  %vm19013_vm12 = vcmp.lt.s32.totalorder %v10937_v40, 120 }
 0x28f   :  { %v14465_v14 = vrot.slane %v19007_v62, %v12963_v38  ;;  %v14469_v44 = vrot.slane %v19007_v62, %v13102_v58  ;;  %v2390_v43 = vmul.f32 %v2366_v10, %v2329_v28  ;;  %v2389_v41 = vmul.f32 %v2362_v61, %v2315_v30  ;;  %vm19014_vm11 = vmmov %vm19013_vm12 }
 0x290   :  { %2277 = vst [vmem:[#allocation2 + $0x5a0] sm:$0xf] %v2261_v29  ;;  %v2186_v52 = vpop.permute.xlu1 %2185  ;;  %v14496_v0 = vrot.slane %v19007_v62, %v13153_v57  ;;  %v2674_v61 = vrot.slane %v19007_v62, %v18957_v46  ;;  %v2426_v53 = vsel %vm67_vm0, %v2412_v8, %v2425_v37  ;;  %v2424_v50 = vsel %vm67_vm0, %v2411_v34, %v2423_v23  ;;  %vm19016_vm9 = vmmov %vm19014_vm11  ;;  %v19020_v37 = vld [vmem:[#allocation93_spill] sm:$0xff] }
 0x291   :  { %v2203_v36 = vsel %vm18431_vm14, %v2186_v52, %v19006_v2  ;;  %v2429_v11 = vrot.slane %v2390_v43, 4  ;;  %v2427_v55 = vrot.slane %v2389_v41, 4  ;;  %v2536_v22 = vrot.slane %v19011_v18, %v12963_v38  ;;  %v19012_v2 = vld [vmem:[#allocation95_spill] sm:$0xff]  ;;  %v19017_v41 = vld [vmem:[#allocation106_spill] sm:$0xff] }
 0x292   :  { %v2182_v16 = vpop.permute.xlu0 %2181  ;;  %v2264_v32 = vmul.f32 %v14384_v5, %v2203_v36 }
 0x293   :  { %v2189_v12 = vsel %vm18431_vm14, %v2182_v16, %v2186_v52  ;;  %v2191_v56 = vsel %vm18431_vm14, %v2178_v27, %v2182_v16  ;;  %v2430_v39 = vsel %vm67_vm0, %v2414_v42, %v2429_v11  ;;  %v2428_v33 = vsel %vm67_vm0, %v2413_v24, %v2427_v55  ;;  %vm19021_vm14 = vmmov %vm19016_vm9  ;;  %v19022_v55 = vld [vmem:[#allocation117_spill] sm:$0xff] }
 0x294   :  { %v2262_v31 = vmul.f32 %v14360_v21, %v2191_v56  ;;  %v2263_v6 = vmul.f32 %v14380_v47, %v2189_v12  ;;  %2280 = vst [vmem:[#allocation2 + $0x5b8] sm:$0xf] %v2264_v32  ;;  %v2614_v45 = vpop.permute.xlu1 %2613  ;;  %v2540_v16 = vrot.slane %v19011_v18, %v13102_v58  ;;  %v2544_v12 = vrot.slane %v19011_v18, %v13153_v57 }
 0x295   :  { %v2548_v56 = vrot.slane %v19011_v18, %v18957_v46 }
 0x296   :  { %2278 = vst [vmem:[#allocation2 + $0x5a8] sm:$0xf] %v2262_v31  ;;  %2279 = vst [vmem:[#allocation2 + $0x5b0] sm:$0xf] %v2263_v6  ;;  %v2610_v5 = vpop.permute.xlu0 %2609 }
 0x297   :  { %v2624_v17 = vsel %vm2621_vm13, %v2610_v5, %v2614_v45  ;;  %v2626_v9 = vsel %vm2621_vm13, %v19009_v26, %v2610_v5  ;;  %v3871_v13 = vld [vmem:[#allocation2 + $0x5a0] sm:$0xff] }
 0x298   :  { %v14489_v21 = vmul.f32 %v14465_v14, %v2626_v9  ;;  %v14492_v47 = vmul.f32 %v14469_v44, %v2624_v17  ;;  %v2484_v59 = vpop.permute.xlu1 %2483  ;;  %v10060_v30 = vpack.c.bf16 %v2424_v50, %v3871_v13 }
 0x299   :  { %v2500_v11 = vsel %vm19021_vm14, %v19020_v37, %v2484_v59  ;;  %vm19024_vm14 = vmmov %vm19016_vm9 }
 0x29a   :  { %v2719_v15 = vrot.slane %v14489_v21, 4  ;;  %v2720_v10 = vrot.slane %v14492_v47, 4  ;;  %v3914_v21 = vld [vmem:[#allocation2 + $0x6f8] sm:$0xff] }
 0x29b   :  { %v2618_v25 = vpop.permute.xlu0 %2617  ;;  %v3874_v3 = vld [vmem:[#allocation2 + $0x5b8] sm:$0xff] }
 0x29c   :  { %2759 = vst [vmem:[#allocation2 + $0x660] sm:$0xf0] %v2719_v15  ;;  %2760 = vst [vmem:[#allocation2 + $0x668] sm:$0xf0] %v2720_v10  ;;  %v2622_v4 = vsel %vm2621_vm13, %v2614_v45, %v2618_v25  ;;  %v2636_v49 = vsel %vm2621_vm13, %v2618_v25, %v19010_v7  ;;  %v2488_v60 = vpop.permute.xlu1 %2487  ;;  %v10138_v27 = vpack.c.bf16 %v2430_v39, %v3874_v3 }
 0x29d   :  { %v14515_v8 = vmul.f32 %v14496_v0, %v2622_v4  ;;  %v14517_v54 = vmul.f32 %v2674_v61, %v2636_v49  ;;  %v3872_v42 = vld [vmem:[#allocation2 + $0x5a8] sm:$0xff]  ;;  %v3873_v20 = vld [vmem:[#allocation2 + $0x5b0] sm:$0xff] }
 0x29e   :  { %v10058_v29 = vpack.c.bf16 %v2426_v53, %v3872_v42  ;;  %v10140_v35 = vpack.c.bf16 %v2428_v33, %v3873_v20  ;;  %10139 = vmatprep.subr.bf16.mxu1 %v10138_v27  ;;  %v2561_v33 = vmul.f32 %v2536_v22, %v2500_v11  ;;  %v3938_v11 = vld [vmem:[#allocation2 + $0x7b8] sm:$0xff] }
 0x29f   :  { %v2721_v24 = vrot.slane %v14515_v8, 4  ;;  %v2722_v28 = vrot.slane %v14517_v54, 4  ;;  %v2486_v52 = vpop.permute.xlu0 %2485  ;;  %v19023_v54 = vld [vmem:[#allocation94_spill] sm:$0xff]  ;;  %v3929_v8 = vld [vmem:[#allocation2 + $0x770] sm:$0xff] }
 0x2a0   :  { %v2501_v36 = vsel %vm19013_vm12, %v19012_v2, %v2486_v52  ;;  %10059 = vmatprep.subr.bf16.mxu0 %v10058_v29  ;;  %10141 = vmatpush1.bf16.msra.mxu1 %v10140_v35  ;;  %v2492_v34 = vpop.permute.xlu1 %2491  ;;  %vm19018_vm12 = vmmov %vm19016_vm9 }
 0x2a1   :  { %2761 = vst [vmem:[#allocation2 + $0x670] sm:$0xf0] %v2721_v24  ;;  %2762 = vst [vmem:[#allocation2 + $0x678] sm:$0xf0] %v2722_v28  ;;  %v2569_v51 = vmul.f32 %v2536_v22, %v2501_v36  ;;  %10061 = vmatpush1.bf16.msra.mxu0 %v10060_v30  ;;  %v2496_v7 = vsel %vm19016_vm9, %v2488_v60, %v2492_v34  ;;  %v3912_v22 = vld [vmem:[#allocation2 + $0x6e8] sm:$0xff] }
 0x2a2   :  { %v2563_v29 = vmul.f32 %v2544_v12, %v2496_v7  ;;  %v3976_v7 = vld [vmem:[#allocation2 + $0x8e8] sm:$0xff] }
 0x2a3   :  { %2585 = vst [vmem:[#allocation2 + $0x660] sm:$0xf] %v2569_v51  ;;  %v2490_v62 = vpop.permute.xlu0 %2489  ;;  %v3928_v51 = vld [vmem:[#allocation2 + $0x768] sm:$0xff] }
 0x2a4   :  { %v2499_v48 = vsel %vm19014_vm11, %v2486_v52, %v2490_v62  ;;  %vm19019_vm11 = vmmov %vm19016_vm9 }
 0x2a5   :  { %v2570_v1 = vmul.f32 %v2540_v16, %v2499_v48  ;;  %v2498_v63 = vsel %vm19019_vm11, %v2484_v59, %v2488_v60  ;;  %v3920_v48 = vld [vmem:[#allocation2 + $0x728] sm:$0xff]  ;;  %vm19042_vm11 = vcmp.lt.s32.totalorder %v10937_v40, 8 }
 0x2a6   :  { %v2562_v53 = vmul.f32 %v2540_v16, %v2498_v63 }
 0x2a7   :  { %v2612_v32 = vpop.permute.xlu1 %2611  ;;  %2586 = vst [vmem:[#allocation2 + $0x668] sm:$0xf] %v2570_v1  ;;  %v10070_v1 = vpack.c.bf16 %v3928_v51, %v3920_v48 }
 0x2a8   :  { %v2627_v43 = vsel %vm2621_vm13, %v19015_v19, %v2612_v32  ;;  %v2494_v31 = vpop.permute.xlu0 %2493  ;;  %v3919_v19 = vld [vmem:[#allocation2 + $0x720] sm:$0xff] }
 0x2a9   :  { %v2497_v6 = vsel %vm19016_vm9, %v2490_v62, %v2494_v31  ;;  %v2511_v45 = vsel %vm19018_vm12, %v2494_v31, %v19017_v41  ;;  %v2695_v5 = vmul.f32 %v14465_v14, %v2627_v43  ;;  %v3911_v62 = vld [vmem:[#allocation2 + $0x6e0] sm:$0xff]  ;;  %v3922_v31 = vld [vmem:[#allocation2 + $0x738] sm:$0xff]  ;;  %v3936_v41 = vld [vmem:[#allocation2 + $0x7a8] sm:$0xff] }
 0x2aa   :  { %v2571_v17 = vmul.f32 %v2544_v12, %v2497_v6  ;;  %v2572_v26 = vmul.f32 %v2548_v56, %v2511_v45  ;;  %v3895_v13 = vld [vmem:[#allocation2 + $0x660] sm:$0xff]  ;;  %v3944_v12 = vld [vmem:[#allocation2 + $0x7e8] sm:$0xff]  ;;  %vm19044_vm9 = vmmov %vm19042_vm11 }
 0x2ab   :  { %v2731_v49 = vrot.slane %v2695_v5, 4  ;;  %v10064_v35 = vpack.c.bf16 %v3895_v13, %v2561_v33  ;;  %v10074_v63 = vpack.c.bf16 %v3944_v12, %v3936_v41  ;;  %v3946_v5 = vld [vmem:[#allocation2 + $0x7f8] sm:$0xff] }
 0x2ac   :  { %v2620_v9 = vpop.permute.xlu1 %2619  ;;  %2587 = vst [vmem:[#allocation2 + $0x670] sm:$0xf] %v2571_v17  ;;  %2588 = vst [vmem:[#allocation2 + $0x678] sm:$0xf] %v2572_v26  ;;  %v2616_v25 = vpop.permute.xlu0 %2615  ;;  %v3960_v17 = vld [vmem:[#allocation2 + $0x868] sm:$0xff]  ;;  %v3921_v26 = vld [vmem:[#allocation2 + $0x730] sm:$0xff] }
 0x2ad   :  { %v2637_v23 = vsel %vm2621_vm13, %v2620_v9, %v19022_v55  ;;  %v2623_v4 = vsel %vm2621_vm13, %v2616_v25, %v2620_v9  ;;  %v2625_v14 = vsel %vm2621_vm13, %v2612_v32, %v2616_v25  ;;  %v2732_v60 = vsel %vm67_vm0, %v2719_v15, %v2731_v49  ;;  %v3930_v32 = vld [vmem:[#allocation2 + $0x778] sm:$0xff]  ;;  %v3935_v9 = vld [vmem:[#allocation2 + $0x7a0] sm:$0xff]  ;;  %v3937_v49 = vld [vmem:[#allocation2 + $0x7b0] sm:$0xff] }
 0x2ae   :  { %v2698_v39 = vmul.f32 %v2674_v61, %v2637_v23  ;;  %v2696_v59 = vmul.f32 %v14469_v44, %v2625_v14  ;;  %v2697_v3 = vmul.f32 %v14496_v0, %v2623_v4  ;;  %v2510_v61 = vsel %vm19024_vm14, %v2492_v34, %v19023_v54  ;;  %v3896_v27 = vld [vmem:[#allocation2 + $0x668] sm:$0xff]  ;;  %v3959_v4 = vld [vmem:[#allocation2 + $0x860] sm:$0xff]  ;;  %v3962_v14 = vld [vmem:[#allocation2 + $0x878] sm:$0xff] }
 0x2af   :  { %v10062_v50 = vpack.c.bf16 %v3896_v27, %v2562_v53  ;;  %v2564_v18 = vmul.f32 %v2548_v56, %v2510_v61  ;;  %v10068_v15 = vpack.c.bf16 %v3911_v62, %v2732_v60  ;;  %v3913_v56 = vld [vmem:[#allocation2 + $0x6f0] sm:$0xff]  ;;  %v10150_v45 = vpack.c.bf16 %v3930_v32, %v3922_v31  ;;  %v3952_v23 = vld [vmem:[#allocation2 + $0x828] sm:$0xff]  ;;  %v3954_v13 = vld [vmem:[#allocation2 + $0x838] sm:$0xff] }
 0x2b0   :  { %v2737_v42 = vrot.slane %v2698_v39, 4  ;;  %v2733_v20 = vrot.slane %v2696_v59, 4  ;;  %v2735_v0 = vrot.slane %v2697_v3, 4  ;;  %v10152_v37 = vpack.c.bf16 %v3929_v8, %v3921_v26  ;;  %v3945_v53 = vld [vmem:[#allocation2 + $0x7f0] sm:$0xff]  ;;  %v3951_v59 = vld [vmem:[#allocation2 + $0x820] sm:$0xff]  ;;  %v3968_v54 = vld [vmem:[#allocation2 + $0x8a8] sm:$0xff] }
 0x2b1   :  { %10063 = vmatprep.subr.bf16.mxu0 %v10062_v50  ;;  %v10154_v25 = vpack.c.bf16 %v3946_v5, %v3938_v11  ;;  %v10078_v39 = vpack.c.bf16 %v3960_v17, %v3952_v23  ;;  %v10156_v3 = vpack.c.bf16 %v3945_v53, %v3937_v49  ;;  %v10080_v33 = vpack.c.bf16 %v3959_v4, %v3951_v59  ;;  %v3961_v27 = vld [vmem:[#allocation2 + $0x870] sm:$0xff]  ;;  %v3975_v50 = vld [vmem:[#allocation2 + $0x8e0] sm:$0xff]  ;;  %v4008_v62 = vld [vmem:[#allocation2 + $0x9e8] sm:$0xff] }
 0x2b2   :  { %v2734_v44 = vsel %vm67_vm0, %v2720_v10, %v2733_v20  ;;  %v2738_v52 = vsel %vm67_vm0, %v2722_v28, %v2737_v42  ;;  %10065 = vmatpush1.bf16.msra.mxu0 %v10064_v35  ;;  %v2736_v47 = vsel %vm67_vm0, %v2721_v24, %v2735_v0  ;;  %v3927_v28 = vld [vmem:[#allocation2 + $0x760] sm:$0xff]  ;;  %v10158_v61 = vpack.c.bf16 %v3962_v14, %v3954_v13  ;;  %v3992_v35 = vld [vmem:[#allocation2 + $0x968] sm:$0xff]  ;;  %v3970_v0 = vld [vmem:[#allocation2 + $0x8b8] sm:$0xff] }
 0x2b3   :  { %v3898_v30 = vld [vmem:[#allocation2 + $0x678] sm:$0xff]  ;;  %v3897_v2 = vld [vmem:[#allocation2 + $0x670] sm:$0xff]  ;;  %v10066_v36 = vpack.c.bf16 %v3912_v22, %v2734_v44  ;;  %v10146_v10 = vpack.c.bf16 %v3914_v21, %v2738_v52  ;;  %v10148_v43 = vpack.c.bf16 %v3913_v56, %v2736_v47  ;;  %v10072_v6 = vpack.c.bf16 %v3927_v28, %v3919_v19  ;;  %v3943_v24 = vld [vmem:[#allocation2 + $0x7e0] sm:$0xff] }
 0x2b4   :  { %v10142_v34 = vpack.c.bf16 %v3898_v30, %v2564_v18  ;;  %v10144_v16 = vpack.c.bf16 %v3897_v2, %v2563_v29  ;;  %v10076_v55 = vpack.c.bf16 %v3943_v24, %v3935_v9  ;;  %v10657_v42 = vld [vmem:[%s18172_s4] sm:$0xff]  ;;  %v10082_v20 = vpack.c.bf16 %v3976_v7, %v3968_v54  ;;  %v3978_v29 = vld [vmem:[#allocation2 + $0x8f8] sm:$0xff]  ;;  %v3953_v18 = vld [vmem:[#allocation2 + $0x830] sm:$0xff] }
 0x2b5   :  { %10067 = vmatprep.subr.bf16.mxu0 %v10066_v36  ;;  %v3967_v60 = vld [vmem:[#allocation2 + $0x8a0] sm:$0xff]  ;;  %v10160_v44 = vpack.c.bf16 %v3961_v27, %v3953_v18  ;;  %v3984_v52 = vld [vmem:[#allocation2 + $0x928] sm:$0xff]  ;;  %v19025_v30 = vmov 0.0   ;;  %v10162_v2 = vpack.c.bf16 %v3978_v29, %v3970_v0  ;;  %v3977_v36 = vld [vmem:[#allocation2 + $0x8f0] sm:$0xff]  ;;  %vm19045_vm14 = vcmp.lt.s32.totalorder %v10937_v40, 7 }
 0x2b6   :  { %10143 = vmatprep.subr.bf16.mxu1 %v10142_v34  ;;  %10069 = vmatpush1.bf16.msra.mxu0 %v10068_v15  ;;  %v10084_v22 = vpack.c.bf16 %v3975_v50, %v3967_v60  ;;  %v10086_v51 = vpack.c.bf16 %v3992_v35, %v3984_v52  ;;  %v3991_v34 = vld [vmem:[#allocation2 + $0x960] sm:$0xff]  ;;  %v3969_v21 = vld [vmem:[#allocation2 + $0x8b0] sm:$0xff]  ;;  %v3986_v47 = vld [vmem:[#allocation2 + $0x938] sm:$0xff] }
 0x2b7   :  { %10145 = vmatpush1.bf16.msra.mxu1 %v10144_v16  ;;  %10071 = vmatprep.subr.bf16.mxu0 %v10070_v1  ;;  %v3994_v16 = vld [vmem:[#allocation2 + $0x978] sm:$0xff]  ;;  %v3983_v15 = vld [vmem:[#allocation2 + $0x920] sm:$0xff]  ;;  %v10164_v48 = vpack.c.bf16 %v3977_v36, %v3969_v21  ;;  %v4000_v1 = vld [vmem:[#allocation2 + $0x9a8] sm:$0xff] }
 0x2b8   :  { %10147 = vmatprep.subr.bf16.mxu1 %v10146_v10  ;;  %v10088_v10 = vpack.c.bf16 %v3991_v34, %v3983_v15  ;;  %v10166_v28 = vpack.c.bf16 %v3994_v16, %v3986_v47  ;;  %v3993_v32 = vld [vmem:[#allocation2 + $0x970] sm:$0xff]  ;;  %v10090_v12 = vpack.c.bf16 %v4008_v62, %v4000_v1  ;;  %v4007_v56 = vld [vmem:[#allocation2 + $0x9e0] sm:$0xff]  ;;  %v4010_v19 = vld [vmem:[#allocation2 + $0x9f8] sm:$0xff] }
 0x2b9   :  { %v3999_v31 = vld [vmem:[#allocation2 + $0x9a0] sm:$0xff]  ;;  %v4002_v41 = vld [vmem:[#allocation2 + $0x9b8] sm:$0xff]  ;;  %v4016_v24 = vld [vmem:[#allocation2 + $0xa28] sm:$0xf] }
 0x2ba   :  { %10073 = vmatpush1.bf16.msra.mxu0 %v10072_v6  ;;  %v10170_v8 = vpack.c.bf16 %v4010_v19, %v4002_v41  ;;  %v4001_v5 = vld [vmem:[#allocation2 + $0x9b0] sm:$0xff]  ;;  %v4015_v26 = vld [vmem:[#allocation2 + $0xa20] sm:$0xf]  ;;  %v4018_v9 = vld [vmem:[#allocation2 + $0xa38] sm:$0xf] }
 0x2bb   :  { %10149 = vmatpush1.bf16.msra.mxu1 %v10148_v43  ;;  %10075 = vmatprep.subr.bf16.mxu0 %v10074_v63  ;;  %v3985_v43 = vld [vmem:[#allocation2 + $0x930] sm:$0xff] }
 0x2bc   :  { %10151 = vmatprep.subr.bf16.mxu1 %v10150_v45  ;;  %v10168_v6 = vpack.c.bf16 %v3993_v32, %v3985_v43  ;;  %v10092_v45 = vpack.c.bf16 %v4007_v56, %v3999_v31  ;;  %v4009_v63 = vld [vmem:[#allocation2 + $0x9f0] sm:$0xff] }
 0x2bd   :  { %v10172_v17 = vpack.c.bf16 %v4009_v63, %v4001_v5  ;;  %v4017_v11 = vld [vmem:[#allocation2 + $0xa30] sm:$0xf]  ;;  %v9782_v47 = vld [vmem:[%s18171_s3 + $0x84] ss:$8 sm:$0xf] }
 0x2be   :  { %10077 = vmatpush1.bf16.msra.mxu0 %v10076_v55  ;;  %v14591_v55 = vpop.permute.xlu0 %4022  ;;  %v9778_v59 = vld [vmem:[%s18171_s3 + $0x82] ss:$8 sm:$0xf]  ;;  %v4645_v13 = vld [vmem:[%s18171_s3] ss:$8 sm:$0xf] }
 0x2bf   :  { %10153 = vmatpush1.bf16.msra.mxu1 %v10152_v37  ;;  %10079 = vmatprep.subr.bf16.mxu0 %v10078_v39  ;;  %v10658_v37 = vld [vmem:[%s18172_s4 + $0x10] sm:$0xff]  ;;  %s19056_s4 = smov 8  }
 0x2c0   :  { %10155 = vmatprep.subr.bf16.mxu1 %v10154_v25  ;;  %v9780_v27 = vld [vmem:[%s18171_s3 + $0x83] ss:$8 sm:$0xf]  ;;  %v9748_v19 = vld [vmem:[%s18171_s3 + $0x2] ss:$8 sm:$0xf] }
 0x2c1   :  { %4402 = vmatmul.mubr.f32.vlgmr.msra.gmra.mrb[2].mxu0 %v10657_v42  ;;  %v19026_v18 = vld [vmem:[#allocation5_spill] sm:$0xff] }
 0x2c2   :  { %10081 = vmatpush1.bf16.msra.mxu0 %v10080_v33  ;;  %4472 = vmatprep.mubr.f32.mxu0 %v19025_v30  ;;  %v4646_v33 = vld [vmem:[%s18171_s3] ss:$8 sm:$0xf0]  ;;  %v9749_v43 = vld [vmem:[%s18171_s3 + $0x2] ss:$8 sm:$0xf0] }
 0x2c3   :  { %10157 = vmatpush1.bf16.msra.mxu1 %v10156_v3  ;;  %10083 = vmatprep.subr.bf16.mxu0 %v10082_v20  ;;  %v9779_v3 = vld [vmem:[%s18171_s3 + $0x82] ss:$8 sm:$0xf0]  ;;  %v9781_v20 = vld [vmem:[%s18171_s3 + $0x83] ss:$8 sm:$0xf0]  ;;  %v14719_v35 = vor.u32 %v4646_v33, %v4645_v13 }
 0x2c4   :  { %10159 = vmatprep.subr.bf16.mxu1 %v10158_v61  ;;  %v14705_v54 = vor.u32 %v9779_v3, %v9778_v59  ;;  %v9746_v61 = vld [vmem:[%s18171_s3 + $0x1] ss:$8 sm:$0xf]  ;;  %v14727_v52 = vor.u32 %v9781_v20, %v9780_v27  ;;  %v9750_v63 = vld [vmem:[%s18171_s3 + $0x3] ss:$8 sm:$0xf] }
 0x2c5   :  { %v9784_v5 = vld [vmem:[%s18171_s3 + $0x85] ss:$8 sm:$0xf] }
 0x2c6   :  { %4544 = vmatmul.mubr.f32.vlgmr.msra.gmra.mrb[2].mxu1 %v10657_v42  ;;  %10085 = vmatpush1.bf16.msra.mxu0 %v10084_v22  ;;  %v9747_v42 = vld [vmem:[%s18171_s3 + $0x1] ss:$8 sm:$0xf0]  ;;  %v6072_v60 = vrot.slane %v14705_v54, %v19026_v18 }
 0x2c7   :  { %10161 = vmatpush1.bf16.msra.mxu1 %v10160_v44  ;;  %10087 = vmatprep.subr.bf16.mxu0 %v10086_v51  ;;  %v19027_v44 = vld [vmem:[#allocation8_spill] sm:$0xff]  ;;  %v14725_v22 = vor.u32 %v9747_v42, %v9746_v61 }
 0x2c8   :  { %10163 = vmatprep.subr.bf16.mxu1 %v10162_v2  ;;  %4614 = vmatprep.mubr.f32.mxu1 %v19025_v30  ;;  %v6068_v0 = vrot.slane %v14705_v54, %v19027_v44  ;;  %v19028_v30 = vld [vmem:[#allocation6_spill] sm:$0xff] }
 0x2c9   :  { %v4664_v2 = vrot.slane %v14719_v35, %v19028_v30  ;;  %v4748_v15 = vrot.slane %v14725_v22, %v19028_v30 }
 0x2ca   :  { %10089 = vmatpush1.bf16.msra.mxu0 %v10088_v10  ;;  %v9783_v10 = vld [vmem:[%s18171_s3 + $0x84] ss:$8 sm:$0xf0] }
 0x2cb   :  { %10165 = vmatpush1.bf16.msra.mxu1 %v10164_v48  ;;  %10091 = vmatprep.subr.bf16.mxu0 %v10090_v12  ;;  %v6132_v48 = vrot.slane %v14727_v52, %v19026_v18  ;;  %v14764_v31 = vor.u32 %v9783_v10, %v9782_v47 }
 0x2cc   :  { %10167 = vmatprep.subr.bf16.mxu1 %v10166_v28  ;;  %v4660_v28 = vrot.slane %v14719_v35, %v19026_v18 }
 0x2ce   :  { %10093 = vmatpush1.bf16.msra.mxu0 %v10092_v45  ;;  %v4744_v45 = vrot.slane %v14725_v22, %v19026_v18 }
 0x2cf   :  { %10169 = vmatpush1.bf16.msra.mxu1 %v10168_v6  ;;  %9740 = vmatprep.subr.msk.mxu0 %vm67_vm0, %v4016_v24  ;;  %v9751_v24 = vld [vmem:[%s18171_s3 + $0x3] ss:$8 sm:$0xf0] }
 0x2d0   :  { %10171 = vmatprep.subr.bf16.mxu1 %v10170_v8  ;;  %v6128_v8 = vrot.slane %v14727_v52, %v19027_v44  ;;  %v14793_v13 = vor.u32 %v9751_v24, %v9750_v63  ;;  %v9789_v63 = vld [vmem:[%s18171_s3 + $0x87] ss:$8 sm:$0xf0] }
 0x2d2   :  { %9741 = vmatpush1.msk.msra.mxu0 %vm67_vm0, %v4015_v26 }
 0x2d3   :  { %10173 = vmatpush1.bf16.msra.mxu1 %v10172_v17  ;;  %9742 = vmatmul.mubr.msk.f32.vlgmr.msra.gmra.mrb[2].mxu0 %vm4025_vm15, %v10658_v37  ;;  %v9785_v17 = vld [vmem:[%s18171_s3 + $0x85] ss:$8 sm:$0xf0] }
 0x2d4   :  { %9743 = vmatprep.subr.msk.mxu1 %vm67_vm0, %v4018_v9  ;;  %v4190_v23 = vpop.f32.mrb[0].mxu0  ;;  %v14795_v33 = vor.u32 %v9785_v17, %v9784_v5 }
 0x2d5   :  { %v14594_v25 = vadd.f32 %v4190_v23, %v14591_v55  ;;  %v4192_v53 = vpop.f32.mrb[1].mxu0 }
 0x2d6   :  { %v14597_v39 = vadd.f32 %v4192_v53, %v14591_v55 }
 0x2d7   :  { %9744 = vmatpush1.msk.msra.mxu1 %vm67_vm0, %v4017_v11  ;;  %5713 = vst [vmem:[#allocation2 + $0x340] sm:$0xff] %v14594_v25  ;;  %v14784_v11 = vor.u32 %v9749_v43, %v9748_v19  ;;  %v4912_v43 = vrot.slane %v14793_v13, %v19026_v18 }
 0x2d8   :  { %9745 = vmatmul.mubr.msk.f32.vlgmr.msra.gmra.mrb[2].mxu1 %vm4025_vm15, %v10658_v37  ;;  %5714 = vst [vmem:[#allocation2 + $0x348] sm:$0xff] %v14597_v39  ;;  %vm19036_vm15 = vcmp.lt.s32.totalorder %v10937_v40, 9 }
 0x2d9   :  { %v4832_v61 = vrot.slane %v14784_v11, %v19028_v30  ;;  %vm19039_vm12 = vmmov %vm19036_vm15 }
 0x2ea   :  { %v4332_v4 = vpop.f32.mrb[0].mxu1 }
 0x2eb   :  { %v14602_v14 = vadd.f32 %v4332_v4, %v14591_v55  ;;  %v4334_v7 = vpop.f32.mrb[1].mxu1  ;;  %v6192_v4 = vrot.slane %v14764_v31, %v19026_v18 }
 0x2ec   :  { %v14609_v49 = vadd.f32 %v4334_v7, %v14591_v55  ;;  %v6188_v7 = vrot.slane %v14764_v31, %v19027_v44 }
 0x2ed   :  { %4709 = vrot.lane.b32.xlu0 %v14602_v14, %s18463_s11  ;;  %4625 = vrot.lane.b32.xlu1 %v14602_v14, %s18465_s12 }
 0x2f1   :  { %4627 = vrot.lane.b32.xlu1 %v14609_v49, %s18465_s12  ;;  %4623 = vrot.lane.b32.xlu0 %v14597_v39, %s18465_s12 }
 0x2f5   :  { %4711 = vrot.lane.b32.xlu1 %v14609_v49, %s18463_s11  ;;  %4793 = vrot.lane.b32.xlu0 %v14602_v14, %s18513_s13 }
 0x2f9   :  { %4707 = vrot.lane.b32.xlu1 %v14597_v39, %s18463_s11  ;;  %4877 = vrot.lane.b32.xlu0 %v14602_v14, %s18511_s14 }
 0x2fd   :  { %4795 = vrot.lane.b32.xlu1 %v14609_v49, %s18513_s13  ;;  %4791 = vrot.lane.b32.xlu0 %v14597_v39, %s18513_s13 }
 0x301   :  { %4879 = vrot.lane.b32.xlu1 %v14609_v49, %s18511_s14  ;;  %4961 = vrot.lane.b32.xlu0 %v14602_v14, %s10670_s16 }
 0x305   :  { %4875 = vrot.lane.b32.xlu1 %v14597_v39, %s18511_s14  ;;  %5045 = vrot.lane.b32.xlu0 %v14602_v14, %s10669_s15 }
 0x309   :  { %4963 = vrot.lane.b32.xlu1 %v14609_v49, %s10670_s16  ;;  %4959 = vrot.lane.b32.xlu0 %v14597_v39, %s10670_s16 }
 0x30d   :  { %5047 = vrot.lane.b32.xlu1 %v14609_v49, %s10669_s15  ;;  %5129 = vrot.lane.b32.xlu0 %v14602_v14, %s18509_s29 }
 0x311   :  { %5043 = vrot.lane.b32.xlu1 %v14597_v39, %s10669_s15  ;;  %5213 = vrot.lane.b32.xlu0 %v14602_v14, %s10672_s20 }
 0x315   :  { %5131 = vrot.lane.b32.xlu1 %v14609_v49, %s18509_s29  ;;  %5127 = vrot.lane.b32.xlu0 %v14597_v39, %s18509_s29 }
 0x319   :  { %5215 = vrot.lane.b32.xlu1 %v14609_v49, %s10672_s20  ;;  %5297 = vrot.lane.b32.xlu0 %v14602_v14, %s18440_s26 }
 0x31d   :  { %5211 = vrot.lane.b32.xlu1 %v14597_v39, %s10672_s20  ;;  %5381 = vrot.lane.b32.xlu0 %v14602_v14, %s18438_s25 }
 0x321   :  { %5299 = vrot.lane.b32.xlu1 %v14609_v49, %s18440_s26  ;;  %5295 = vrot.lane.b32.xlu0 %v14597_v39, %s18440_s26 }
 0x325   :  { %5383 = vrot.lane.b32.xlu1 %v14609_v49, %s18438_s25  ;;  %5465 = vrot.lane.b32.xlu0 %v14602_v14, %s18436_s30 }
 0x329   :  { %5379 = vrot.lane.b32.xlu1 %v14597_v39, %s18438_s25  ;;  %5549 = vrot.lane.b32.xlu0 %v14602_v14, %s18434_s22 }
 0x32d   :  { %5467 = vrot.lane.b32.xlu1 %v14609_v49, %s18436_s30  ;;  %5463 = vrot.lane.b32.xlu0 %v14597_v39, %s18436_s30  ;;  %s19054_s30 = smov 55  }
 0x331   :  { %5551 = vrot.lane.b32.xlu1 %v14609_v49, %s18434_s22  ;;  %5633 = vrot.lane.b32.xlu0 %v14602_v14, %s18432_s17 }
 0x335   :  { %5547 = vrot.lane.b32.xlu1 %v14597_v39, %s18434_s22  ;;  %5631 = vrot.lane.b32.xlu0 %v14597_v39, %s18432_s17  ;;  %s19055_s22 = smov 9  }
 0x339   :  { %5635 = vrot.lane.b32.xlu1 %v14609_v49, %s18432_s17  ;;  %4705 = vrot.lane.b32.xlu0 %v14594_v25, %s18463_s11 }
 0x33d   :  { %4621 = vrot.lane.b32.xlu1 %v14594_v25, %s18465_s12 }
 0x341   :  { %5727 = vrot.lane.b32.xlu1 %v14609_v49, %s18467_s28 }
 0x345   :  { %5811 = vrot.lane.b32.xlu1 %v14609_v49, %s18886_s18 }
 0x35f   :  { %v4710_v50 = vpop.permute.xlu0 %4709  ;;  %v4626_v29 = vpop.permute.xlu1 %4625 }
 0x363   :  { %v14731_v36 = vpop.permute.xlu1 %4627  ;;  %v14733_v51 = vpop.permute.xlu0 %4623 }
 0x364   :  { %v4641_v34 = vsel %vm150_vm2, %v4626_v29, %v14731_v36  ;;  %v4642_v16 = vsel %vm150_vm2, %v14733_v51, %v4626_v29 }
 0x365   :  { %v6103_v62 = vmul.f32 %v6072_v60, %v4641_v34  ;;  %v6102_v21 = vmul.f32 %v6068_v0, %v4642_v16  ;;  %v4692_v1 = vmul.f32 %v4664_v2, %v4641_v34  ;;  %v4691_v26 = vmul.f32 %v4660_v28, %v4642_v16  ;;  %v9786_v16 = vld [vmem:[%s18171_s3 + $0x86] ss:$8 sm:$0xf]  ;;  %v9753_v28 = vld [vmem:[%s18171_s3 + $0x4] ss:$8 sm:$0xf0] }
 0x366   :  { %v4916_v2 = vrot.slane %v14793_v13, %v19028_v30  ;;  %v6252_v34 = vrot.slane %v14795_v33, %v19026_v18 }
 0x367   :  { %6111 = vst [vmem:[#allocation2 + $0x490] sm:$0xff] %v6103_v62  ;;  %6110 = vst [vmem:[#allocation2 + $0x488] sm:$0xff] %v6102_v21  ;;  %v14753_v32 = vpop.permute.xlu1 %4711  ;;  %v4794_v12 = vpop.permute.xlu0 %4793  ;;  %v9787_v62 = vld [vmem:[%s18171_s3 + $0x86] ss:$8 sm:$0xf0] }
 0x368   :  { %v4725_v56 = vsel %vm275_vm1, %v4710_v50, %v14753_v32 }
 0x369   :  { %v4776_v6 = vmul.f32 %v4748_v15, %v4725_v56  ;;  %v6163_v41 = vmul.f32 %v6132_v48, %v4725_v56  ;;  %v4828_v15 = vrot.slane %v14784_v11, %v19026_v18 }
 0x36b   :  { %6171 = vst [vmem:[#allocation2 + $0x4d0] sm:$0xff] %v6163_v41  ;;  %v14782_v9 = vpop.permute.xlu1 %4707  ;;  %v4878_v37 = vpop.permute.xlu0 %4877  ;;  %v10226_v23 = vpack.c.bf16 %v4776_v6, %v4692_v1  ;;  %v9752_v1 = vld [vmem:[%s18171_s3 + $0x4] ss:$8 sm:$0xf]  ;;  %v6248_v6 = vrot.slane %v14795_v33, %v19027_v44 }
 0x36c   :  { %v4726_v53 = vsel %vm275_vm1, %v14782_v9, %v4710_v50  ;;  %v9754_v41 = vld [vmem:[%s18171_s3 + $0x5] ss:$8 sm:$0xf] }
 0x36d   :  { %v4775_v59 = vmul.f32 %v4744_v45, %v4726_v53  ;;  %v6162_v3 = vmul.f32 %v6128_v8, %v4726_v53  ;;  %10227 = vmatprep.subr.bf16.mxu1 %v10226_v23  ;;  %v9755_v45 = vld [vmem:[%s18171_s3 + $0x5] ss:$8 sm:$0xf0]  ;;  %v9788_v8 = vld [vmem:[%s18171_s3 + $0x87] ss:$8 sm:$0xf] }
 0x36f   :  { %6170 = vst [vmem:[#allocation2 + $0x4c8] sm:$0xff] %v6162_v3  ;;  %v14799_v42 = vpop.permute.xlu1 %4795  ;;  %v14801_v27 = vpop.permute.xlu0 %4791  ;;  %v10228_v20 = vpack.c.bf16 %v4775_v59, %v4691_v26  ;;  %v14852_v26 = vor.u32 %v9753_v28, %v9752_v1 }
 0x370   :  { %v4809_v50 = vsel %vm457_vm3, %v4794_v12, %v14799_v42  ;;  %v4810_v29 = vsel %vm457_vm3, %v14801_v27, %v4794_v12  ;;  %v14832_v12 = vor.u32 %v9787_v62, %v9786_v16 }
 0x371   :  { %v6223_v60 = vmul.f32 %v6192_v4, %v4809_v50  ;;  %v6222_v0 = vmul.f32 %v6188_v7, %v4810_v29  ;;  %10229 = vmatpush1.bf16.msra.mxu1 %v10228_v20  ;;  %v4860_v21 = vmul.f32 %v4832_v61, %v4809_v50  ;;  %v4859_v24 = vmul.f32 %v4828_v15, %v4810_v29  ;;  %v9790_v15 = vld [vmem:[%s18171_s3 + $0xc0] ss:$8 sm:$0xf] }
 0x372   :  { %v6312_v4 = vrot.slane %v14832_v12, %v19026_v18  ;;  %v6308_v7 = vrot.slane %v14832_v12, %v19027_v44  ;;  %v14861_v61 = vor.u32 %v9755_v45, %v9754_v41  ;;  %v14863_v20 = vor.u32 %v9789_v63, %v9788_v8 }
 0x373   :  { %6231 = vst [vmem:[#allocation2 + $0x510] sm:$0xff] %v6223_v60  ;;  %6230 = vst [vmem:[#allocation2 + $0x508] sm:$0xff] %v6222_v0  ;;  %v14821_v48 = vpop.permute.xlu1 %4879  ;;  %v4962_v47 = vpop.permute.xlu0 %4961  ;;  %v5000_v50 = vrot.slane %v14852_v26, %v19028_v30 }
 0x374   :  { %v4893_v10 = vsel %vm583_vm4, %v4878_v37, %v14821_v48  ;;  %v5084_v62 = vrot.slane %v14861_v61, %v19028_v30  ;;  %v5080_v63 = vrot.slane %v14861_v61, %v19026_v18 }
 0x375   :  { %v4944_v56 = vmul.f32 %v4916_v2, %v4893_v10  ;;  %v6283_v19 = vmul.f32 %v6252_v34, %v4893_v10  ;;  %v9791_v10 = vld [vmem:[%s18171_s3 + $0xc0] ss:$8 sm:$0xf0] }
 0x376   :  { %v14900_v41 = vor.u32 %v9791_v10, %v9790_v15 }
 0x377   :  { %6291 = vst [vmem:[#allocation2 + $0x550] sm:$0xff] %v6283_v19  ;;  %v14850_v5 = vpop.permute.xlu1 %4875  ;;  %v5046_v17 = vpop.permute.xlu0 %5045  ;;  %v10230_v23 = vpack.c.bf16 %v4944_v56, %v4860_v21  ;;  %v6372_v21 = vrot.slane %v14863_v20, %v19026_v18 }
 0x378   :  { %v4894_v53 = vsel %vm583_vm4, %v14850_v5, %v4878_v37 }
 0x379   :  { %v4943_v59 = vmul.f32 %v4912_v43, %v4894_v53  ;;  %v6282_v3 = vmul.f32 %v6248_v6, %v4894_v53  ;;  %10231 = vmatprep.subr.bf16.mxu1 %v10230_v23  ;;  %v9756_v43 = vld [vmem:[%s18171_s3 + $0x6] ss:$8 sm:$0xf]  ;;  %v9758_v23 = vld [vmem:[%s18171_s3 + $0x7] ss:$8 sm:$0xf] }
 0x37a   :  { %v9757_v6 = vld [vmem:[%s18171_s3 + $0x6] ss:$8 sm:$0xf0]  ;;  %v9759_v53 = vld [vmem:[%s18171_s3 + $0x7] ss:$8 sm:$0xf0] }
 0x37b   :  { %6290 = vst [vmem:[#allocation2 + $0x548] sm:$0xff] %v6282_v3  ;;  %v14867_v29 = vpop.permute.xlu1 %4963  ;;  %v14869_v37 = vpop.permute.xlu0 %4959  ;;  %v10232_v60 = vpack.c.bf16 %v4943_v59, %v4859_v24  ;;  %v6368_v24 = vrot.slane %v14863_v20, %v19027_v44 }
 0x37c   :  { %v4977_v0 = vsel %vm765_vm6, %v4962_v47, %v14867_v29  ;;  %v4978_v2 = vsel %vm765_vm6, %v14869_v37, %v4962_v47  ;;  %v4996_v47 = vrot.slane %v14852_v26, %v19026_v18 }
 0x37d   :  { %v6343_v34 = vmul.f32 %v6312_v4, %v4977_v0  ;;  %v6342_v16 = vmul.f32 %v6308_v7, %v4978_v2  ;;  %10233 = vmatpush1.bf16.msra.mxu1 %v10232_v60  ;;  %v5028_v1 = vmul.f32 %v5000_v50, %v4977_v0  ;;  %v9792_v4 = vld [vmem:[%s18171_s3 + $0xc1] ss:$8 sm:$0xf]  ;;  %v14920_v60 = vor.u32 %v9757_v6, %v9756_v43 }
 0x37e   :  { %v9793_v7 = vld [vmem:[%s18171_s3 + $0xc1] ss:$8 sm:$0xf0]  ;;  %v5027_v59 = vmul.f32 %v4996_v47, %v4978_v2  ;;  %v14929_v2 = vor.u32 %v9759_v53, %v9758_v23  ;;  %v9794_v23 = vld [vmem:[%s18171_s3 + $0xc2] ss:$8 sm:$0xf] }
 0x37f   :  { %6351 = vst [vmem:[#allocation2 + $0x590] sm:$0xff] %v6343_v34  ;;  %6350 = vst [vmem:[#allocation2 + $0x588] sm:$0xff] %v6342_v16  ;;  %v14889_v28 = vpop.permute.xlu1 %5047  ;;  %v5130_v56 = vpop.permute.xlu0 %5129  ;;  %v6432_v16 = vrot.slane %v14900_v41, %v19026_v18  ;;  %v14931_v10 = vor.u32 %v9793_v7, %v9792_v4  ;;  %v9795_v53 = vld [vmem:[%s18171_s3 + $0xc2] ss:$8 sm:$0xf0] }
 0x380   :  { %19029 = vst [vmem:[#allocation10_spill] sm:$0xff] %v14889_v28  ;;  %v5061_v19 = vsel %vm891_vm5, %v5046_v17, %v14889_v28 }
 0x381   :  { %v5112_v45 = vmul.f32 %v5084_v62, %v5061_v19  ;;  %v6403_v8 = vmul.f32 %v6372_v21, %v5061_v19  ;;  %v6428_v62 = vrot.slane %v14900_v41, %v19027_v44 }
 0x383   :  { %6411 = vst [vmem:[#allocation2 + $0x5d0] sm:$0xff] %v6403_v8  ;;  %v14918_v3 = vpop.permute.xlu1 %5043  ;;  %v5214_v50 = vpop.permute.xlu0 %5213  ;;  %v10234_v0 = vpack.c.bf16 %v5112_v45, %v5028_v1  ;;  %v5168_v1 = vrot.slane %v14920_v60, %v19028_v30 }
 0x384   :  { %v5062_v34 = vsel %vm891_vm5, %v14918_v3, %v5046_v17 }
 0x385   :  { %v5111_v21 = vmul.f32 %v5080_v63, %v5062_v34  ;;  %v6402_v15 = vmul.f32 %v6368_v24, %v5062_v34  ;;  %10235 = vmatprep.subr.bf16.mxu1 %v10234_v0  ;;  %v5252_v63 = vrot.slane %v14929_v2, %v19028_v30  ;;  %v6492_v24 = vrot.slane %v14931_v10, %v19026_v18  ;;  %v9760_v34 = vld [vmem:[%s18171_s3 + $0x40] ss:$8 sm:$0xf] }
 0x387   :  { %6410 = vst [vmem:[#allocation2 + $0x5c8] sm:$0xff] %v6402_v15  ;;  %v14935_v47 = vpop.permute.xlu1 %5131  ;;  %v14937_v17 = vpop.permute.xlu0 %5127  ;;  %v10236_v19 = vpack.c.bf16 %v5111_v21, %v5027_v59 }
 0x388   :  { %19030 = vst [vmem:[#allocation29_spill] sm:$0xff] %v14935_v47  ;;  %v5145_v43 = vsel %vm1073_vm7, %v5130_v56, %v14935_v47  ;;  %v5146_v6 = vsel %vm1073_vm7, %v14937_v17, %v5130_v56  ;;  %v5164_v56 = vrot.slane %v14920_v60, %v19026_v18 }
 0x389   :  { %v6463_v45 = vmul.f32 %v6432_v16, %v5145_v43  ;;  %v6462_v8 = vmul.f32 %v6428_v62, %v5146_v6  ;;  %10237 = vmatpush1.bf16.msra.mxu1 %v10236_v19  ;;  %v5196_v4 = vmul.f32 %v5168_v1, %v5145_v43  ;;  %v9761_v16 = vld [vmem:[%s18171_s3 + $0x40] ss:$8 sm:$0xf0]  ;;  %v14968_v62 = vor.u32 %v9795_v53, %v9794_v23  ;;  %v9762_v43 = vld [vmem:[%s18171_s3 + $0x41] ss:$8 sm:$0xf] }
 0x38a   :  { %v5248_v1 = vrot.slane %v14929_v2, %v19026_v18  ;;  %v6488_v19 = vrot.slane %v14931_v10, %v19027_v44 }
 0x38b   :  { %6471 = vst [vmem:[#allocation2 + $0x610] sm:$0xff] %v6463_v45  ;;  %6470 = vst [vmem:[#allocation2 + $0x608] sm:$0xff] %v6462_v8  ;;  %v14957_v7 = vpop.permute.xlu1 %5215  ;;  %v5298_v59 = vpop.permute.xlu0 %5297  ;;  %v9763_v45 = vld [vmem:[%s18171_s3 + $0x41] ss:$8 sm:$0xf0]  ;;  %v5195_v8 = vmul.f32 %v5164_v56, %v5146_v6  ;;  %v6552_v58 = vrot.slane %v14968_v62, %v19026_v18  ;;  %v6548_v47 = vrot.slane %v14968_v62, %v19027_v44 }
 0x38c   :  { %19031 = vst [vmem:[#allocation126_spill] sm:$0xff] %v14957_v7  ;;  %v5229_v0 = vsel %vm1199_vm8, %v5214_v50, %v14957_v7  ;;  %19032 = vst [vmem:[#allocation127_spill] sm:$0xff] %v14968_v62  ;;  %v14991_v6 = vor.u32 %v9763_v45, %v9762_v43 }
 0x38d   :  { %v5280_v21 = vmul.f32 %v5252_v63, %v5229_v0  ;;  %v6523_v15 = vmul.f32 %v6492_v24, %v5229_v0  ;;  %v14982_v24 = vor.u32 %v9761_v16, %v9760_v34 }
 0x38e   :  { %19033 = vst [vmem:[#allocation38_spill] sm:$0xff] %v14991_v6 }
 0x38f   :  { %6531 = vst [vmem:[#allocation2 + $0x650] sm:$0xff] %v6523_v15  ;;  %v14980_v23 = vpop.permute.xlu1 %5211  ;;  %v5382_v63 = vpop.permute.xlu0 %5381  ;;  %v10238_v53 = vpack.c.bf16 %v5280_v21, %v5196_v4  ;;  %v5336_v56 = vrot.slane %v14982_v24, %v19028_v30  ;;  %v5332_v43 = vrot.slane %v14982_v24, %v19026_v18 }
 0x390   :  { %v5230_v0 = vsel %vm1199_vm8, %v14980_v23, %v5214_v50 }
 0x391   :  { %v5279_v57 = vmul.f32 %v5248_v1, %v5230_v0  ;;  %v6522_v7 = vmul.f32 %v6488_v19, %v5230_v0  ;;  %10239 = vmatprep.subr.bf16.mxu1 %v10238_v53  ;;  %v5416_v53 = vrot.slane %v14991_v6, %v19026_v18  ;;  %v9766_v0 = vld [vmem:[%s18171_s3 + $0x43] ss:$8 sm:$0xf] }
 0x393   :  { %6530 = vst [vmem:[#allocation2 + $0x648] sm:$0xff] %v6522_v7  ;;  %v14995_v4 = vpop.permute.xlu1 %5299  ;;  %v14997_v34 = vpop.permute.xlu0 %5295  ;;  %v10240_v50 = vpack.c.bf16 %v5279_v57, %v5195_v8  ;;  %v5420_v7 = vrot.slane %v14991_v6, %v19028_v30 }
 0x394   :  { %19034 = vst [vmem:[#allocation12_spill] sm:$0xff] %v14995_v4  ;;  %v5313_v16 = vsel %vm1381_vm10, %v5298_v59, %v14995_v4  ;;  %v5314_v21 = vsel %vm1381_vm10, %v14997_v34, %v5298_v59 }
 0x395   :  { %v6583_v15 = vmul.f32 %v6552_v58, %v5313_v16  ;;  %v6582_v1 = vmul.f32 %v6548_v47, %v5314_v21  ;;  %10241 = vmatpush1.bf16.msra.mxu1 %v10240_v50  ;;  %v5364_v19 = vmul.f32 %v5336_v56, %v5313_v16  ;;  %v9764_v58 = vld [vmem:[%s18171_s3 + $0x42] ss:$8 sm:$0xf]  ;;  %v9767_v56 = vld [vmem:[%s18171_s3 + $0x43] ss:$8 sm:$0xf0]  ;;  %v5363_v50 = vmul.f32 %v5332_v43, %v5314_v21 }
 0x396   :  { %v9765_v47 = vld [vmem:[%s18171_s3 + $0x42] ss:$8 sm:$0xf0]  ;;  %v15035_v4 = vor.u32 %v9767_v56, %v9766_v0 }
 0x397   :  { %6591 = vst [vmem:[#allocation2 + $0x690] sm:$0xff] %v6583_v15  ;;  %6590 = vst [vmem:[#allocation2 + $0x688] sm:$0xff] %v6582_v1  ;;  %v15009_v57 = vpop.permute.xlu1 %5383  ;;  %v5466_v45 = vpop.permute.xlu0 %5465  ;;  %v15030_v1 = vor.u32 %v9765_v47, %v9764_v58 }
 0x398   :  { %19035 = vst [vmem:[#allocation16_spill] sm:$0xff] %v15009_v57  ;;  %v5397_v8 = vsel %vm19036_vm15, %v5382_v63, %v15009_v57  ;;  %v5588_v58 = vrot.slane %v15035_v4, %v19028_v30  ;;  %vm19048_vm15 = vmmov %vm19045_vm14 }
 0x399   :  { %v5448_v59 = vmul.f32 %v5420_v7, %v5397_v8  ;;  %19038 = vst [vmem:[#allocation19_spill] sm:$0xff] %v15030_v1  ;;  %v5504_v6 = vrot.slane %v15030_v1, %v19028_v30 }
 0x39b   :  { %v15028_v16 = vpop.permute.xlu1 %5379  ;;  %v5550_v15 = vpop.permute.xlu0 %5549  ;;  %v10242_v57 = vpack.c.bf16 %v5448_v59, %v5364_v19  ;;  %v5500_v59 = vrot.slane %v15030_v1, %v19026_v18 }
 0x39c   :  { %19037 = vst [vmem:[#allocation39_spill] sm:$0xff] %v15028_v16  ;;  %v5398_v7 = vsel %vm19039_vm12, %v15028_v16, %v5382_v63  ;;  %v9768_v63 = vld [vmem:[%s18171_s3 + $0x44] ss:$8 sm:$0xf]  ;;  %vm19050_vm12 = vcmp.lt.s32.totalorder %v10937_v40, 1 }
 0x39d   :  { %v5447_v8 = vmul.f32 %v5416_v53, %v5398_v7  ;;  %10243 = vmatprep.subr.bf16.mxu1 %v10242_v57  ;;  %v9769_v57 = vld [vmem:[%s18171_s3 + $0x44] ss:$8 sm:$0xf0] }
 0x39f   :  { %v15039_v28 = vpop.permute.xlu1 %5467  ;;  %v15041_v21 = vpop.permute.xlu0 %5463  ;;  %v10244_v43 = vpack.c.bf16 %v5447_v8, %v5363_v50  ;;  %v15064_v8 = vor.u32 %v9769_v57, %v9768_v63 }
 0x3a0   :  { %19040 = vst [vmem:[#allocation118_spill] sm:$0xff] %v15039_v28  ;;  %19041 = vst [vmem:[#allocation125_spill] sm:$0xff] %v15041_v21  ;;  %v5481_v19 = vsel %vm19042_vm11, %v5466_v45, %v15039_v28  ;;  %v5482_v56 = vsel %vm19044_vm9, %v15041_v21, %v5466_v45  ;;  %vm6822_vm9 = vcmask 719872  }
 0x3a1   :  { %10245 = vmatpush1.bf16.msra.mxu1 %v10244_v43  ;;  %v5532_v47 = vmul.f32 %v5504_v6, %v5481_v19  ;;  %19046 = vst [vmem:[#allocation113_spill] sm:$0xff] %v15064_v8  ;;  %v5584_v43 = vrot.slane %v15035_v4, %v19026_v18  ;;  %v5531_v16 = vmul.f32 %v5500_v59, %v5482_v56  ;;  %vm19053_vm11 = vmmov %vm19050_vm12 }
 0x3a3   :  { %v15056_v53 = vpop.permute.xlu1 %5551  ;;  %v5634_v0 = vpop.permute.xlu0 %5633 }
 0x3a4   :  { %19043 = vst [vmem:[#allocation4_spill] sm:$0xff] %v15056_v53  ;;  %v5565_v50 = vsel %vm19045_vm14, %v5550_v15, %v15056_v53  ;;  %vm19064_vm14 = vcmp.lt.s32.totalorder %v10937_v40, 127 }
 0x3a5   :  { %v5616_v28 = vmul.f32 %v5588_v58, %v5565_v50  ;;  %v5668_v50 = vrot.slane %v15064_v8, %v19026_v18 }
 0x3a6   :  { %v4474_v7 = vpop.f32.mrb[2].mxu0 }
 0x3a7   :  { %v15067_v6 = vadd.f32 %v4474_v7, %v14591_v55  ;;  %v4476_v19 = vpop.f32.mrb[3].mxu0  ;;  %v15075_v21 = vpop.permute.xlu1 %5547  ;;  %v10246_v58 = vpack.c.bf16 %v5616_v28, %v5532_v47 }
 0x3a8   :  { %v15072_v1 = vadd.f32 %v4476_v19, %v14591_v55  ;;  %19047 = vst [vmem:[#allocation115_spill] sm:$0xff] %v15075_v21  ;;  %v5566_v57 = vsel %vm19048_vm15, %v15075_v21, %v5550_v15  ;;  %v15087_v59 = vpop.permute.xlu0 %5631  ;;  %v5672_v19 = vrot.slane %v15064_v8, %v19028_v30  ;;  %v19051_v15 = vld [vmem:[#allocation7_spill] sm:$0xff]  ;;  %v4656_v8 = vrot.slane %v14719_v35, %v19027_v44 }
 0x3a9   :  { %5717 = vst [vmem:[#allocation2 + $0x360] sm:$0xff] %v15067_v6  ;;  %5729 = vrot.lane.b32.xlu0 %v15067_v6, %s18467_s28  ;;  %19049 = vst [vmem:[#allocation60_spill] sm:$0xff] %v15087_v59  ;;  %v5615_v7 = vmul.f32 %v5584_v43, %v5566_v57  ;;  %v5650_v28 = vsel %vm19050_vm12, %v15087_v59, %v5634_v0  ;;  %10247 = vmatprep.subr.bf16.mxu1 %v10246_v58  ;;  %vm19066_vm15 = vcmp.lt.s32.totalorder %v10937_v40, 121 }
 0x3aa   :  { %5718 = vst [vmem:[#allocation2 + $0x368] sm:$0xff] %v15072_v1  ;;  %v4740_v43 = vrot.slane %v14725_v22, %v19027_v44  ;;  %v5699_v58 = vmul.f32 %v5668_v50, %v5650_v28  ;;  %v6064_v21 = vrot.slane %v14705_v54, %v19051_v15  ;;  %vm19069_vm12 = vmmov %vm19064_vm14 }
 0x3ab   :  { %v4616_v45 = vpop.f32.mrb[2].mxu1  ;;  %v15102_v53 = vpop.permute.xlu1 %5635 }
 0x3ac   :  { %v15080_v63 = vadd.f32 %v4616_v45, %v14591_v55  ;;  %v4618_v56 = vpop.f32.mrb[3].mxu1  ;;  %v6124_v45 = vrot.slane %v14727_v52, %v19051_v15  ;;  %19052 = vst [vmem:[#allocation14_spill] sm:$0xff] %v15102_v53  ;;  %v5649_v57 = vsel %vm19053_vm11, %v5634_v0, %v15102_v53  ;;  %vm19071_vm11 = vmmov %vm19066_vm15 }
 0x3ad   :  { %v15094_v47 = vadd.f32 %v4618_v56, %v14591_v55  ;;  %5813 = vrot.lane.b32.xlu0 %v15067_v6, %s18886_s18  ;;  %v10248_v55 = vpack.c.bf16 %v5615_v7, %v5531_v16  ;;  %v15113_v56 = vpop.permute.xlu0 %4705  ;;  %v5700_v59 = vmul.f32 %v5672_v19, %v5649_v57 }
 0x3ae   :  { %5719 = vst [vmem:[#allocation2 + $0x370] sm:$0xff] %v15080_v63  ;;  %v4727_v16 = vsel %vm275_vm1, %v15113_v56, %v14782_v9  ;;  %v10252_v9 = vpack.c.bf16 %v14602_v14, %v5699_v58  ;;  %v9773_v58 = vld [vmem:[%s18171_s3 + $0x47] ss:$8 sm:$0xf0] }
 0x3af   :  { %5720 = vst [vmem:[#allocation2 + $0x378] sm:$0xff] %v15094_v47  ;;  %4635 = vrot.lane.b32.xlu1 %v15094_v47, %s18465_s12  ;;  %10249 = vmatpush1.bf16.msra.mxu1 %v10248_v55  ;;  %v6161_v50 = vmul.f32 %v6124_v45, %v4727_v16  ;;  %v15125_v0 = vpop.permute.xlu1 %4621  ;;  %v10250_v7 = vpack.c.bf16 %v14609_v49, %v5700_v59 }
 0x3b0   :  { %v4774_v28 = vmul.f32 %v4740_v43, %v4727_v16  ;;  %v4643_v19 = vsel %vm150_vm2, %v15125_v0, %v14733_v51  ;;  %v9772_v43 = vld [vmem:[%s18171_s3 + $0x47] ss:$8 sm:$0xf] }
 0x3b1   :  { %4719 = vrot.lane.b32.xlu0 %v15094_v47, %s18463_s11  ;;  %6169 = vst [vmem:[#allocation2 + $0x4c0] sm:$0xff] %v6161_v50  ;;  %v4690_v45 = vmul.f32 %v4656_v8, %v4643_v19  ;;  %v6101_v55 = vmul.f32 %v6064_v21, %v4643_v19  ;;  %10251 = vmatprep.subr.bf16.mxu1 %v10250_v7  ;;  %v9770_v21 = vld [vmem:[%s18171_s3 + $0x46] ss:$8 sm:$0xf] }
 0x3b2   :  { %v9771_v8 = vld [vmem:[%s18171_s3 + $0x46] ss:$8 sm:$0xf0]  ;;  %v15266_v16 = vor.u32 %v9773_v58, %v9772_v43  ;;  %v6092_v19 = vrot.slane %v14705_v54, %v18957_v46  ;;  %v6152_v43 = vrot.slane %v14727_v52, %v18957_v46 }
 0x3b3   :  { %5725 = vrot.lane.b32.xlu1 %v14602_v14, %s18467_s28  ;;  %10253 = vmatpush1.bf16.msra.mxu1 %v10252_v9  ;;  %6109 = vst [vmem:[#allocation2 + $0x480] sm:$0xff] %v6101_v55  ;;  %v10174_v59 = vpack.c.bf16 %v4774_v28, %v4690_v45  ;;  %v5728_v51 = vpop.permute.xlu1 %5727  ;;  %v15264_v57 = vor.u32 %v9771_v8, %v9770_v21 }
 0x3b4   :  { %19062 = vst [vmem:[#allocation15_spill] sm:$0xff] %v15266_v16  ;;  %v4652_v45 = vrot.slane %v14719_v35, %v19051_v15  ;;  %v4736_v8 = vrot.slane %v14725_v22, %v19051_v15 }
 0x3b5   :  { %5809 = vrot.lane.b32.xlu0 %v14602_v14, %s18886_s18  ;;  %10175 = vmatprep.subr.bf16.mxu0 %v10174_v59  ;;  %19061 = vst [vmem:[#allocation116_spill] sm:$0xff] %v15264_v57  ;;  %v5764_v28 = vrot.slane %v15264_v57, %v19028_v30 }
 0x3b7   :  { %4789 = vrot.lane.b32.xlu1 %v14594_v25, %s18513_s13  ;;  %v5812_v50 = vpop.permute.xlu1 %5811 }
 0x3b9   :  { %4873 = vrot.lane.b32.xlu0 %v14594_v25, %s18511_s14 }
 0x3bb   :  { %5895 = vrot.lane.b32.xlu1 %v14609_v49, %s18922_s23 }
 0x3bd   :  { %5897 = vrot.lane.b32.xlu0 %v15067_v6, %s18922_s23 }
 0x3bf   :  { %5979 = vrot.lane.b32.xlu1 %v14609_v49, %s18918_s19 }
 0x3c1   :  { %5981 = vrot.lane.b32.xlu0 %v15067_v6, %s18918_s19 }
 0x3c3   :  { %4803 = vrot.lane.b32.xlu1 %v15094_v47, %s18513_s13 }
 0x3c5   :  { %4887 = vrot.lane.b32.xlu0 %v15094_v47, %s18511_s14 }
 0x3c7   :  { %5893 = vrot.lane.b32.xlu1 %v14602_v14, %s18922_s23 }
 0x3c9   :  { %5977 = vrot.lane.b32.xlu0 %v14602_v14, %s18918_s19  ;;  %v15218_v14 = vld [vmem:[%s18174_s5] sm:$0xff] }
 0x3ca   :  { %19059 = vst [vmem:[#allocation43_spill] sm:$0xff] %v15218_v14  ;;  %v15222_v49 = vcombine.high %v15218_v14, %v15218_v14  ;;  %v5760_v14 = vrot.slane %v15264_v57, %v19026_v18 }
 0x3cb   :  { %4629 = vrot.lane.b32.xlu1 %v15067_v6, %s18465_s12 }
 0x3cc   :  { %19060 = vst [vmem:[#allocation114_spill] sm:$0xff] %v15222_v49  ;;  %9797 = vmatprep.mubr.msk.f32.mxu1 %vm6822_vm9, %v15222_v49  ;;  %9796 = vmatprep.mubr.msk.f32.mxu0 %vm6822_vm9, %v15222_v49 }
 0x3cd   :  { %4713 = vrot.lane.b32.xlu0 %v15067_v6, %s18463_s11 }
 0x3cf   :  { %4957 = vrot.lane.b32.xlu1 %v14594_v25, %s10670_s16 }
 0x3d1   :  { %5041 = vrot.lane.b32.xlu0 %v14594_v25, %s10669_s15 }
 0x3d3   :  { %4971 = vrot.lane.b32.xlu1 %v15094_v47, %s10670_s16 }
 0x3d5   :  { %5055 = vrot.lane.b32.xlu0 %v15094_v47, %s10669_s15 }
 0x3d7   :  { %4797 = vrot.lane.b32.xlu1 %v15067_v6, %s18513_s13 }
 0x3d9   :  { %4881 = vrot.lane.b32.xlu0 %v15067_v6, %s18511_s14 }
 0x3db   :  { %5125 = vrot.lane.b32.xlu1 %v14594_v25, %s18509_s29 }
 0x3dd   :  { %5209 = vrot.lane.b32.xlu0 %v14594_v25, %s10672_s20 }
 0x3df   :  { %5139 = vrot.lane.b32.xlu1 %v15094_v47, %s18509_s29 }
 0x3e1   :  { %5223 = vrot.lane.b32.xlu0 %v15094_v47, %s10672_s20 }
 0x3e3   :  { %4965 = vrot.lane.b32.xlu1 %v15067_v6, %s10670_s16 }
 0x3e5   :  { %5049 = vrot.lane.b32.xlu0 %v15067_v6, %s10669_s15 }
 0x3e7   :  { %5293 = vrot.lane.b32.xlu1 %v14594_v25, %s19054_s30 }
 0x3e9   :  { %5377 = vrot.lane.b32.xlu0 %v14594_v25, %s19055_s22 }
 0x3eb   :  { %5307 = vrot.lane.b32.xlu1 %v15094_v47, %s19054_s30 }
 0x3ed   :  { %5391 = vrot.lane.b32.xlu0 %v15094_v47, %s19055_s22 }
 0x3ef   :  { %5133 = vrot.lane.b32.xlu1 %v15067_v6, %s18509_s29 }
 0x3f1   :  { %5217 = vrot.lane.b32.xlu0 %v15067_v6, %s10672_s20 }
 0x3f3   :  { %5461 = vrot.lane.b32.xlu1 %v14594_v25, %s19056_s4 }
 0x3f5   :  { %5545 = vrot.lane.b32.xlu0 %v14594_v25, %s19057_s7 }
 0x3f7   :  { %5475 = vrot.lane.b32.xlu1 %v15094_v47, %s19056_s4 }
 0x3f9   :  { %5559 = vrot.lane.b32.xlu0 %v15094_v47, %s19057_s7 }
 0x3fb   :  { %5629 = vrot.lane.b32.xlu1 %v14594_v25, %s19058_s21 }
 0x3fd   :  { %5643 = vrot.lane.b32.xlu0 %v15094_v47, %s19058_s21 }
 0x3ff   :  { %4633 = vrot.lane.b32.xlu1 %v15080_v63, %s18465_s12 }
 0x401   :  { %4717 = vrot.lane.b32.xlu0 %v15080_v63, %s18463_s11 }
 0x403   :  { %5301 = vrot.lane.b32.xlu1 %v15067_v6, %s19054_s30 }
 0x405   :  { %4631 = vrot.lane.b32.xlu0 %v15072_v1, %s18465_s12 }
 0x407   :  { %4715 = vrot.lane.b32.xlu1 %v15072_v1, %s18463_s11  ;;  %s19079_s11 = smov 127  }
 0x409   :  { %5723 = vrot.lane.b32.xlu0 %v14597_v39, %s18467_s28 }
 0x40b   :  { %5807 = vrot.lane.b32.xlu1 %v14597_v39, %s18886_s18 }
 0x40d   :  { %5721 = vrot.lane.b32.xlu0 %v14594_v25, %s18467_s28  ;;  %s19192_s28 = smov 73  }
 0x40f   :  { %5805 = vrot.lane.b32.xlu1 %v14594_v25, %s18886_s18 }
 0x411   :  { %4801 = vrot.lane.b32.xlu0 %v15080_v63, %s18513_s13 }
 0x413   :  { %4885 = vrot.lane.b32.xlu1 %v15080_v63, %s18511_s14 }
 0x415   :  { %4799 = vrot.lane.b32.xlu0 %v15072_v1, %s18513_s13 }
 0x417   :  { %4883 = vrot.lane.b32.xlu1 %v15072_v1, %s18511_s14 }
 0x419   :  { %5891 = vrot.lane.b32.xlu0 %v14597_v39, %s18922_s23 }
 0x41b   :  { %5975 = vrot.lane.b32.xlu1 %v14597_v39, %s18918_s19  ;;  %v15268_v7 = vpop.permute.xlu0 %5729  ;;  %v5848_v39 = vrot.slane %v15266_v16, %v19028_v30 }
 0x41c   :  { %19063 = vst [vmem:[#allocation44_spill] sm:$0xff] %v15268_v7  ;;  %v5740_v9 = vsel %vm19064_vm14, %v5728_v51, %v15268_v7  ;;  %vm19074_vm14 = vcmp.lt.s32.totalorder %v10937_v40, 120 }
 0x41d   :  { %5889 = vrot.lane.b32.xlu0 %v14594_v25, %s18922_s23  ;;  %v5792_v58 = vmul.f32 %v5764_v28, %v5740_v9 }
 0x41f   :  { %5973 = vrot.lane.b32.xlu1 %v14594_v25, %s18918_s19  ;;  %v15287_v59 = vpop.permute.xlu0 %5813 }
 0x420   :  { %19065 = vst [vmem:[#allocation11_spill] sm:$0xff] %v15287_v59  ;;  %v5824_v25 = vsel %vm19066_vm15, %v5812_v50, %v15287_v59  ;;  %vm19077_vm15 = vmmov %vm19074_vm14 }
 0x421   :  { %v15285_v55 = vpop.permute.xlu1 %4635  ;;  %v5876_v53 = vmul.f32 %v5848_v39, %v5824_v25  ;;  %4969 = vrot.lane.b32.xlu0 %v15080_v63, %s10670_s16  ;;  %v5844_v39 = vrot.slane %v15266_v16, %v19026_v18 }
 0x422   :  { %v4644_v21 = vsel %vm150_vm2, %v15285_v55, %v15125_v0 }
 0x423   :  { %v6108_v7 = vmul.f32 %v6092_v19, %v4644_v21  ;;  %5053 = vrot.lane.b32.xlu1 %v15080_v63, %s10669_s15  ;;  %v15306_v49 = vpop.permute.xlu0 %4719  ;;  %v10254_v59 = vpack.c.bf16 %v5876_v53, %v5792_v58  ;;  %v6184_v19 = vrot.slane %v14764_v31, %v19051_v15 }
 0x424   :  { %19068 = vst [vmem:[#allocation13_spill] sm:$0xff] %v15306_v49  ;;  %v4728_v28 = vsel %vm275_vm1, %v15306_v49, %v15113_v56  ;;  %v4824_v56 = vrot.slane %v14784_v11, %v19027_v44 }
 0x425   :  { %6116 = vst [vmem:[#allocation2 + $0x4b8] sm:$0xff] %v6108_v7  ;;  %v15304_v0 = vpop.permute.xlu1 %5725  ;;  %v4689_v7 = vmul.f32 %v4652_v45, %v4644_v21  ;;  %v4773_v9 = vmul.f32 %v4736_v8, %v4728_v28  ;;  %v6168_v53 = vmul.f32 %v6152_v43, %v4728_v28  ;;  %4967 = vrot.lane.b32.xlu0 %v15072_v1, %s10670_s16  ;;  %v9774_v43 = vld [vmem:[%s18171_s3 + $0x80] ss:$8 sm:$0xf] }
 0x426   :  { %19067 = vst [vmem:[#allocation120_spill] sm:$0xff] %v15304_v0  ;;  %v5741_v25 = vsel %vm19069_vm12, %v15304_v0, %v5728_v51  ;;  %10255 = vmatprep.subr.bf16.mxu1 %v10254_v59  ;;  %v4908_v51 = vrot.slane %v14793_v13, %v19027_v44  ;;  %v6244_v59 = vrot.slane %v14795_v33, %v19051_v15  ;;  %v9775_v28 = vld [vmem:[%s18171_s3 + $0x80] ss:$8 sm:$0xf0]  ;;  %vm19084_vm12 = vcmp.lt.s32.totalorder %v10937_v40, 9 }
 0x427   :  { %5051 = vrot.lane.b32.xlu1 %v15072_v1, %s10669_s15  ;;  %6176 = vst [vmem:[#allocation2 + $0x4f8] sm:$0xff] %v6168_v53  ;;  %v15327_v57 = vpop.permute.xlu0 %5809  ;;  %v10176_v45 = vpack.c.bf16 %v4773_v9, %v4689_v7  ;;  %v5791_v7 = vmul.f32 %v5760_v14, %v5741_v25  ;;  %v9776_v9 = vld [vmem:[%s18171_s3 + $0x81] ss:$8 sm:$0xf]  ;;  %v15358_v25 = vor.u32 %v9775_v28, %v9774_v43 }
 0x428   :  { %19070 = vst [vmem:[#allocation26_spill] sm:$0xff] %v15327_v57  ;;  %v5825_v8 = vsel %vm19071_vm11, %v15327_v57, %v5812_v50  ;;  %v9777_v53 = vld [vmem:[%s18171_s3 + $0x81] ss:$8 sm:$0xf0]  ;;  %v4904_v28 = vrot.slane %v14793_v13, %v19051_v15  ;;  %vm19087_vm11 = vmmov %vm19084_vm12 }
 0x429   :  { %v4790_v58 = vpop.permute.xlu1 %4789  ;;  %v5875_v50 = vmul.f32 %v5844_v39, %v5825_v8  ;;  %5137 = vrot.lane.b32.xlu0 %v15080_v63, %s18509_s29  ;;  %10177 = vmatpush1.bf16.msra.mxu0 %v10176_v45  ;;  %19072 = vst [vmem:[#allocation121_spill] sm:$0xff] %v15358_v25  ;;  %v15360_v8 = vor.u32 %v9777_v53, %v9776_v9 }
 0x42a   :  { %v4811_v21 = vsel %vm457_vm3, %v4790_v58, %v14801_v27 }
 0x42b   :  { %v6221_v27 = vmul.f32 %v6184_v19, %v4811_v21  ;;  %5221 = vrot.lane.b32.xlu1 %v15080_v63, %s10672_s20  ;;  %v4874_v14 = vpop.permute.xlu0 %4873  ;;  %v10256_v19 = vpack.c.bf16 %v5875_v50, %v5791_v7  ;;  %v4858_v57 = vmul.f32 %v4824_v56, %v4811_v21  ;;  %v6212_v56 = vrot.slane %v14764_v31, %v18957_v46 }
 0x42c   :  { %v4895_v39 = vsel %vm583_vm4, %v4874_v14, %v14850_v5  ;;  %v5932_v5 = vrot.slane %v15358_v25, %v19028_v30  ;;  %v6016_v21 = vrot.slane %v15360_v8, %v19028_v30  ;;  %v6272_v50 = vrot.slane %v14795_v33, %v18957_v46 }
 0x42d   :  { %6229 = vst [vmem:[#allocation2 + $0x500] sm:$0xff] %v6221_v27  ;;  %v5896_v0 = vpop.permute.xlu1 %5895  ;;  %v4942_v16 = vmul.f32 %v4908_v51, %v4895_v39  ;;  %v6281_v49 = vmul.f32 %v6244_v59, %v4895_v39  ;;  %5135 = vrot.lane.b32.xlu0 %v15072_v1, %s18509_s29  ;;  %10257 = vmatpush1.bf16.msra.mxu1 %v10256_v19 }
 0x42f   :  { %5219 = vrot.lane.b32.xlu1 %v15072_v1, %s10672_s20  ;;  %6289 = vst [vmem:[#allocation2 + $0x540] sm:$0xff] %v6281_v49  ;;  %v15366_v7 = vpop.permute.xlu0 %5897  ;;  %v10178_v27 = vpack.c.bf16 %v4942_v16, %v4858_v57  ;;  %v4820_v57 = vrot.slane %v14784_v11, %v19051_v15 }
 0x430   :  { %19073 = vst [vmem:[#allocation123_spill] sm:$0xff] %v15366_v7  ;;  %v5908_v49 = vsel %vm19074_vm14, %v5896_v0, %v15366_v7  ;;  %v5928_v7 = vrot.slane %v15358_v25, %v19026_v18  ;;  %vm19092_vm14 = vcmp.lt.s32.totalorder %v10937_v40, 8 }
 0x431   :  { %v5980_v45 = vpop.permute.xlu1 %5979  ;;  %5305 = vrot.lane.b32.xlu0 %v15080_v63, %s19054_s30  ;;  %10179 = vmatprep.subr.bf16.mxu0 %v10178_v27  ;;  %v5960_v9 = vmul.f32 %v5932_v5, %v5908_v49 }
 0x433   :  { %5389 = vrot.lane.b32.xlu1 %v15080_v63, %s19055_s22  ;;  %v15385_v51 = vpop.permute.xlu0 %5981 }
 0x434   :  { %19075 = vst [vmem:[#allocation21_spill] sm:$0xff] %v15385_v51  ;;  %v5992_v43 = vsel %vm2621_vm13, %v5980_v45, %v15385_v51  ;;  %v6332_v51 = vrot.slane %v14832_v12, %v18957_v46 }
 0x435   :  { %v15383_v16 = vpop.permute.xlu1 %4803  ;;  %v6044_v19 = vmul.f32 %v6016_v21, %v5992_v43  ;;  %5303 = vrot.lane.b32.xlu0 %v15072_v1, %s19054_s30  ;;  %v6012_v21 = vrot.slane %v15360_v8, %v19026_v18 }
 0x436   :  { %v4812_v59 = vsel %vm457_vm3, %v15383_v16, %v4790_v58 }
 0x437   :  { %v6228_v53 = vmul.f32 %v6212_v56, %v4812_v59  ;;  %5387 = vrot.lane.b32.xlu1 %v15072_v1, %s19055_s22  ;;  %v15403_v39 = vpop.permute.xlu0 %4887  ;;  %v10258_v27 = vpack.c.bf16 %v6044_v19, %v5960_v9  ;;  %v4668_v56 = vrot.slane %v14719_v35, %v12963_v38  ;;  %v4857_v49 = vmul.f32 %v4820_v57, %v4812_v59 }
 0x438   :  { %v4896_v5 = vsel %vm583_vm4, %v15403_v39, %v4874_v14  ;;  %v6076_v14 = vrot.slane %v14705_v54, %v19028_v30  ;;  %v6304_v59 = vrot.slane %v14832_v12, %v19051_v15 }
 0x439   :  { %6236 = vst [vmem:[#allocation2 + $0x538] sm:$0xff] %v6228_v53  ;;  %v15401_v58 = vpop.permute.xlu1 %5893  ;;  %v4941_v43 = vmul.f32 %v4904_v28, %v4896_v5  ;;  %v6288_v53 = vmul.f32 %v6272_v50, %v4896_v5  ;;  %5473 = vrot.lane.b32.xlu0 %v15080_v63, %s19056_s4  ;;  %10259 = vmatprep.subr.bf16.mxu1 %v10258_v27 }
 0x43a   :  { %19076 = vst [vmem:[#allocation17_spill] sm:$0xff] %v15401_v58  ;;  %v5909_v9 = vsel %vm19077_vm15, %v15401_v58, %v5896_v0  ;;  %v4752_v27 = vrot.slane %v14725_v22, %v12963_v38  ;;  %v6136_v5 = vrot.slane %v14727_v52, %v19028_v30  ;;  %vm19095_vm15 = vcmp.lt.s32.totalorder %v10937_v40, 7 }
 0x43b   :  { %5557 = vrot.lane.b32.xlu1 %v15080_v63, %s19057_s7  ;;  %6296 = vst [vmem:[#allocation2 + $0x578] sm:$0xff] %v6288_v53  ;;  %v15425_v57 = vpop.permute.xlu0 %5977  ;;  %v10180_v28 = vpack.c.bf16 %v4941_v43, %v4857_v49  ;;  %v5959_v53 = vmul.f32 %v5928_v7, %v5909_v9  ;;  %v6364_v9 = vrot.slane %v14863_v20, %v19051_v15 }
 0x43c   :  { %19078 = vst [vmem:[#allocation22_spill] sm:$0xff] %v15425_v57  ;;  %v5993_v0 = vsel %vm2621_vm13, %v15425_v57, %v5980_v45 }
 0x43d   :  { %v15423_v19 = vpop.permute.xlu1 %4629  ;;  %v6043_v49 = vmul.f32 %v6012_v21, %v5993_v0  ;;  %5471 = vrot.lane.b32.xlu0 %v15072_v1, %s19056_s4  ;;  %10181 = vmatpush1.bf16.msra.mxu0 %v10180_v28  ;;  %v6744_v28 = vld [vmem:[#allocation2 + $0x490] sm:$0xff] }
 0x43e   :  { %v4640_v50 = vsel %vm150_vm2, %v14731_v36, %v15423_v19  ;;  %v4992_v36 = vrot.slane %v14852_v26, %v19027_v44  ;;  %v6752_v0 = vld [vmem:[#allocation2 + $0x4d0] sm:$0xff] }
 0x43f   :  { %v4693_v18 = vmul.f32 %v4668_v56, %v4640_v50  ;;  %5555 = vrot.lane.b32.xlu1 %v15072_v1, %s19057_s7  ;;  %v15446_v43 = vpop.permute.xlu0 %4713  ;;  %v10260_v7 = vpack.c.bf16 %v6043_v49, %v5959_v53  ;;  %v6104_v58 = vmul.f32 %v6076_v14, %v4640_v50  ;;  %v4836_v14 = vrot.slane %v14784_v11, %v12963_v38 }
 0x440   :  { %v4724_v21 = vsel %vm275_vm1, %v14753_v32, %v15446_v43  ;;  %v4988_v32 = vrot.slane %v14852_v26, %v19051_v15  ;;  %v10264_v50 = vpack.c.bf16 %v6752_v0, %v6744_v28 }
 0x441   :  { %4701 = vst [vmem:[#allocation2 + $0x20] sm:$0xff] %v4693_v18  ;;  %v4958_v45 = vpop.permute.xlu1 %4957  ;;  %v5076_v18 = vrot.slane %v14861_v61, %v19027_v44  ;;  %v4777_v53 = vmul.f32 %v4752_v27, %v4724_v21  ;;  %5641 = vrot.lane.b32.xlu0 %v15080_v63, %s19058_s21  ;;  %10261 = vmatpush1.bf16.msra.mxu1 %v10260_v7 }
 0x442   :  { %v4979_v56 = vsel %vm765_vm6, %v4958_v45, %v14869_v37  ;;  %v6164_v37 = vmul.f32 %v6136_v5, %v4724_v21  ;;  %v5072_v5 = vrot.slane %v14861_v61, %v19051_v15  ;;  %v6392_v7 = vrot.slane %v14863_v20, %v18957_v46 }
 0x443   :  { %v6341_v57 = vmul.f32 %v6304_v59, %v4979_v56  ;;  %5639 = vrot.lane.b32.xlu1 %v15072_v1, %s19058_s21  ;;  %4785 = vst [vmem:[#allocation2 + $0x60] sm:$0xff] %v4777_v53  ;;  %v5042_v25 = vpop.permute.xlu0 %5041  ;;  %v5026_v21 = vmul.f32 %v4992_v36, %v4979_v56 }
 0x444   :  { %v10262_v59 = vpack.c.bf16 %v6164_v37, %v6104_v58  ;;  %v6256_v37 = vrot.slane %v14795_v33, %v19028_v30 }
 0x445   :  { %6349 = vst [vmem:[#allocation2 + $0x580] sm:$0xff] %v6341_v57  ;;  %v15467_v49 = vpop.permute.xlu1 %4971  ;;  %v5063_v57 = vsel %vm891_vm5, %v5042_v25, %v14918_v3  ;;  %5735 = vrot.lane.b32.xlu0 %v15094_v47, %s19079_s11  ;;  %v6196_v3 = vrot.slane %v14764_v31, %v19028_v30 }
 0x446   :  { %v4980_v27 = vsel %vm765_vm6, %v15467_v49, %v4958_v45  ;;  %v5110_v58 = vmul.f32 %v5076_v18, %v5063_v57  ;;  %v6401_v28 = vmul.f32 %v6364_v9, %v5063_v57  ;;  %10263 = vmatprep.subr.bf16.mxu1 %v10262_v59  ;;  %v4920_v9 = vrot.slane %v14793_v13, %v12963_v38 }
 0x447   :  { %v6348_v53 = vmul.f32 %v6332_v51, %v4980_v27  ;;  %5819 = vrot.lane.b32.xlu1 %v15094_v47, %s18886_s18  ;;  %v15489_v0 = vpop.permute.xlu0 %5055  ;;  %v6424_v51 = vrot.slane %v14900_v41, %v19051_v15  ;;  %10265 = vmatpush1.bf16.msra.mxu1 %v10264_v50  ;;  %v5025_v59 = vmul.f32 %v4988_v32, %v4980_v27 }
 0x448   :  { %6409 = vst [vmem:[#allocation2 + $0x5c0] sm:$0xff] %v6401_v28  ;;  %v10182_v36 = vpack.c.bf16 %v5110_v58, %v5026_v21  ;;  %v5064_v18 = vsel %vm891_vm5, %v15489_v0, %v5042_v25  ;;  %v6452_v32 = vrot.slane %v14900_v41, %v18957_v46  ;;  %v6484_v58 = vrot.slane %v14931_v10, %v19051_v15  ;;  %v6760_v28 = vld [vmem:[#allocation2 + $0x510] sm:$0xff] }
 0x449   :  { %6356 = vst [vmem:[#allocation2 + $0x5b8] sm:$0xff] %v6348_v53  ;;  %v15487_v45 = vpop.permute.xlu1 %4797  ;;  %v5109_v50 = vmul.f32 %v5072_v5, %v5064_v18  ;;  %v6408_v21 = vmul.f32 %v6392_v7, %v5064_v18  ;;  %5733 = vrot.lane.b32.xlu0 %v15080_v63, %s19079_s11  ;;  %v5244_v7 = vrot.slane %v14929_v2, %v19027_v44 }
 0x44a   :  { %v4808_v56 = vsel %vm457_vm3, %v14799_v42, %v15487_v45  ;;  %10183 = vmatprep.subr.bf16.mxu0 %v10182_v36  ;;  %v5160_v42 = vrot.slane %v14920_v60, %v19027_v44  ;;  %v6768_v36 = vld [vmem:[#allocation2 + $0x550] sm:$0xff] }
 0x44b   :  { %v4861_v57 = vmul.f32 %v4836_v14, %v4808_v56  ;;  %5817 = vrot.lane.b32.xlu1 %v15080_v63, %s18886_s18  ;;  %6416 = vst [vmem:[#allocation2 + $0x5f8] sm:$0xff] %v6408_v21  ;;  %v15510_v53 = vpop.permute.xlu0 %4881  ;;  %v10184_v14 = vpack.c.bf16 %v5109_v50, %v5025_v59  ;;  %v6224_v18 = vmul.f32 %v6196_v3, %v4808_v56 }
 0x44c   :  { %v4892_v5 = vsel %vm583_vm4, %v14821_v48, %v15510_v53  ;;  %v5156_v48 = vrot.slane %v14920_v60, %v19051_v15  ;;  %v5004_v3 = vrot.slane %v14852_v26, %v12963_v38  ;;  %v10268_v56 = vpack.c.bf16 %v6768_v36, %v6760_v28 }
 0x44d   :  { %4869 = vst [vmem:[#allocation2 + $0xa0] sm:$0xff] %v4861_v57  ;;  %v5126_v25 = vpop.permute.xlu1 %5125  ;;  %v4945_v59 = vmul.f32 %v4920_v9, %v4892_v5  ;;  %5903 = vrot.lane.b32.xlu0 %v15094_v47, %s18922_s23  ;;  %10185 = vmatpush1.bf16.msra.mxu0 %v10184_v14  ;;  %v6512_v14 = vrot.slane %v14931_v10, %v18957_v46 }
 0x44e   :  { %v5147_v27 = vsel %vm1073_vm7, %v5126_v25, %v14937_v17  ;;  %v6284_v17 = vmul.f32 %v6256_v37, %v4892_v5  ;;  %v5240_v37 = vrot.slane %v14929_v2, %v19051_v15 }
 0x44f   :  { %v6461_v57 = vmul.f32 %v6424_v51, %v5147_v27  ;;  %5987 = vrot.lane.b32.xlu1 %v15094_v47, %s18918_s19  ;;  %4953 = vst [vmem:[#allocation2 + $0xe0] sm:$0xff] %v4945_v59  ;;  %v5210_v21 = vpop.permute.xlu0 %5209  ;;  %v5194_v5 = vmul.f32 %v5160_v42, %v5147_v27  ;;  %v6544_v42 = vrot.slane %v14968_v62, %v19051_v15 }
 0x450   :  { %v10266_v51 = vpack.c.bf16 %v6284_v17, %v6224_v18  ;;  %v5231_v47 = vsel %vm1199_vm8, %v5210_v21, %v14980_v23  ;;  %v6316_v23 = vrot.slane %v14832_v12, %v19028_v30 }
 0x451   :  { %6469 = vst [vmem:[#allocation2 + $0x600] sm:$0xff] %v6461_v57  ;;  %v15531_v50 = vpop.permute.xlu1 %5139  ;;  %v5278_v28 = vmul.f32 %v5244_v7, %v5231_v47  ;;  %v6521_v36 = vmul.f32 %v6484_v58, %v5231_v47  ;;  %5901 = vrot.lane.b32.xlu0 %v15080_v63, %s18922_s23  ;;  %v5088_v7 = vrot.slane %v14861_v61, %v12963_v38 }
 0x452   :  { %v5148_v9 = vsel %vm1073_vm7, %v15531_v50, %v5126_v25  ;;  %10267 = vmatprep.subr.bf16.mxu1 %v10266_v51  ;;  %v6376_v58 = vrot.slane %v14863_v20, %v19028_v30 }
 0x453   :  { %v6468_v57 = vmul.f32 %v6452_v32, %v5148_v9  ;;  %5985 = vrot.lane.b32.xlu1 %v15080_v63, %s18918_s19  ;;  %6529 = vst [vmem:[#allocation2 + $0x640] sm:$0xff] %v6521_v36  ;;  %v15553_v18 = vpop.permute.xlu0 %5223  ;;  %10269 = vmatpush1.bf16.msra.mxu1 %v10268_v56  ;;  %v10186_v32 = vpack.c.bf16 %v5278_v28, %v5194_v5  ;;  %v6776_v28 = vld [vmem:[#allocation2 + $0x590] sm:$0xff] }
 0x454   :  { %v5232_v27 = vsel %vm1199_vm8, %v15553_v18, %v5210_v21  ;;  %v5193_v59 = vmul.f32 %v5156_v48, %v5148_v9  ;;  %v6784_v36 = vld [vmem:[#allocation2 + $0x5d0] sm:$0xff] }
 0x455   :  { %6476 = vst [vmem:[#allocation2 + $0x638] sm:$0xff] %v6468_v57  ;;  %v15551_v25 = vpop.permute.xlu1 %4965  ;;  %v5277_v51 = vmul.f32 %v5240_v37, %v5232_v27  ;;  %v6528_v56 = vmul.f32 %v6512_v14, %v5232_v27  ;;  %5385 = vrot.lane.b32.xlu0 %v15067_v6, %s19055_s22  ;;  %10187 = vmatprep.subr.bf16.mxu0 %v10186_v32  ;;  %v19082_v14 = vld [vmem:[#allocation38_spill] sm:$0xff] }
 0x456   :  { %19080 = vst [vmem:[#allocation27_spill] sm:$0xff] %v15551_v25  ;;  %v4976_v63 = vsel %vm765_vm6, %v14867_v29, %v15551_v25  ;;  %v5328_v29 = vrot.slane %v14982_v24, %v19027_v44  ;;  %v6572_v37 = vrot.slane %v14968_v62, %v18957_v46  ;;  %v5412_v57 = vrot.slane %v19082_v14, %v19027_v44 }
 0x457   :  { %v5029_v17 = vmul.f32 %v5004_v3, %v4976_v63  ;;  %5469 = vrot.lane.b32.xlu1 %v15067_v6, %s19056_s4  ;;  %6536 = vst [vmem:[#allocation2 + $0x678] sm:$0xff] %v6528_v56  ;;  %v15574_v47 = vpop.permute.xlu0 %5049  ;;  %v10188_v5 = vpack.c.bf16 %v5277_v51, %v5193_v59  ;;  %v19081_v3 = vld [vmem:[#allocation10_spill] sm:$0xff]  ;;  %v6344_v32 = vmul.f32 %v6316_v23, %v4976_v63  ;;  %v19083_v63 = vld [vmem:[#allocation39_spill] sm:$0xff] }
 0x458   :  { %v5060_v9 = vsel %vm891_vm5, %v19081_v3, %v15574_v47  ;;  %v10272_v23 = vpack.c.bf16 %v6784_v36, %v6776_v28 }
 0x459   :  { %5037 = vst [vmem:[#allocation2 + $0x120] sm:$0xff] %v5029_v17  ;;  %v5294_v21 = vpop.permute.xlu1 %5293  ;;  %v5113_v59 = vmul.f32 %v5088_v7, %v5060_v9  ;;  %5553 = vrot.lane.b32.xlu0 %v15067_v6, %s19057_s7  ;;  %10189 = vmatpush1.bf16.msra.mxu0 %v10188_v5  ;;  %v5324_v17 = vrot.slane %v14982_v24, %v19051_v15 }
 0x45a   :  { %v5315_v48 = vsel %vm1381_vm10, %v5294_v21, %v14997_v34  ;;  %v6404_v34 = vmul.f32 %v6376_v58, %v5060_v9  ;;  %v5408_v58 = vrot.slane %v19082_v14, %v19051_v15 }
 0x45b   :  { %v6581_v27 = vmul.f32 %v6544_v42, %v5315_v48  ;;  %5637 = vrot.lane.b32.xlu1 %v15067_v6, %s19058_s21  ;;  %5121 = vst [vmem:[#allocation2 + $0x160] sm:$0xff] %v5113_v59  ;;  %v5378_v56 = vpop.permute.xlu0 %5377  ;;  %v5172_v6 = vrot.slane %v14920_v60, %v12963_v38  ;;  %v5362_v5 = vmul.f32 %v5328_v29, %v5315_v48  ;;  %v19086_v29 = vld [vmem:[#allocation29_spill] sm:$0xff] }
 0x45c   :  { %v10270_v3 = vpack.c.bf16 %v6404_v34, %v6344_v32  ;;  %v5399_v7 = vsel %vm19084_vm12, %v5378_v56, %v19083_v63  ;;  %v6496_v59 = vrot.slane %v14931_v10, %v19028_v30  ;;  %vm19097_vm12 = vmmov %vm19092_vm14 }
 0x45d   :  { %6589 = vst [vmem:[#allocation2 + $0x680] sm:$0xff] %v6581_v27  ;;  %v15593_v51 = vpop.permute.xlu1 %5307  ;;  %v5446_v28 = vmul.f32 %v5412_v57, %v5399_v7  ;;  %5731 = vrot.lane.b32.xlu0 %v15072_v1, %s19079_s11  ;;  %v5256_v57 = vrot.slane %v14929_v2, %v12963_v38 }
 0x45e   :  { %v5316_v42 = vsel %vm1381_vm10, %v15593_v51, %v5294_v21  ;;  %10271 = vmatprep.subr.bf16.mxu1 %v10270_v3  ;;  %v6436_v21 = vrot.slane %v14900_v41, %v19028_v30 }
 0x45f   :  { %v6588_v9 = vmul.f32 %v6572_v37, %v5316_v42  ;;  %5815 = vrot.lane.b32.xlu1 %v15072_v1, %s18886_s18  ;;  %10273 = vmatpush1.bf16.msra.mxu1 %v10272_v23  ;;  %v15613_v32 = vpop.permute.xlu0 %5391  ;;  %v10190_v27 = vpack.c.bf16 %v5446_v28, %v5362_v5  ;;  %v5361_v34 = vmul.f32 %v5324_v17, %v5316_v42  ;;  %v19089_v17 = vld [vmem:[#allocation19_spill] sm:$0xff] }
 0x460   :  { %v5400_v37 = vsel %vm19087_vm11, %v15613_v32, %v5378_v56  ;;  %v6814_v56 = vld [vmem:[%s18175_s8] sm:$0xf]  ;;  %v5496_v42 = vrot.slane %v19089_v17, %v19027_v44  ;;  %vm19100_vm11 = vcmp.lt.s32.totalorder %v10937_v40, 1  ;;  %s19193_s8 = smov 72  }
 0x461   :  { %6596 = vst [vmem:[#allocation2 + $0x6b8] sm:$0xff] %v6588_v9  ;;  %v15611_v36 = vpop.permute.xlu1 %5133  ;;  %v5445_v23 = vmul.f32 %v5408_v58, %v5400_v37  ;;  %10191 = vmatprep.subr.bf16.mxu0 %v10190_v27  ;;  %5899 = vrot.lane.b32.xlu0 %v15072_v1, %s18922_s23  ;;  %v5580_v27 = vrot.slane %v15035_v4, %v19027_v44  ;;  %v6800_v37 = vld [vmem:[#allocation2 + $0x650] sm:$0xff] }
 0x462   :  { %19085 = vst [vmem:[#allocation3_spill] sm:$0xff] %v15611_v36  ;;  %v5144_v48 = vsel %vm1073_vm7, %v19086_v29, %v15611_v36  ;;  %v6792_v29 = vld [vmem:[#allocation2 + $0x610] sm:$0xff] }
 0x463   :  { %v5197_v3 = vmul.f32 %v5172_v6, %v5144_v48  ;;  %5983 = vrot.lane.b32.xlu1 %v15072_v1, %s18918_s19  ;;  %v15630_v7 = vpop.permute.xlu0 %5217  ;;  %v10192_v5 = vpack.c.bf16 %v5445_v23, %v5361_v34  ;;  %v19090_v6 = vld [vmem:[#allocation126_spill] sm:$0xff]  ;;  %v6464_v9 = vmul.f32 %v6436_v21, %v5144_v48  ;;  %v5492_v21 = vrot.slane %v19089_v17, %v19051_v15  ;;  %v19094_v48 = vld [vmem:[#allocation115_spill] sm:$0xff] }
 0x464   :  { %19088 = vst [vmem:[#allocation25_spill] sm:$0xff] %v15630_v7  ;;  %v5228_v58 = vsel %vm1199_vm8, %v19090_v6, %v15630_v7 }
 0x465   :  { %5205 = vst [vmem:[#allocation2 + $0x1a0] sm:$0xff] %v5197_v3  ;;  %v5462_v63 = vpop.permute.xlu1 %5461  ;;  %v5281_v28 = vmul.f32 %v5256_v57, %v5228_v58  ;;  %v6524_v1 = vmul.f32 %v6496_v59, %v5228_v58  ;;  %10193 = vmatpush1.bf16.msra.mxu0 %v10192_v5  ;;  %v19091_v3 = vld [vmem:[#allocation125_spill] sm:$0xff]  ;;  %6817 = vperm.xlu0 %10625, %v6814_v56  }
 0x466   :  { %v5483_v34 = vsel %vm19092_vm14, %v5462_v63, %v19091_v3  ;;  %v10276_v59 = vpack.c.bf16 %v6800_v37, %v6792_v29  ;;  %v19096_v58 = vld [vmem:[#allocation113_spill] sm:$0xff]  ;;  %v5576_v56 = vrot.slane %v15035_v4, %v19051_v15  ;;  %vm19101_vm14 = vmmov %vm19095_vm15  ;;  %v19102_v29 = vld [vmem:[#allocation20_spill] sm:$0xff] }
 0x467   :  { %5289 = vst [vmem:[#allocation2 + $0x1e0] sm:$0xff] %v5281_v28  ;;  %v5546_v36 = vpop.permute.xlu0 %5545  ;;  %v10274_v25 = vpack.c.bf16 %v6524_v1, %v6464_v9  ;;  %v5530_v5 = vmul.f32 %v5496_v42, %v5483_v34  ;;  %v5664_v7 = vrot.slane %v19096_v58, %v19027_v44 }
 0x468   :  { %v5567_v57 = vsel %vm19095_vm15, %v5546_v36, %v19094_v48  ;;  %v19099_v48 = vld [vmem:[#allocation60_spill] sm:$0xff]  ;;  %vm19104_vm15 = vmmov %vm19100_vm11 }
 0x469   :  { %v15646_v23 = vpop.permute.xlu1 %5475  ;;  %v5614_v6 = vmul.f32 %v5580_v27, %v5567_v57  ;;  %10275 = vmatprep.subr.bf16.mxu1 %v10274_v25  ;;  %v6088_v25 = vrot.slane %v14705_v54, %v19102_v29 }
 0x46a   :  { %19093 = vst [vmem:[#allocation23_spill] sm:$0xff] %v15646_v23  ;;  %v5484_v9 = vsel %vm19097_vm12, %v15646_v23, %v5462_v63  ;;  %10277 = vmatpush1.bf16.msra.mxu1 %v10276_v59  ;;  %v5660_v63 = vrot.slane %v19096_v58, %v19051_v15  ;;  %v6703_v59 = vld [vmem:[#allocation2 + $0x348] sm:$0xff]  ;;  %vm19114_vm12 = vcmp.lt.s32.totalorder %v10937_v40, 121 }
 0x46b   :  { %v15660_v1 = vpop.permute.xlu0 %5559  ;;  %v10194_v3 = vpack.c.bf16 %v5614_v6, %v5530_v5  ;;  %v5529_v37 = vmul.f32 %v5492_v21, %v5484_v9  ;;  %v4680_v5 = vrot.slane %v14719_v35, %v18957_v46  ;;  %v5340_v21 = vrot.slane %v14982_v24, %v12963_v38 }
 0x46c   :  { %19098 = vst [vmem:[#allocation102_spill] sm:$0xff] %v15660_v1  ;;  %v5568_v27 = vsel %vm19101_vm14, %v15660_v1, %v5546_v36  ;;  %vm19117_vm14 = vmmov %vm19114_vm12 }
 0x46d   :  { %v5630_v28 = vpop.permute.xlu1 %5629  ;;  %v5613_v57 = vmul.f32 %v5576_v56, %v5568_v27  ;;  %10195 = vmatprep.subr.bf16.mxu0 %v10194_v3  ;;  %v6556_v56 = vrot.slane %v14968_v62, %v19028_v30  ;;  %v6148_v27 = vrot.slane %v14727_v52, %v19102_v29 }
 0x46e   :  { %v5651_v42 = vsel %vm19100_vm11, %v5630_v28, %v19099_v48  ;;  %vm19116_vm11 = vcmp.lt.s32.totalorder %v10937_v40, 127 }
 0x46f   :  { %v5698_v34 = vmul.f32 %v5664_v7, %v5651_v42  ;;  %v15674_v48 = vpop.permute.xlu0 %5643  ;;  %v10196_v23 = vpack.c.bf16 %v5613_v57, %v5529_v37  ;;  %v4764_v42 = vrot.slane %v14725_v22, %v18957_v46 }
 0x470   :  { %19103 = vst [vmem:[#allocation36_spill] sm:$0xff] %v15674_v48  ;;  %v5652_v7 = vsel %vm19104_vm15, %v15674_v48, %v5630_v28  ;;  %vm19118_vm15 = vmmov %vm19116_vm11 }
 0x471   :  { %v4634_v6 = vpop.permute.xlu1 %4633  ;;  %v10198_v17 = vpack.c.bf16 %v6703_v59, %v5698_v34  ;;  %v5697_v3 = vmul.f32 %v5660_v63, %v5652_v7  ;;  %10197 = vmatpush1.bf16.msra.mxu0 %v10196_v23  ;;  %v4760_v34 = vrot.slane %v14725_v22, %v19102_v29  ;;  %v19106_v59 = vld [vmem:[#allocation12_spill] sm:$0xff]  ;;  %v19107_v23 = vld [vmem:[#allocation13_spill] sm:$0xff] }
 0x472   :  { %v4637_v36 = vsel %vm150_vm2, %v4634_v6, %v15285_v55  ;;  %v6702_v55 = vld [vmem:[#allocation2 + $0x340] sm:$0xff] }
 0x473   :  { %v6107_v9 = vmul.f32 %v6088_v25, %v4637_v36  ;;  %10199 = vmatprep.subr.bf16.mxu0 %v10198_v17  ;;  %v4718_v28 = vpop.permute.xlu0 %4717  ;;  %v6140_v25 = vrot.slane %v14727_v52, %v12963_v38  ;;  %v10200_v57 = vpack.c.bf16 %v6702_v55, %v5697_v3  ;;  %v4696_v63 = vmul.f32 %v4680_v5, %v4637_v36 }
 0x474   :  { %v4721_v17 = vsel %vm275_vm1, %v4718_v28, %v19107_v23  ;;  %v4676_v5 = vrot.slane %v14719_v35, %v19102_v29  ;;  %v6080_v36 = vrot.slane %v14705_v54, %v12963_v38 }
 0x475   :  { %6115 = vst [vmem:[#allocation2 + $0x4b0] sm:$0xff] %v6107_v9  ;;  %v15690_v37 = vpop.permute.xlu1 %5301  ;;  %v19108_v9 = vld [vmem:[#allocation124_spill] sm:$0xff]  ;;  %v4780_v58 = vmul.f32 %v4764_v42, %v4721_v17  ;;  %v6167_v1 = vmul.f32 %v6148_v27, %v4721_v17  ;;  %10201 = vmatpush1.bf16.msra.mxu0 %v10200_v57 }
 0x476   :  { %19105 = vst [vmem:[#allocation99_spill] sm:$0xff] %v15690_v37  ;;  %v5312_v7 = vsel %vm1381_vm10, %v19106_v59, %v15690_v37  ;;  %v6144_v30 = vrot.slane %v14727_v52, %v19108_v9  ;;  %v6084_v3 = vrot.slane %v14705_v54, %v19108_v9  ;;  %v19109_v52 = vld [vmem:[#allocation15_spill] sm:$0xff] }
 0x477   :  { %v5365_v62 = vmul.f32 %v5340_v21, %v5312_v7  ;;  %v6584_v48 = vmul.f32 %v6556_v56, %v5312_v7  ;;  %6175 = vst [vmem:[#allocation2 + $0x4f0] sm:$0xff] %v6167_v1  ;;  %v4632_v59 = vpop.permute.xlu0 %4631  ;;  %v5840_v21 = vrot.slane %v19109_v52, %v19027_v44  ;;  %v6808_v56 = vld [vmem:[#allocation2 + $0x690] sm:$0xff]  ;;  %v10330_v42 = vpack.c.bf16 %v4780_v58, %v4696_v63  ;;  %v19111_v7 = vld [vmem:[#allocation43_spill] sm:$0xff] }
 0x478   :  { %v4638_v54 = vsel %vm150_vm2, %v4632_v59, %v4634_v6 }
 0x479   :  { %5373 = vst [vmem:[#allocation2 + $0x220] sm:$0xff] %v5365_v62  ;;  %v4716_v55 = vpop.permute.xlu1 %4715  ;;  %6948 = vmatprep.subr.mxu1 %v6584_v48  ;;  %v15725_v62 = vsel %vm150_vm2, %v15423_v19, %v4632_v59  ;;  %v6106_v17 = vmul.f32 %v6084_v3, %v4638_v54 }
 0x47a   :  { %v4722_v27 = vsel %vm275_vm1, %v4716_v55, %v4718_v28  ;;  %v15718_v57 = vsel %vm275_vm1, %v15446_v43, %v4716_v55  ;;  %6949 = vmatpush1.msra.mxu1 %v6808_v56  ;;  %v19110_v28 = vld [vmem:[#allocation116_spill] sm:$0xff]  ;;  %v4695_v43 = vmul.f32 %v4676_v5, %v4638_v54  ;;  %v6105_v23 = vmul.f32 %v6080_v36, %v15725_v62  ;;  %v19112_v55 = vld [vmem:[#allocation114_spill] sm:$0xff] }
 0x47b   :  { %v4779_v1 = vmul.f32 %v4760_v34, %v4722_v27  ;;  %v6165_v58 = vmul.f32 %v6140_v25, %v15718_v57  ;;  %v6166_v48 = vmul.f32 %v6144_v30, %v4722_v27  ;;  %v5756_v63 = vrot.slane %v19110_v28, %v19027_v44  ;;  %6961 = vmatmul.mubr.f32.vlgmr.msra.gmra.mrb[4].mxu1 %v19111_v7  ;;  %v5724_v19 = vpop.permute.xlu0 %5723  ;;  %v19113_v30 = vld [vmem:[#allocation26_spill] sm:$0xff]  ;;  %v19115_v25 = vld [vmem:[#allocation120_spill] sm:$0xff] }
 0x47c   :  { %10331 = vmatprep.subr.bf16.mxu1 %v10330_v42  ;;  %9799 = vmatprep.mubr.msk.f32.mxu1 %vm6822_vm9, %v19112_v55  ;;  %6113 = vst [vmem:[#allocation2 + $0x4a0] sm:$0xff] %v6105_v23  ;;  %6114 = vst [vmem:[#allocation2 + $0x4a8] sm:$0xff] %v6106_v17  ;;  %v5742_v5 = vsel %vm19116_vm11, %v5724_v19, %v19115_v25  ;;  %v5836_v56 = vrot.slane %v19109_v52, %v19051_v15 }
 0x47d   :  { %6173 = vst [vmem:[#allocation2 + $0x4e0] sm:$0xff] %v6165_v58  ;;  %6174 = vst [vmem:[#allocation2 + $0x4e8] sm:$0xff] %v6166_v48  ;;  %v5808_v6 = vpop.permute.xlu1 %5807  ;;  %v10332_v36 = vpack.c.bf16 %v4779_v1, %v4695_v43  ;;  %v5790_v59 = vmul.f32 %v5756_v63, %v5742_v5  ;;  %v5752_v42 = vrot.slane %v19110_v28, %v19051_v15 }
 0x47e   :  { %v5826_v34 = vsel %vm19114_vm12, %v5808_v6, %v19113_v30  ;;  %v4932_v1 = vrot.slane %v14793_v13, %v18957_v46  ;;  %v6268_v63 = vrot.slane %v14795_v33, %v19102_v29  ;;  %v4848_v23 = vrot.slane %v14784_v11, %v18957_v46 }
 0x47f   :  { %v5874_v3 = vmul.f32 %v5840_v21, %v5826_v34  ;;  %10333 = vmatpush1.bf16.msra.mxu1 %v10332_v36  ;;  %v15746_v54 = vpop.permute.xlu0 %5721  ;;  %v6208_v17 = vrot.slane %v14764_v31, %v19102_v29  ;;  %v6260_v36 = vrot.slane %v14795_v33, %v12963_v38  ;;  %vm19124_vm12 = vcmp.lt.s32.totalorder %v10937_v40, 120 }
 0x480   :  { %v5743_v21 = vsel %vm19118_vm15, %v15746_v54, %v5724_v19  ;;  %v4928_v19 = vrot.slane %v14793_v13, %v19102_v29  ;;  %vm19125_vm11 = vmmov %vm19124_vm12 }
 0x481   :  { %v15744_v27 = vpop.permute.xlu1 %5805  ;;  %v10202_v58 = vpack.c.bf16 %v5874_v3, %v5790_v59  ;;  %v5789_v43 = vmul.f32 %v5752_v42, %v5743_v21  ;;  %v6264_v3 = vrot.slane %v14795_v33, %v19108_v9  ;;  %v6008_v33 = vrot.slane %v15360_v8, %v19027_v44 }
 0x482   :  { %v5827_v48 = vsel %vm19117_vm14, %v15744_v27, %v5808_v6  ;;  %vm19130_vm14 = vcmp.lt.s32.totalorder %v10937_v40, 9 }
 0x483   :  { %v5873_v7 = vmul.f32 %v5836_v56, %v5827_v48  ;;  %10203 = vmatprep.subr.bf16.mxu0 %v10202_v58  ;;  %v4802_v30 = vpop.permute.xlu0 %4801  ;;  %v6200_v48 = vrot.slane %v14764_v31, %v12963_v38  ;;  %vm19132_vm15 = vmmov %vm19130_vm14 }
 0x484   :  { %v4805_v5 = vsel %vm457_vm3, %v4802_v30, %v15383_v16  ;;  %v6204_v16 = vrot.slane %v14764_v31, %v19108_v9 }
 0x485   :  { %v4886_v6 = vpop.permute.xlu1 %4885  ;;  %v10204_v34 = vpack.c.bf16 %v5873_v7, %v5789_v43  ;;  %v4864_v42 = vmul.f32 %v4848_v23, %v4805_v5  ;;  %v15776_v58 = vmul.f32 %v6208_v17, %v4805_v5 }
 0x486   :  { %v4889_v25 = vsel %vm583_vm4, %v4886_v6, %v15403_v39  ;;  %v4844_v39 = vrot.slane %v14784_v11, %v19102_v29 }
 0x487   :  { %v4948_v59 = vmul.f32 %v4932_v1, %v4889_v25  ;;  %v15774_v56 = vmul.f32 %v6268_v63, %v4889_v25  ;;  %19120 = vst [vmem:[#allocation24_spill] sm:$0xff] %v15776_v58  ;;  %10205 = vmatpush1.bf16.msra.mxu0 %v10204_v34  ;;  %v4800_v7 = vpop.permute.xlu0 %4799  ;;  %v5184_v58 = vrot.slane %v14920_v60, %v18957_v46 }
 0x488   :  { %v4806_v31 = vsel %vm457_vm3, %v4800_v7, %v4802_v30  ;;  %v15800_v17 = vsel %vm457_vm3, %v15487_v45, %v4800_v7  ;;  %v19122_v45 = vld [vmem:[#allocation22_spill] sm:$0xff] }
 0x489   :  { %19119 = vst [vmem:[#allocation28_spill] sm:$0xff] %v15774_v56  ;;  %v4884_v21 = vpop.permute.xlu1 %4883  ;;  %v10334_v1 = vpack.c.bf16 %v4948_v59, %v4864_v42  ;;  %v19121_v59 = vld [vmem:[#allocation121_spill] sm:$0xff]  ;;  %v4863_v42 = vmul.f32 %v4844_v39, %v4806_v31 }
 0x48a   :  { %v4890_v43 = vsel %vm583_vm4, %v4884_v21, %v4886_v6  ;;  %v15793_v23 = vsel %vm583_vm4, %v15510_v53, %v4884_v21  ;;  %v5924_v6 = vrot.slane %v19121_v59, %v19027_v44  ;;  %v6225_v53 = vmul.f32 %v6200_v48, %v15800_v17 }
 0x48b   :  { %v4947_v34 = vmul.f32 %v4928_v19, %v4890_v43  ;;  %v6285_v25 = vmul.f32 %v6260_v36, %v15793_v23  ;;  %v6286_v5 = vmul.f32 %v6264_v3, %v4890_v43  ;;  %10335 = vmatprep.subr.bf16.mxu1 %v10334_v1  ;;  %v6226_v21 = vmul.f32 %v6204_v16, %v4806_v31  ;;  %v5892_v63 = vpop.permute.xlu0 %5891  ;;  %v19123_v36 = vld [vmem:[#allocation17_spill] sm:$0xff] }
 0x48c   :  { %6233 = vst [vmem:[#allocation2 + $0x520] sm:$0xff] %v6225_v53  ;;  %v5910_v3 = vsel %vm19124_vm12, %v5892_v63, %v19123_v36  ;;  %v6004_v48 = vrot.slane %v15360_v8, %v19051_v15  ;;  %v5920_v16 = vrot.slane %v19121_v59, %v19051_v15  ;;  %v5016_v53 = vrot.slane %v14852_v26, %v18957_v46  ;;  %v6766_v15 = vld [vmem:[#allocation2 + $0x540] sm:$0xff] }
 0x48d   :  { %6293 = vst [vmem:[#allocation2 + $0x560] sm:$0xff] %v6285_v25  ;;  %6294 = vst [vmem:[#allocation2 + $0x568] sm:$0xff] %v6286_v5  ;;  %v5976_v30 = vpop.permute.xlu1 %5975  ;;  %v10336_v7 = vpack.c.bf16 %v4947_v34, %v4863_v42  ;;  %v5958_v39 = vmul.f32 %v5924_v6, %v5910_v3  ;;  %v5100_v42 = vrot.slane %v14861_v61, %v18957_v46  ;;  %vm19137_vm12 = vcmp.lt.s32.totalorder %v10937_v40, 7 }
 0x48e   :  { %6234 = vst [vmem:[#allocation2 + $0x528] sm:$0xff] %v6226_v21  ;;  %v5994_v19 = vsel %vm2621_vm13, %v5976_v30, %v19122_v45  ;;  %v6743_v21 = vld [vmem:[#allocation2 + $0x488] sm:$0xff] }
 0x48f   :  { %v6042_v1 = vmul.f32 %v6008_v33, %v5994_v19  ;;  %10337 = vmatpush1.bf16.msra.mxu1 %v10336_v7  ;;  %v15818_v31 = vpop.permute.xlu0 %5889  ;;  %v6751_v45 = vld [vmem:[#allocation2 + $0x4c8] sm:$0xff] }
 0x490   :  { %v5911_v33 = vsel %vm19125_vm11, %v15818_v31, %v5892_v63  ;;  %v10210_v7 = vpack.c.bf16 %v6751_v45, %v6743_v21  ;;  %vm19139_vm11 = vcmp.lt.s32.totalorder %v10937_v40, 8 }
 0x491   :  { %v15816_v43 = vpop.permute.xlu1 %5973  ;;  %v10206_v25 = vpack.c.bf16 %v6042_v1, %v5958_v39  ;;  %v5957_v6 = vmul.f32 %v5920_v16, %v5911_v33  ;;  %v6742_v1 = vld [vmem:[#allocation2 + $0x480] sm:$0xff]  ;;  %v6759_v33 = vld [vmem:[#allocation2 + $0x508] sm:$0xff] }
 0x492   :  { %v5995_v5 = vsel %vm2621_vm13, %v15816_v43, %v5976_v30  ;;  %v6750_v39 = vld [vmem:[#allocation2 + $0x4c0] sm:$0xff] }
 0x493   :  { %v6041_v34 = vmul.f32 %v6004_v48, %v5995_v5  ;;  %10207 = vmatprep.subr.bf16.mxu0 %v10206_v25  ;;  %v4970_v36 = vpop.permute.xlu0 %4969  ;;  %v5096_v25 = vrot.slane %v14861_v61, %v19102_v29  ;;  %v5012_v5 = vrot.slane %v14852_v26, %v19102_v29 }
 0x494   :  { %v15838_v63 = vsel %vm765_vm6, %v4970_v36, %v15467_v49  ;;  %v6324_v49 = vrot.slane %v14832_v12, %v19108_v9 }
 0x495   :  { %v5054_v19 = vpop.permute.xlu1 %5053  ;;  %v10208_v3 = vpack.c.bf16 %v6041_v34, %v5957_v6  ;;  %19127 = vst [vmem:[#allocation128_spill] sm:$0xff] %v15838_v63  ;;  %v5032_v16 = vmul.f32 %v5016_v53, %v15838_v63  ;;  %v6767_v34 = vld [vmem:[#allocation2 + $0x548] sm:$0xff]  ;;  %v10212_v53 = vpack.c.bf16 %v6750_v39, %v6742_v1  ;;  %v6758_v63 = vld [vmem:[#allocation2 + $0x500] sm:$0xff] }
 0x496   :  { %v15833_v30 = vsel %vm891_vm5, %v5054_v19, %v15489_v0  ;;  %v6384_v0 = vrot.slane %v14863_v20, %v19108_v9  ;;  %v10214_v56 = vpack.c.bf16 %v6767_v34, %v6759_v33  ;;  %v6775_v1 = vld [vmem:[#allocation2 + $0x588] sm:$0xff] }
 0x497   :  { %19126 = vst [vmem:[#allocation32_spill] sm:$0xff] %v15833_v30  ;;  %v5116_v48 = vmul.f32 %v5100_v42, %v15833_v30  ;;  %10209 = vmatpush1.bf16.msra.mxu0 %v10208_v3  ;;  %v15852_v42 = vpop.permute.xlu0 %4967  ;;  %v6783_v39 = vld [vmem:[#allocation2 + $0x5c8] sm:$0xff] }
 0x498   :  { %10211 = vmatprep.subr.bf16.mxu0 %v10210_v7  ;;  %v4974_v3 = vsel %vm765_vm6, %v15852_v42, %v4970_v36  ;;  %v5268_v7 = vrot.slane %v14929_v2, %v18957_v46  ;;  %v6791_v34 = vld [vmem:[#allocation2 + $0x608] sm:$0xff] }
 0x499   :  { %v15850_v6 = vpop.permute.xlu1 %5051  ;;  %v10338_v21 = vpack.c.bf16 %v5116_v48, %v5032_v16  ;;  %v5031_v16 = vmul.f32 %v5012_v5, %v4974_v3  ;;  %v10218_v5 = vpack.c.bf16 %v6783_v39, %v6775_v1 }
 0x49a   :  { %v5058_v45 = vsel %vm891_vm5, %v15850_v6, %v5054_v19  ;;  %v15866_v19 = vmul.f32 %v6324_v49, %v4974_v3  ;;  %v6782_v49 = vld [vmem:[#allocation2 + $0x5c0] sm:$0xff] }
 0x49b   :  { %v5115_v44 = vmul.f32 %v5096_v25, %v5058_v45  ;;  %10213 = vmatpush1.bf16.msra.mxu0 %v10212_v53  ;;  %v15864_v48 = vmul.f32 %v6384_v0, %v5058_v45  ;;  %10339 = vmatprep.subr.bf16.mxu1 %v10338_v21  ;;  %v5138_v30 = vpop.permute.xlu0 %5137  ;;  %v10216_v25 = vpack.c.bf16 %v6766_v15, %v6758_v63  ;;  %v6799_v53 = vld [vmem:[#allocation2 + $0x648] sm:$0xff]  ;;  %v6774_v63 = vld [vmem:[#allocation2 + $0x580] sm:$0xff] }
 0x49c   :  { %19129 = vst [vmem:[#allocation42_spill] sm:$0xff] %v15866_v19  ;;  %10215 = vmatprep.subr.bf16.mxu0 %v10214_v56  ;;  %v15876_v33 = vsel %vm1073_vm7, %v5138_v30, %v15531_v50  ;;  %v5264_v15 = vrot.slane %v14929_v2, %v19102_v29  ;;  %v5180_v50 = vrot.slane %v14920_v60, %v19102_v29  ;;  %v6798_v45 = vld [vmem:[#allocation2 + $0x640] sm:$0xff] }
 0x49d   :  { %19128 = vst [vmem:[#allocation41_spill] sm:$0xff] %v15864_v48  ;;  %v5222_v36 = vpop.permute.xlu1 %5221  ;;  %v10340_v0 = vpack.c.bf16 %v5115_v44, %v5031_v16  ;;  %v5200_v56 = vmul.f32 %v5184_v58, %v15876_v33  ;;  %v6444_v44 = vrot.slane %v14900_v41, %v19108_v9  ;;  %v10222_v39 = vpack.c.bf16 %v6799_v53, %v6791_v34 }
 0x49e   :  { %v15871_v37 = vsel %vm1199_vm8, %v5222_v36, %v15553_v18  ;;  %v6504_v18 = vrot.slane %v14931_v10, %v19108_v9  ;;  %v4756_v16 = vrot.slane %v14725_v22, %v19108_v9  ;;  %v5352_v22 = vrot.slane %v14982_v24, %v18957_v46 }
 0x49f   :  { %v5284_v21 = vmul.f32 %v5268_v7, %v15871_v37  ;;  %10217 = vmatpush1.bf16.msra.mxu0 %v10216_v25  ;;  %10341 = vmatpush1.bf16.msra.mxu1 %v10340_v0  ;;  %v15892_v3 = vpop.permute.xlu0 %5135  ;;  %v10220_v7 = vpack.c.bf16 %v6782_v49, %v6774_v63  ;;  %v4672_v25 = vrot.slane %v14719_v35, %v19108_v9 }
 0x4a0   :  { %10219 = vmatprep.subr.bf16.mxu0 %v10218_v5  ;;  %v5142_v5 = vsel %vm1073_vm7, %v15892_v3, %v5138_v30  ;;  %v5436_v49 = vrot.slane %v19082_v14, %v18957_v46  ;;  %v4924_v35 = vrot.slane %v14793_v13, %v19108_v9  ;;  %v6790_v30 = vld [vmem:[#allocation2 + $0x600] sm:$0xff]  ;;  %v5348_v63 = vrot.slane %v14982_v24, %v19102_v29 }
 0x4a1   :  { %v15890_v58 = vpop.permute.xlu1 %5219  ;;  %v10342_v1 = vpack.c.bf16 %v5284_v21, %v5200_v56  ;;  %v5199_v34 = vmul.f32 %v5180_v50, %v5142_v5  ;;  %v15914_v53 = vmul.f32 %v6444_v44, %v5142_v5  ;;  %v5092_v21 = vrot.slane %v14861_v61, %v19108_v9 }
 0x4a2   :  { %v5226_v0 = vsel %vm1199_vm8, %v15890_v58, %v5222_v36  ;;  %v4840_v36 = vrot.slane %v14784_v11, %v19108_v9  ;;  %v10224_v13 = vpack.c.bf16 %v6798_v45, %v6790_v30  ;;  %v4778_v11 = vmul.f32 %v4756_v16, %v15718_v57 }
 0x4a3   :  { %v5283_v19 = vmul.f32 %v5264_v15, %v5226_v0  ;;  %v15904_v48 = vmul.f32 %v6504_v18, %v5226_v0  ;;  %10221 = vmatpush1.bf16.msra.mxu0 %v10220_v7  ;;  %10343 = vmatprep.subr.bf16.mxu1 %v10342_v1  ;;  %v5306_v15 = vpop.permute.xlu0 %5305  ;;  %v5432_v18 = vrot.slane %v19082_v14, %v19102_v29 }
 0x4a4   :  { %10223 = vmatprep.subr.bf16.mxu0 %v10222_v39  ;;  %v15929_v61 = vsel %vm1381_vm10, %v5306_v15, %v15593_v51  ;;  %v4694_v7 = vmul.f32 %v4672_v25, %v15725_v62  ;;  %v6807_v39 = vld [vmem:[#allocation2 + $0x688] sm:$0xff]  ;;  %v4946_v45 = vmul.f32 %v4924_v35, %v15793_v23  ;;  %v5008_v16 = vrot.slane %v14852_v26, %v19108_v9  ;;  %v6806_v35 = vld [vmem:[#allocation2 + $0x680] sm:$0xff] }
 0x4a5   :  { %v5390_v56 = vpop.permute.xlu1 %5389  ;;  %v10344_v44 = vpack.c.bf16 %v5283_v19, %v5199_v34  ;;  %v5368_v0 = vmul.f32 %v5352_v22, %v15929_v61  ;;  %v5260_v51 = vrot.slane %v14929_v2, %v19108_v9  ;;  %v5176_v62 = vrot.slane %v14920_v60, %v19108_v9  ;;  %v19131_v2 = vld [vmem:[#allocation27_spill] sm:$0xff] }
 0x4a6   :  { %v5393_v50 = vsel %vm19130_vm14, %v5390_v56, %v15613_v32  ;;  %v4862_v32 = vmul.f32 %v4840_v36, %v15800_v17  ;;  %v5604_v23 = vrot.slane %v15035_v4, %v18957_v46  ;;  %v6610_v17 = vld [vmem:[#allocation2 + $0x60] sm:$0xff]  ;;  %v15953_v26 = vsel %vm891_vm5, %v15574_v47, %v15850_v6  ;;  %vm19140_vm14 = vmmov %vm19137_vm12 }
 0x4a7   :  { %v5452_v1 = vmul.f32 %v5436_v49, %v5393_v50  ;;  %10225 = vmatpush1.bf16.msra.mxu0 %v10224_v13  ;;  %10345 = vmatpush1.bf16.msra.mxu1 %v10344_v44  ;;  %v15945_v25 = vpop.permute.xlu0 %5303  ;;  %v15959_v60 = vsel %vm765_vm6, %v19131_v2, %v15852_v42  ;;  %v19133_v6 = vld [vmem:[#allocation19_spill] sm:$0xff]  ;;  %v10278_v30 = vpack.c.bf16 %v4778_v11, %v4694_v7 }
 0x4a8   :  { %6877 = vmatprep.subr.mxu0 %v6807_v39  ;;  %v15967_v22 = vsel %vm1381_vm10, %v15945_v25, %v5306_v15  ;;  %v5520_v34 = vrot.slane %v19133_v6, %v18957_v46  ;;  %v6602_v42 = vld [vmem:[#allocation2 + $0x20] sm:$0xff]  ;;  %v5600_v13 = vrot.slane %v15035_v4, %v19102_v29  ;;  %v5030_v50 = vmul.f32 %v5008_v16, %v15959_v60 }
 0x4a9   :  { %v15943_v19 = vpop.permute.xlu1 %5387  ;;  %v10346_v5 = vpack.c.bf16 %v5452_v1, %v5368_v0  ;;  %v5367_v47 = vmul.f32 %v5348_v63, %v15967_v22  ;;  %v10280_v15 = vpack.c.bf16 %v6610_v17, %v6602_v42  ;;  %v5114_v63 = vmul.f32 %v5092_v21, %v15953_v26  ;;  %v6626_v1 = vld [vmem:[#allocation2 + $0xe0] sm:$0xff]  ;;  %v19134_v0 = vld [vmem:[#allocation25_spill] sm:$0xff] }
 0x4aa   :  { %v5394_v49 = vsel %vm19132_vm15, %v15943_v19, %v5390_v56  ;;  %v15977_v56 = vld [vmem:[%s18174_s5] sm:$0xff]  ;;  %v15988_v39 = vsel %vm1199_vm8, %v19134_v0, %v15890_v58  ;;  %v5516_v58 = vrot.slane %v19133_v6, %v19102_v29  ;;  %vm19141_vm15 = vmmov %vm19139_vm11 }
 0x4ab   :  { %v5451_v36 = vmul.f32 %v5432_v18, %v5394_v49  ;;  %6878 = vmatpush1.msra.mxu0 %v6806_v35  ;;  %10347 = vmatprep.subr.bf16.mxu1 %v10346_v5  ;;  %v10282_v18 = vpack.c.bf16 %v4946_v45, %v4862_v32  ;;  %v5474_v11 = vpop.permute.xlu0 %5473  ;;  %v19135_v45 = vld [vmem:[#allocation3_spill] sm:$0xff]  ;;  %v19136_v32 = vld [vmem:[#allocation102_spill] sm:$0xff]  ;;  %v10286_v42 = vpack.c.bf16 %v5114_v63, %v5030_v50 }
 0x4ac   :  { %6890 = vmatmul.mubr.f32.vlgmr.msra.gmra.mrb[4].mxu0 %v15977_v56  ;;  %10279 = vmatprep.subr.bf16.mxu0 %v10278_v30  ;;  %v15994_v21 = vsel %vm1073_vm7, %v19135_v45, %v15892_v3  ;;  %v19138_v5 = vld [vmem:[#allocation23_spill] sm:$0xff]  ;;  %v5282_v3 = vmul.f32 %v5260_v51, %v15988_v39 }
 0x4ad   :  { %v5558_v44 = vpop.permute.xlu1 %5557  ;;  %v10348_v7 = vpack.c.bf16 %v5451_v36, %v5367_v47  ;;  %9798 = vmatprep.mubr.msk.f32.mxu0 %vm6822_vm9, %v19112_v55  ;;  %v5477_v55 = vsel %vm19139_vm11, %v5474_v11, %v19138_v5  ;;  %10281 = vmatpush1.bf16.msra.mxu0 %v10280_v15  ;;  %v6618_v49 = vld [vmem:[#allocation2 + $0xa0] sm:$0xff]  ;;  %v5198_v36 = vmul.f32 %v5176_v62, %v15994_v21 }
 0x4ae   :  { %v5561_v16 = vsel %vm19137_vm12, %v5558_v44, %v19136_v32  ;;  %v5536_v2 = vmul.f32 %v5520_v34, %v5477_v55  ;;  %10283 = vmatprep.subr.bf16.mxu0 %v10282_v18  ;;  %v10284_v35 = vpack.c.bf16 %v6626_v1, %v6618_v49  ;;  %v6642_v15 = vld [vmem:[#allocation2 + $0x160] sm:$0xff]  ;;  %vm19144_vm12 = vcmp.lt.s32.totalorder %v10937_v40, 1 }
 0x4af   :  { %v5620_v17 = vmul.f32 %v5604_v23, %v5561_v16  ;;  %10349 = vmatpush1.bf16.msra.mxu1 %v10348_v7  ;;  %v16008_v30 = vpop.permute.xlu0 %5471  ;;  %v6634_v62 = vld [vmem:[#allocation2 + $0x120] sm:$0xff]  ;;  %v19142_v7 = vld [vmem:[#allocation113_spill] sm:$0xff]  ;;  %vm19145_vm11 = vmmov %vm19144_vm12 }
 0x4b0   :  { %v5478_v34 = vsel %vm19141_vm15, %v16008_v30, %v5474_v11  ;;  %v5684_v1 = vrot.slane %v19142_v7, %v19102_v29  ;;  %v5688_v63 = vrot.slane %v19142_v7, %v18957_v46  ;;  %v10288_v50 = vpack.c.bf16 %v6642_v15, %v6634_v62  ;;  %v6658_v16 = vld [vmem:[#allocation2 + $0x1e0] sm:$0xff]  ;;  %v19143_v11 = vld [vmem:[#allocation36_spill] sm:$0xff] }
 0x4b1   :  { %v16006_v47 = vpop.permute.xlu1 %5555  ;;  %v10350_v0 = vpack.c.bf16 %v5620_v17, %v5536_v2  ;;  %10285 = vmatpush1.bf16.msra.mxu0 %v10284_v35  ;;  %v5535_v51 = vmul.f32 %v5516_v58, %v5478_v34  ;;  %v5864_v17 = vrot.slane %v19109_v52, %v18957_v46  ;;  %v6650_v2 = vld [vmem:[#allocation2 + $0x1a0] sm:$0xff]  ;;  %v5780_v35 = vrot.slane %v19110_v28, %v18957_v46 }
 0x4b2   :  { %v5562_v23 = vsel %vm19140_vm14, %v16006_v47, %v5558_v44  ;;  %10287 = vmatprep.subr.bf16.mxu0 %v10286_v42  ;;  %v10290_v44 = vpack.c.bf16 %v5282_v3, %v5198_v36  ;;  %v10292_v3 = vpack.c.bf16 %v6658_v16, %v6650_v2  ;;  %v6709_v42 = vld [vmem:[#allocation2 + $0x378] sm:$0xff]  ;;  %vm19146_vm14 = vcmp.lt.s32.totalorder %v10937_v40, 121 }
 0x4b3   :  { %v5619_v18 = vmul.f32 %v5600_v13, %v5562_v23  ;;  %10351 = vmatprep.subr.bf16.mxu1 %v10350_v0  ;;  %v5642_v5 = vpop.permute.xlu0 %5641  ;;  %v6708_v0 = vld [vmem:[#allocation2 + $0x370] sm:$0xff]  ;;  %vm19147_vm15 = vcmp.lt.s32.totalorder %v10937_v40, 127 }
 0x4b4   :  { %v5645_v13 = vsel %vm19144_vm12, %v5642_v5, %v19143_v11  ;;  %vm19148_vm12 = vmmov %vm19146_vm14  ;;  %v6032_v11 = vrot.slane %v15360_v8, %v18957_v46 }
 0x4b5   :  { %v16020_v45 = vpop.permute.xlu1 %5639  ;;  %v10352_v32 = vpack.c.bf16 %v5619_v18, %v5535_v51  ;;  %10289 = vmatpush1.bf16.msra.mxu0 %v10288_v50  ;;  %v5704_v49 = vmul.f32 %v5688_v63, %v5645_v13  ;;  %v5776_v50 = vrot.slane %v19110_v28, %v19102_v29 }
 0x4b6   :  { %v5646_v55 = vsel %vm19145_vm11, %v16020_v45, %v5642_v5  ;;  %10291 = vmatprep.subr.bf16.mxu0 %v10290_v44  ;;  %vm19149_vm11 = vmmov %vm19147_vm15 }
 0x4b7   :  { %10353 = vmatpush1.bf16.msra.mxu1 %v10352_v32  ;;  %v5703_v58 = vmul.f32 %v5684_v1, %v5646_v55  ;;  %v5736_v23 = vpop.permute.xlu0 %5735  ;;  %v10354_v34 = vpack.c.bf16 %v6709_v42, %v5704_v49  ;;  %v5860_v1 = vrot.slane %v19109_v52, %v19102_v29  ;;  %v5948_v55 = vrot.slane %v19121_v59, %v18957_v46  ;;  %v6757_v42 = vld [vmem:[#allocation2 + $0x4f8] sm:$0xff] }
 0x4b8   :  { %v5744_v62 = vsel %vm19147_vm15, %v5736_v23, %v15746_v54 }
 0x4b9   :  { %v5820_v36 = vpop.permute.xlu1 %5819  ;;  %10293 = vmatpush1.bf16.msra.mxu0 %v10292_v3  ;;  %v10356_v18 = vpack.c.bf16 %v6708_v0, %v5703_v58  ;;  %v5796_v63 = vmul.f32 %v5780_v35, %v5744_v62  ;;  %10355 = vmatprep.subr.bf16.mxu1 %v10354_v34  ;;  %v16064_v0 = vld [vmem:[#allocation2 + $0x578] sm:$0xff] }
 0x4ba   :  { %v5828_v15 = vsel %vm19146_vm14, %v5820_v36, %v15744_v27  ;;  %vm19150_vm14 = vcmp.lt.s32.totalorder %v10937_v40, 120 }
 0x4bb   :  { %v5880_v51 = vmul.f32 %v5864_v17, %v5828_v15  ;;  %10357 = vmatpush1.bf16.msra.mxu1 %v10356_v18  ;;  %v16047_v32 = vpop.permute.xlu0 %5733  ;;  %vm19151_vm15 = vmmov %vm19150_vm14  ;;  %v6781_v18 = vld [vmem:[#allocation2 + $0x5b8] sm:$0xff]  ;;  %v19165_v15 = vld [vmem:[#allocation32_spill] sm:$0xff] }
 0x4bc   :  { %v5737_v54 = vsel %vm19149_vm11, %v16047_v32, %v5736_v23 }
 0x4bd   :  { %v16042_v44 = vpop.permute.xlu1 %5817  ;;  %v10358_v16 = vpack.c.bf16 %v5880_v51, %v5796_v63  ;;  %v5795_v13 = vmul.f32 %v5776_v50, %v5737_v54  ;;  %v5344_v51 = vrot.slane %v14982_v24, %v19108_v9  ;;  %v16080_v63 = vld [vmem:[#allocation2 + $0x538] sm:$0xff] }
 0x4be   :  { %v5821_v27 = vsel %vm19148_vm12, %v16042_v44, %v5820_v36  ;;  %v6028_v36 = vrot.slane %v15360_v8, %v19102_v29  ;;  %v10370_v54 = vpack.c.bf16 %v16064_v0, %v16080_v63  ;;  %v6756_v63 = vld [vmem:[#allocation2 + $0x4f0] sm:$0xff]  ;;  %vm19153_vm12 = vcmp.lt.s32.totalorder %v10937_v40, 9 }
 0x4bf   :  { %v5879_v5 = vmul.f32 %v5860_v1, %v5821_v27  ;;  %10359 = vmatprep.subr.bf16.mxu1 %v10358_v16  ;;  %v5904_v58 = vpop.permute.xlu0 %5903  ;;  %v6749_v1 = vld [vmem:[#allocation2 + $0x4b8] sm:$0xff]  ;;  %vm19155_vm11 = vmmov %vm19153_vm12 }
 0x4c0   :  { %v5912_v3 = vsel %vm19150_vm14, %v5904_v58, %v15818_v31  ;;  %vm19157_vm14 = vcmp.lt.s32.totalorder %v10937_v40, 8  ;;  %v6024_v31 = vrot.slane %v15360_v8, %v19108_v9 }
 0x4c1   :  { %v5988_v17 = vpop.permute.xlu1 %5987  ;;  %v10360_v49 = vpack.c.bf16 %v5879_v5, %v5795_v13  ;;  %v5964_v23 = vmul.f32 %v5948_v55, %v5912_v3  ;;  %v10366_v5 = vpack.c.bf16 %v6757_v42, %v6749_v1  ;;  %v5508_v13 = vrot.slane %v19133_v6, %v12963_v38  ;;  %v19152_v3 = vld [vmem:[#allocation99_spill] sm:$0xff] }
 0x4c2   :  { %v5996_v2 = vsel %vm2621_vm13, %v5988_v17, %v15816_v43  ;;  %v5944_v43 = vrot.slane %v19121_v59, %v19102_v29  ;;  %v5512_v55 = vrot.slane %v19133_v6, %v19108_v9  ;;  %v5680_v6 = vrot.slane %v19142_v7, %v19108_v9 }
 0x4c3   :  { %v6048_v35 = vmul.f32 %v6032_v11, %v5996_v2  ;;  %10361 = vmatpush1.bf16.msra.mxu1 %v10360_v49  ;;  %v16085_v27 = vpop.permute.xlu0 %5901  ;;  %v5428_v49 = vrot.slane %v19082_v14, %v19108_v9  ;;  %v5592_v42 = vrot.slane %v15035_v4, %v12963_v38 }
 0x4c4   :  { %v5905_v24 = vsel %vm19151_vm15, %v16085_v27, %v5904_v58  ;;  %v16106_v58 = vsel %vm1381_vm10, %v19152_v3, %v15945_v25  ;;  %v19156_v25 = vld [vmem:[#allocation118_spill] sm:$0xff]  ;;  %vm19158_vm15 = vmmov %vm19157_vm14 }
 0x4c5   :  { %v16078_v62 = vpop.permute.xlu1 %5985  ;;  %v10362_v16 = vpack.c.bf16 %v6048_v35, %v5964_v23  ;;  %v5963_v2 = vmul.f32 %v5944_v43, %v5905_v24  ;;  %v5676_v35 = vrot.slane %v19142_v7, %v12963_v38  ;;  %v5856_v43 = vrot.slane %v19109_v52, %v19108_v9 }
 0x4c6   :  { %v5989_v50 = vsel %vm2621_vm13, %v16078_v62, %v5988_v17  ;;  %v5424_v17 = vrot.slane %v19082_v14, %v12963_v38  ;;  %v5596_v14 = vrot.slane %v15035_v4, %v19108_v9  ;;  %v5772_v24 = vrot.slane %v19110_v28, %v19108_v9 }
 0x4c7   :  { %v6047_v11 = vmul.f32 %v6028_v36, %v5989_v50  ;;  %10363 = vmatprep.subr.bf16.mxu1 %v10362_v16  ;;  %v5386_v0 = vpop.permute.xlu0 %5385  ;;  %v6789_v50 = vld [vmem:[#allocation2 + $0x5f8] sm:$0xff]  ;;  %v19154_v16 = vld [vmem:[#allocation16_spill] sm:$0xff]  ;;  %v5366_v57 = vmul.f32 %v5344_v51, %v16106_v58  ;;  %v6666_v51 = vld [vmem:[#allocation2 + $0x220] sm:$0xff] }
 0x4c8   :  { %v5395_v7 = vsel %vm19153_vm12, %v5386_v0, %v15943_v19  ;;  %v5396_v4 = vsel %vm19155_vm11, %v19154_v16, %v5386_v0  ;;  %v6748_v19 = vld [vmem:[#allocation2 + $0x4b0] sm:$0xff]  ;;  %v10374_v34 = vpack.c.bf16 %v6789_v50, %v6781_v18  ;;  %vm19159_vm12 = vcmp.lt.s32.totalorder %v10937_v40, 1 }
 0x4c9   :  { %v5470_v36 = vpop.permute.xlu1 %5469  ;;  %v10364_v1 = vpack.c.bf16 %v6047_v11, %v5963_v2  ;;  %v5449_v2 = vmul.f32 %v5424_v17, %v5396_v4  ;;  %v5450_v23 = vmul.f32 %v5428_v49, %v5395_v7  ;;  %v10368_v3 = vpack.c.bf16 %v6756_v63, %v6748_v19  ;;  %v19160_v49 = vld [vmem:[#allocation14_spill] sm:$0xff]  ;;  %vm19161_vm11 = vmmov %vm19159_vm12  ;;  %v19163_v63 = vld [vmem:[#allocation4_spill] sm:$0xff] }
 0x4ca   :  { %v5480_v11 = vsel %vm19157_vm14, %v19156_v25, %v5470_v36  ;;  %v5479_v0 = vsel %vm19158_vm15, %v5470_v36, %v16008_v30  ;;  %vm19162_vm14 = vcmp.lt.s32.totalorder %v10937_v40, 7 }
 0x4cb   :  { %10365 = vmatpush1.bf16.msra.mxu1 %v10364_v1  ;;  %v5554_v1 = vpop.permute.xlu0 %5553  ;;  %v10294_v7 = vpack.c.bf16 %v5450_v23, %v5366_v57  ;;  %v10296_v4 = vpack.c.bf16 %v5449_v2, %v6666_v51  ;;  %v5533_v30 = vmul.f32 %v5508_v13, %v5480_v11  ;;  %vm19164_vm15 = vmmov %vm19162_vm14  ;;  %v5534_v50 = vmul.f32 %v5512_v55, %v5479_v0  ;;  %v19167_v13 = vld [vmem:[#allocation128_spill] sm:$0xff]  ;;  %v6805_v51 = vld [vmem:[#allocation2 + $0x678] sm:$0xff] }
 0x4cc   :  { %10367 = vmatprep.subr.bf16.mxu1 %v10366_v5  ;;  %v5563_v5 = vsel %vm19162_vm14, %v5554_v1, %v16006_v47  ;;  %v5564_v18 = vsel %vm19164_vm15, %v19163_v63, %v5554_v1  ;;  %v19166_v57 = vrot.slane %v14863_v20, %v19102_v29 }
 0x4cd   :  { %v5638_v16 = vpop.permute.xlu1 %5637  ;;  %v5617_v19 = vmul.f32 %v5592_v42, %v5564_v18  ;;  %10295 = vmatprep.subr.bf16.mxu0 %v10294_v7  ;;  %v6706_v18 = vld [vmem:[#allocation2 + $0x360] sm:$0xff] }
 0x4ce   :  { %v5647_v17 = vsel %vm19159_vm12, %v5638_v16, %v16020_v45  ;;  %v5648_v25 = vsel %vm19161_vm11, %v19160_v49, %v5638_v16  ;;  %v5618_v45 = vmul.f32 %v5596_v14, %v5563_v5  ;;  %v6407_v23 = vmul.f32 %v19166_v57, %v19165_v15  ;;  %10297 = vmatpush1.bf16.msra.mxu0 %v10296_v4  ;;  %v6707_v16 = vld [vmem:[#allocation2 + $0x368] sm:$0xff]  ;;  %v19171_v49 = vld [vmem:[#allocation11_spill] sm:$0xff] }
 0x4cf   :  { %v5702_v36 = vmul.f32 %v5680_v6, %v5647_v17  ;;  %10369 = vmatpush1.bf16.msra.mxu1 %v10368_v3  ;;  %v19168_v6 = vrot.slane %v14832_v12, %v19102_v29  ;;  %v5701_v47 = vmul.f32 %v5676_v35, %v5648_v25  ;;  %vm19169_vm12 = vcmp.lt.s32.totalorder %v10937_v40, 121  ;;  %v5732_v42 = vpop.permute.xlu0 %5731  ;;  %v19173_v25 = vld [vmem:[#allocation44_spill] sm:$0xff] }
 0x4d0   :  { %10371 = vmatprep.subr.bf16.mxu1 %v10370_v54  ;;  %v10298_v14 = vpack.c.bf16 %v5618_v45, %v5534_v50  ;;  %v10300_v3 = vpack.c.bf16 %v5617_v19, %v5533_v30  ;;  %vm19170_vm11 = vcmp.lt.s32.totalorder %v10937_v40, 127  ;;  %v5936_v35 = vrot.slane %v19121_v59, %v12963_v38  ;;  %vm19172_vm14 = vmmov %vm19169_vm12  ;;  %v19176_v4 = vld [vmem:[#allocation24_spill] sm:$0xff] }
 0x4d1   :  { %v6347_v11 = vmul.f32 %v19168_v6, %v19167_v13  ;;  %v5816_v2 = vpop.permute.xlu1 %5815  ;;  %v10302_v0 = vpack.c.bf16 %v6707_v16, %v5702_v36  ;;  %v5738_v17 = vsel %vm19170_vm11, %v5732_v42, %v16047_v32  ;;  %v5940_v54 = vrot.slane %v19121_v59, %v19108_v9  ;;  %vm19174_vm15 = vmmov %vm19170_vm11  ;;  %v6797_v32 = vld [vmem:[#allocation2 + $0x638] sm:$0xff]  ;;  %v19183_v16 = vld [vmem:[#allocation21_spill] sm:$0xff] }
 0x4d2   :  { %v5822_v55 = vsel %vm19169_vm12, %v5816_v2, %v16042_v44  ;;  %v5823_v44 = vsel %vm19172_vm14, %v19171_v49, %v5816_v2  ;;  %v5739_v1 = vsel %vm19174_vm15, %v19173_v25, %v5732_v42  ;;  %v5794_v7 = vmul.f32 %v5772_v24, %v5738_v17  ;;  %10299 = vmatprep.subr.bf16.mxu0 %v10298_v14  ;;  %v6747_v17 = vld [vmem:[#allocation2 + $0x4a8] sm:$0xff] }
 0x4d3   :  { %v5878_v15 = vmul.f32 %v5856_v43, %v5822_v55  ;;  %v19175_v43 = vld [vmem:[#allocation28_spill] sm:$0xff]  ;;  %v19178_v36 = vrot.slane %v14931_v10, %v19102_v29  ;;  %10301 = vmatpush1.bf16.msra.mxu0 %v10300_v3  ;;  %v10376_v63 = vpack.c.bf16 %v6407_v23, %v6347_v11  ;;  %v10378_v50 = vpack.c.bf16 %v6805_v51, %v6797_v32  ;;  %v5900_v57 = vpop.permute.xlu0 %5899  ;;  %v19184_v55 = vld [vmem:[#allocation123_spill] sm:$0xff] }
 0x4d4   :  { %v19177_v30 = vpack.c.bf16 %v19175_v43, %v19176_v4  ;;  %v19179_v24 = vrot.slane %v14900_v41, %v19102_v29  ;;  %10303 = vmatprep.subr.bf16.mxu0 %v10302_v0  ;;  %v10304_v13 = vpack.c.bf16 %v6706_v18, %v5701_v47  ;;  %v19181_v23 = vrot.slane %v19110_v28, %v12963_v38  ;;  %v6762_v32 = vld [vmem:[#allocation2 + $0x520] sm:$0xff] }
 0x4d5   :  { %v6527_v59 = vmul.f32 %v19178_v36, %v15871_v37  ;;  %v5984_v5 = vpop.permute.xlu1 %5983  ;;  %v10306_v6 = vpack.c.bf16 %v5878_v15, %v5794_v7  ;;  %v19180_v37 = vrot.slane %v19109_v52, %v12963_v38  ;;  %vm19182_vm12 = vcmp.lt.s32.totalorder %v10937_v40, 120  ;;  %v19186_v52 = vld [vmem:[#allocation127_spill] sm:$0xff]  ;;  %v6813_v15 = vld [vmem:[#allocation2 + $0x6b8] sm:$0xff] }
 0x4d6   :  { %10373 = vmatpush1.bf16.msra.mxu1 %v19177_v30  ;;  %v6467_v19 = vmul.f32 %v19179_v24, %v15876_v33  ;;  %v5990_v45 = vsel %vm2621_vm13, %v5984_v5, %v16078_v62  ;;  %v5793_v11 = vmul.f32 %v19181_v23, %v5739_v1  ;;  %v5906_v33 = vsel %vm19182_vm12, %v5900_v57, %v16085_v27  ;;  %vm19185_vm11 = vmmov %vm19182_vm12  ;;  %v6746_v1 = vld [vmem:[#allocation2 + $0x4a0] sm:$0xff] }
 0x4d7   :  { %10375 = vmatprep.subr.bf16.mxu1 %v10374_v34  ;;  %v5877_v34 = vmul.f32 %v19180_v37, %v5823_v44  ;;  %v6046_v2 = vmul.f32 %v6024_v31, %v5990_v45  ;;  %v5991_v62 = vsel %vm2621_vm13, %v19183_v16, %v5984_v5  ;;  %v5907_v47 = vsel %vm19185_vm11, %v19184_v55, %v5900_v57  ;;  %v6754_v7 = vld [vmem:[#allocation2 + $0x4e0] sm:$0xff] }
 0x4d8   :  { %v5962_v42 = vmul.f32 %v5940_v54, %v5906_v33  ;;  %10305 = vmatpush1.bf16.msra.mxu0 %v10304_v13  ;;  %v6568_v28 = vrot.slane %v19186_v52, %v19102_v29  ;;  %v10380_v31 = vpack.c.bf16 %v6527_v59, %v6467_v19  ;;  %v19187_v27 = vrot.slane %v15360_v8, %v12963_v38  ;;  %v6755_v54 = vld [vmem:[#allocation2 + $0x4e8] sm:$0xff]  ;;  %v6770_v36 = vld [vmem:[#allocation2 + $0x560] sm:$0xff] }
 0x4d9   :  { %10307 = vmatprep.subr.bf16.mxu0 %v10306_v6  ;;  %v5961_v0 = vmul.f32 %v5936_v35, %v5907_v47  ;;  %v10308_v51 = vpack.c.bf16 %v5877_v34, %v5793_v11  ;;  %v10314_v25 = vpack.c.bf16 %v6755_v54, %v6747_v17  ;;  %v6763_v8 = vld [vmem:[#allocation2 + $0x528] sm:$0xff]  ;;  %v6380_v43 = vrot.slane %v14863_v20, %v12963_v38  ;;  %v7109_v55 = vld [vmem:[%s18168_s0] sm:$0xff] }
 0x4da   :  { %10377 = vmatpush1.bf16.msra.mxu1 %v10376_v63  ;;  %v10310_v14 = vpack.c.bf16 %v6046_v2, %v5962_v42  ;;  %v6045_v3 = vmul.f32 %v19187_v27, %v5991_v62  ;;  %v6587_v49 = vmul.f32 %v6568_v28, %v15929_v61  ;;  %v6771_v35 = vld [vmem:[#allocation2 + $0x568] sm:$0xff]  ;;  %v6320_v4 = vrot.slane %v14832_v12, %v12963_v38  ;;  %v19189_v12 = vld [vmem:[#allocation42_spill] sm:$0xff]  ;;  %v7113_v47 = vld [vmem:[%s18170_s2] sm:$0xff] }
 0x4db   :  { %10379 = vmatprep.subr.bf16.mxu1 %v10378_v50  ;;  %v10316_v30 = vpack.c.bf16 %v6754_v7, %v6746_v1  ;;  %v10318_v61 = vpack.c.bf16 %v6771_v35, %v6763_v8  ;;  %v6500_v59 = vrot.slane %v14931_v10, %v12963_v38  ;;  %v6405_v5 = vmul.f32 %v6380_v43, %v15953_v26  ;;  %v19188_v50 = vld [vmem:[#allocation41_spill] sm:$0xff]  ;;  %v7124_v1 = vld [vmem:[%s18169_s1 + $0x18] sm:$0xff] }
 0x4dc   :  { %10309 = vmatpush1.bf16.msra.mxu0 %v10308_v51  ;;  %v10312_v44 = vpack.c.bf16 %v6045_v3, %v5961_v0  ;;  %v6345_v63 = vmul.f32 %v6320_v4, %v15959_v60  ;;  %v6440_v18 = vrot.slane %v14900_v41, %v12963_v38  ;;  %v10320_v20 = vpack.c.bf16 %v6770_v36, %v6762_v32 }
 0x4dd   :  { %10311 = vmatprep.subr.bf16.mxu0 %v10310_v14  ;;  %v19190_v24 = vpack.c.bf16 %v19188_v50, %v19189_v12  ;;  %v6525_v19 = vmul.f32 %v6500_v59, %v15988_v39  ;;  %v6564_v10 = vrot.slane %v19186_v52, %v19108_v9  ;;  %v19191_v26 = vpack.c.bf16 %v15904_v48, %v15914_v53  ;;  %v7114_v48 = vld [vmem:[%s18170_s2 + $0x8] sm:$0xff]  ;;  %v7111_v50 = vld [vmem:[%s18168_s0 + $0x10] sm:$0xff]  ;;  %v19222_v9 = vld [vmem:[#allocation7_spill] sm:$0xff] }
 0x4de   :  { %10381 = vmatpush1.bf16.msra.mxu1 %v10380_v31  ;;  %v6465_v45 = vmul.f32 %v6440_v18, %v15994_v21  ;;  %v10324_v57 = vpack.c.bf16 %v6405_v5, %v6345_v63  ;;  %v6560_v41 = vrot.slane %v19186_v52, %v12963_v38  ;;  %v7110_v21 = vld [vmem:[%s18168_s0 + $0x8] sm:$0xff]  ;;  %v7117_v42 = vmul.f32 %v7113_v47, %v7109_v55  ;;  %v7121_v52 = vld [vmem:[%s18169_s1] sm:$0xff]  ;;  %v7115_v12 = vld [vmem:[%s18170_s2 + $0x10] sm:$0xff] }
 0x4df   :  { %7090 = vmatprep.subr.mxu1 %v6813_v15  ;;  %v6586_v13 = vmul.f32 %v6564_v10, %v15967_v22  ;;  %v7118_v53 = vmul.f32 %v7114_v48, %v7110_v21  ;;  %v7122_v22 = vld [vmem:[%s18169_s1 + $0x8] sm:$0xff]  ;;  %v19196_v21 = vld [vmem:[#allocation6_spill] sm:$0xff]  ;;  %vm19219_vm14 = vcmp.lt.s32.totalorder %v10937_v40, 8 }
 0x4e0   :  { %10313 = vmatpush1.bf16.msra.mxu0 %v10312_v44  ;;  %v10328_v60 = vpack.c.bf16 %v6525_v19, %v6465_v45  ;;  %v6585_v39 = vmul.f32 %v6560_v41, %v16106_v58  ;;  %v7125_v28 = vmul.f32 %v7121_v52, %v7117_v42  ;;  %v7116_v44 = vld [vmem:[%s18170_s2 + $0x18] sm:$0xff]  ;;  %v7119_v41 = vmul.f32 %v7115_v12, %v7111_v50  ;;  %vm19231_vm11 = vmmov %vm19219_vm14 }
 0x4e1   :  { %10315 = vmatprep.subr.bf16.mxu0 %v10314_v25  ;;  %v7126_v6 = vmul.f32 %v7122_v22, %v7118_v53  ;;  %v7197_v5 = vld [vmem:[%s18171_s3] ss:$8 sm:$0xf]  ;;  %v9832_v18 = vld [vmem:[%s18171_s3 + $0x82] ss:$8 sm:$0xf] }
 0x4e2   :  { %7091 = vmatpush1.msra.mxu1 %v6587_v49  ;;  %v7133_v0 = vcombine.high %v7125_v28, %v7125_v28  ;;  %v7112_v49 = vld [vmem:[%s18168_s0 + $0x18] sm:$0xff]  ;;  %v19197_v53 = vld [vmem:[#allocation5_spill] sm:$0xff] }
 0x4e3   :  { %7103 = vmatmul.mubr.f32.vlgmr.msra.gmra.mrb[6].mxu1 %v15977_v56  ;;  %v7134_v11 = vcombine.high %v7126_v6, %v7126_v6  ;;  %v7120_v25 = vmul.f32 %v7116_v44, %v7112_v49  ;;  %v7198_v63 = vld [vmem:[%s18171_s3] ss:$8 sm:$0xf0]  ;;  %v9800_v45 = vld [vmem:[%s18171_s3 + $0x1] ss:$8 sm:$0xf] }
 0x4e4   :  { %10317 = vmatpush1.bf16.msra.mxu0 %v10316_v30  ;;  %v16245_v37 = vpop.permute.xlu0 %6817  ;;  %v9834_v10 = vld [vmem:[%s18171_s3 + $0x83] ss:$8 sm:$0xf]  ;;  %v9839_v44 = vld [vmem:[%s18171_s3 + $0x85] ss:$8 sm:$0xf0] }
 0x4e5   :  { %10319 = vmatprep.subr.bf16.mxu0 %v10318_v61  ;;  %v7128_v7 = vmul.f32 %v7124_v1, %v7120_v25  ;;  %v9804_v42 = vld [vmem:[%s18171_s3 + $0x3] ss:$8 sm:$0xf]  ;;  %v9840_v12 = vld [vmem:[%s18171_s3 + $0x86] ss:$8 sm:$0xf] }
 0x4e6   :  { %v9805_v52 = vld [vmem:[%s18171_s3 + $0x3] ss:$8 sm:$0xf0] }
 0x4e7   :  { %v7136_v30 = vcombine.high %v7128_v7, %v7128_v7 }
 0x4e8   :  { %10321 = vmatpush1.bf16.msra.mxu0 %v10320_v20  ;;  %v9833_v20 = vld [vmem:[%s18171_s3 + $0x82] ss:$8 sm:$0xf0] }
 0x4e9   :  { %10323 = vmatprep.subr.bf16.mxu0 %v19190_v24  ;;  %v16419_v24 = vor.u32 %v7198_v63, %v7197_v5  ;;  %v16421_v19 = vor.u32 %v9833_v20, %v9832_v18  ;;  %v9807_v18 = vld [vmem:[%s18171_s3 + $0x4] ss:$8 sm:$0xf0] }
 0x4eb   :  { %19194 = vst [vmem:[#allocation46_spill] sm:$0xff] %v16419_v24  ;;  %19195 = vst [vmem:[#allocation101_spill] sm:$0xff] %v16421_v19  ;;  %v7216_v48 = vrot.slane %v16419_v24, %v19196_v21  ;;  %v8624_v22 = vrot.slane %v16421_v19, %v19197_v53  ;;  %v7212_v29 = vrot.slane %v16419_v24, %v19197_v53 }
 0x4ec   :  { %10325 = vmatpush1.bf16.msra.mxu0 %v10324_v57  ;;  %v9801_v57 = vld [vmem:[%s18171_s3 + $0x1] ss:$8 sm:$0xf0] }
 0x4ed   :  { %10327 = vmatprep.subr.bf16.mxu0 %v19191_v26  ;;  %v9835_v26 = vld [vmem:[%s18171_s3 + $0x83] ss:$8 sm:$0xf0] }
 0x4f0   :  { %10329 = vmatpush1.bf16.msra.mxu0 %v10328_v60  ;;  %v7123_v60 = vld [vmem:[%s18169_s1 + $0x10] sm:$0xff]  ;;  %s19226_s1 = smov 65  }
 0x4f1   :  { %7019 = vmatprep.subr.mxu0 %v6586_v13  ;;  %v9802_v13 = vld [vmem:[%s18171_s3 + $0x2] ss:$8 sm:$0xf] }
 0x4f4   :  { %7020 = vmatpush1.msra.mxu0 %v6585_v39  ;;  %v9803_v39 = vld [vmem:[%s18171_s3 + $0x2] ss:$8 sm:$0xf0] }
 0x4f5   :  { %7032 = vmatmul.mubr.f32.vlgmr.msra.gmra.mrb[6].mxu0 %v15977_v56 }
 0x54e   :  { %v6962_v58 = vpop.f32.mrb[4].mxu1 }
 0x54f   :  { %v6963_v34 = vadd.f32 %v6962_v58, %v16245_v37  ;;  %v6964_v56 = vpop.f32.mrb[5].mxu1  ;;  %v16454_v58 = vor.u32 %v9835_v26, %v9834_v10 }
 0x550   :  { %v6965_v23 = vadd.f32 %v6964_v56, %v16245_v37  ;;  %v9837_v56 = vld [vmem:[%s18171_s3 + $0x84] ss:$8 sm:$0xf0] }
 0x551   :  { %v7151_v2 = vrot.slane %v6963_v34, 4  ;;  %19199 = vst [vmem:[#allocation48_spill] sm:$0xff] %v16454_v58  ;;  %v9836_v34 = vld [vmem:[%s18171_s3 + $0x84] ss:$8 sm:$0xf] }
 0x552   :  { %v7152_v33 = vrot.slane %v6965_v23, 4  ;;  %v16476_v47 = vor.u32 %v9837_v56, %v9836_v34  ;;  %v9808_v56 = vld [vmem:[%s18171_s3 + $0x5] ss:$8 sm:$0xf] }
 0x553   :  { %v16250_v16 = vsel %vm67_vm0, %v7126_v6, %v7151_v2  ;;  %v16452_v6 = vor.u32 %v9801_v57, %v9800_v45  ;;  %v7127_v2 = vmul.f32 %v7123_v60, %v7119_v41  ;;  %v9841_v45 = vld [vmem:[%s18171_s3 + $0x86] ss:$8 sm:$0xf0] }
 0x554   :  { %8267 = vst [vmem:[#allocation2 + $0x350] sm:$0xff] %v16250_v16  ;;  %v16254_v62 = vsel %vm67_vm0, %v7134_v11, %v7152_v33  ;;  %7177 = vrot.lane.b32.xlu1 %v16250_v16, %s19192_s28  ;;  %v16470_v33 = vor.u32 %v9803_v39, %v9802_v13  ;;  %19203 = vst [vmem:[#allocation53_spill] sm:$0xff] %v16476_v47  ;;  %v16556_v34 = vor.u32 %v9841_v45, %v9840_v12  ;;  %v9813_v45 = vld [vmem:[%s18171_s3 + $0x7] ss:$8 sm:$0xf0] }
 0x555   :  { %8268 = vst [vmem:[#allocation2 + $0x358] sm:$0xff] %v16254_v62  ;;  %7179 = vrot.lane.b32.xlu0 %v16254_v62, %s19192_s28  ;;  %19198 = vst [vmem:[#allocation100_spill] sm:$0xff] %v16452_v6 }
 0x556   :  { %19202 = vst [vmem:[#allocation112_spill] sm:$0xff] %v16470_v33 }
 0x558   :  { %7261 = vrot.lane.b32.xlu1 %v16250_v16, %s19193_s8 }
 0x559   :  { %7263 = vrot.lane.b32.xlu0 %v16254_v62, %s19193_s8 }
 0x55c   :  { %7345 = vrot.lane.b32.xlu1 %v16250_v16, %s18513_s13 }
 0x55d   :  { %7347 = vrot.lane.b32.xlu0 %v16254_v62, %s18513_s13 }
 0x560   :  { %7429 = vrot.lane.b32.xlu1 %v16250_v16, %s18511_s14 }
 0x561   :  { %7431 = vrot.lane.b32.xlu0 %v16254_v62, %s18511_s14 }
 0x564   :  { %7513 = vrot.lane.b32.xlu1 %v16250_v16, %s10670_s16 }
 0x565   :  { %7515 = vrot.lane.b32.xlu0 %v16254_v62, %s10670_s16 }
 0x568   :  { %7597 = vrot.lane.b32.xlu1 %v16250_v16, %s10669_s15 }
 0x569   :  { %7599 = vrot.lane.b32.xlu0 %v16254_v62, %s10669_s15 }
 0x56c   :  { %7681 = vrot.lane.b32.xlu1 %v16250_v16, %s18509_s29 }
 0x56d   :  { %7683 = vrot.lane.b32.xlu0 %v16254_v62, %s18509_s29 }
 0x570   :  { %7765 = vrot.lane.b32.xlu1 %v16250_v16, %s10672_s20 }
 0x571   :  { %7767 = vrot.lane.b32.xlu0 %v16254_v62, %s10672_s20 }
 0x574   :  { %7849 = vrot.lane.b32.xlu1 %v16250_v16, %s19054_s30 }
 0x575   :  { %7851 = vrot.lane.b32.xlu0 %v16254_v62, %s19054_s30 }
 0x578   :  { %7933 = vrot.lane.b32.xlu1 %v16250_v16, %s19055_s22 }
 0x579   :  { %7935 = vrot.lane.b32.xlu0 %v16254_v62, %s19055_s22 }
 0x57c   :  { %8017 = vrot.lane.b32.xlu1 %v16250_v16, %s19056_s4 }
 0x57d   :  { %8019 = vrot.lane.b32.xlu0 %v16254_v62, %s19056_s4 }
 0x57f   :  { %v6891_v31 = vpop.f32.mrb[4].mxu0 }
 0x580   :  { %8101 = vrot.lane.b32.xlu1 %v16250_v16, %s19057_s7  ;;  %v6892_v14 = vadd.f32 %v6891_v31, %v16245_v37  ;;  %v6893_v27 = vpop.f32.mrb[5].mxu0 }
 0x581   :  { %v6894_v3 = vadd.f32 %v6893_v27, %v16245_v37  ;;  %v8684_v27 = vrot.slane %v16454_v58, %v19197_v53 }
 0x582   :  { %v7149_v51 = vrot.slane %v6892_v14, 4  ;;  %v7300_v14 = vrot.slane %v16452_v6, %v19196_v21 }
 0x583   :  { %v7150_v15 = vrot.slane %v6894_v3, 4 }
 0x584   :  { %v16315_v17 = vsel %vm67_vm0, %v7125_v28, %v7149_v51 }
 0x585   :  { %8265 = vst [vmem:[#allocation2 + $0x340] sm:$0xff] %v16315_v17  ;;  %v16319_v54 = vsel %vm67_vm0, %v7133_v0, %v7150_v15  ;;  %7173 = vrot.lane.b32.xlu1 %v16315_v17, %s19192_s28  ;;  %v9838_v0 = vld [vmem:[%s18171_s3 + $0x85] ss:$8 sm:$0xf] }
 0x586   :  { %8266 = vst [vmem:[#allocation2 + $0x348] sm:$0xff] %v16319_v54  ;;  %7175 = vrot.lane.b32.xlu0 %v16319_v54, %s19192_s28  ;;  %v16517_v63 = vor.u32 %v9839_v44, %v9838_v0  ;;  %v9810_v44 = vld [vmem:[%s18171_s3 + $0x6] ss:$8 sm:$0xf] }
 0x588   :  { %19206 = vst [vmem:[#allocation105_spill] sm:$0xff] %v16517_v63 }
 0x589   :  { %7257 = vrot.lane.b32.xlu1 %v16315_v17, %s19193_s8 }
 0x58a   :  { %7259 = vrot.lane.b32.xlu0 %v16319_v54, %s19193_s8 }
 0x58d   :  { %7341 = vrot.lane.b32.xlu1 %v16315_v17, %s18513_s13 }
 0x58e   :  { %7343 = vrot.lane.b32.xlu0 %v16319_v54, %s18513_s13 }
 0x591   :  { %7425 = vrot.lane.b32.xlu1 %v16315_v17, %s18511_s14 }
 0x592   :  { %7427 = vrot.lane.b32.xlu0 %v16319_v54, %s18511_s14 }
 0x595   :  { %7509 = vrot.lane.b32.xlu1 %v16315_v17, %s10670_s16 }
 0x596   :  { %7511 = vrot.lane.b32.xlu0 %v16319_v54, %s10670_s16 }
 0x599   :  { %7593 = vrot.lane.b32.xlu1 %v16315_v17, %s10669_s15 }
 0x59a   :  { %7595 = vrot.lane.b32.xlu0 %v16319_v54, %s10669_s15 }
 0x59d   :  { %7677 = vrot.lane.b32.xlu1 %v16315_v17, %s18509_s29 }
 0x59e   :  { %7679 = vrot.lane.b32.xlu0 %v16319_v54, %s18509_s29  ;;  %s19225_s29 = smov 71  }
 0x5a1   :  { %7761 = vrot.lane.b32.xlu1 %v16315_v17, %s10672_s20 }
 0x5a2   :  { %7763 = vrot.lane.b32.xlu0 %v16319_v54, %s10672_s20 }
 0x5a5   :  { %7845 = vrot.lane.b32.xlu1 %v16315_v17, %s19054_s30 }
 0x5a6   :  { %7847 = vrot.lane.b32.xlu0 %v16319_v54, %s19054_s30 }
 0x5a9   :  { %7929 = vrot.lane.b32.xlu1 %v16315_v17, %s19055_s22 }
 0x5aa   :  { %7931 = vrot.lane.b32.xlu0 %v16319_v54, %s19055_s22 }
 0x5ad   :  { %8013 = vrot.lane.b32.xlu1 %v16315_v17, %s19056_s4 }
 0x5ae   :  { %8015 = vrot.lane.b32.xlu0 %v16319_v54, %s19056_s4 }
 0x5b1   :  { %8097 = vrot.lane.b32.xlu1 %v16315_v17, %s19057_s7 }
 0x5b2   :  { %8099 = vrot.lane.b32.xlu0 %v16319_v54, %s19057_s7 }
 0x5b5   :  { %8181 = vrot.lane.b32.xlu1 %v16315_v17, %s19058_s21 }
 0x5b6   :  { %v7104_v8 = vpop.f32.mrb[6].mxu1  ;;  %8103 = vrot.lane.b32.xlu0 %v16254_v62, %s19057_s7 }
 0x5b7   :  { %v7105_v35 = vadd.f32 %v7104_v8, %v16245_v37  ;;  %v7106_v43 = vpop.f32.mrb[7].mxu1  ;;  %v7384_v8 = vrot.slane %v16470_v33, %v19196_v21 }
 0x5b8   :  { %v7107_v4 = vadd.f32 %v7106_v43, %v16245_v37 }
 0x5b9   :  { %v7155_v61 = vrot.slane %v7105_v35, 4 }
 0x5ba   :  { %v7156_v32 = vrot.slane %v7107_v4, 4  ;;  %v8744_v4 = vrot.slane %v16476_v47, %v19197_v53 }
 0x5bb   :  { %v16386_v36 = vsel %vm67_vm0, %v7128_v7, %v7155_v61  ;;  %v7135_v7 = vcombine.high %v7127_v2, %v7127_v2 }
 0x5bc   :  { %8271 = vst [vmem:[#allocation2 + $0x370] sm:$0xff] %v16386_v36  ;;  %v16390_v59 = vsel %vm67_vm0, %v7136_v30, %v7156_v32  ;;  %v9806_v30 = vld [vmem:[%s18171_s3 + $0x4] ss:$8 sm:$0xf] }
 0x5bd   :  { %8272 = vst [vmem:[#allocation2 + $0x378] sm:$0xff] %v16390_v59  ;;  %7271 = vrot.lane.b32.xlu0 %v16390_v59, %s19193_s8  ;;  %7187 = vrot.lane.b32.xlu1 %v16390_v59, %s19192_s28  ;;  %v16550_v13 = vor.u32 %v9807_v18, %v9806_v30 }
 0x5c1   :  { %7439 = vrot.lane.b32.xlu0 %v16390_v59, %s18511_s14  ;;  %7355 = vrot.lane.b32.xlu1 %v16390_v59, %s18513_s13 }
 0x5c5   :  { %7607 = vrot.lane.b32.xlu0 %v16390_v59, %s10669_s15  ;;  %7523 = vrot.lane.b32.xlu1 %v16390_v59, %s10670_s16 }
 0x5c6   :  { %v16462_v23 = vpop.permute.xlu1 %7177 }
 0x5c7   :  { %v16464_v11 = vpop.permute.xlu0 %7179 }
 0x5c8   :  { %19200 = vst [vmem:[#allocation30_spill] sm:$0xff] %v16464_v11  ;;  %v7193_v55 = vsel %vm150_vm2, %v16462_v23, %v16464_v11  ;;  %v7033_v3 = vpop.f32.mrb[6].mxu0 }
 0x5c9   :  { %7775 = vrot.lane.b32.xlu0 %v16390_v59, %s10672_s20  ;;  %7691 = vrot.lane.b32.xlu1 %v16390_v59, %s19201_s27  ;;  %v7244_v28 = vmul.f32 %v7216_v48, %v7193_v55  ;;  %v8655_v31 = vmul.f32 %v8624_v22, %v7193_v55  ;;  %v7034_v15 = vadd.f32 %v7033_v3, %v16245_v37  ;;  %v7035_v49 = vpop.f32.mrb[7].mxu0 }
 0x5ca   :  { %v16491_v51 = vpop.permute.xlu1 %7261  ;;  %v7036_v1 = vadd.f32 %v7035_v49, %v16245_v37  ;;  %v16512_v37 = vor.u32 %v9805_v52, %v9804_v42  ;;  %v8804_v22 = vrot.slane %v16517_v63, %v19197_v53  ;;  %v9842_v42 = vld [vmem:[%s18171_s3 + $0x87] ss:$8 sm:$0xf] }
 0x5cb   :  { %8663 = vst [vmem:[#allocation2 + $0x490] sm:$0xff] %v8655_v31  ;;  %v16497_v25 = vpop.permute.xlu0 %7263  ;;  %v7153_v43 = vrot.slane %v7034_v15, 4  ;;  %v9843_v52 = vld [vmem:[%s18171_s3 + $0x87] ss:$8 sm:$0xf0]  ;;  %v8864_v15 = vrot.slane %v16556_v34, %v19197_v53 }
 0x5cc   :  { %19204 = vst [vmem:[#allocation98_spill] sm:$0xff] %v16497_v25  ;;  %v7277_v35 = vsel %vm275_vm1, %v16491_v51, %v16497_v25  ;;  %19205 = vst [vmem:[#allocation37_spill] sm:$0xff] %v16512_v37  ;;  %v7154_v5 = vrot.slane %v7036_v1, 4  ;;  %v7468_v60 = vrot.slane %v16512_v37, %v19196_v21  ;;  %v16590_v49 = vor.u32 %v9843_v52, %v9842_v42  ;;  %v9811_v1 = vld [vmem:[%s18171_s3 + $0x6] ss:$8 sm:$0xf0] }
 0x5cd   :  { %7943 = vrot.lane.b32.xlu0 %v16390_v59, %s19055_s22  ;;  %7859 = vrot.lane.b32.xlu1 %v16390_v59, %s19054_s30  ;;  %v7328_v61 = vmul.f32 %v7300_v14, %v7277_v35  ;;  %v8715_v32 = vmul.f32 %v8684_v27, %v7277_v35  ;;  %v16523_v20 = vsel %vm67_vm0, %v7127_v2, %v7153_v43  ;;  %v9809_v2 = vld [vmem:[%s18171_s3 + $0x5] ss:$8 sm:$0xf0]  ;;  %v9845_v35 = vld [vmem:[%s18171_s3 + $0xc0] ss:$8 sm:$0xf0] }
 0x5ce   :  { %v16525_v50 = vpop.permute.xlu1 %7345  ;;  %8269 = vst [vmem:[#allocation2 + $0x360] sm:$0xff] %v16523_v20  ;;  %v16535_v57 = vsel %vm67_vm0, %v7135_v7, %v7154_v5  ;;  %v7552_v14 = vrot.slane %v16550_v13, %v19196_v21  ;;  %v16584_v27 = vor.u32 %v9809_v2, %v9808_v56  ;;  %v8924_v18 = vrot.slane %v16590_v49, %v19197_v53 }
 0x5cf   :  { %7336 = vst [vmem:[#allocation2 + $0x58] sm:$0xff] %v7328_v61  ;;  %8723 = vst [vmem:[#allocation2 + $0x4d0] sm:$0xff] %v8715_v32  ;;  %v16537_v10 = vpop.permute.xlu0 %7347  ;;  %v10434_v26 = vpack.c.bf16 %v7328_v61, %v7244_v28  ;;  %v16618_v61 = vor.u32 %v9811_v1, %v9810_v44  ;;  %v9848_v1 = vld [vmem:[%s18171_s3 + $0xc2] ss:$8 sm:$0xf]  ;;  %vm19217_vm0 = vcmp.lt.s32.totalorder %v10937_v40, 9  ;;  %v7296_v25 = vrot.slane %v16452_v6, %v19197_v53 }
 0x5d0   :  { %19207 = vst [vmem:[#allocation108_spill] sm:$0xff] %v16537_v10  ;;  %8270 = vst [vmem:[#allocation2 + $0x368] sm:$0xff] %v16535_v57  ;;  %v7361_v41 = vsel %vm457_vm3, %v16525_v50, %v16537_v10  ;;  %v7636_v30 = vrot.slane %v16584_v27, %v19196_v21 }
 0x5d1   :  { %8111 = vrot.lane.b32.xlu0 %v16390_v59, %s19057_s7  ;;  %8027 = vrot.lane.b32.xlu1 %v16390_v59, %s19056_s4  ;;  %v16552_v39 = vmul.f32 %v7384_v8, %v7361_v41  ;;  %v8775_v48 = vmul.f32 %v8744_v4, %v7361_v41  ;;  %v9844_v8 = vld [vmem:[%s18171_s3 + $0xc0] ss:$8 sm:$0xf]  ;;  %v9846_v41 = vld [vmem:[%s18171_s3 + $0xc1] ss:$8 sm:$0xf]  ;;  %v7720_v56 = vrot.slane %v16618_v61, %v19196_v21  ;;  %vm19228_vm15 = vmmov %vm19217_vm0 }
 0x5d2   :  { %10435 = vmatprep.subr.bf16.mxu1 %v10434_v26  ;;  %v16564_v55 = vpop.permute.xlu1 %7429  ;;  %v16624_v12 = vor.u32 %v9845_v35, %v9844_v8  ;;  %v9849_v8 = vld [vmem:[%s18171_s3 + $0xc2] ss:$8 sm:$0xf0]  ;;  %vm19229_vm12 = vmmov %vm19217_vm0 }
 0x5d3   :  { %8783 = vst [vmem:[#allocation2 + $0x510] sm:$0xff] %v8775_v48  ;;  %v16572_v28 = vpop.permute.xlu0 %7431 }
 0x5d4   :  { %19208 = vst [vmem:[#allocation18_spill] sm:$0xff] %v16572_v28  ;;  %v7445_v31 = vsel %vm583_vm4, %v16564_v55, %v16572_v28 }
 0x5d5   :  { %8183 = vrot.lane.b32.xlu0 %v16319_v54, %s19058_s21  ;;  %8185 = vrot.lane.b32.xlu1 %v16250_v16, %s19058_s21  ;;  %v16586_v3 = vmul.f32 %v7468_v60, %v7445_v31  ;;  %v8835_v0 = vmul.f32 %v8804_v22, %v7445_v31  ;;  %v9847_v60 = vld [vmem:[%s18171_s3 + $0xc1] ss:$8 sm:$0xf0]  ;;  %v8984_v31 = vrot.slane %v16624_v12, %v19197_v53 }
 0x5d6   :  { %v16598_v7 = vpop.permute.xlu1 %7513 }
 0x5d7   :  { %8843 = vst [vmem:[#allocation2 + $0x550] sm:$0xff] %v8835_v0  ;;  %v16606_v43 = vpop.permute.xlu0 %7515  ;;  %v9814_v0 = vld [vmem:[%s18171_s3 + $0x40] ss:$8 sm:$0xf] }
 0x5d8   :  { %19209 = vst [vmem:[#allocation58_spill] sm:$0xff] %v16606_v43  ;;  %v7529_v4 = vsel %vm765_vm6, %v16598_v7, %v16606_v43 }
 0x5d9   :  { %8187 = vrot.lane.b32.xlu0 %v16254_v62, %s19058_s21  ;;  %8195 = vrot.lane.b32.xlu1 %v16390_v59, %s19058_s21  ;;  %v16620_v32 = vmul.f32 %v7552_v14, %v7529_v4  ;;  %v8895_v5 = vmul.f32 %v8864_v15, %v7529_v4  ;;  %v9812_v59 = vld [vmem:[%s18171_s3 + $0x7] ss:$8 sm:$0xf]  ;;  %v16659_v14 = vor.u32 %v9847_v60, %v9846_v41  ;;  %v9815_v15 = vld [vmem:[%s18171_s3 + $0x40] ss:$8 sm:$0xf0] }
 0x5da   :  { %v16632_v26 = vpop.permute.xlu1 %7597  ;;  %v16653_v2 = vor.u32 %v9813_v45, %v9812_v59  ;;  %v16693_v41 = vor.u32 %v9849_v8, %v9848_v1 }
 0x5db   :  { %7588 = vst [vmem:[#allocation2 + $0x118] sm:$0xff] %v16620_v32  ;;  %8903 = vst [vmem:[#allocation2 + $0x590] sm:$0xff] %v8895_v5  ;;  %v16641_v48 = vpop.permute.xlu0 %7599  ;;  %v16687_v5 = vor.u32 %v9815_v15, %v9814_v0  ;;  %v9044_v45 = vrot.slane %v16659_v14, %v19197_v53 }
 0x5dc   :  { %19210 = vst [vmem:[#allocation35_spill] sm:$0xff] %v16641_v48  ;;  %v7613_v22 = vsel %vm891_vm5, %v16632_v26, %v16641_v48  ;;  %v9104_v8 = vrot.slane %v16693_v41, %v19197_v53 }
 0x5dd   :  { %8275 = vrot.lane.b32.xlu0 %v16319_v54, %s19079_s11  ;;  %8277 = vrot.lane.b32.xlu1 %v16250_v16, %s19079_s11  ;;  %v16655_v42 = vmul.f32 %v7636_v30, %v7613_v22  ;;  %v8955_v52 = vmul.f32 %v8924_v18, %v7613_v22  ;;  %v7804_v30 = vrot.slane %v16653_v2, %v19196_v21  ;;  %v9816_v22 = vld [vmem:[%s18171_s3 + $0x41] ss:$8 sm:$0xf] }
 0x5de   :  { %v16667_v44 = vpop.permute.xlu1 %7681 }
 0x5df   :  { %8963 = vst [vmem:[#allocation2 + $0x5d0] sm:$0xff] %v8955_v52  ;;  %v16675_v35 = vpop.permute.xlu0 %7683  ;;  %v9817_v52 = vld [vmem:[%s18171_s3 + $0x41] ss:$8 sm:$0xf0] }
 0x5e0   :  { %19211 = vst [vmem:[#allocation40_spill] sm:$0xff] %v16675_v35  ;;  %v7697_v4 = vsel %vm1073_vm7, %v16667_v44, %v16675_v35  ;;  %v9818_v35 = vld [vmem:[%s18171_s3 + $0x42] ss:$8 sm:$0xf] }
 0x5e1   :  { %8279 = vrot.lane.b32.xlu0 %v16254_v62, %s19079_s11  ;;  %8361 = vrot.lane.b32.xlu1 %v16250_v16, %s18886_s18  ;;  %v16689_v18 = vmul.f32 %v7720_v56, %v7697_v4  ;;  %v9015_v59 = vmul.f32 %v8984_v31, %v7697_v4  ;;  %v7888_v31 = vrot.slane %v16687_v5, %v19196_v21 }
 0x5e2   :  { %v16695_v60 = vpop.permute.xlu1 %7765  ;;  %v16719_v4 = vor.u32 %v9817_v52, %v9816_v22 }
 0x5e3   :  { %9023 = vst [vmem:[#allocation2 + $0x610] sm:$0xff] %v9015_v59  ;;  %v16703_v0 = vpop.permute.xlu0 %7767 }
 0x5e4   :  { %19212 = vst [vmem:[#allocation103_spill] sm:$0xff] %v16703_v0  ;;  %v7781_v56 = vsel %vm1199_vm8, %v16695_v60, %v16703_v0  ;;  %19213 = vst [vmem:[#allocation45_spill] sm:$0xff] %v16719_v4  ;;  %v9819_v0 = vld [vmem:[%s18171_s3 + $0x42] ss:$8 sm:$0xf0] }
 0x5e5   :  { %8359 = vrot.lane.b32.xlu0 %v16319_v54, %s18886_s18  ;;  %8357 = vrot.lane.b32.xlu1 %v16315_v17, %s18886_s18  ;;  %v16715_v15 = vmul.f32 %v7804_v30, %v7781_v56  ;;  %v9075_v1 = vmul.f32 %v9044_v45, %v7781_v56  ;;  %v7972_v56 = vrot.slane %v16719_v4, %v19196_v21 }
 0x5e6   :  { %v16721_v59 = vpop.permute.xlu1 %7849 }
 0x5e7   :  { %7840 = vst [vmem:[#allocation2 + $0x1d8] sm:$0xff] %v16715_v15  ;;  %9083 = vst [vmem:[#allocation2 + $0x650] sm:$0xff] %v9075_v1  ;;  %v16730_v30 = vpop.permute.xlu0 %7851  ;;  %v16744_v1 = vor.u32 %v9819_v0, %v9818_v35 }
 0x5e8   :  { %19214 = vst [vmem:[#allocation122_spill] sm:$0xff] %v16730_v30  ;;  %v7865_v45 = vsel %vm1381_vm10, %v16721_v59, %v16730_v30 }
 0x5e9   :  { %8363 = vrot.lane.b32.xlu0 %v16254_v62, %s18886_s18  ;;  %8281 = vrot.lane.b32.xlu1 %v16523_v20, %s19079_s11  ;;  %v16740_v22 = vmul.f32 %v7888_v31, %v7865_v45  ;;  %v9135_v52 = vmul.f32 %v9104_v8, %v7865_v45  ;;  %19215 = vst [vmem:[#allocation110_spill] sm:$0xff] %v16744_v1 }
 0x5ea   :  { %v16746_v48 = vpop.permute.xlu1 %7933  ;;  %v8056_v35 = vrot.slane %v16744_v1, %v19196_v21 }
 0x5eb   :  { %9143 = vst [vmem:[#allocation2 + $0x690] sm:$0xff] %v9135_v52  ;;  %v16748_v43 = vpop.permute.xlu0 %7935 }
 0x5ec   :  { %19216 = vst [vmem:[#allocation34_spill] sm:$0xff] %v16748_v43  ;;  %v7949_v31 = vsel %vm19217_vm0, %v16746_v48, %v16748_v43  ;;  %v19221_v43 = vld [vmem:[#allocation8_spill] sm:$0xff]  ;;  %vm19232_vm0 = vmmov %vm19231_vm11 }
 0x5ed   :  { %8273 = vrot.lane.b32.xlu0 %v16315_v17, %s19079_s11  ;;  %8365 = vrot.lane.b32.xlu1 %v16523_v20, %s18886_s18  ;;  %v16758_v8 = vmul.f32 %v7972_v56, %v7949_v31  ;;  %v7208_v30 = vrot.slane %v16419_v24, %v19221_v43  ;;  %v7292_v10 = vrot.slane %v16452_v6, %v19221_v43 }
 0x5ee   :  { %v16762_v0 = vpop.permute.xlu1 %8017  ;;  %v8680_v38 = vrot.slane %v16454_v58, %v19221_v43 }
 0x5ef   :  { %v16764_v45 = vpop.permute.xlu0 %8019 }
 0x5f0   :  { %19218 = vst [vmem:[#allocation109_spill] sm:$0xff] %v16764_v45  ;;  %v8033_v52 = vsel %vm19219_vm14, %v16762_v0, %v16764_v45  ;;  %vm19233_vm14 = vcmp.lt.s32.totalorder %v10937_v40, 7 }
 0x5f1   :  { %8443 = vrot.lane.b32.xlu0 %v16319_v54, %s18922_s23  ;;  %8445 = vrot.lane.b32.xlu1 %v16250_v16, %s18922_s23  ;;  %v16774_v56 = vmul.f32 %v8056_v35, %v8033_v52  ;;  %v8616_v35 = vrot.slane %v16421_v19, %v19222_v9  ;;  %v8620_v52 = vrot.slane %v16421_v19, %v19221_v43 }
 0x5f2   :  { %v16776_v31 = vpop.permute.xlu1 %8101 }
 0x5f3   :  { %19220 = vst [vmem:[#allocation96_spill] sm:$0xff] %v16774_v56  ;;  %8092 = vst [vmem:[#allocation2 + $0x298] sm:$0xff] %v16774_v56 }
 0x5f5   :  { %8447 = vrot.lane.b32.xlu0 %v16254_v62, %s18922_s23  ;;  %8449 = vrot.lane.b32.xlu1 %v16523_v20, %s18922_s23 }
 0x5f7   :  { %v16795_v45 = vpop.permute.xlu1 %7173 }
 0x5f8   :  { %19223 = vst [vmem:[#allocation97_spill] sm:$0xff] %v16795_v45  ;;  %v7176_v28 = vpop.permute.xlu0 %7175 }
 0x5f9   :  { %8527 = vrot.lane.b32.xlu0 %v16319_v54, %s18918_s19  ;;  %8529 = vrot.lane.b32.xlu1 %v16250_v16, %s18918_s19  ;;  %v7194_v11 = vsel %vm150_vm2, %v7176_v28, %v16462_v23  ;;  %v7195_v54 = vsel %vm150_vm2, %v16795_v45, %v7176_v28  ;;  %v8676_v16 = vrot.slane %v16454_v58, %v19222_v9 }
 0x5fa   :  { %v7242_v56 = vmul.f32 %v7208_v30, %v7195_v54  ;;  %v7243_v19 = vmul.f32 %v7212_v29, %v7194_v11  ;;  %v8653_v24 = vmul.f32 %v8616_v35, %v7195_v54  ;;  %v8654_v46 = vmul.f32 %v8620_v52, %v7194_v11 }
 0x5fb   :  { %v16815_v23 = vpop.permute.xlu1 %7257  ;;  %v7376_v45 = vrot.slane %v16470_v33, %v19221_v43  ;;  %v7380_v30 = vrot.slane %v16470_v33, %v19197_v53  ;;  %v8736_v11 = vrot.slane %v16476_v47, %v19222_v9 }
 0x5fc   :  { %19224 = vst [vmem:[#allocation50_spill] sm:$0xff] %v16815_v23  ;;  %8661 = vst [vmem:[#allocation2 + $0x480] sm:$0xff] %v8653_v24  ;;  %v7260_v28 = vpop.permute.xlu0 %7259 }
 0x5fd   :  { %8531 = vrot.lane.b32.xlu0 %v16254_v62, %s18918_s19  ;;  %8533 = vrot.lane.b32.xlu1 %v16523_v20, %s18918_s19  ;;  %8662 = vst [vmem:[#allocation2 + $0x488] sm:$0xff] %v8654_v46  ;;  %v7278_v29 = vsel %vm275_vm1, %v7260_v28, %v16491_v51  ;;  %v7279_v62 = vsel %vm275_vm1, %v16815_v23, %v7260_v28 }
 0x5fe   :  { %v8740_v46 = vrot.slane %v16476_v47, %v19221_v43  ;;  %v7326_v24 = vmul.f32 %v7292_v10, %v7279_v62  ;;  %v7327_v35 = vmul.f32 %v7296_v25, %v7278_v29  ;;  %v8713_v52 = vmul.f32 %v8676_v16, %v7279_v62 }
 0x5ff   :  { %v8714_v54 = vmul.f32 %v8680_v38, %v7278_v29  ;;  %v16835_v51 = vpop.permute.xlu1 %7341  ;;  %v7460_v28 = vrot.slane %v16512_v37, %v19221_v43  ;;  %v7464_v25 = vrot.slane %v16512_v37, %v19197_v53  ;;  %v8796_v38 = vrot.slane %v16517_v63, %v19222_v9 }
 0x600   :  { %7334 = vst [vmem:[#allocation2 + $0x48] sm:$0xff] %v7326_v24  ;;  %7335 = vst [vmem:[#allocation2 + $0x50] sm:$0xff] %v7327_v35  ;;  %v7344_v47 = vpop.permute.xlu0 %7343  ;;  %v10436_v10 = vpack.c.bf16 %v7327_v35, %v7243_v19  ;;  %v10382_v16 = vpack.c.bf16 %v7326_v24, %v7242_v56  ;;  %v8800_v62 = vrot.slane %v16517_v63, %v19221_v43 }
 0x601   :  { %8441 = vrot.lane.b32.xlu0 %v16315_v17, %s18922_s23  ;;  %8525 = vrot.lane.b32.xlu1 %v16315_v17, %s18918_s19  ;;  %8721 = vst [vmem:[#allocation2 + $0x4c0] sm:$0xff] %v8713_v52  ;;  %8722 = vst [vmem:[#allocation2 + $0x4c8] sm:$0xff] %v8714_v54  ;;  %v7362_v17 = vsel %vm457_vm3, %v7344_v47, %v16525_v50  ;;  %v7363_v29 = vsel %vm457_vm3, %v16835_v51, %v7344_v47 }
 0x602   :  { %v10438_v52 = vpack.c.bf16 %v16586_v3, %v16552_v39  ;;  %v16853_v54 = vmul.f32 %v7376_v45, %v7363_v29  ;;  %v7411_v23 = vmul.f32 %v7380_v30, %v7362_v17  ;;  %v8773_v33 = vmul.f32 %v8736_v11, %v7363_v29  ;;  %10437 = vmatpush1.bf16.msra.mxu1 %v10436_v10 }
 0x603   :  { %v8774_v19 = vmul.f32 %v8740_v46, %v7362_v17  ;;  %v16859_v50 = vpop.permute.xlu1 %7425  ;;  %v7544_v39 = vrot.slane %v16550_v13, %v19221_v43  ;;  %v7548_v3 = vrot.slane %v16550_v13, %v19197_v53  ;;  %10383 = vmatprep.subr.bf16.mxu0 %v10382_v16  ;;  %v8860_v30 = vrot.slane %v16556_v34, %v19221_v43 }
 0x604   :  { %8781 = vst [vmem:[#allocation2 + $0x500] sm:$0xff] %v8773_v33  ;;  %v7428_v47 = vpop.permute.xlu0 %7427  ;;  %10439 = vmatprep.subr.bf16.mxu1 %v10438_v52  ;;  %v8856_v33 = vrot.slane %v16556_v34, %v19222_v9  ;;  %v7628_v16 = vrot.slane %v16584_v27, %v19221_v43  ;;  %v10442_v52 = vpack.c.bf16 %v16655_v42, %v16620_v32 }
 0x605   :  { %7181 = vrot.lane.b32.xlu0 %v16523_v20, %s19192_s28  ;;  %7265 = vrot.lane.b32.xlu1 %v16523_v20, %s19193_s8  ;;  %8782 = vst [vmem:[#allocation2 + $0x508] sm:$0xff] %v8774_v19  ;;  %v7446_v45 = vsel %vm583_vm4, %v7428_v47, %v16564_v55  ;;  %v7447_v56 = vsel %vm583_vm4, %v16859_v50, %v7428_v47 }
 0x606   :  { %v16875_v11 = vmul.f32 %v7460_v28, %v7447_v56  ;;  %v7495_v46 = vmul.f32 %v7464_v25, %v7446_v45  ;;  %v8833_v24 = vmul.f32 %v8796_v38, %v7447_v56  ;;  %v8834_v35 = vmul.f32 %v8800_v62, %v7446_v45 }
 0x607   :  { %v16881_v55 = vpop.permute.xlu1 %7509  ;;  %v7632_v28 = vrot.slane %v16584_v27, %v19197_v53  ;;  %v8916_v25 = vrot.slane %v16590_v49, %v19222_v9  ;;  %v8920_v62 = vrot.slane %v16590_v49, %v19221_v43  ;;  %v7712_v42 = vrot.slane %v16618_v61, %v19221_v43 }
 0x608   :  { %8841 = vst [vmem:[#allocation2 + $0x540] sm:$0xff] %v8833_v24  ;;  %8842 = vst [vmem:[#allocation2 + $0x548] sm:$0xff] %v8834_v35  ;;  %v7512_v10 = vpop.permute.xlu0 %7511  ;;  %v10440_v38 = vpack.c.bf16 %v7495_v46, %v7411_v23  ;;  %v7716_v23 = vrot.slane %v16618_v61, %v19197_v53 }
 0x609   :  { %7349 = vrot.lane.b32.xlu0 %v16523_v20, %s19225_s29  ;;  %7433 = vrot.lane.b32.xlu1 %v16523_v20, %s19226_s1  ;;  %v7530_v17 = vsel %vm765_vm6, %v7512_v10, %v16598_v7  ;;  %v7531_v29 = vsel %vm765_vm6, %v16881_v55, %v7512_v10 }
 0x60a   :  { %v16899_v19 = vmul.f32 %v7544_v39, %v7531_v29  ;;  %v7579_v47 = vmul.f32 %v7548_v3, %v7530_v17  ;;  %v8893_v45 = vmul.f32 %v8856_v33, %v7531_v29  ;;  %v8894_v56 = vmul.f32 %v8860_v30, %v7530_v17  ;;  %10441 = vmatpush1.bf16.msra.mxu1 %v10440_v38 }
 0x60b   :  { %v16905_v7 = vpop.permute.xlu1 %7593  ;;  %10443 = vmatprep.subr.bf16.mxu1 %v10442_v52  ;;  %v8976_v33 = vrot.slane %v16624_v12, %v19222_v9  ;;  %v8980_v30 = vrot.slane %v16624_v12, %v19221_v43  ;;  %v7796_v17 = vrot.slane %v16653_v2, %v19221_v43  ;;  %v9040_v52 = vrot.slane %v16659_v14, %v19221_v43 }
 0x60c   :  { %7586 = vst [vmem:[#allocation2 + $0x108] sm:$0xff] %v16899_v19  ;;  %7587 = vst [vmem:[#allocation2 + $0x110] sm:$0xff] %v7579_v47  ;;  %v7596_v32 = vpop.permute.xlu0 %7595 }
 0x60d   :  { %7517 = vrot.lane.b32.xlu0 %v16523_v20, %s10670_s16  ;;  %7601 = vrot.lane.b32.xlu1 %v16523_v20, %s10669_s15  ;;  %8901 = vst [vmem:[#allocation2 + $0x580] sm:$0xff] %v8893_v45  ;;  %8902 = vst [vmem:[#allocation2 + $0x588] sm:$0xff] %v8894_v56  ;;  %v7614_v39 = vsel %vm891_vm5, %v7596_v32, %v16632_v26  ;;  %v7615_v3 = vsel %vm891_vm5, %v16905_v7, %v7596_v32 }
 0x60e   :  { %v16922_v46 = vmul.f32 %v7628_v16, %v7615_v3  ;;  %v7663_v24 = vmul.f32 %v7632_v28, %v7614_v39  ;;  %v8953_v35 = vmul.f32 %v8916_v25, %v7615_v3  ;;  %v8954_v10 = vmul.f32 %v8920_v62, %v7614_v39 }
 0x60f   :  { %v16928_v26 = vpop.permute.xlu1 %7677  ;;  %v7800_v16 = vrot.slane %v16653_v2, %v19197_v53  ;;  %v9036_v28 = vrot.slane %v16659_v14, %v19222_v9  ;;  %v10446_v45 = vpack.c.bf16 %v16715_v15, %v16689_v18  ;;  %v7880_v18 = vrot.slane %v16687_v5, %v19221_v43 }
 0x610   :  { %8961 = vst [vmem:[#allocation2 + $0x5c0] sm:$0xff] %v8953_v35  ;;  %8962 = vst [vmem:[#allocation2 + $0x5c8] sm:$0xff] %v8954_v10  ;;  %v7680_v38 = vpop.permute.xlu0 %7679  ;;  %v10444_v25 = vpack.c.bf16 %v7663_v24, %v7579_v47  ;;  %v7884_v15 = vrot.slane %v16687_v5, %v19197_v53 }
 0x611   :  { %7685 = vrot.lane.b32.xlu0 %v16523_v20, %s19201_s27  ;;  %7769 = vrot.lane.b32.xlu1 %v16523_v20, %s10672_s20  ;;  %v7698_v29 = vsel %vm1073_vm7, %v7680_v38, %v16667_v44  ;;  %v7699_v62 = vsel %vm1073_vm7, %v16928_v26, %v7680_v38 }
 0x612   :  { %v16946_v56 = vmul.f32 %v7712_v42, %v7699_v62  ;;  %v7747_v32 = vmul.f32 %v7716_v23, %v7698_v29  ;;  %v9013_v39 = vmul.f32 %v8976_v33, %v7699_v62  ;;  %v9014_v3 = vmul.f32 %v8980_v30, %v7698_v29  ;;  %10445 = vmatpush1.bf16.msra.mxu1 %v10444_v25 }
 0x613   :  { %v16952_v44 = vpop.permute.xlu1 %7761  ;;  %10447 = vmatprep.subr.bf16.mxu1 %v10446_v45  ;;  %v9096_v33 = vrot.slane %v16693_v41, %v19222_v9  ;;  %v9100_v30 = vrot.slane %v16693_v41, %v19221_v43  ;;  %v7968_v62 = vrot.slane %v16719_v4, %v19197_v53 }
 0x614   :  { %9021 = vst [vmem:[#allocation2 + $0x600] sm:$0xff] %v9013_v39  ;;  %9022 = vst [vmem:[#allocation2 + $0x608] sm:$0xff] %v9014_v3  ;;  %v7764_v47 = vpop.permute.xlu0 %7763 }
 0x615   :  { %7183 = vrot.lane.b32.xlu0 %v16535_v57, %s19192_s28  ;;  %7185 = vrot.lane.b32.xlu1 %v16386_v36, %s19192_s28  ;;  %v7782_v42 = vsel %vm1199_vm8, %v7764_v47, %v16695_v60  ;;  %v7783_v23 = vsel %vm1199_vm8, %v16952_v44, %v7764_v47 }
 0x616   :  { %v16968_v24 = vmul.f32 %v7796_v17, %v7783_v23  ;;  %v7831_v35 = vmul.f32 %v7800_v16, %v7782_v42  ;;  %v9073_v10 = vmul.f32 %v9036_v28, %v7783_v23  ;;  %v9074_v38 = vmul.f32 %v9040_v52, %v7782_v42 }
 0x617   :  { %v16974_v60 = vpop.permute.xlu1 %7845  ;;  %v7964_v17 = vrot.slane %v16719_v4, %v19221_v43  ;;  %v10450_v52 = vpack.c.bf16 %v16758_v8, %v16740_v22  ;;  %v9821_v22 = vld [vmem:[%s18171_s3 + $0x43] ss:$8 sm:$0xf0] }
 0x618   :  { %7838 = vst [vmem:[#allocation2 + $0x1c8] sm:$0xff] %v16968_v24  ;;  %7839 = vst [vmem:[#allocation2 + $0x1d0] sm:$0xff] %v7831_v35  ;;  %v7848_v25 = vpop.permute.xlu0 %7847  ;;  %v10448_v16 = vpack.c.bf16 %v7831_v35, %v7747_v32  ;;  %v9149_v8 = vld [vmem:[%s18176_s6] sm:$0xff] }
 0x619   :  { %7267 = vrot.lane.b32.xlu0 %v16535_v57, %s19193_s8  ;;  %7269 = vrot.lane.b32.xlu1 %v16386_v36, %s19193_s8  ;;  %9081 = vst [vmem:[#allocation2 + $0x640] sm:$0xff] %v9073_v10  ;;  %9082 = vst [vmem:[#allocation2 + $0x648] sm:$0xff] %v9074_v38  ;;  %v7866_v28 = vsel %vm1381_vm10, %v7848_v25, %v16721_v59  ;;  %v7867_v29 = vsel %vm1381_vm10, %v16974_v60, %v7848_v25  ;;  %v9820_v59 = vld [vmem:[%s18171_s3 + $0x43] ss:$8 sm:$0xf] }
 0x61a   :  { %v16989_v45 = vmul.f32 %v7880_v18, %v7867_v29  ;;  %v7915_v39 = vmul.f32 %v7884_v15, %v7866_v28  ;;  %v9133_v3 = vmul.f32 %v9096_v33, %v7867_v29  ;;  %v9134_v47 = vmul.f32 %v9100_v30, %v7866_v28  ;;  %10449 = vmatpush1.bf16.msra.mxu1 %v10448_v16 }
 0x61b   :  { %v16998_v32 = vpop.permute.xlu1 %7929  ;;  %10451 = vmatprep.subr.bf16.mxu1 %v10450_v52  ;;  %v17006_v15 = vcombine.high %v9149_v8, %v9149_v8  ;;  %v8048_v33 = vrot.slane %v16744_v1, %v19221_v43  ;;  %v8052_v30 = vrot.slane %v16744_v1, %v19197_v53  ;;  %v17020_v38 = vor.u32 %v9821_v22, %v9820_v59 }
 0x61c   :  { %9141 = vst [vmem:[#allocation2 + $0x680] sm:$0xff] %v9133_v3  ;;  %9142 = vst [vmem:[#allocation2 + $0x688] sm:$0xff] %v9134_v47  ;;  %v7932_v18 = vpop.permute.xlu0 %7931 }
 0x61d   :  { %7853 = vrot.lane.b32.xlu0 %v16523_v20, %s19054_s30  ;;  %7351 = vrot.lane.b32.xlu1 %v16535_v57, %s19225_s29  ;;  %19227 = vst [vmem:[#allocation47_spill] sm:$0xff] %v17006_v15  ;;  %v7950_v42 = vsel %vm19228_vm15, %v7932_v18, %v16746_v48  ;;  %v7951_v23 = vsel %vm19229_vm12, %v16998_v32, %v7932_v18  ;;  %19230 = vst [vmem:[#allocation51_spill] sm:$0xff] %v17020_v38 }
 0x61e   :  { %v17018_v35 = vmul.f32 %v7964_v17, %v7951_v23  ;;  %v7999_v10 = vmul.f32 %v7968_v62, %v7950_v42  ;;  %9850 = vmatprep.mubr.msk.f32.mxu0 %vm6822_vm9, %v17006_v15  ;;  %9851 = vmatprep.mubr.msk.f32.mxu1 %vm6822_vm9, %v17006_v15  ;;  %v8132_v52 = vrot.slane %v17020_v38, %v19221_v43  ;;  %vm19234_vm15 = vmmov %vm19233_vm14 }
 0x61f   :  { %v17030_v48 = vpop.permute.xlu1 %8013  ;;  %v8136_v3 = vrot.slane %v17020_v38, %v19197_v53  ;;  %v8140_v18 = vrot.slane %v17020_v38, %v19196_v21  ;;  %vm19238_vm12 = vmmov %vm19233_vm14 }
 0x620   :  { %v8016_v25 = vpop.permute.xlu0 %8015  ;;  %v10452_v17 = vpack.c.bf16 %v7999_v10, %v7915_v39  ;;  %v7288_v10 = vrot.slane %v16452_v6, %v19222_v9 }
 0x621   :  { %7353 = vrot.lane.b32.xlu0 %v16386_v36, %s19225_s29  ;;  %7435 = vrot.lane.b32.xlu1 %v16535_v57, %s19226_s1  ;;  %v8034_v16 = vsel %vm19231_vm11, %v8016_v25, %v16762_v0  ;;  %v8035_v28 = vsel %vm19232_vm0, %v17030_v48, %v8016_v25  ;;  %v19239_v25 = vld [vmem:[#allocation9_spill] sm:$0xff]  ;;  %vm19254_vm11 = vcmp.lt.s32.totalorder %v10937_v40, 9  ;;  %vm19258_vm0 = vmmov %vm19238_vm12 }
 0x622   :  { %v17038_v29 = vmul.f32 %v8048_v33, %v8035_v28  ;;  %v8083_v62 = vmul.f32 %v8052_v30, %v8034_v16  ;;  %10453 = vmatpush1.bf16.msra.mxu1 %v10452_v17  ;;  %v8704_v17 = vrot.slane %v16454_v58, %v19239_v25  ;;  %v19240_v16 = vld [vmem:[#allocation46_spill] sm:$0xff] }
 0x623   :  { %v17048_v0 = vpop.permute.xlu1 %8097  ;;  %v7204_v28 = vrot.slane %v19240_v16, %v19222_v9  ;;  %v19244_v58 = vld [vmem:[#allocation50_spill] sm:$0xff] }
 0x624   :  { %8090 = vst [vmem:[#allocation2 + $0x288] sm:$0xff] %v17038_v29  ;;  %8091 = vst [vmem:[#allocation2 + $0x290] sm:$0xff] %v8083_v62  ;;  %v8100_v39 = vpop.permute.xlu0 %8099 }
 0x625   :  { %7437 = vrot.lane.b32.xlu0 %v16386_v36, %s19226_s1  ;;  %7519 = vrot.lane.b32.xlu1 %v16535_v57, %s10670_s16  ;;  %v8118_v47 = vsel %vm19233_vm14, %v8100_v39, %v16776_v31  ;;  %v8119_v59 = vsel %vm19234_vm15, %v17048_v0, %v8100_v39  ;;  %vm19259_vm14 = vcmp.lt.s32.totalorder %v10937_v40, 8  ;;  %vm19262_vm15 = vcmp.lt.s32.totalorder %v10937_v40, 1 }
 0x626   :  { %v17057_v22 = vmul.f32 %v8132_v52, %v8119_v59  ;;  %v8167_v8 = vmul.f32 %v8136_v3, %v8118_v47  ;;  %v19241_v52 = vld [vmem:[#allocation101_spill] sm:$0xff] }
 0x627   :  { %v17065_v42 = vpop.permute.xlu1 %8181  ;;  %v8644_v3 = vrot.slane %v19241_v52, %v19239_v25  ;;  %v19245_v52 = vld [vmem:[#allocation97_spill] sm:$0xff] }
 0x628   :  { %19235 = vst [vmem:[#allocation31_spill] sm:$0xff] %v17057_v22  ;;  %19236 = vst [vmem:[#allocation55_spill] sm:$0xff] %v17065_v42  ;;  %v17067_v23 = vpop.permute.xlu0 %8103 }
 0x629   :  { %7521 = vrot.lane.b32.xlu0 %v16386_v36, %s10670_s16  ;;  %7603 = vrot.lane.b32.xlu1 %v16535_v57, %s10669_s15  ;;  %19237 = vst [vmem:[#allocation52_spill] sm:$0xff] %v17067_v23  ;;  %v8117_v33 = vsel %vm19238_vm12, %v16776_v31, %v17067_v23  ;;  %v19242_v31 = vld [vmem:[#allocation96_spill] sm:$0xff]  ;;  %vm19263_vm12 = vmmov %vm19262_vm15 }
 0x62a   :  { %v8168_v30 = vmul.f32 %v8140_v18, %v8117_v33  ;;  %v7456_v18 = vrot.slane %v16512_v37, %v19222_v9  ;;  %v8824_v33 = vrot.slane %v16517_v63, %v19239_v25  ;;  %v19243_v23 = vld [vmem:[#allocation112_spill] sm:$0xff]  ;;  %v10456_v37 = vpack.c.bf16 %v8167_v8, %v8083_v62 }
 0x62b   :  { %v7372_v15 = vrot.slane %v19243_v23, %v19222_v9  ;;  %v7624_v62 = vrot.slane %v16584_v27, %v19222_v9  ;;  %v7540_v8 = vrot.slane %v16550_v13, %v19222_v9 }
 0x62c   :  { %v10454_v39 = vpack.c.bf16 %v8168_v30, %v19242_v31  ;;  %v19246_v31 = vld [vmem:[#allocation53_spill] sm:$0xff] }
 0x62d   :  { %7605 = vrot.lane.b32.xlu0 %v16386_v36, %s10669_s15  ;;  %7687 = vrot.lane.b32.xlu1 %v16535_v57, %s19201_s27  ;;  %v8764_v16 = vrot.slane %v19246_v31, %v19239_v25 }
 0x62e   :  { %10455 = vmatprep.subr.bf16.mxu1 %v10454_v39 }
 0x62f   :  { %v17086_v47 = vpop.permute.xlu0 %7271  ;;  %v17088_v59 = vpop.permute.xlu1 %7187  ;;  %10457 = vmatpush1.bf16.msra.mxu1 %v10456_v37 }
 0x630   :  { %v7280_v6 = vsel %vm275_vm1, %v17086_v47, %v19244_v58  ;;  %v7196_v30 = vsel %vm150_vm2, %v17088_v59, %v19245_v52 }
 0x631   :  { %v7325_v21 = vmul.f32 %v7288_v10, %v7280_v6  ;;  %v8720_v63 = vmul.f32 %v8704_v17, %v7280_v6  ;;  %v7241_v42 = vmul.f32 %v7204_v28, %v7196_v30  ;;  %v8660_v22 = vmul.f32 %v8644_v3, %v7196_v30  ;;  %7689 = vrot.lane.b32.xlu0 %v16386_v36, %s19201_s27 }
 0x632   :  { %7771 = vrot.lane.b32.xlu1 %v16535_v57, %s10672_s20  ;;  %v8944_v6 = vrot.slane %v16590_v49, %v19239_v25  ;;  %v10386_v17 = vpack.c.bf16 %v16875_v11, %v16853_v54  ;;  %v7792_v54 = vrot.slane %v16653_v2, %v19222_v9  ;;  %v9064_v11 = vrot.slane %v16659_v14, %v19239_v25 }
 0x633   :  { %7333 = vst [vmem:[#allocation2 + $0x40] sm:$0xff] %v7325_v21  ;;  %8728 = vst [vmem:[#allocation2 + $0x4f8] sm:$0xff] %v8720_v63  ;;  %v17110_v58 = vpop.permute.xlu0 %7439  ;;  %v17112_v52 = vpop.permute.xlu1 %7355  ;;  %v10384_v10 = vpack.c.bf16 %v7325_v21, %v7241_v42  ;;  %v10390_v30 = vpack.c.bf16 %v16922_v46, %v16899_v19  ;;  %v7960_v19 = vrot.slane %v16719_v4, %v19222_v9 }
 0x634   :  { %8668 = vst [vmem:[#allocation2 + $0x4b8] sm:$0xff] %v8660_v22  ;;  %19247 = vst [vmem:[#allocation104_spill] sm:$0xff] %v17110_v58  ;;  %v7448_v37 = vsel %vm583_vm4, %v17110_v58, %v16859_v50  ;;  %v7364_v63 = vsel %vm457_vm3, %v17112_v52, %v16835_v51  ;;  %v8884_v22 = vrot.slane %v16556_v34, %v19239_v25  ;;  %v19304_v58 = vld [vmem:[#allocation20_spill] sm:$0xff] }
 0x635   :  { %v7493_v28 = vmul.f32 %v7456_v18, %v7448_v37  ;;  %v8840_v3 = vmul.f32 %v8824_v33, %v7448_v37  ;;  %v7409_v39 = vmul.f32 %v7372_v15, %v7364_v63  ;;  %v8780_v21 = vmul.f32 %v8764_v16, %v7364_v63  ;;  %7773 = vrot.lane.b32.xlu0 %v16386_v36, %s10672_s20 }
 0x636   :  { %7855 = vrot.lane.b32.xlu1 %v16535_v57, %s19054_s30  ;;  %10385 = vmatpush1.bf16.msra.mxu0 %v10384_v10  ;;  %v7708_v15 = vrot.slane %v16618_v61, %v19222_v9  ;;  %v9004_v33 = vrot.slane %v16624_v12, %v19239_v25  ;;  %v7876_v46 = vrot.slane %v16687_v5, %v19222_v9 }
 0x637   :  { %8848 = vst [vmem:[#allocation2 + $0x578] sm:$0xff] %v8840_v3  ;;  %8788 = vst [vmem:[#allocation2 + $0x538] sm:$0xff] %v8780_v21  ;;  %v17136_v51 = vpop.permute.xlu0 %7607  ;;  %v17138_v50 = vpop.permute.xlu1 %7523  ;;  %10387 = vmatprep.subr.bf16.mxu0 %v10386_v17  ;;  %v10388_v42 = vpack.c.bf16 %v7493_v28, %v7409_v39 }
 0x638   :  { %19248 = vst [vmem:[#allocation54_spill] sm:$0xff] %v17136_v51  ;;  %19249 = vst [vmem:[#allocation107_spill] sm:$0xff] %v17138_v50  ;;  %v7616_v16 = vsel %vm891_vm5, %v17136_v51, %v16905_v7  ;;  %v7532_v18 = vsel %vm765_vm6, %v17138_v50, %v16881_v55  ;;  %v9318_v51 = vld [vmem:[#allocation2 + $0x540] sm:$0xff] }
 0x639   :  { %v7661_v10 = vmul.f32 %v7624_v62, %v7616_v16  ;;  %v8960_v37 = vmul.f32 %v8944_v6, %v7616_v16  ;;  %v7577_v63 = vmul.f32 %v7540_v8, %v7532_v18  ;;  %v8900_v17 = vmul.f32 %v8884_v22, %v7532_v18  ;;  %7857 = vrot.lane.b32.xlu0 %v16386_v36, %s19054_s30 }
 0x63a   :  { %7937 = vrot.lane.b32.xlu1 %v16523_v20, %s19055_s22  ;;  %10389 = vmatpush1.bf16.msra.mxu0 %v10388_v42  ;;  %v9124_v8 = vrot.slane %v16693_v41, %v19239_v25  ;;  %v10394_v22 = vpack.c.bf16 %v16968_v24, %v16946_v56  ;;  %v17190_v42 = vld [vmem:[#allocation2 + $0x370] sm:$0xff]  ;;  %v8044_v18 = vrot.slane %v16744_v1, %v19222_v9  ;;  %v9302_v1 = vld [vmem:[#allocation2 + $0x4c0] sm:$0xff] }
 0x63b   :  { %8968 = vst [vmem:[#allocation2 + $0x5f8] sm:$0xff] %v8960_v37  ;;  %7585 = vst [vmem:[#allocation2 + $0x100] sm:$0xff] %v7577_v63  ;;  %v17162_v55 = vpop.permute.xlu0 %7775  ;;  %v17164_v7 = vpop.permute.xlu1 %7691  ;;  %10391 = vmatprep.subr.bf16.mxu0 %v10390_v30  ;;  %v10392_v62 = vpack.c.bf16 %v7661_v10, %v7577_v63  ;;  %v10398_v63 = vpack.c.bf16 %v17018_v35, %v16989_v45 }
 0x63c   :  { %8908 = vst [vmem:[#allocation2 + $0x5b8] sm:$0xff] %v8900_v17  ;;  %19250 = vst [vmem:[#allocation56_spill] sm:$0xff] %v17162_v55  ;;  %v7784_v36 = vsel %vm1199_vm8, %v17162_v55, %v16952_v44  ;;  %v7700_v6 = vsel %vm1073_vm7, %v17164_v7, %v16928_v26  ;;  %v9822_v44 = vld [vmem:[%s18171_s3 + $0x44] ss:$8 sm:$0xf] }
 0x63d   :  { %19251 = vst [vmem:[#allocation57_spill] sm:$0xff] %v17164_v7  ;;  %v7829_v28 = vmul.f32 %v7792_v54, %v7784_v36  ;;  %v9080_v3 = vmul.f32 %v9064_v11, %v7784_v36  ;;  %v7745_v39 = vmul.f32 %v7708_v15, %v7700_v6  ;;  %v9020_v21 = vmul.f32 %v9004_v33, %v7700_v6  ;;  %v9823_v26 = vld [vmem:[%s18171_s3 + $0x44] ss:$8 sm:$0xf0] }
 0x63e   :  { %7939 = vrot.lane.b32.xlu0 %v16535_v57, %s19055_s22  ;;  %7941 = vrot.lane.b32.xlu1 %v17190_v42, %s19055_s22  ;;  %v8128_v54 = vrot.slane %v17020_v38, %v19222_v9  ;;  %v17210_v33 = vor.u32 %v9823_v26, %v9822_v44  ;;  %v19260_v6 = vld [vmem:[#allocation31_spill] sm:$0xff] }
 0x63f   :  { %10393 = vmatpush1.bf16.msra.mxu0 %v10392_v62  ;;  %7837 = vst [vmem:[#allocation2 + $0x1c0] sm:$0xff] %v7829_v28  ;;  %9088 = vst [vmem:[#allocation2 + $0x678] sm:$0xff] %v9080_v3  ;;  %v17194_v56 = vpop.permute.xlu0 %7943  ;;  %v17196_v24 = vpop.permute.xlu1 %7859  ;;  %v10396_v11 = vpack.c.bf16 %v7829_v28, %v7745_v39  ;;  %v19261_v39 = vld [vmem:[#allocation55_spill] sm:$0xff] }
 0x640   :  { %9028 = vst [vmem:[#allocation2 + $0x638] sm:$0xff] %v9020_v21  ;;  %19252 = vst [vmem:[#allocation59_spill] sm:$0xff] %v17194_v56  ;;  %10395 = vmatprep.subr.bf16.mxu0 %v10394_v22  ;;  %v7952_v15 = vsel %vm19254_vm11, %v17194_v56, %v16998_v32  ;;  %v7868_v16 = vsel %vm1381_vm10, %v17196_v24, %v16974_v60  ;;  %v8216_v35 = vrot.slane %v17210_v33, %v19221_v43  ;;  %v19264_v21 = vld [vmem:[#allocation6_spill] sm:$0xff] }
 0x641   :  { %19253 = vst [vmem:[#allocation33_spill] sm:$0xff] %v17196_v24  ;;  %19255 = vst [vmem:[#allocation64_spill] sm:$0xff] %v17210_v33  ;;  %v7997_v30 = vmul.f32 %v7960_v19, %v7952_v15  ;;  %v7913_v10 = vmul.f32 %v7876_v46, %v7868_v16  ;;  %v9140_v37 = vmul.f32 %v9124_v8, %v7868_v16  ;;  %v9255_v16 = vld [vmem:[#allocation2 + $0x348] sm:$0xff] }
 0x642   :  { %8021 = vrot.lane.b32.xlu0 %v16523_v20, %s19056_s4  ;;  %8023 = vrot.lane.b32.xlu1 %v16535_v57, %s19056_s4  ;;  %v8220_v36 = vrot.slane %v17210_v33, %v19197_v53  ;;  %v10402_v8 = vpack.c.bf16 %v19260_v6, %v17038_v29  ;;  %v8224_v44 = vrot.slane %v17210_v33, %v19264_v21  ;;  %vm19268_vm11 = vmmov %vm19263_vm12  ;;  %v9827_v6 = vld [vmem:[%s18171_s3 + $0x47] ss:$8 sm:$0xf0] }
 0x643   :  { %10397 = vmatpush1.bf16.msra.mxu0 %v10396_v11  ;;  %9148 = vst [vmem:[#allocation2 + $0x6b8] sm:$0xff] %v9140_v37  ;;  %v17218_v60 = vpop.permute.xlu0 %8111  ;;  %v17220_v32 = vpop.permute.xlu1 %8027  ;;  %v10400_v17 = vpack.c.bf16 %v7997_v30, %v7913_v10  ;;  %v8212_v11 = vrot.slane %v17210_v33, %v19222_v9  ;;  %v19300_v33 = vld [vmem:[#allocation98_spill] sm:$0xff]  ;;  %v9319_v24 = vld [vmem:[#allocation2 + $0x548] sm:$0xff]  ;;  %v8928_v4 = vrot.slane %v16590_v49, %v19264_v21 }
 0x644   :  { %19256 = vst [vmem:[#allocation61_spill] sm:$0xff] %v17218_v60  ;;  %19257 = vst [vmem:[#allocation63_spill] sm:$0xff] %v17220_v32  ;;  %10399 = vmatprep.subr.bf16.mxu0 %v10398_v63  ;;  %v8120_v19 = vsel %vm19258_vm0, %v17218_v60, %v17048_v0  ;;  %v8036_v45 = vsel %vm19259_vm14, %v17220_v32, %v17030_v48  ;;  %v9824_v48 = vld [vmem:[%s18171_s3 + $0x46] ss:$8 sm:$0xf]  ;;  %vm19270_vm14 = vcmp.lt.s32.totalorder %v10937_v40, 127 }
 0x645   :  { %v8165_v46 = vmul.f32 %v8128_v54, %v8120_v19  ;;  %v8081_v62 = vmul.f32 %v8044_v18, %v8036_v45  ;;  %v9825_v0 = vld [vmem:[%s18171_s3 + $0x46] ss:$8 sm:$0xf0]  ;;  %vm19269_vm0 = vmmov %vm19268_vm11  ;;  %v8868_v32 = vrot.slane %v16556_v34, %v19264_v21  ;;  %v9048_v7 = vrot.slane %v16659_v14, %v19264_v21 }
 0x646   :  { %8025 = vrot.lane.b32.xlu0 %v17190_v42, %s19056_s4  ;;  %8105 = vrot.lane.b32.xlu1 %v16523_v20, %s19057_s7  ;;  %v17257_v15 = vor.u32 %v9825_v0, %v9824_v48  ;;  %v10661_v19 = vld [vmem:[#allocation2 + $0x360] sm:$0xff] }
 0x647   :  { %10401 = vmatpush1.bf16.msra.mxu0 %v10400_v17  ;;  %8089 = vst [vmem:[#allocation2 + $0x280] sm:$0xff] %v8081_v62  ;;  %v8184_v22 = vpop.permute.xlu0 %8183  ;;  %v8186_v28 = vpop.permute.xlu1 %8185  ;;  %v10404_v3 = vpack.c.bf16 %v8165_v46, %v8081_v62  ;;  %v9257_v46 = vld [vmem:[#allocation2 + $0x358] sm:$0xff]  ;;  %v17275_v62 = vld [vmem:[#allocation2 + $0x368] sm:$0xff] }
 0x648   :  { %10403 = vmatprep.subr.bf16.mxu0 %v10402_v8  ;;  %v8203_v29 = vsel %vm19262_vm15, %v19261_v39, %v8184_v22  ;;  %v8202_v20 = vsel %vm19263_vm12, %v8184_v22, %v8186_v28  ;;  %19265 = vst [vmem:[#allocation62_spill] sm:$0xff] %v17257_v15  ;;  %v8308_v45 = vrot.slane %v17257_v15, %v19221_v43  ;;  %vm19272_vm15 = vmmov %vm19270_vm14  ;;  %vm19274_vm12 = vcmp.lt.s32.totalorder %v10937_v40, 121 }
 0x649   :  { %v8250_v26 = vmul.f32 %v8216_v35, %v8203_v29  ;;  %v8251_v54 = vmul.f32 %v8220_v36, %v8202_v20  ;;  %v9254_v35 = vld [vmem:[#allocation2 + $0x340] sm:$0xff] }
 0x64a   :  { %8107 = vrot.lane.b32.xlu0 %v16535_v57, %s19057_s7  ;;  %8109 = vrot.lane.b32.xlu1 %v17190_v42, %s19057_s7  ;;  %v9826_v36 = vld [vmem:[%s18171_s3 + $0x47] ss:$8 sm:$0xf] }
 0x64b   :  { %10405 = vmatpush1.bf16.msra.mxu0 %v10404_v3  ;;  %v17261_v18 = vpop.permute.xlu0 %8187  ;;  %v17263_v30 = vpop.permute.xlu1 %8195  ;;  %v10406_v10 = vpack.c.bf16 %v9255_v16, %v8250_v26  ;;  %v8312_v3 = vrot.slane %v17257_v15, %v19197_v53  ;;  %v17291_v20 = vor.u32 %v9827_v6, %v9826_v36  ;;  %v8316_v6 = vrot.slane %v17257_v15, %v19264_v21 }
 0x64c   :  { %19266 = vst [vmem:[#allocation66_spill] sm:$0xff] %v17261_v18  ;;  %19267 = vst [vmem:[#allocation65_spill] sm:$0xff] %v17263_v30  ;;  %v8201_v37 = vsel %vm19268_vm11, %v8186_v28, %v17261_v18  ;;  %v8204_v57 = vsel %vm19269_vm0, %v17263_v30, %v19261_v39  ;;  %v9256_v39 = vld [vmem:[#allocation2 + $0x350] sm:$0xff]  ;;  %v9295_v18 = vld [vmem:[#allocation2 + $0x488] sm:$0xff] }
 0x64d   :  { %v8252_v63 = vmul.f32 %v8224_v44, %v8201_v37  ;;  %v8249_v17 = vmul.f32 %v8212_v11, %v8204_v57  ;;  %10407 = vmatprep.subr.bf16.mxu0 %v10406_v10  ;;  %19271 = vst [vmem:[#allocation68_spill] sm:$0xff] %v17291_v20  ;;  %v10460_v44 = vpack.c.bf16 %v9256_v39, %v8251_v54  ;;  %v10663_v57 = vld [vmem:[#allocation2 + $0x378] sm:$0xff]  ;;  %vm19275_vm11 = vmmov %vm19274_vm12 }
 0x64e   :  { %8189 = vrot.lane.b32.xlu0 %v10661_v19, %s19058_s21  ;;  %8191 = vrot.lane.b32.xlu1 %v17275_v62, %s19058_s21  ;;  %v8392_v37 = vrot.slane %v17291_v20, %v19221_v43  ;;  %v8388_v54 = vrot.slane %v17291_v20, %v19222_v9  ;;  %v8396_v36 = vrot.slane %v17291_v20, %v19197_v53  ;;  %vm19277_vm0 = vmmov %vm19275_vm11 }
 0x64f   :  { %v8276_v8 = vpop.permute.xlu0 %8275  ;;  %v8278_v48 = vpop.permute.xlu1 %8277  ;;  %v10408_v0 = vpack.c.bf16 %v9254_v35, %v8249_v17  ;;  %v10458_v22 = vpack.c.bf16 %v9257_v46, %v8252_v63 }
 0x650   :  { %v8294_v28 = vsel %vm19270_vm14, %v8276_v8, %v8278_v48 }
 0x651   :  { %v8342_v29 = vmul.f32 %v8308_v45, %v8294_v28  ;;  %10409 = vmatpush1.bf16.msra.mxu0 %v10408_v0  ;;  %10459 = vmatprep.subr.bf16.mxu1 %v10458_v22  ;;  %v9829_v0 = vld [vmem:[%s18171_s3 + $0x80] ss:$8 sm:$0xf0] }
 0x652   :  { %8193 = vrot.lane.b32.xlu0 %v17190_v42, %s19058_s21  ;;  %8283 = vrot.lane.b32.xlu1 %v17275_v62, %s19079_s11 }
 0x653   :  { %v8280_v26 = vpop.permute.xlu0 %8279  ;;  %v8362_v11 = vpop.permute.xlu1 %8361  ;;  %10461 = vmatpush1.bf16.msra.mxu1 %v10460_v44 }
 0x654   :  { %v8293_v16 = vsel %vm19272_vm15, %v8278_v48, %v8280_v26  ;;  %v9828_v48 = vld [vmem:[%s18171_s3 + $0x80] ss:$8 sm:$0xf]  ;;  %vm19281_vm15 = vmmov %vm19270_vm14 }
 0x655   :  { %v8343_v10 = vmul.f32 %v8312_v3, %v8293_v16  ;;  %v8304_v16 = vrot.slane %v17257_v15, %v19222_v9 }
 0x656   :  { %8285 = vrot.lane.b32.xlu0 %v17190_v42, %s19079_s11  ;;  %8287 = vrot.lane.b32.xlu1 %v10663_v57, %s19079_s11 }
 0x657   :  { %v8360_v63 = vpop.permute.xlu0 %8359  ;;  %v17304_v17 = vpop.permute.xlu1 %8357 }
 0x658   :  { %19273 = vst [vmem:[#allocation67_spill] sm:$0xff] %v17304_v17  ;;  %v8378_v19 = vsel %vm19274_vm12, %v8360_v63, %v8362_v11  ;;  %v8379_v45 = vsel %vm19275_vm11, %v17304_v17, %v8360_v63  ;;  %vm19282_vm12 = vmmov %vm19277_vm0  ;;  %vm19283_vm11 = vcmp.lt.s32.totalorder %v10937_v40, 120 }
 0x659   :  { %v8426_v35 = vmul.f32 %v8392_v37, %v8378_v19  ;;  %v8425_v46 = vmul.f32 %v8388_v54, %v8379_v45  ;;  %v8400_v37 = vrot.slane %v17291_v20, %v19264_v21  ;;  %v17337_v19 = vor.u32 %v9829_v0, %v9828_v48  ;;  %v9830_v48 = vld [vmem:[%s18171_s3 + $0x81] ss:$8 sm:$0xf] }
 0x65a   :  { %8367 = vrot.lane.b32.xlu0 %v17275_v62, %s18886_s18  ;;  %8369 = vrot.lane.b32.xlu1 %v17190_v42, %s18886_s18  ;;  %v17437_v20 = vld [vmem:[#allocation2 + $0x610] sm:$0xff] }
 0x65b   :  { %v8364_v22 = vpop.permute.xlu0 %8363  ;;  %v17325_v28 = vpop.permute.xlu1 %8281  ;;  %v10410_v3 = vpack.c.bf16 %v8426_v35, %v8342_v29  ;;  %19278 = vst [vmem:[#allocation73_spill] sm:$0xff] %v17337_v19 }
 0x65c   :  { %19276 = vst [vmem:[#allocation69_spill] sm:$0xff] %v17325_v28  ;;  %v8377_v39 = vsel %vm19277_vm0, %v8362_v11, %v8364_v22  ;;  %v8292_v44 = vsel %vm19270_vm14, %v8280_v26, %v17325_v28  ;;  %vm19286_vm0 = vmmov %vm19283_vm11  ;;  %v19298_v28 = vld [vmem:[#allocation105_spill] sm:$0xff] }
 0x65d   :  { %v8427_v54 = vmul.f32 %v8396_v36, %v8377_v39  ;;  %v8344_v63 = vmul.f32 %v8316_v6, %v8292_v44  ;;  %10411 = vmatprep.subr.bf16.mxu0 %v10410_v3  ;;  %v8476_v6 = vrot.slane %v17337_v19, %v19221_v43  ;;  %vm19287_vm14 = vmmov %vm19286_vm0  ;;  %v8808_v30 = vrot.slane %v19298_v28, %v19264_v21 }
 0x65e   :  { %8371 = vrot.lane.b32.xlu0 %v10663_v57, %s18886_s18  ;;  %8451 = vrot.lane.b32.xlu1 %v17275_v62, %s18922_s23 }
 0x65f   :  { %v17341_v29 = vpop.permute.xlu0 %8273  ;;  %v17343_v11 = vpop.permute.xlu1 %8365  ;;  %v10464_v17 = vpack.c.bf16 %v8427_v54, %v8343_v10 }
 0x660   :  { %19279 = vst [vmem:[#allocation71_spill] sm:$0xff] %v17341_v29  ;;  %19280 = vst [vmem:[#allocation70_spill] sm:$0xff] %v17343_v11  ;;  %v8295_v26 = vsel %vm19281_vm15, %v17341_v29, %v8276_v8  ;;  %v8376_v45 = vsel %vm19282_vm12, %v8364_v22, %v17343_v11  ;;  %v9831_v8 = vld [vmem:[%s18171_s3 + $0x81] ss:$8 sm:$0xf0] }
 0x661   :  { %v8341_v35 = vmul.f32 %v8304_v16, %v8295_v26  ;;  %v8428_v36 = vmul.f32 %v8400_v37, %v8376_v45  ;;  %v8480_v16 = vrot.slane %v17337_v19, %v19197_v53  ;;  %v8484_v37 = vrot.slane %v17337_v19, %v19264_v21  ;;  %vm19291_vm15 = vmmov %vm19286_vm0 }
 0x662   :  { %8453 = vrot.lane.b32.xlu0 %v17190_v42, %s18922_s23  ;;  %8455 = vrot.lane.b32.xlu1 %v10663_v57, %s18922_s23  ;;  %v17370_v45 = vor.u32 %v9831_v8, %v9830_v48 }
 0x663   :  { %v8444_v0 = vpop.permute.xlu0 %8443  ;;  %v8446_v22 = vpop.permute.xlu1 %8445  ;;  %v10412_v3 = vpack.c.bf16 %v8425_v46, %v8341_v35  ;;  %v10462_v39 = vpack.c.bf16 %v8428_v36, %v8344_v63 }
 0x664   :  { %v8462_v44 = vsel %vm19283_vm11, %v8444_v0, %v8446_v22  ;;  %19284 = vst [vmem:[#allocation72_spill] sm:$0xff] %v17370_v45  ;;  %v8564_v8 = vrot.slane %v17370_v45, %v19197_v53 }
 0x665   :  { %v8510_v26 = vmul.f32 %v8476_v6, %v8462_v44  ;;  %10413 = vmatpush1.bf16.msra.mxu0 %v10412_v3  ;;  %10463 = vmatprep.subr.bf16.mxu1 %v10462_v39 }
 0x666   :  { %8535 = vrot.lane.b32.xlu0 %v17275_v62, %s18918_s19  ;;  %8537 = vrot.lane.b32.xlu1 %v17190_v42, %s18918_s19  ;;  %v8560_v42 = vrot.slane %v17370_v45, %v19221_v43 }
 0x667   :  { %8518 = vst [vmem:[#allocation2 + $0x408] sm:$0xff] %v8510_v26  ;;  %v8448_v46 = vpop.permute.xlu0 %8447  ;;  %v17374_v63 = vpop.permute.xlu1 %8449  ;;  %10465 = vmatpush1.bf16.msra.mxu1 %v10464_v17 }
 0x668   :  { %19285 = vst [vmem:[#allocation74_spill] sm:$0xff] %v17374_v63  ;;  %v8461_v35 = vsel %vm19286_vm0, %v8446_v22, %v8448_v46  ;;  %v8460_v62 = vsel %vm19287_vm14, %v8448_v46, %v17374_v63  ;;  %v8568_v22 = vrot.slane %v17370_v45, %v19264_v21  ;;  %vm19368_vm0 = vcmp.lt.s32.totalorder %v10937_v40, 1 }
 0x669   :  { %v8511_v36 = vmul.f32 %v8480_v16, %v8461_v35  ;;  %v8512_v6 = vmul.f32 %v8484_v37, %v8460_v62  ;;  %v17397_v16 = vld [vmem:[#allocation2 + $0x4d0] sm:$0xff]  ;;  %v8472_v35 = vrot.slane %v17337_v19, %v19222_v9  ;;  %v8556_v62 = vrot.slane %v17370_v45, %v19222_v9  ;;  %v19295_v45 = vld [vmem:[#allocation100_spill] sm:$0xff]  ;;  %vm19369_vm14 = vmmov %vm19368_vm0 }
 0x66a   :  { %8539 = vrot.lane.b32.xlu0 %v10663_v57, %s18918_s19  ;;  %v17399_v37 = vld [vmem:[#allocation2 + $0x550] sm:$0xff]  ;;  %v19296_v19 = vld [vmem:[#allocation48_spill] sm:$0xff] }
 0x66b   :  { %8519 = vst [vmem:[#allocation2 + $0x410] sm:$0xff] %v8511_v36  ;;  %8520 = vst [vmem:[#allocation2 + $0x418] sm:$0xff] %v8512_v6  ;;  %v8528_v10 = vpop.permute.xlu0 %8527  ;;  %v8530_v54 = vpop.permute.xlu1 %8529  ;;  %v17419_v9 = vld [vmem:[#allocation2 + $0x650] sm:$0xff]  ;;  %v8688_v11 = vrot.slane %v19296_v19, %v19264_v21 }
 0x66c   :  { %v8546_v17 = vsel %vm2621_vm13, %v8528_v10, %v8530_v54 }
 0x66d   :  { %v8594_v48 = vmul.f32 %v8560_v42, %v8546_v17  ;;  %v17407_v42 = vld [vmem:[#allocation2 + $0x510] sm:$0xff] }
 0x66f   :  { %v8532_v3 = vpop.permute.xlu0 %8531  ;;  %v17390_v39 = vpop.permute.xlu1 %8533  ;;  %v10414_v57 = vpack.c.bf16 %v8594_v48, %v8510_v26  ;;  %v17405_v26 = vld [vmem:[#allocation2 + $0x490] sm:$0xff] }
 0x670   :  { %19288 = vst [vmem:[#allocation75_spill] sm:$0xff] %v17390_v39  ;;  %v8545_v43 = vsel %vm2621_vm13, %v8530_v54, %v8532_v3  ;;  %v8544_v44 = vsel %vm2621_vm13, %v8532_v3, %v17390_v39 }
 0x671   :  { %v8595_v46 = vmul.f32 %v8564_v8, %v8545_v43  ;;  %v8596_v53 = vmul.f32 %v8568_v22, %v8544_v44  ;;  %10415 = vmatprep.subr.bf16.mxu0 %v10414_v57  ;;  %v17417_v43 = vld [vmem:[#allocation2 + $0x5d0] sm:$0xff] }
 0x673   :  { %v17409_v54 = vpop.permute.xlu0 %8441  ;;  %v17411_v17 = vpop.permute.xlu1 %8525  ;;  %v10466_v48 = vpack.c.bf16 %v8596_v53, %v8512_v6  ;;  %v10468_v3 = vpack.c.bf16 %v8595_v46, %v8511_v36  ;;  %v19292_v6 = vld [vmem:[#allocation111_spill] sm:$0xff]  ;;  %v19293_v36 = vld [vmem:[#allocation46_spill] sm:$0xff]  ;;  %v19294_v53 = vld [vmem:[#allocation101_spill] sm:$0xff] }
 0x674   :  { %19289 = vst [vmem:[#allocation77_spill] sm:$0xff] %v17409_v54  ;;  %19290 = vst [vmem:[#allocation79_spill] sm:$0xff] %v17411_v17  ;;  %v8463_v57 = vsel %vm19291_vm15, %v17409_v54, %v8444_v0  ;;  %v8547_v44 = vsel %vm2621_vm13, %v17411_v17, %v8528_v10  ;;  %v7220_v46 = vrot.slane %v19293_v36, %v19292_v6  ;;  %v9303_v0 = vld [vmem:[#allocation2 + $0x4c8] sm:$0xff]  ;;  %v17435_v54 = vld [vmem:[#allocation2 + $0x590] sm:$0xff] }
 0x675   :  { %v8628_v8 = vrot.slane %v19294_v53, %v19264_v21  ;;  %v8509_v39 = vmul.f32 %v8472_v35, %v8463_v57  ;;  %v8593_v22 = vmul.f32 %v8556_v62, %v8547_v44  ;;  %v7304_v63 = vrot.slane %v19295_v45, %v19292_v6  ;;  %10467 = vmatprep.subr.bf16.mxu1 %v10466_v48  ;;  %v19297_v44 = vld [vmem:[#allocation37_spill] sm:$0xff]  ;;  %v19299_v35 = vld [vmem:[#allocation30_spill] sm:$0xff]  ;;  %vm19372_vm15 = vmmov %vm19368_vm0 }
 0x676   :  { %v7388_v10 = vrot.slane %v19243_v23, %v19292_v6  ;;  %v8748_v17 = vrot.slane %v19246_v31, %v19264_v21  ;;  %10469 = vmatpush1.bf16.msra.mxu1 %v10468_v3  ;;  %v7472_v29 = vrot.slane %v19297_v44, %v19292_v6  ;;  %v10418_v38 = vpack.c.bf16 %v9303_v0, %v9295_v18  ;;  %v9294_v0 = vld [vmem:[#allocation2 + $0x480] sm:$0xff]  ;;  %v19302_v18 = vld [vmem:[#allocation18_spill] sm:$0xff] }
 0x677   :  { %8517 = vst [vmem:[#allocation2 + $0x400] sm:$0xff] %v8509_v39  ;;  %v17447_v48 = vpop.permute.xlu0 %7181  ;;  %v17449_v57 = vpop.permute.xlu1 %7265  ;;  %v10416_v15 = vpack.c.bf16 %v8593_v22, %v8509_v39  ;;  %v9366_v39 = vld [vmem:[%s18177_s9] sm:$0xf] }
 0x678   :  { %v7192_v62 = vsel %vm150_vm2, %v19299_v35, %v17447_v48  ;;  %v7276_v60 = vsel %vm275_vm1, %v19300_v33, %v17449_v57  ;;  %v7640_v33 = vrot.slane %v16584_v27, %v19292_v6  ;;  %9369 = vperm.xlu1 %10626, %v9366_v39  }
 0x679   :  { %v17470_v22 = vmul.f32 %v7220_v46, %v7192_v62  ;;  %v8656_v3 = vmul.f32 %v8628_v8, %v7192_v62  ;;  %v17472_v56 = vmul.f32 %v7304_v63, %v7276_v60  ;;  %v8716_v35 = vmul.f32 %v8688_v11, %v7276_v60  ;;  %10417 = vmatpush1.bf16.msra.mxu0 %v10416_v15  ;;  %v9311_v46 = vld [vmem:[#allocation2 + $0x508] sm:$0xff] }
 0x67a   :  { %10419 = vmatprep.subr.bf16.mxu0 %v10418_v38  ;;  %v10420_v63 = vpack.c.bf16 %v9302_v1, %v9294_v0  ;;  %v19301_v62 = vld [vmem:[#allocation108_spill] sm:$0xff]  ;;  %v10422_v11 = vpack.c.bf16 %v9319_v24, %v9311_v46  ;;  %v9310_v46 = vld [vmem:[#allocation2 + $0x500] sm:$0xff] }
 0x67b   :  { %7253 = vst [vmem:[#allocation2 + $0x20] sm:$0xff] %v17470_v22  ;;  %7337 = vst [vmem:[#allocation2 + $0x60] sm:$0xff] %v17472_v56  ;;  %v17482_v60 = vpop.permute.xlu0 %7349  ;;  %v17484_v15 = vpop.permute.xlu1 %7433  ;;  %v10470_v8 = vpack.c.bf16 %v8716_v35, %v8656_v3  ;;  %v9335_v0 = vld [vmem:[#allocation2 + $0x5c8] sm:$0xff] }
 0x67c   :  { %8724 = vst [vmem:[#allocation2 + $0x4d8] sm:$0xff] %v8716_v35  ;;  %v7360_v39 = vsel %vm457_vm3, %v19301_v62, %v17482_v60  ;;  %v7444_v55 = vsel %vm583_vm4, %v19302_v18, %v17484_v15  ;;  %v19303_v62 = vld [vmem:[#allocation124_spill] sm:$0xff]  ;;  %v19307_v18 = vld [vmem:[#allocation35_spill] sm:$0xff] }
 0x67d   :  { %v17500_v50 = vmul.f32 %v7388_v10, %v7360_v39  ;;  %v8776_v1 = vmul.f32 %v8748_v17, %v7360_v39  ;;  %v17502_v3 = vmul.f32 %v7472_v29, %v7444_v55  ;;  %v8836_v35 = vmul.f32 %v8808_v30, %v7444_v55  ;;  %10421 = vmatpush1.bf16.msra.mxu0 %v10420_v63  ;;  %v19306_v39 = vld [vmem:[#allocation58_spill] sm:$0xff]  ;;  %v9334_v17 = vld [vmem:[#allocation2 + $0x5c0] sm:$0xff] }
 0x67e   :  { %10471 = vmatprep.subr.bf16.mxu1 %v10470_v8  ;;  %10423 = vmatprep.subr.bf16.mxu0 %v10422_v11  ;;  %v7224_v38 = vrot.slane %v19293_v36, %v19303_v62  ;;  %v19305_v30 = vpack.c.bf16 %v17397_v16, %v17405_v26  ;;  %v10424_v11 = vpack.c.bf16 %v9318_v51, %v9310_v46  ;;  %v9327_v8 = vld [vmem:[#allocation2 + $0x588] sm:$0xff]  ;;  %v9326_v26 = vld [vmem:[#allocation2 + $0x580] sm:$0xff] }
 0x67f   :  { %7421 = vst [vmem:[#allocation2 + $0xa0] sm:$0xff] %v17500_v50  ;;  %7505 = vst [vmem:[#allocation2 + $0xe0] sm:$0xff] %v17502_v3  ;;  %v17512_v29 = vpop.permute.xlu0 %7517  ;;  %v17514_v55 = vpop.permute.xlu1 %7601  ;;  %v10474_v63 = vpack.c.bf16 %v8836_v35, %v8776_v1  ;;  %v19308_v51 = vrot.slane %v16550_v13, %v19292_v6 }
 0x680   :  { %10473 = vmatpush1.bf16.msra.mxu1 %v19305_v30  ;;  %v7528_v24 = vsel %vm765_vm6, %v19306_v39, %v17512_v29  ;;  %v7612_v16 = vsel %vm891_vm5, %v19307_v18, %v17514_v55  ;;  %v10426_v30 = vpack.c.bf16 %v9335_v0, %v9327_v8  ;;  %v9351_v39 = vld [vmem:[#allocation2 + $0x648] sm:$0xff]  ;;  %v19311_v0 = vld [vmem:[#allocation103_spill] sm:$0xff] }
 0x681   :  { %v17536_v1 = vmul.f32 %v19308_v51, %v7528_v24  ;;  %v8896_v35 = vmul.f32 %v8868_v32, %v7528_v24  ;;  %v17538_v46 = vmul.f32 %v7640_v33, %v7612_v16  ;;  %v8956_v10 = vmul.f32 %v8928_v4, %v7612_v16  ;;  %10425 = vmatpush1.bf16.msra.mxu0 %v10424_v11  ;;  %v19310_v51 = vld [vmem:[#allocation40_spill] sm:$0xff]  ;;  %v9350_v24 = vld [vmem:[#allocation2 + $0x640] sm:$0xff] }
 0x682   :  { %10475 = vmatprep.subr.bf16.mxu1 %v10474_v63  ;;  %10427 = vmatprep.subr.bf16.mxu0 %v10426_v30  ;;  %v19309_v33 = vpack.c.bf16 %v17399_v37, %v17407_v42  ;;  %v10428_v63 = vpack.c.bf16 %v9334_v17, %v9326_v26  ;;  %v9343_v30 = vld [vmem:[#allocation2 + $0x608] sm:$0xff]  ;;  %v8700_v42 = vrot.slane %v19296_v19, %v19304_v58  ;;  %v9342_v18 = vld [vmem:[#allocation2 + $0x600] sm:$0xff] }
 0x683   :  { %7589 = vst [vmem:[#allocation2 + $0x120] sm:$0xff] %v17536_v1  ;;  %8904 = vst [vmem:[#allocation2 + $0x598] sm:$0xff] %v8896_v35  ;;  %v17548_v4 = vpop.permute.xlu0 %7685  ;;  %v17550_v32 = vpop.permute.xlu1 %7769  ;;  %v10478_v16 = vpack.c.bf16 %v8956_v10, %v8896_v35  ;;  %v19312_v17 = vrot.slane %v16618_v61, %v19292_v6  ;;  %v19313_v26 = vrot.slane %v16624_v12, %v19264_v21 }
 0x684   :  { %7673 = vst [vmem:[#allocation2 + $0x160] sm:$0xff] %v17538_v46  ;;  %10477 = vmatpush1.bf16.msra.mxu1 %v19309_v33  ;;  %v7696_v8 = vsel %vm1073_vm7, %v19310_v51, %v17548_v4  ;;  %v7780_v37 = vsel %vm1199_vm8, %v19311_v0, %v17550_v32  ;;  %v10430_v33 = vpack.c.bf16 %v9351_v39, %v9343_v30 }
 0x685   :  { %v17572_v10 = vmul.f32 %v19312_v17, %v7696_v8  ;;  %v9016_v35 = vmul.f32 %v19313_v26, %v7696_v8  ;;  %v19314_v51 = vrot.slane %v16653_v2, %v19292_v6  ;;  %v9076_v0 = vmul.f32 %v9048_v7, %v7780_v37  ;;  %10429 = vmatpush1.bf16.msra.mxu0 %v10428_v63 }
 0x686   :  { %10479 = vmatprep.subr.bf16.mxu1 %v10478_v16  ;;  %10431 = vmatprep.subr.bf16.mxu0 %v10430_v33  ;;  %v7892_v39 = vrot.slane %v16687_v5, %v19292_v6  ;;  %v9108_v30 = vrot.slane %v16693_v41, %v19264_v21  ;;  %v19315_v63 = vpack.c.bf16 %v17417_v43, %v17435_v54 }
 0x687   :  { %v17580_v11 = vmul.f32 %v19314_v51, %v7780_v37  ;;  %7757 = vst [vmem:[#allocation2 + $0x1a0] sm:$0xff] %v17572_v10  ;;  %9084 = vst [vmem:[#allocation2 + $0x658] sm:$0xff] %v9076_v0  ;;  %v7184_v8 = vpop.permute.xlu0 %7183  ;;  %v7186_v7 = vpop.permute.xlu1 %7185  ;;  %v8752_v16 = vrot.slane %v19246_v31, %v19292_v6  ;;  %v10432_v37 = vpack.c.bf16 %v9350_v24, %v9342_v18 }
 0x688   :  { %10481 = vmatpush1.bf16.msra.mxu1 %v19315_v63  ;;  %v10482_v33 = vpack.c.bf16 %v9076_v0, %v9016_v35  ;;  %v7396_v26 = vrot.slane %v19243_v23, %v19304_v58  ;;  %v7191_v51 = vsel %vm150_vm2, %v17447_v48, %v7184_v8  ;;  %v7189_v17 = vsel %vm150_vm2, %v7186_v7, %v17088_v59 }
 0x689   :  { %7841 = vst [vmem:[#allocation2 + $0x1e0] sm:$0xff] %v17580_v11  ;;  %v7190_v54 = vsel %vm150_vm2, %v7184_v8, %v7186_v7  ;;  %v7246_v18 = vmul.f32 %v7224_v38, %v7191_v51  ;;  %v19316_v24 = vrot.slane %v19294_v53, %v19292_v6  ;;  %v19317_v48 = vrot.slane %v19293_v36, %v19304_v58  ;;  %v9359_v7 = vld [vmem:[#allocation2 + $0x688] sm:$0xff] }
 0x68a   :  { %v19318_v59 = vrot.slane %v19293_v36, %v19239_v25  ;;  %10433 = vmatpush1.bf16.msra.mxu0 %v10432_v37  ;;  %v19319_v63 = vrot.slane %v19294_v53, %v19303_v62  ;;  %v19320_v43 = vrot.slane %v19294_v53, %v19304_v58  ;;  %10483 = vmatprep.subr.bf16.mxu1 %v10482_v33 }
 0x68b   :  { %v8657_v35 = vmul.f32 %v19316_v24, %v7191_v51  ;;  %v17616_v0 = vmul.f32 %v19317_v48, %v7190_v54  ;;  %9428 = vmatprep.subr.mxu0 %v9359_v7  ;;  %v8756_v24 = vrot.slane %v19246_v31, %v19303_v62  ;;  %v7268_v48 = vpop.permute.xlu0 %7267  ;;  %v7270_v36 = vpop.permute.xlu1 %7269  ;;  %v19321_v37 = vpack.c.bf16 %v17419_v9, %v17437_v20 }
 0x68c   :  { %v17621_v8 = vmul.f32 %v19318_v59, %v7189_v17  ;;  %v8658_v38 = vmul.f32 %v19319_v63, %v7190_v54  ;;  %v8659_v51 = vmul.f32 %v19320_v43, %v7189_v17  ;;  %v8760_v59 = vrot.slane %v19246_v31, %v19304_v58  ;;  %v9358_v43 = vld [vmem:[#allocation2 + $0x680] sm:$0xff] }
 0x68d   :  { %8665 = vst [vmem:[#allocation2 + $0x4a0] sm:$0xff] %v8657_v35  ;;  %10485 = vmatpush1.bf16.msra.mxu1 %v19321_v37  ;;  %v7476_v54 = vrot.slane %v19297_v44, %v19303_v62  ;;  %v8812_v53 = vrot.slane %v19298_v28, %v19292_v6  ;;  %v7275_v33 = vsel %vm275_vm1, %v17449_v57, %v7268_v48 }
 0x68e   :  { %8666 = vst [vmem:[#allocation2 + $0x4a8] sm:$0xff] %v8658_v38  ;;  %8667 = vst [vmem:[#allocation2 + $0x4b0] sm:$0xff] %v8659_v51  ;;  %v7273_v20 = vsel %vm275_vm1, %v7270_v36, %v17086_v47  ;;  %v7274_v9 = vsel %vm275_vm1, %v7268_v48, %v7270_v36  ;;  %v19322_v7 = vrot.slane %v19295_v45, %v19303_v62  ;;  %9429 = vmatpush1.msra.mxu0 %v9358_v43 }
 0x68f   :  { %v19323_v38 = vrot.slane %v19296_v19, %v19292_v6  ;;  %v19324_v57 = vrot.slane %v19295_v45, %v19304_v58  ;;  %v19325_v47 = vrot.slane %v19295_v45, %v19239_v25  ;;  %v19326_v36 = vrot.slane %v19296_v19, %v19303_v62  ;;  %v17682_v19 = vpop.permute.xlu0 %7853  ;;  %v7352_v45 = vpop.permute.xlu1 %7351 }
 0x690   :  { %v7330_v63 = vmul.f32 %v19322_v7, %v7275_v33  ;;  %v8719_v7 = vmul.f32 %v8700_v42, %v7273_v20  ;;  %v8816_v17 = vrot.slane %v19298_v28, %v19303_v62  ;;  %v7560_v42 = vrot.slane %v16550_v13, %v19303_v62 }
 0x691   :  { %v8717_v51 = vmul.f32 %v19323_v38, %v7275_v33  ;;  %v17661_v37 = vmul.f32 %v19324_v57, %v7274_v9  ;;  %v7332_v48 = vmul.f32 %v19325_v47, %v7273_v20  ;;  %v17669_v35 = vmul.f32 %v19326_v36, %v7274_v9  ;;  %v17678_v38 = vld [vmem:[%s18176_s6] sm:$0xff] }
 0x692   :  { %v8820_v33 = vrot.slane %v19298_v28, %v19304_v58  ;;  %9441 = vmatmul.mubr.f32.vlgmr.msra.gmra.mrb[8].mxu0 %v17678_v38  ;;  %7338 = vst [vmem:[#allocation2 + $0x68] sm:$0xff] %v7330_v63  ;;  %v10486_v9 = vpack.c.bf16 %v7330_v63, %v7246_v18  ;;  %v19327_v57 = vld [vmem:[#allocation47_spill] sm:$0xff]  ;;  %8727 = vst [vmem:[#allocation2 + $0x4f0] sm:$0xff] %v8719_v7  ;;  %v7359_v36 = vsel %vm457_vm3, %v17482_v60, %v7352_v45 }
 0x693   :  { %8725 = vst [vmem:[#allocation2 + $0x4e0] sm:$0xff] %v8717_v51  ;;  %7339 = vst [vmem:[#allocation2 + $0x70] sm:$0xff] %v17661_v37  ;;  %9852 = vmatprep.mubr.msk.f32.mxu0 %vm6822_vm9, %v19327_v57  ;;  %v19328_v51 = vld [vmem:[#allocation122_spill] sm:$0xff]  ;;  %v10488_v18 = vpack.c.bf16 %v17472_v56, %v17470_v22  ;;  %v7568_v63 = vrot.slane %v16550_v13, %v19239_v25  ;;  %v17718_v56 = vmul.f32 %v8752_v16, %v7359_v36  ;;  %v7436_v16 = vpop.permute.xlu1 %7435 }
 0x694   :  { %7340 = vst [vmem:[#allocation2 + $0x78] sm:$0xff] %v7332_v48  ;;  %8726 = vst [vmem:[#allocation2 + $0x4e8] sm:$0xff] %v17669_v35  ;;  %v7864_v47 = vsel %vm1381_vm10, %v19328_v51, %v17682_v19  ;;  %v19329_v51 = vrot.slane %v19243_v23, %v19303_v62  ;;  %10487 = vmatprep.subr.bf16.mxu0 %v10486_v9  ;;  %v8876_v22 = vrot.slane %v16556_v34, %v19303_v62  ;;  %v9360_v9 = vld [vmem:[#allocation2 + $0x690] sm:$0xff] }
 0x695   :  { %v17707_v43 = vmul.f32 %v7892_v39, %v7864_v47  ;;  %v9136_v7 = vmul.f32 %v9108_v30, %v7864_v47  ;;  %10489 = vmatpush1.bf16.msra.mxu0 %v10488_v18  ;;  %v8880_v60 = vrot.slane %v16556_v34, %v19304_v58  ;;  %8785 = vst [vmem:[#allocation2 + $0x520] sm:$0xff] %v17718_v56  ;;  %v7354_v30 = vpop.permute.xlu0 %7353  ;;  %vm19347_vm1 = vcmp.lt.s32.totalorder %v10937_v40, 9 }
 0x696   :  { %v7414_v20 = vmul.f32 %v19329_v51, %v7359_v36  ;;  %v10538_v47 = vpack.c.bf16 %v7332_v48, %v17621_v8  ;;  %v7648_v36 = vrot.slane %v16584_v27, %v19304_v58  ;;  %v7357_v39 = vsel %vm457_vm3, %v7354_v30, %v17112_v52  ;;  %vm19348_vm2 = vmmov %vm19347_vm1 }
 0x697   :  { %7925 = vst [vmem:[#allocation2 + $0x220] sm:$0xff] %v17707_v43  ;;  %9499 = vmatprep.subr.mxu1 %v9136_v7  ;;  %v7358_v21 = vsel %vm457_vm3, %v7352_v45, %v7354_v30  ;;  %v7443_v8 = vsel %vm583_vm4, %v17484_v15, %v7436_v16  ;;  %v10540_v48 = vpack.c.bf16 %v17661_v37, %v17616_v0  ;;  %v19331_v45 = vld [vmem:[#allocation104_spill] sm:$0xff]  ;;  %vm19350_vm3 = vmmov %vm19347_vm1 }
 0x698   :  { %9500 = vmatpush1.msra.mxu1 %v9360_v9  ;;  %v7415_v7 = vmul.f32 %v7396_v26, %v7358_v21  ;;  %v19330_v51 = vrot.slane %v19243_v23, %v19239_v25  ;;  %v17756_v52 = vmul.f32 %v8756_v24, %v7358_v21  ;;  %v17761_v15 = vmul.f32 %v8760_v59, %v7357_v39  ;;  %v7520_v59 = vpop.permute.xlu1 %7519 }
 0x699   :  { %10539 = vmatprep.subr.bf16.mxu1 %v10538_v47  ;;  %v7498_v0 = vmul.f32 %v7476_v54, %v7443_v8  ;;  %v17769_v23 = vmul.f32 %v8812_v53, %v7443_v8  ;;  %9512 = vmatmul.mubr.f32.vlgmr.msra.gmra.mrb[8].mxu1 %v17678_v38  ;;  %v8940_v26 = vrot.slane %v16590_v49, %v19304_v58  ;;  %v7438_v24 = vpop.permute.xlu0 %7437 }
 0x69a   :  { %v7416_v18 = vmul.f32 %v19330_v51, %v7357_v39  ;;  %v7728_v31 = vrot.slane %v16618_v61, %v19303_v62  ;;  %8786 = vst [vmem:[#allocation2 + $0x528] sm:$0xff] %v17756_v52  ;;  %10541 = vmatpush1.bf16.msra.mxu1 %v10540_v48  ;;  %v8992_v54 = vrot.slane %v16624_v12, %v19292_v6 }
 0x69b   :  { %v10492_v53 = vpack.c.bf16 %v17502_v3, %v17500_v50  ;;  %v7732_v37 = vrot.slane %v16618_v61, %v19304_v58  ;;  %9853 = vmatprep.mubr.msk.f32.mxu1 %vm6822_vm9, %v19327_v57  ;;  %8845 = vst [vmem:[#allocation2 + $0x560] sm:$0xff] %v17769_v23  ;;  %v7441_v21 = vsel %vm583_vm4, %v7438_v24, %v19331_v45  ;;  %v19335_v45 = vld [vmem:[#allocation107_spill] sm:$0xff] }
 0x69c   :  { %v7442_v39 = vsel %vm583_vm4, %v7436_v16, %v7438_v24  ;;  %v7527_v30 = vsel %vm765_vm6, %v17512_v29, %v7520_v59  ;;  %v10490_v50 = vpack.c.bf16 %v7498_v0, %v7414_v20  ;;  %v19332_v3 = vrot.slane %v19297_v44, %v19304_v58  ;;  %vm19351_vm4 = vmmov %vm19347_vm1 }
 0x69d   :  { %v19333_v57 = vrot.slane %v19297_v44, %v19239_v25  ;;  %v17803_v51 = vmul.f32 %v8816_v17, %v7442_v39  ;;  %v17808_v16 = vmul.f32 %v8820_v33, %v7441_v21  ;;  %v7582_v29 = vmul.f32 %v7560_v42, %v7527_v30  ;;  %v7522_v28 = vpop.permute.xlu0 %7521  ;;  %v7604_v33 = vpop.permute.xlu1 %7603 }
 0x69e   :  { %v7499_v9 = vmul.f32 %v19332_v3, %v7442_v39  ;;  %v19334_v20 = vrot.slane %v16556_v34, %v19292_v6  ;;  %10491 = vmatprep.subr.bf16.mxu0 %v10490_v50  ;;  %v7736_v44 = vrot.slane %v16618_v61, %v19239_v25  ;;  %v10528_v17 = vpack.c.bf16 %v17769_v23, %v17718_v56 }
 0x69f   :  { %v7500_v47 = vmul.f32 %v19333_v57, %v7441_v21  ;;  %8846 = vst [vmem:[#allocation2 + $0x568] sm:$0xff] %v17803_v51  ;;  %10493 = vmatpush1.bf16.msra.mxu0 %v10492_v53  ;;  %v10526_v42 = vpack.c.bf16 %v17803_v51, %v17756_v52  ;;  %v10580_v24 = vpack.c.bf16 %v17808_v16, %v17761_v15  ;;  %7590 = vst [vmem:[#allocation2 + $0x128] sm:$0xff] %v7582_v29  ;;  %v9349_v52 = vld [vmem:[#allocation2 + $0x638] sm:$0xff] }
 0x6a0   :  { %v17816_v8 = vmul.f32 %v19334_v20, %v7527_v30  ;;  %v10544_v0 = vpack.c.bf16 %v7499_v9, %v7415_v7  ;;  %v7525_v21 = vsel %vm765_vm6, %v7522_v28, %v19335_v45  ;;  %v7526_v39 = vsel %vm765_vm6, %v7520_v59, %v7522_v28  ;;  %v9357_v51 = vld [vmem:[#allocation2 + $0x678] sm:$0xff] }
 0x6a1   :  { %v10542_v48 = vpack.c.bf16 %v7500_v47, %v7416_v18  ;;  %v7611_v18 = vsel %vm891_vm5, %v17514_v55, %v7604_v33  ;;  %v8996_v7 = vrot.slane %v16624_v12, %v19303_v62  ;;  %v19336_v53 = vrot.slane %v16550_v13, %v19304_v58  ;;  %v7606_v34 = vpop.permute.xlu0 %7605  ;;  %v9365_v15 = vld [vmem:[#allocation2 + $0x6b8] sm:$0xff] }
 0x6a2   :  { %8905 = vst [vmem:[#allocation2 + $0x5a0] sm:$0xff] %v17816_v8  ;;  %v7584_v50 = vmul.f32 %v7568_v63, %v7525_v21  ;;  %v17847_v3 = vmul.f32 %v8876_v22, %v7526_v39  ;;  %v17852_v55 = vmul.f32 %v8880_v60, %v7525_v21  ;;  %v19337_v59 = vrot.slane %v16584_v27, %v19303_v62  ;;  %v7688_v60 = vpop.permute.xlu1 %7687 }
 0x6a3   :  { %v7583_v30 = vmul.f32 %v19336_v53, %v7526_v39  ;;  %10543 = vmatprep.subr.bf16.mxu1 %v10542_v48  ;;  %v19338_v57 = vrot.slane %v16590_v49, %v19292_v6  ;;  %v9000_v63 = vrot.slane %v16624_v12, %v19304_v58  ;;  %v7812_v22 = vrot.slane %v16653_v2, %v19303_v62  ;;  %v19339_v48 = vld [vmem:[#allocation54_spill] sm:$0xff] }
 0x6a4   :  { %v7666_v9 = vmul.f32 %v19337_v59, %v7611_v18  ;;  %10545 = vmatpush1.bf16.msra.mxu1 %v10544_v0  ;;  %7592 = vst [vmem:[#allocation2 + $0x138] sm:$0xff] %v7584_v50  ;;  %8906 = vst [vmem:[#allocation2 + $0x5a8] sm:$0xff] %v17847_v3  ;;  %v9052_v47 = vrot.slane %v16659_v14, %v19292_v6  ;;  %v7816_v20 = vrot.slane %v16653_v2, %v19304_v58 }
 0x6a5   :  { %v17860_v13 = vmul.f32 %v19338_v57, %v7611_v18  ;;  %7591 = vst [vmem:[#allocation2 + $0x130] sm:$0xff] %v7583_v30  ;;  %8907 = vst [vmem:[#allocation2 + $0x5b0] sm:$0xff] %v17852_v55  ;;  %v7820_v12 = vrot.slane %v16653_v2, %v19239_v25  ;;  %v10496_v28 = vpack.c.bf16 %v17538_v46, %v17536_v1  ;;  %v7690_v59 = vpop.permute.xlu0 %7689 }
 0x6a6   :  { %v7609_v0 = vsel %vm891_vm5, %v7606_v34, %v19339_v48  ;;  %v7610_v45 = vsel %vm891_vm5, %v7604_v33, %v7606_v34  ;;  %v7695_v21 = vsel %vm1073_vm7, %v17548_v4, %v7688_v60  ;;  %v10494_v39 = vpack.c.bf16 %v7666_v9, %v7582_v29  ;;  %v7772_v48 = vpop.permute.xlu1 %7771 }
 0x6a7   :  { %v7667_v18 = vmul.f32 %v7648_v36, %v7610_v45  ;;  %v19340_v2 = vrot.slane %v16584_v27, %v19239_v25  ;;  %v19341_v46 = vrot.slane %v16590_v49, %v19303_v62  ;;  %v17898_v33 = vmul.f32 %v8940_v26, %v7609_v0 }
 0x6a8   :  { %v7750_v4 = vmul.f32 %v7728_v31, %v7695_v21  ;;  %v17903_v29 = vmul.f32 %v8992_v54, %v7695_v21  ;;  %v9056_v27 = vrot.slane %v16659_v14, %v19303_v62  ;;  %10495 = vmatprep.subr.bf16.mxu0 %v10494_v39  ;;  %v10532_v36 = vpack.c.bf16 %v17860_v13, %v17816_v8  ;;  %v19342_v31 = vld [vmem:[#allocation57_spill] sm:$0xff] }
 0x6a9   :  { %v7668_v1 = vmul.f32 %v19340_v2, %v7609_v0  ;;  %v17893_v53 = vmul.f32 %v19341_v46, %v7610_v45  ;;  %10497 = vmatpush1.bf16.msra.mxu0 %v10496_v28  ;;  %v10548_v57 = vpack.c.bf16 %v7667_v18, %v7583_v30  ;;  %v10584_v26 = vpack.c.bf16 %v17898_v33, %v17852_v55  ;;  %v19343_v18 = vld [vmem:[#allocation56_spill] sm:$0xff] }
 0x6aa   :  { %v7693_v54 = vsel %vm1073_vm7, %v7690_v59, %v19342_v31  ;;  %v7694_v34 = vsel %vm1073_vm7, %v7688_v60, %v7690_v59  ;;  %v9060_v0 = vrot.slane %v16659_v14, %v19304_v58  ;;  %v7896_v30 = vrot.slane %v16687_v5, %v19303_v62  ;;  %v7856_v46 = vpop.permute.xlu1 %7855 }
 0x6ab   :  { %v10546_v9 = vpack.c.bf16 %v7668_v1, %v7584_v50  ;;  %v10530_v49 = vpack.c.bf16 %v17893_v53, %v17847_v3  ;;  %v7751_v50 = vmul.f32 %v7732_v37, %v7694_v34  ;;  %v7752_v28 = vmul.f32 %v7736_v44, %v7693_v54 }
 0x6ac   :  { %v17925_v45 = vmul.f32 %v8996_v7, %v7694_v34  ;;  %v17927_v21 = vmul.f32 %v9000_v63, %v7693_v54  ;;  %v7779_v60 = vsel %vm1199_vm8, %v17550_v32, %v7772_v48  ;;  %v9112_v14 = vrot.slane %v16693_v41, %v19292_v6  ;;  %v7774_v7 = vpop.permute.xlu0 %7773 }
 0x6ad   :  { %10547 = vmatprep.subr.bf16.mxu1 %v10546_v9  ;;  %v7900_v39 = vrot.slane %v16687_v5, %v19304_v58  ;;  %v7904_v61 = vrot.slane %v16687_v5, %v19239_v25  ;;  %v7834_v37 = vmul.f32 %v7812_v22, %v7779_v60  ;;  %v17938_v44 = vmul.f32 %v9052_v47, %v7779_v60  ;;  %v19344_v5 = vld [vmem:[#allocation45_spill] sm:$0xff] }
 0x6ae   :  { %10549 = vmatpush1.bf16.msra.mxu1 %v10548_v57  ;;  %v9116_v63 = vrot.slane %v16693_v41, %v19303_v62  ;;  %v9120_v32 = vrot.slane %v16693_v41, %v19304_v58  ;;  %v7777_v2 = vsel %vm1199_vm8, %v7774_v7, %v19343_v18  ;;  %v7778_v1 = vsel %vm1199_vm8, %v7772_v48, %v7774_v7 }
 0x6af   :  { %v7976_v22 = vrot.slane %v19344_v5, %v19292_v6  ;;  %v7980_v47 = vrot.slane %v19344_v5, %v19303_v62  ;;  %7842 = vst [vmem:[#allocation2 + $0x1e8] sm:$0xff] %v7834_v37  ;;  %9085 = vst [vmem:[#allocation2 + $0x660] sm:$0xff] %v17938_v44  ;;  %v7835_v59 = vmul.f32 %v7816_v20, %v7778_v1  ;;  %vm19354_vm5 = vcmp.lt.s32.totalorder %v10937_v40, 8 }
 0x6b0   :  { %v7836_v9 = vmul.f32 %v7820_v12, %v7777_v2  ;;  %v17954_v41 = vmul.f32 %v9056_v27, %v7778_v1  ;;  %v17956_v57 = vmul.f32 %v9060_v0, %v7777_v2  ;;  %v7863_v31 = vsel %vm1381_vm10, %v17682_v19, %v7856_v46  ;;  %v7858_v27 = vpop.permute.xlu0 %7857  ;;  %v19345_v19 = vld [vmem:[#allocation33_spill] sm:$0xff]  ;;  %vm19355_vm6 = vmmov %vm19354_vm5 }
 0x6b1   :  { %v10498_v54 = vpack.c.bf16 %v7834_v37, %v7750_v4  ;;  %v10500_v34 = vpack.c.bf16 %v17580_v11, %v17572_v10  ;;  %v10536_v48 = vpack.c.bf16 %v17938_v44, %v17903_v29  ;;  %7843 = vst [vmem:[#allocation2 + $0x1f0] sm:$0xff] %v7835_v59  ;;  %v7918_v20 = vmul.f32 %v7896_v30, %v7863_v31  ;;  %v7938_v10 = vpop.permute.xlu1 %7937  ;;  %vm19358_vm7 = vmmov %vm19354_vm5 }
 0x6b2   :  { %7844 = vst [vmem:[#allocation2 + $0x1f8] sm:$0xff] %v7836_v9  ;;  %9086 = vst [vmem:[#allocation2 + $0x668] sm:$0xff] %v17954_v41  ;;  %v17967_v12 = vmul.f32 %v9112_v14, %v7863_v31  ;;  %v10550_v0 = vpack.c.bf16 %v7836_v9, %v7752_v28  ;;  %v10552_v60 = vpack.c.bf16 %v7835_v59, %v7751_v50  ;;  %v19346_v28 = vld [vmem:[#allocation34_spill] sm:$0xff] }
 0x6b3   :  { %9087 = vst [vmem:[#allocation2 + $0x670] sm:$0xff] %v17956_v57  ;;  %v7861_v4 = vsel %vm1381_vm10, %v7858_v27, %v19345_v19  ;;  %v7862_v11 = vsel %vm1381_vm10, %v7856_v46, %v7858_v27  ;;  %10499 = vmatprep.subr.bf16.mxu0 %v10498_v54  ;;  %v10534_v37 = vpack.c.bf16 %v17954_v41, %v17925_v45  ;;  %vm19359_vm8 = vmmov %vm19354_vm5  ;;  %vm19361_vm10 = vcmp.lt.s32.totalorder %v10937_v40, 7 }
 0x6b4   :  { %v10588_v30 = vpack.c.bf16 %v17956_v57, %v17927_v21  ;;  %v7919_v14 = vmul.f32 %v7900_v39, %v7862_v11  ;;  %v7920_v7 = vmul.f32 %v7904_v61, %v7861_v4  ;;  %v17978_v18 = vmul.f32 %v9116_v63, %v7862_v11  ;;  %10501 = vmatpush1.bf16.msra.mxu0 %v10500_v34  ;;  %v7940_v9 = vpop.permute.xlu0 %7939  ;;  %v19352_v34 = vld [vmem:[#allocation110_spill] sm:$0xff]  ;;  %vm19362_vm9 = vmmov %vm19361_vm10 }
 0x6b5   :  { %v17980_v50 = vmul.f32 %v9120_v32, %v7861_v4  ;;  %v7948_v2 = vsel %vm19347_vm1, %v19346_v28, %v7938_v10  ;;  %v7984_v1 = vrot.slane %v19344_v5, %v19304_v58  ;;  %v7988_v46 = vrot.slane %v19344_v5, %v19239_v25  ;;  %10551 = vmatprep.subr.bf16.mxu1 %v10550_v0  ;;  %v7942_v61 = vpop.permute.xlu1 %7941  ;;  %v19349_v32 = vld [vmem:[#allocation59_spill] sm:$0xff]  ;;  %v19353_v4 = vld [vmem:[#allocation109_spill] sm:$0xff]  ;;  %vm19364_vm12 = vmmov %vm19362_vm9 }
 0x6b6   :  { %v8001_v59 = vmul.f32 %v7976_v22, %v7948_v2  ;;  %10553 = vmatpush1.bf16.msra.mxu1 %v10552_v60  ;;  %v7947_v39 = vsel %vm19348_vm2, %v7938_v10, %v7940_v9  ;;  %v7945_v31 = vsel %vm19350_vm3, %v7942_v61, %v19349_v32  ;;  %v7946_v54 = vsel %vm19351_vm4, %v7940_v9, %v7942_v61  ;;  %v19356_v61 = vld [vmem:[#allocation51_spill] sm:$0xff]  ;;  %vm19365_vm11 = vmmov %vm19362_vm9 }
 0x6b7   :  { %v8002_v63 = vmul.f32 %v7980_v47, %v7947_v39  ;;  %v8060_v5 = vrot.slane %v19352_v34, %v19292_v6  ;;  %v8003_v27 = vmul.f32 %v7984_v1, %v7946_v54  ;;  %v8004_v22 = vmul.f32 %v7988_v46, %v7945_v31  ;;  %vm19373_vm1 = vmmov %vm19368_vm0 }
 0x6b8   :  { %8009 = vst [vmem:[#allocation2 + $0x260] sm:$0xff] %v8001_v59  ;;  %v8064_v0 = vrot.slane %v19352_v34, %v19303_v62  ;;  %v8022_v60 = vpop.permute.xlu0 %8021  ;;  %v10504_v28 = vpack.c.bf16 %v8001_v59, %v17707_v43  ;;  %v8068_v1 = vrot.slane %v19352_v34, %v19304_v58  ;;  %v8072_v46 = vrot.slane %v19352_v34, %v19239_v25  ;;  %v19360_v34 = vld [vmem:[#allocation52_spill] sm:$0xff] }
 0x6b9   :  { %v10502_v19 = vpack.c.bf16 %v8002_v63, %v7918_v20  ;;  %v8032_v47 = vsel %vm19354_vm5, %v19353_v4, %v8022_v60  ;;  %v8024_v11 = vpop.permute.xlu1 %8023  ;;  %v10554_v10 = vpack.c.bf16 %v8004_v22, %v7920_v7  ;;  %v10556_v2 = vpack.c.bf16 %v8003_v27, %v7919_v14  ;;  %v19357_v14 = vld [vmem:[#allocation63_spill] sm:$0xff] }
 0x6ba   :  { %v8085_v9 = vmul.f32 %v8060_v5, %v8032_v47  ;;  %v8031_v39 = vsel %vm19355_vm6, %v8022_v60, %v8024_v11  ;;  %v8144_v63 = vrot.slane %v19356_v61, %v19292_v6  ;;  %v8148_v27 = vrot.slane %v19356_v61, %v19303_v62 }
 0x6bb   :  { %10503 = vmatprep.subr.bf16.mxu0 %v10502_v19  ;;  %v8086_v20 = vmul.f32 %v8064_v0, %v8031_v39  ;;  %10555 = vmatprep.subr.bf16.mxu1 %v10554_v10  ;;  %v8152_v0 = vrot.slane %v19356_v61, %v19304_v58  ;;  %v8156_v60 = vrot.slane %v19356_v61, %v19239_v25  ;;  %v19363_v10 = vld [vmem:[#allocation61_spill] sm:$0xff]  ;;  %v19366_v39 = vld [vmem:[#allocation64_spill] sm:$0xff]  ;;  %vm19375_vm2 = vcmp.lt.s32.totalorder %v10937_v40, 127 }
 0x6bc   :  { %10505 = vmatpush1.bf16.msra.mxu0 %v10504_v28  ;;  %8093 = vst [vmem:[#allocation2 + $0x2a0] sm:$0xff] %v8085_v9  ;;  %v8026_v43 = vpop.permute.xlu0 %8025  ;;  %10557 = vmatpush1.bf16.msra.mxu1 %v10556_v2  ;;  %vm19376_vm3 = vmmov %vm19375_vm2  ;;  %vm19382_vm6 = vcmp.lt.s32.totalorder %v10937_v40, 121  ;;  %v10586_v56 = vpack.c.bf16 %v9357_v51, %v9349_v52 }
 0x6bd   :  { %8094 = vst [vmem:[#allocation2 + $0x2a8] sm:$0xff] %v8086_v20  ;;  %v8029_v7 = vsel %vm19358_vm7, %v8026_v43, %v19357_v14  ;;  %v8030_v59 = vsel %vm19359_vm8, %v8024_v11, %v8026_v43  ;;  %v8106_v32 = vpop.permute.xlu1 %8105  ;;  %vm19377_vm4 = vmmov %vm19375_vm2 }
 0x6be   :  { %v8087_v31 = vmul.f32 %v8068_v1, %v8030_v59  ;;  %v8088_v54 = vmul.f32 %v8072_v46, %v8029_v7  ;;  %v8116_v5 = vsel %vm19361_vm10, %v19360_v34, %v8106_v32  ;;  %v8228_v1 = vrot.slane %v19366_v39, %v19292_v6  ;;  %v19367_v7 = vld [vmem:[#allocation66_spill] sm:$0xff]  ;;  %vm19379_vm5 = vmmov %vm19375_vm2 }
 0x6bf   :  { %v8169_v22 = vmul.f32 %v8144_v63, %v8116_v5  ;;  %v8232_v63 = vrot.slane %v19366_v39, %v19303_v62  ;;  %vm19383_vm7 = vmmov %vm19382_vm6 }
 0x6c0   :  { %8095 = vst [vmem:[#allocation2 + $0x2b0] sm:$0xff] %v8087_v31  ;;  %8096 = vst [vmem:[#allocation2 + $0x2b8] sm:$0xff] %v8088_v54  ;;  %v8108_v19 = vpop.permute.xlu0 %8107 }
 0x6c1   :  { %8177 = vst [vmem:[#allocation2 + $0x2e0] sm:$0xff] %v8169_v22  ;;  %v8115_v4 = vsel %vm19362_vm9, %v8106_v32, %v8108_v19  ;;  %v8110_v47 = vpop.permute.xlu1 %8109  ;;  %v10508_v5 = vpack.c.bf16 %v8169_v22, %v8085_v9  ;;  %vm19385_vm8 = vmmov %vm19382_vm6  ;;  %vm19389_vm9 = vcmp.lt.s32.totalorder %v10937_v40, 120  ;;  %v9317_v40 = vld [vmem:[#allocation2 + $0x538] sm:$0xff] }
 0x6c2   :  { %v8170_v11 = vmul.f32 %v8148_v27, %v8115_v4  ;;  %v8113_v28 = vsel %vm19364_vm12, %v8110_v47, %v19363_v10  ;;  %v8114_v2 = vsel %vm19365_vm11, %v8108_v19, %v8110_v47  ;;  %v19370_v47 = vld [vmem:[#allocation62_spill] sm:$0xff]  ;;  %v19371_v10 = vld [vmem:[#allocation65_spill] sm:$0xff]  ;;  %vm19387_vm10 = vmmov %vm19382_vm6 }
 0x6c3   :  { %v8171_v46 = vmul.f32 %v8152_v0, %v8114_v2  ;;  %v8172_v61 = vmul.f32 %v8156_v60, %v8113_v28  ;;  %v8236_v0 = vrot.slane %v19366_v39, %v19304_v58  ;;  %v8240_v60 = vrot.slane %v19366_v39, %v19239_v25  ;;  %vm19390_vm12 = vmmov %vm19389_vm9 }
 0x6c4   :  { %v8190_v43 = vpop.permute.xlu0 %8189  ;;  %v10506_v14 = vpack.c.bf16 %v8170_v11, %v8086_v20  ;;  %v8320_v11 = vrot.slane %v19370_v47, %v19292_v6  ;;  %vm19391_vm11 = vmmov %vm19389_vm9 }
 0x6c5   :  { %v8200_v59 = vsel %vm19368_vm0, %v19367_v7, %v8190_v43  ;;  %v8192_v32 = vpop.permute.xlu1 %8191  ;;  %v10558_v34 = vpack.c.bf16 %v8172_v61, %v8088_v54  ;;  %v10560_v27 = vpack.c.bf16 %v8171_v46, %v8087_v31  ;;  %v9258_v54 = vld [vmem:[#allocation2 + $0x360] sm:$0xff]  ;;  %v9259_v31 = vld [vmem:[#allocation2 + $0x368] sm:$0xff]  ;;  %vm19393_vm0 = vmmov %vm19389_vm9 }
 0x6c6   :  { %v8253_v4 = vmul.f32 %v8228_v1, %v8200_v59  ;;  %v8199_v19 = vsel %vm19369_vm14, %v8190_v43, %v8192_v32  ;;  %10507 = vmatprep.subr.bf16.mxu0 %v10506_v14  ;;  %v8324_v14 = vrot.slane %v19370_v47, %v19303_v62  ;;  %v8328_v59 = vrot.slane %v19370_v47, %v19304_v58 }
 0x6c7   :  { %v8254_v20 = vmul.f32 %v8232_v63, %v8199_v19  ;;  %10559 = vmatprep.subr.bf16.mxu1 %v10558_v34  ;;  %10509 = vmatpush1.bf16.msra.mxu0 %v10508_v5  ;;  %v19374_v63 = vld [vmem:[#allocation69_spill] sm:$0xff]  ;;  %v8332_v34 = vrot.slane %v19370_v47, %v19239_v25  ;;  %v19380_v47 = vld [vmem:[#allocation68_spill] sm:$0xff] }
 0x6c8   :  { %8261 = vst [vmem:[#allocation2 + $0x320] sm:$0xff] %v8253_v4  ;;  %v8194_v9 = vpop.permute.xlu0 %8193  ;;  %10561 = vmatpush1.bf16.msra.mxu1 %v10560_v27  ;;  %v10512_v22 = vpack.c.bf16 %v9258_v54, %v8253_v4  ;;  %v9260_v5 = vld [vmem:[#allocation2 + $0x370] sm:$0xff]  ;;  %v19378_v54 = vld [vmem:[#allocation71_spill] sm:$0xff] }
 0x6c9   :  { %v8197_v28 = vsel %vm19372_vm15, %v8194_v9, %v19371_v10  ;;  %v8198_v2 = vsel %vm19373_vm1, %v8192_v32, %v8194_v9  ;;  %v8284_v39 = vpop.permute.xlu1 %8283  ;;  %v10510_v1 = vpack.c.bf16 %v9259_v31, %v8254_v20  ;;  %v9261_v32 = vld [vmem:[#allocation2 + $0x378] sm:$0xff]  ;;  %v8404_v31 = vrot.slane %v19380_v47, %v19292_v6 }
 0x6ca   :  { %v8255_v46 = vmul.f32 %v8236_v0, %v8198_v2  ;;  %v8256_v61 = vmul.f32 %v8240_v60, %v8197_v28  ;;  %v8291_v43 = vsel %vm19375_vm2, %v19374_v63, %v8284_v39  ;;  %v8408_v28 = vrot.slane %v19380_v47, %v19303_v62 }
 0x6cb   :  { %v8345_v7 = vmul.f32 %v8320_v11, %v8291_v43  ;;  %10511 = vmatprep.subr.bf16.mxu0 %v10510_v1  ;;  %v8412_v43 = vrot.slane %v19380_v47, %v19304_v58 }
 0x6cc   :  { %v8286_v27 = vpop.permute.xlu0 %8285  ;;  %10513 = vmatpush1.bf16.msra.mxu0 %v10512_v22  ;;  %v10562_v4 = vpack.c.bf16 %v9261_v32, %v8256_v61  ;;  %v10564_v19 = vpack.c.bf16 %v9260_v5, %v8255_v46 }
 0x6cd   :  { %v8290_v0 = vsel %vm19376_vm3, %v8284_v39, %v8286_v27  ;;  %v8288_v60 = vpop.permute.xlu1 %8287  ;;  %v19381_v39 = vld [vmem:[#allocation70_spill] sm:$0xff] }
 0x6ce   :  { %v8346_v20 = vmul.f32 %v8324_v14, %v8290_v0  ;;  %v8289_v11 = vsel %vm19377_vm4, %v8286_v27, %v8288_v60  ;;  %v8296_v9 = vsel %vm19379_vm5, %v8288_v60, %v19378_v54  ;;  %10563 = vmatprep.subr.bf16.mxu1 %v10562_v4  ;;  %v8416_v14 = vrot.slane %v19380_v47, %v19239_v25 }
 0x6cf   :  { %v8347_v10 = vmul.f32 %v8328_v59, %v8289_v11  ;;  %v8348_v22 = vmul.f32 %v8332_v34, %v8296_v9  ;;  %10565 = vmatpush1.bf16.msra.mxu1 %v10564_v19  ;;  %v19384_v34 = vld [vmem:[#allocation73_spill] sm:$0xff]  ;;  %v19386_v19 = vld [vmem:[#allocation67_spill] sm:$0xff] }
 0x6d0   :  { %v8368_v2 = vpop.permute.xlu0 %8367  ;;  %v8488_v32 = vrot.slane %v19384_v34, %v19292_v6 }
 0x6d1   :  { %v8375_v1 = vsel %vm19382_vm6, %v19381_v39, %v8368_v2  ;;  %v8370_v46 = vpop.permute.xlu1 %8369  ;;  %v8500_v39 = vrot.slane %v19384_v34, %v19239_v25 }
 0x6d2   :  { %v8429_v61 = vmul.f32 %v8404_v31, %v8375_v1  ;;  %v8374_v63 = vsel %vm19383_vm7, %v8368_v2, %v8370_v46  ;;  %v19388_v31 = vld [vmem:[#allocation74_spill] sm:$0xff] }
 0x6d3   :  { %v8430_v59 = vmul.f32 %v8408_v28, %v8374_v63  ;;  %v8492_v28 = vrot.slane %v19384_v34, %v19303_v62 }
 0x6d4   :  { %v8372_v5 = vpop.permute.xlu0 %8371  ;;  %v10516_v27 = vpack.c.bf16 %v8429_v61, %v8345_v7  ;;  %v8496_v7 = vrot.slane %v19384_v34, %v19304_v58  ;;  %v19394_v34 = vld [vmem:[#allocation72_spill] sm:$0xff] }
 0x6d5   :  { %v8373_v4 = vsel %vm19385_vm8, %v8370_v46, %v8372_v5  ;;  %v8380_v0 = vsel %vm19387_vm10, %v8372_v5, %v19386_v19  ;;  %v8452_v60 = vpop.permute.xlu1 %8451  ;;  %v10514_v11 = vpack.c.bf16 %v8430_v59, %v8346_v20  ;;  %v19392_v59 = vld [vmem:[#allocation77_spill] sm:$0xff]  ;;  %v8572_v5 = vrot.slane %v19394_v34, %v19292_v6  ;;  %v19395_v19 = vld [vmem:[#allocation75_spill] sm:$0xff] }
 0x6d6   :  { %v8431_v54 = vmul.f32 %v8412_v43, %v8373_v4  ;;  %v8432_v9 = vmul.f32 %v8416_v14, %v8380_v0  ;;  %v8459_v47 = vsel %vm19389_vm9, %v19388_v31, %v8452_v60 }
 0x6d7   :  { %v8513_v2 = vmul.f32 %v8488_v32, %v8459_v47  ;;  %10515 = vmatprep.subr.bf16.mxu0 %v10514_v11 }
 0x6d8   :  { %v8454_v1 = vpop.permute.xlu0 %8453  ;;  %10517 = vmatpush1.bf16.msra.mxu0 %v10516_v27  ;;  %v10566_v20 = vpack.c.bf16 %v8432_v9, %v8348_v22  ;;  %v10568_v46 = vpack.c.bf16 %v8431_v54, %v8347_v10  ;;  %v8576_v10 = vrot.slane %v19394_v34, %v19303_v62  ;;  %v8580_v54 = vrot.slane %v19394_v34, %v19304_v58 }
 0x6d9   :  { %8521 = vst [vmem:[#allocation2 + $0x420] sm:$0xff] %v8513_v2  ;;  %v8458_v61 = vsel %vm19390_vm12, %v8452_v60, %v8454_v1  ;;  %v8456_v63 = vpop.permute.xlu1 %8455  ;;  %v8584_v62 = vrot.slane %v19394_v34, %v19239_v25  ;;  %v9309_v25 = vld [vmem:[#allocation2 + $0x4f8] sm:$0xff] }
 0x6da   :  { %v8514_v43 = vmul.f32 %v8492_v28, %v8458_v61  ;;  %v8457_v14 = vsel %vm19391_vm11, %v8454_v1, %v8456_v63  ;;  %v8464_v32 = vsel %vm19393_vm0, %v8456_v63, %v19392_v59  ;;  %10567 = vmatprep.subr.bf16.mxu1 %v10566_v20  ;;  %v9299_v28 = vld [vmem:[#allocation2 + $0x4a8] sm:$0xff]  ;;  %v9306_v63 = vld [vmem:[#allocation2 + $0x4e0] sm:$0xff] }
 0x6db   :  { %v8515_v27 = vmul.f32 %v8496_v7, %v8457_v14  ;;  %v8516_v22 = vmul.f32 %v8500_v39, %v8464_v32  ;;  %10569 = vmatpush1.bf16.msra.mxu1 %v10568_v46  ;;  %v19396_v39 = vld [vmem:[#allocation79_spill] sm:$0xff]  ;;  %v10522_v58 = vpack.c.bf16 %v17669_v35, %v9299_v28  ;;  %v9301_v14 = vld [vmem:[#allocation2 + $0x4b8] sm:$0xff] }
 0x6dc   :  { %8522 = vst [vmem:[#allocation2 + $0x428] sm:$0xff] %v8514_v43  ;;  %v8536_v4 = vpop.permute.xlu0 %8535  ;;  %v9298_v32 = vld [vmem:[#allocation2 + $0x4a0] sm:$0xff] }
 0x6dd   :  { %8523 = vst [vmem:[#allocation2 + $0x430] sm:$0xff] %v8515_v27  ;;  %8524 = vst [vmem:[#allocation2 + $0x438] sm:$0xff] %v8516_v22  ;;  %v8543_v0 = vsel %vm2621_vm13, %v19395_v19, %v8536_v4  ;;  %v8538_v60 = vpop.permute.xlu1 %8537  ;;  %v10524_v34 = vpack.c.bf16 %v9306_v63, %v9298_v32 }
 0x6de   :  { %v8597_v11 = vmul.f32 %v8572_v5, %v8543_v0  ;;  %v8542_v6 = vsel %vm2621_vm13, %v8536_v4, %v8538_v60  ;;  %v10574_v5 = vpack.c.bf16 %v9309_v25, %v9301_v14  ;;  %v9300_v4 = vld [vmem:[#allocation2 + $0x4b0] sm:$0xff] }
 0x6df   :  { %v8598_v9 = vmul.f32 %v8576_v10, %v8542_v6  ;;  %v9308_v10 = vld [vmem:[#allocation2 + $0x4f0] sm:$0xff] }
 0x6e0   :  { %v8540_v31 = vpop.permute.xlu0 %8539  ;;  %v10520_v47 = vpack.c.bf16 %v8597_v11, %v8513_v2  ;;  %v10576_v35 = vpack.c.bf16 %v9308_v10, %v9300_v4 }
 0x6e1   :  { %v8541_v7 = vsel %vm2621_vm13, %v8538_v60, %v8540_v31  ;;  %v8548_v1 = vsel %vm2621_vm13, %v8540_v31, %v19396_v39  ;;  %v10518_v20 = vpack.c.bf16 %v8598_v9, %v8514_v43  ;;  %v9325_v43 = vld [vmem:[#allocation2 + $0x578] sm:$0xff] }
 0x6e2   :  { %v8599_v46 = vmul.f32 %v8580_v54, %v8541_v7  ;;  %v8600_v61 = vmul.f32 %v8584_v62, %v8548_v1  ;;  %v10578_v19 = vpack.c.bf16 %v9325_v43, %v9317_v40 }
 0x6e3   :  { %10519 = vmatprep.subr.bf16.mxu0 %v10518_v20 }
 0x6e4   :  { %10521 = vmatpush1.bf16.msra.mxu0 %v10520_v47  ;;  %v10570_v59 = vpack.c.bf16 %v8600_v61, %v8516_v22  ;;  %v10572_v2 = vpack.c.bf16 %v8599_v46, %v8515_v27  ;;  %v9333_v27 = vld [vmem:[#allocation2 + $0x5b8] sm:$0xff] }
 0x6e5   :  { %10523 = vmatprep.subr.bf16.mxu0 %v10522_v58  ;;  %v9341_v22 = vld [vmem:[#allocation2 + $0x5f8] sm:$0xff] }
 0x6e6   :  { %10571 = vmatprep.subr.bf16.mxu1 %v10570_v59  ;;  %v10582_v0 = vpack.c.bf16 %v9341_v22, %v9333_v27 }
 0x6e7   :  { %10573 = vmatpush1.bf16.msra.mxu1 %v10572_v2 }
 0x6e8   :  { %10525 = vmatpush1.bf16.msra.mxu0 %v10524_v34  ;;  %10575 = vmatprep.subr.bf16.mxu1 %v10574_v5 }
 0x6e9   :  { %10527 = vmatprep.subr.bf16.mxu0 %v10526_v42 }
 0x6eb   :  { %10577 = vmatpush1.bf16.msra.mxu1 %v10576_v35 }
 0x6ec   :  { %10529 = vmatpush1.bf16.msra.mxu0 %v10528_v17  ;;  %10579 = vmatprep.subr.bf16.mxu1 %v10578_v19 }
 0x6ed   :  { %10531 = vmatprep.subr.bf16.mxu0 %v10530_v49 }
 0x6ef   :  { %10581 = vmatpush1.bf16.msra.mxu1 %v10580_v24 }
 0x6f0   :  { %10533 = vmatpush1.bf16.msra.mxu0 %v10532_v36  ;;  %10583 = vmatprep.subr.bf16.mxu1 %v10582_v0 }
 0x6f1   :  { %10535 = vmatprep.subr.bf16.mxu0 %v10534_v37 }
 0x6f3   :  { %10585 = vmatpush1.bf16.msra.mxu1 %v10584_v26 }
 0x6f4   :  { %10537 = vmatpush1.bf16.msra.mxu0 %v10536_v48  ;;  %10587 = vmatprep.subr.bf16.mxu1 %v10586_v56 }
 0x6f5   :  { %9570 = vmatprep.subr.mxu0 %v17978_v18 }
 0x6f7   :  { %10589 = vmatpush1.bf16.msra.mxu1 %v10588_v30  ;;  %v9370_v23 = vpop.permute.xlu1 %9369 }
 0x6f8   :  { %9571 = vmatpush1.msra.mxu0 %v17967_v12  ;;  %9641 = vmatprep.subr.mxu1 %v9365_v15 }
 0x6f9   :  { %9583 = vmatmul.mubr.f32.vlgmr.msra.gmra.mrb[10].mxu0 %v17678_v38 }
 0x6fb   :  { %9642 = vmatpush1.msra.mxu1 %v17980_v50 }
 0x6fc   :  { %9654 = vmatmul.mubr.f32.vlgmr.msra.gmra.mrb[10].mxu1 %v17678_v38 }
 0x765   :  { %v9442_v16 = vpop.f32.mrb[8].mxu0 }
 0x766   :  { %v9443_v8 = vadd.f32 %v9442_v16, %v9370_v23  ;;  %v9444_v17 = vpop.f32.mrb[9].mxu0 }
 0x767   :  { %v9445_v42 = vadd.f32 %v9444_v17, %v9370_v23 }
 0x769   :  { %v9668_v24 = vcombine.low %v9443_v8, %v9445_v42 }
 0x76b   :  { %9676 = vst [vmem:[%s18178_s10] sm:$0xff] %v9668_v24 }
 0x76c   :  { %v9513_v3 = vpop.f32.mrb[8].mxu1 }
 0x76d   :  { %v9515_v55 = vpop.f32.mrb[9].mxu1  ;;  %v9514_v13 = vadd.f32 %v9513_v3, %v9370_v23 }
 0x76e   :  { %v9516_v53 = vadd.f32 %v9515_v55, %v9370_v23 }
 0x770   :  { %v9669_v33 = vcombine.low %v9514_v13, %v9516_v53 }
 0x772   :  { %9677 = vst [vmem:[%s18178_s10 + $0x8] sm:$0xff] %v9669_v33 }
 0x7cc   :  { %v9584_v38 = vpop.f32.mrb[10].mxu0 }
 0x7cd   :  { %v9585_v29 = vadd.f32 %v9584_v38, %v9370_v23  ;;  %v9586_v36 = vpop.f32.mrb[11].mxu0 }
 0x7ce   :  { %v9587_v49 = vadd.f32 %v9586_v36, %v9370_v23 }
 0x7cf   :  { %v9655_v26 = vpop.f32.mrb[10].mxu1 }
 0x7d0   :  { %v9670_v45 = vcombine.low %v9585_v29, %v9587_v49  ;;  %v9656_v21 = vadd.f32 %v9655_v26, %v9370_v23  ;;  %v9657_v44 = vpop.f32.mrb[11].mxu1 }
 0x7d1   :  { %v9658_v41 = vadd.f32 %v9657_v44, %v9370_v23 }
 0x7d2   :  { %9678 = vst [vmem:[%s18178_s10 + $0x10] sm:$0xff] %v9670_v45 }
 0x7d3   :  { %v9671_v57 = vcombine.low %v9656_v21, %v9658_v41 }
 0x7d5   :  { %9679 = vst [vmem:[%s18178_s10 + $0x18] sm:$0xff] %v9671_v57 }

</bundles_post_ra>
